<compile_context>
chip_gen: v7x
topology: tpu7x:2x2x1
jax: 0.10.0
libtpu: 0.0.40
codegen_flags: <defaults>
</compile_context>

<pallas_src>
import functools

import jax
import jax.numpy as jnp
from jax import lax
from jax.experimental import pallas as pl
from jax.experimental.pallas import tpu as pltpu

BN_EPS = 1e-5
KSIZE = 5
OUT_PAD = 128   # lane-dense output row: lanes 0:3 trans, 3:7 quat, rest zero
CIN_PAD = 128   # input_proj output padded 64 -> 128 lanes (128-aligned im2col)
DILATIONS = (1, 2, 4, 8)


# ------------------------------ static helpers ------------------------------ #
def _kept_offsets(win_len, dilation):
    offs = []
    for k in range(KSIZE):
        off = (k - (KSIZE - 1) // 2) * dilation
        if abs(off) < win_len:          # |off| >= L taps read only zero padding
            offs.append(off)
    return offs


def _distinct_offsets(win_len):
    offs = set()
    for d in DILATIONS:
        for off in _kept_offsets(win_len, d):
            if off != 0:
                offs.add(off)
    return sorted(offs)


def _round_up(a, b):
    return ((a + b - 1) // b) * b


# ---------------------------------- kernel ---------------------------------- #
def imu_encoder_kernel(x_ref, rl_ref, pool_ref,
                       wp, bp,
                       w11, b11, w12, b12,
                       w21, b21, w22, b22,
                       w31, b31, w32, b32,
                       w41, b41, w42, b42,
                       wfc, bfc, ws, bs, wh, bh,
                       out_ref, xcat_ref, *, win_len, mask_in_bf16):
    L = win_len
    x = x_ref[...]                        # (M, 6) f32, M = BT * L
    rl = rl_ref[...]                      # (M, 1) int32 within-window index
    m = x.shape[0]

    # Per-offset boundary masks, computed once and reused by every conv
    # (~8 distinct offsets instead of ~38 taps; JAX does not CSE these).
    mdt = jnp.bfloat16 if mask_in_bf16 else jnp.float32
    masks = {}
    for off in _distinct_offsets(L):
        valid = (rl < (L - off)) if off > 0 else (rl >= (-off))
        masks[off] = valid.astype(mdt)    # (M, 1) of 0/1

    def conv(h, w_ref, b_ref, dilation, extra=None):
        """Dilated 'same' Conv1d (k=5) as ONE im2col matmul.

        Shifted+masked taps are written side by side into the lane-aligned
        scratch, then a single (M, K)@(K, Cout) bf16 matmul with f32
        accumulation replaces 5 small matmuls + 4 f32 accumulator adds.
        `extra` appends the residual-downsample input columns so the 1x1
        downsample conv rides in the same matmul.
        """
        cin = h.shape[1]
        hb = h.astype(jnp.bfloat16)
        col = 0
        for k in range(KSIZE):
            off = (k - (KSIZE - 1) // 2) * dilation   # tap reads h[t + off]
            if abs(off) >= L:
                continue                               # entirely in zero padding
            if off == 0:
                tap = hb
            else:
                # circular roll over all M rows (shift must be non-negative)
                rolled = pltpu.roll(h, shift=(-off) % m, axis=0)   # f32 roll
                if mask_in_bf16:
                    tap = rolled.astype(jnp.bfloat16) * masks[off]  # bf16 VALU
                else:
                    tap = (rolled * masks[off]).astype(jnp.bfloat16)  # f32 (v5e)
            xcat_ref[:, col:col + cin] = tap
            col += cin
        if extra is not None:
            ce = extra.shape[1]
            xcat_ref[:, col:col + ce] = extra
            col += ce
        return jnp.dot(xcat_ref[:, 0:col], w_ref[...],
                       preferred_element_type=jnp.float32) + b_ref[...]

    # input_proj (Conv1d k=1), output lane-padded 64 -> 128
    h = jnp.dot(x, wp[...], preferred_element_type=jnp.float32) + bp[...]   # (M, 128)

    # TCN stack (BN folded into weights, dropout = identity at inference).
    # Blocks 1 & 3: 1x1 downsample folded into conv2's matmul (extra=...).
    h1 = jnp.maximum(conv(h, w11, b11, 1), 0.0)
    h = jnp.maximum(conv(h1, w12, b12, 1, extra=h.astype(jnp.bfloat16)), 0.0)   # 64->128, d=1

    h1 = jnp.maximum(conv(h, w21, b21, 2), 0.0)
    h = jnp.maximum(conv(h1, w22, b22, 2) + h, 0.0)                             # 128->128, d=2

    h1 = jnp.maximum(conv(h, w31, b31, 4), 0.0)
    h = jnp.maximum(conv(h1, w32, b32, 4, extra=h.astype(jnp.bfloat16)), 0.0)   # 128->256, d=4

    h1 = jnp.maximum(conv(h, w41, b41, 8), 0.0)
    h = jnp.maximum(conv(h1, w42, b42, 8) + h, 0.0)                             # 256->256, d=8

    # final_conv (Conv1d k=1 + BN + ReLU)
    h = jnp.maximum(jnp.dot(h.astype(jnp.bfloat16), wfc[...],
                            preferred_element_type=jnp.float32) + bfc[...], 0.0)

    # per-window global average pool as a tiny (BT, M) @ (M, feat) bf16 matmul
    feat = jnp.dot(pool_ref[...], h.astype(jnp.bfloat16),
                   preferred_element_type=jnp.float32)                          # (BT, feat)

    # shared MLP
    s = jnp.maximum(jnp.dot(feat.astype(jnp.bfloat16), ws[...],
                            preferred_element_type=jnp.float32) + bs[...], 0.0)

    # merged trans/rot heads (lane-padded f32; learned scale and the +1e-8
    # quaternion offset are already folded into wh / bh by the wrapper)
    y = jnp.dot(s, wh[...], preferred_element_type=jnp.float32) + bh[...]       # (BT, 128)

    # F.normalize(eps=1e-6) applied to the quat lanes (3:7) only:
    #   q / max(||q||, 1e-6) == q * rsqrt(max(||q||^2, 1e-12))   (EUP rsqrt)
    lane = lax.broadcasted_iota(jnp.int32, (1, OUT_PAD), 1)
    qmask = jnp.logical_and(lane >= 3, lane < 7).astype(jnp.float32)
    q2 = jnp.sum(y * y * qmask, axis=-1, keepdims=True)
    inv = lax.rsqrt(jnp.maximum(q2, 1e-12))
    out_ref[...] = y * (qmask * (inv - 1.0) + 1.0)


# ------------------------------ parameter init ------------------------------ #
def init_params(key, imu_channels=6, feat_dim=256):
    ks = iter(jax.random.split(key, 24))
    bn_fold = 1.0 / jnp.sqrt(jnp.float32(1.0 + BN_EPS))  # BN eval: gamma=1, beta=0, mean=0, var=1

    def conv_w(k, cout, cin, ksz):  # kaiming_normal, fan_out, relu
        std = (2.0 / (cout * ksz)) ** 0.5
        return jax.random.normal(k, (cout, cin, ksz), jnp.float32) * std

    def to_tap(w):   # (Cout, Cin, K) -> (K, Cin, Cout)
        return jnp.transpose(w, (2, 1, 0))

    def to_mat(w):   # (Cout, Cin, 1) -> (Cin, Cout)
        return jnp.transpose(w[:, :, 0], (1, 0))

    def xavier(k, fout, fin, gain=1.0):
        lim = gain * (6.0 / (fin + fout)) ** 0.5
        return jax.random.uniform(k, (fout, fin), jnp.float32, -lim, lim)

    p = {}
    p['wp'] = to_mat(conv_w(next(ks), 64, imu_channels, 1))        # input_proj
    p['bp'] = jnp.zeros((1, 64), jnp.float32)

    cfgs = [(64, 128), (128, 128), (128, 256), (256, 256)]
    for i, (cin, cout) in enumerate(cfgs, start=1):
        p[f'w{i}1'] = to_tap(conv_w(next(ks), cout, cin, KSIZE)) * bn_fold
        p[f'b{i}1'] = jnp.zeros((1, cout), jnp.float32)
        p[f'w{i}2'] = to_tap(conv_w(next(ks), cout, cout, KSIZE)) * bn_fold
        p[f'b{i}2'] = jnp.zeros((1, cout), jnp.float32)
        if cin != cout:
            p[f'wd{i}'] = to_mat(conv_w(next(ks), cout, cin, 1))
            p[f'bd{i}'] = jnp.zeros((1, cout), jnp.float32)

    p['wf'] = to_mat(conv_w(next(ks), feat_dim, 256, 1)) * bn_fold
    p['bf'] = jnp.zeros((1, feat_dim), jnp.float32)

    hidden = feat_dim // 2
    p['ws'] = jnp.transpose(xavier(next(ks), hidden, feat_dim))     # (feat_dim, hidden)
    p['bs'] = jnp.zeros((1, hidden), jnp.float32)
    p['wt'] = jnp.transpose(xavier(next(ks), 3, hidden))            # (hidden, 3)
    p['bt'] = jnp.zeros((1, 3), jnp.float32)
    p['wr'] = jnp.transpose(xavier(next(ks), 4, hidden, gain=0.1))  # (hidden, 4)
    p['br'] = jnp.zeros((1, 4), jnp.float32).at[0, 3].set(0.1)      # rot_head.bias[3] = 0.1
    p['scale_raw'] = jnp.zeros((1,), jnp.float32)                   # PureIMUEncoderWithScale.scale_raw
    return p


# --------------------------------- wrapper ---------------------------------- #
def _device_kind():
    try:
        return jax.devices()[0].device_kind.lower()
    except Exception:
        return ""


def _tuning(n_windows, win_len, requested_bt=None):
    kind = _device_kind()
    is_v5 = ("v5" in kind) or ("lite" in kind)
    is_v6 = ("v6" in kind) or ("trillium" in kind)
    is_v7 = ("v7" in kind) or ("7x" in kind) or ("ironwood" in kind)

    if requested_bt is not None:
        bt = int(requested_bt)
    else:
        # M = BT*L rows per grid step; larger M amortizes per-step overhead and
        # weight pushes.  v6e (128 MiB VMEM): M ~ 1024; v5e / v7x: M ~ 512.
        target_m = 1024 if is_v6 else 512
        bt = max(1, target_m // max(1, win_len))
    bt = max(1, min(bt, n_windows))
    if is_v7 and n_windows >= 16:
        bt = min(bt, n_windows // 2)       # keep grid >= 2 so both TCs get work
    # out block is (BT, 128): BT must be sublane aligned (multiple of 8); this
    # also makes M = BT*L a multiple of 8 for the (M, 6) input block.
    bt = _round_up(bt, 8)

    mask_in_bf16 = not is_v5               # v5e has no bf16 VALU -> keep f32
    vmem_limit = (96 << 20) if (is_v5 or is_v6) else (48 << 20)  # v7x: 64 MiB physical
    return bt, mask_in_bf16, vmem_limit


def _concat_conv_weight(w_taps, win_len, dilation, pad_rows_to=None,
                        wd=None, wd_pad_rows_to=None):
    """(5, Cin, Cout) tap weights -> (K_kept*Cin [+Cin_res], Cout) bf16 im2col weight."""
    pieces = []
    for k in range(KSIZE):
        off = (k - (KSIZE - 1) // 2) * dilation
        if abs(off) >= win_len:
            continue
        wk = w_taps[k]
        if pad_rows_to is not None and wk.shape[0] < pad_rows_to:
            wk = jnp.pad(wk, ((0, pad_rows_to - wk.shape[0]), (0, 0)))
        pieces.append(wk)
    if wd is not None:
        if wd_pad_rows_to is not None and wd.shape[0] < wd_pad_rows_to:
            wd = jnp.pad(wd, ((0, wd_pad_rows_to - wd.shape[0]), (0, 0)))
        pieces.append(wd)
    return jnp.concatenate(pieces, axis=0).astype(jnp.bfloat16)


def pure_imu_encoder_with_scale_forward(imu, params, seq_len, samples_per_interval,
                                        batch_tile=None):
    n_steps = seq_len - 1
    B, total, ch = imu.shape
    assert ch == 6 and total == n_steps * samples_per_interval
    L = samples_per_interval
    N = B * n_steps
    x = imu.reshape(N, L, 6).astype(jnp.float32)

    BT, mask_in_bf16, vmem_limit = _tuning(N, L, batch_tile)
    N_pad = _round_up(N, BT)
    if N_pad != N:
        x = jnp.pad(x, ((0, N_pad - N), (0, 0), (0, 0)))
    M = BT * L
    x_flat = x.reshape(N_pad * L, 6)

    # constrained learnable scale: clamp raw, 1 + 0.1*tanh, clamp [0.9, 1.1]
    scale_raw = jnp.clip(params['scale_raw'], -2.0, 2.0)
    scale = jnp.clip(1.0 + 0.1 * jnp.tanh(scale_raw), 0.9, 1.1)       # (1,)

    # input_proj lane-padded 64 -> 128 so every im2col piece is 128-lane aligned
    wp = jnp.pad(params['wp'], ((0, 0), (0, CIN_PAD - params['wp'].shape[1])))
    bp = jnp.pad(params['bp'], ((0, 0), (0, CIN_PAD - params['bp'].shape[1])))

    # Per-conv im2col weights: kept taps (|off| < L) concatenated along K; the
    # 1x1 residual-downsample weights of blocks 1 & 3 are appended to conv2's K.
    w11 = _concat_conv_weight(params['w11'], L, 1, pad_rows_to=CIN_PAD)
    w12 = _concat_conv_weight(params['w12'], L, 1,
                              wd=params['wd1'], wd_pad_rows_to=CIN_PAD)
    b12 = params['b12'] + params['bd1']
    w21 = _concat_conv_weight(params['w21'], L, 2)
    w22 = _concat_conv_weight(params['w22'], L, 2)
    w31 = _concat_conv_weight(params['w31'], L, 4)
    w32 = _concat_conv_weight(params['w32'], L, 4, wd=params['wd3'])
    b32 = params['b32'] + params['bd3']
    w41 = _concat_conv_weight(params['w41'], L, 8)
    w42 = _concat_conv_weight(params['w42'], L, 8)
    k_max = max(w.shape[0] for w in (w11, w12, w21, w22, w31, w32, w41, w42))

    # Merged lane-padded heads (kept f32 to protect final pose precision):
    # learned scale folded into the trans columns, +1e-8 offset into the bias.
    hidden = params['wt'].shape[0]
    wh = jnp.zeros((hidden, OUT_PAD), jnp.float32)
    wh = wh.at[:, 0:3].set(params['wt'] * scale).at[:, 3:7].set(params['wr'])
    bh = jnp.zeros((1, OUT_PAD), jnp.float32)
    bh = bh.at[:, 0:3].set(params['bt'] * scale).at[:, 3:7].set(params['br'] + 1e-8)

    flat = [
        wp, bp,
        w11, params['b11'], w12, b12,
        w21, params['b21'], w22, params['b22'],
        w31, params['b31'], w32, b32,
        w41, params['b41'], w42, params['b42'],
        params['wf'].astype(jnp.bfloat16), params['bf'],
        params['ws'].astype(jnp.bfloat16), params['bs'],
        wh, bh,
    ]

    # Hoisted helper tensors: within-window row index + per-window averaging
    # matrix (pool matmul operands in bf16, f32 accumulation in-kernel).
    rl = (jnp.arange(M, dtype=jnp.int32) % L).reshape(M, 1)
    win_id = jnp.arange(M, dtype=jnp.int32) // L
    pool = ((win_id[None, :] == jnp.arange(BT, dtype=jnp.int32)[:, None])
            .astype(jnp.float32) / L).astype(jnp.bfloat16)

    def full_spec(shape):
        nd = len(shape)
        return pl.BlockSpec(shape, lambda n, _nd=nd: (0,) * _nd)

    in_specs = ([pl.BlockSpec((M, 6), lambda n: (n, 0)),
                 full_spec(rl.shape), full_spec(pool.shape)]
                + [full_spec(a.shape) for a in flat])

    out = pl.pallas_call(
        functools.partial(imu_encoder_kernel, win_len=L, mask_in_bf16=mask_in_bf16),
        out_shape=jax.ShapeDtypeStruct((N_pad, OUT_PAD), jnp.float32),
        grid=(N_pad // BT,),
        in_specs=in_specs,
        out_specs=pl.BlockSpec((BT, OUT_PAD), lambda n: (n, 0)),
        scratch_shapes=[pltpu.VMEM((M, k_max), jnp.bfloat16)],   # im2col slab
        compiler_params=pltpu.CompilerParams(
            dimension_semantics=("parallel",),    # window tiles are independent
            vmem_limit_bytes=vmem_limit),
    )(x_flat, rl, pool, *flat)

    poses = out[:N, :7].reshape(B, n_steps, 7)
    return {'poses': poses, 'learned_scale': scale[0], 'scale_raw': scale_raw[0]}


# ----------------------------- pure-JAX reference --------------------------- #
def reference_forward(imu, params, seq_len, samples_per_interval):
    with jax.default_matmul_precision("highest"):
        n_steps = seq_len - 1
        B = imu.shape[0]
        x = imu.reshape(B * n_steps, samples_per_interval, 6).astype(jnp.float32)
        L = x.shape[1]

        def conv5(h, w, b, d):
            pad = (KSIZE - 1) * d // 2
            hp = jnp.pad(h, ((0, 0), (pad, pad), (0, 0)))
            acc = jnp.zeros((h.shape[0], L, w.shape[2]), jnp.float32)
            for k in range(KSIZE):
                acc = acc + jnp.einsum('nlc,cd->nld', hp[:, k * d:k * d + L, :], w[k])
            return acc + b

        h = jnp.einsum('nlc,cd->nld', x, params['wp']) + params['bp']
        for i, d, down in [(1, 1, True), (2, 2, False), (3, 4, True), (4, 8, False)]:
            out = jnp.maximum(conv5(h, params[f'w{i}1'], params[f'b{i}1'], d), 0.0)
            out = conv5(out, params[f'w{i}2'], params[f'b{i}2'], d)
            res = (jnp.einsum('nlc,cd->nld', h, params[f'wd{i}']) + params[f'bd{i}']) if down else h
            h = jnp.maximum(out + res, 0.0)
        h = jnp.maximum(jnp.einsum('nlc,cd->nld', h, params['wf']) + params['bf'], 0.0)
        feat = jnp.mean(h, axis=1)
        s = jnp.maximum(feat @ params['ws'] + params['bs'], 0.0)
        trans = s @ params['wt'] + params['bt']
        quat = s @ params['wr'] + params['br'] + 1e-8
        quat = quat / jnp.maximum(jnp.linalg.norm(quat, axis=-1, keepdims=True), 1e-6)
        scale_raw = jnp.clip(params['scale_raw'], -2.0, 2.0)
        scale = jnp.clip(1.0 + 0.1 * jnp.tanh(scale_raw), 0.9, 1.1)
        poses = jnp.concatenate([trans * scale, quat], axis=-1)
        return poses.reshape(B, n_steps, 7)


# ----------------------------------- main ------------------------------------ #
if __name__ == "__main__":
    SEQ_LEN = 5                 # -> n_steps = 4
    SPI = 16                    # samples_per_interval
    B = 2

    key = jax.random.PRNGKey(0)
    pkey, dkey = jax.random.split(key)
    params = init_params(pkey)
    imu = jax.random.normal(dkey, (B, (SEQ_LEN - 1) * SPI, 6), jnp.float32)

    out = pure_imu_encoder_with_scale_forward(imu, params, SEQ_LEN, SPI)
    poses = jax.block_until_ready(out['poses'])

    ref = reference_forward(imu, params, SEQ_LEN, SPI)
    assert poses.shape == (B, SEQ_LEN - 1, 7)
    assert bool(jnp.all(jnp.isfinite(poses)))
    # Conv / pool / shared-MLP matmul operands are bf16 (f32 accumulation) ->
    # compare against the full-f32 reference with a relaxed tolerance.
    assert bool(jnp.allclose(poses, ref, atol=3e-2, rtol=3e-2)), \
        "mismatch vs pure-JAX reference"
    print("KERNEL_OK")
</pallas_src>

<mosaic_0001>
module attributes {stable_mosaic.version = 11 : i64} {
  func.func @imu_encoder_kernel(%arg0: i32, %arg1: memref<128x6xf32, #tpu.memory_space<vmem>>, %arg2: memref<128x1xi32, #tpu.memory_space<vmem>>, %arg3: memref<8x128xbf16, #tpu.memory_space<vmem>>, %arg4: memref<6x128xf32, #tpu.memory_space<vmem>>, %arg5: memref<1x128xf32, #tpu.memory_space<vmem>>, %arg6: memref<640x128xbf16, #tpu.memory_space<vmem>>, %arg7: memref<1x128xf32, #tpu.memory_space<vmem>>, %arg8: memref<768x128xbf16, #tpu.memory_space<vmem>>, %arg9: memref<1x128xf32, #tpu.memory_space<vmem>>, %arg10: memref<640x128xbf16, #tpu.memory_space<vmem>>, %arg11: memref<1x128xf32, #tpu.memory_space<vmem>>, %arg12: memref<640x128xbf16, #tpu.memory_space<vmem>>, %arg13: memref<1x128xf32, #tpu.memory_space<vmem>>, %arg14: memref<640x256xbf16, #tpu.memory_space<vmem>>, %arg15: memref<1x256xf32, #tpu.memory_space<vmem>>, %arg16: memref<1408x256xbf16, #tpu.memory_space<vmem>>, %arg17: memref<1x256xf32, #tpu.memory_space<vmem>>, %arg18: memref<768x256xbf16, #tpu.memory_space<vmem>>, %arg19: memref<1x256xf32, #tpu.memory_space<vmem>>, %arg20: memref<768x256xbf16, #tpu.memory_space<vmem>>, %arg21: memref<1x256xf32, #tpu.memory_space<vmem>>, %arg22: memref<256x256xbf16, #tpu.memory_space<vmem>>, %arg23: memref<1x256xf32, #tpu.memory_space<vmem>>, %arg24: memref<256x128xbf16, #tpu.memory_space<vmem>>, %arg25: memref<1x128xf32, #tpu.memory_space<vmem>>, %arg26: memref<128x128xf32, #tpu.memory_space<vmem>>, %arg27: memref<1x128xf32, #tpu.memory_space<vmem>>, %arg28: memref<8x128xf32, #tpu.memory_space<vmem>>, %arg29: memref<128x1408xbf16, #tpu.memory_space<vmem>>) attributes {dimension_semantics = [#tpu.dimension_semantics<parallel>], iteration_bounds = array<i64: 1>, scalar_prefetch = 0 : i64, scratch_operands = 1 : i64, tpu.core_type = #tpu.core_type<tc>, window_params = [{transform_indices = @transform_0, window_bounds = array<i64: 128, 6>}, {pipeline_mode = #tpu.pipeline_mode<synchronous>, transform_indices = @transform_1, window_bounds = array<i64: 128, 1>}, {pipeline_mode = #tpu.pipeline_mode<synchronous>, transform_indices = @transform_2, window_bounds = array<i64: 8, 128>}, {pipeline_mode = #tpu.pipeline_mode<synchronous>, transform_indices = @transform_3, window_bounds = array<i64: 6, 128>}, {pipeline_mode = #tpu.pipeline_mode<synchronous>, transform_indices = @transform_4, window_bounds = array<i64: 1, 128>}, {pipeline_mode = #tpu.pipeline_mode<synchronous>, transform_indices = @transform_5, window_bounds = array<i64: 640, 128>}, {pipeline_mode = #tpu.pipeline_mode<synchronous>, transform_indices = @transform_6, window_bounds = array<i64: 1, 128>}, {pipeline_mode = #tpu.pipeline_mode<synchronous>, transform_indices = @transform_7, window_bounds = array<i64: 768, 128>}, {pipeline_mode = #tpu.pipeline_mode<synchronous>, transform_indices = @transform_8, window_bounds = array<i64: 1, 128>}, {pipeline_mode = #tpu.pipeline_mode<synchronous>, transform_indices = @transform_9, window_bounds = array<i64: 640, 128>}, {pipeline_mode = #tpu.pipeline_mode<synchronous>, transform_indices = @transform_10, window_bounds = array<i64: 1, 128>}, {pipeline_mode = #tpu.pipeline_mode<synchronous>, transform_indices = @transform_11, window_bounds = array<i64: 640, 128>}, {pipeline_mode = #tpu.pipeline_mode<synchronous>, transform_indices = @transform_12, window_bounds = array<i64: 1, 128>}, {pipeline_mode = #tpu.pipeline_mode<synchronous>, transform_indices = @transform_13, window_bounds = array<i64: 640, 256>}, {pipeline_mode = #tpu.pipeline_mode<synchronous>, transform_indices = @transform_14, window_bounds = array<i64: 1, 256>}, {pipeline_mode = #tpu.pipeline_mode<synchronous>, transform_indices = @transform_15, window_bounds = array<i64: 1408, 256>}, {pipeline_mode = #tpu.pipeline_mode<synchronous>, transform_indices = @transform_16, window_bounds = array<i64: 1, 256>}, {pipeline_mode = #tpu.pipeline_mode<synchronous>, transform_indices = @transform_17, window_bounds = array<i64: 768, 256>}, {pipeline_mode = #tpu.pipeline_mode<synchronous>, transform_indices = @transform_18, window_bounds = array<i64: 1, 256>}, {pipeline_mode = #tpu.pipeline_mode<synchronous>, transform_indices = @transform_19, window_bounds = array<i64: 768, 256>}, {pipeline_mode = #tpu.pipeline_mode<synchronous>, transform_indices = @transform_20, window_bounds = array<i64: 1, 256>}, {pipeline_mode = #tpu.pipeline_mode<synchronous>, transform_indices = @transform_21, window_bounds = array<i64: 256, 256>}, {pipeline_mode = #tpu.pipeline_mode<synchronous>, transform_indices = @transform_22, window_bounds = array<i64: 1, 256>}, {pipeline_mode = #tpu.pipeline_mode<synchronous>, transform_indices = @transform_23, window_bounds = array<i64: 256, 128>}, {pipeline_mode = #tpu.pipeline_mode<synchronous>, transform_indices = @transform_24, window_bounds = array<i64: 1, 128>}, {pipeline_mode = #tpu.pipeline_mode<synchronous>, transform_indices = @transform_25, window_bounds = array<i64: 128, 128>}, {pipeline_mode = #tpu.pipeline_mode<synchronous>, transform_indices = @transform_26, window_bounds = array<i64: 1, 128>}, {transform_indices = @transform_27, window_bounds = array<i64: 8, 128>}]} {
    %c0 = arith.constant 0 : index
    %c0_0 = arith.constant 0 : index
    %0 = vector.load %arg1[%c0, %c0_0] : memref<128x6xf32, #tpu.memory_space<vmem>>, vector<128x6xf32>
    %c0_1 = arith.constant 0 : index
    %c0_2 = arith.constant 0 : index
    %1 = vector.load %arg2[%c0_1, %c0_2] : memref<128x1xi32, #tpu.memory_space<vmem>>, vector<128x1xi32>
    %c8_i32 = arith.constant 8 : i32
    %2 = vector.broadcast %c8_i32 : i32 to vector<128x1xi32>
    %3 = arith.cmpi sge, %1, %2 : vector<128x1xi32>
    %4 = arith.extui %3 : vector<128x1xi1> to vector<128x1xi32>
    %5 = arith.sitofp %4 : vector<128x1xi32> to vector<128x1xf32>
    %6 = arith.truncf %5 : vector<128x1xf32> to vector<128x1xbf16>
    %c4_i32 = arith.constant 4 : i32
    %7 = vector.broadcast %c4_i32 : i32 to vector<128x1xi32>
    %8 = arith.cmpi sge, %1, %7 : vector<128x1xi32>
    %9 = arith.extui %8 : vector<128x1xi1> to vector<128x1xi32>
    %10 = arith.sitofp %9 : vector<128x1xi32> to vector<128x1xf32>
    %11 = arith.truncf %10 : vector<128x1xf32> to vector<128x1xbf16>
    %c2_i32 = arith.constant 2 : i32
    %12 = vector.broadcast %c2_i32 : i32 to vector<128x1xi32>
    %13 = arith.cmpi sge, %1, %12 : vector<128x1xi32>
    %14 = arith.extui %13 : vector<128x1xi1> to vector<128x1xi32>
    %15 = arith.sitofp %14 : vector<128x1xi32> to vector<128x1xf32>
    %16 = arith.truncf %15 : vector<128x1xf32> to vector<128x1xbf16>
    %c1_i32 = arith.constant 1 : i32
    %17 = vector.broadcast %c1_i32 : i32 to vector<128x1xi32>
    %18 = arith.cmpi sge, %1, %17 : vector<128x1xi32>
    %19 = arith.extui %18 : vector<128x1xi1> to vector<128x1xi32>
    %20 = arith.sitofp %19 : vector<128x1xi32> to vector<128x1xf32>
    %21 = arith.truncf %20 : vector<128x1xf32> to vector<128x1xbf16>
    %c15_i32 = arith.constant 15 : i32
    %22 = vector.broadcast %c15_i32 : i32 to vector<128x1xi32>
    %23 = arith.cmpi slt, %1, %22 : vector<128x1xi32>
    %24 = arith.extui %23 : vector<128x1xi1> to vector<128x1xi32>
    %25 = arith.sitofp %24 : vector<128x1xi32> to vector<128x1xf32>
    %26 = arith.truncf %25 : vector<128x1xf32> to vector<128x1xbf16>
    %c14_i32 = arith.constant 14 : i32
    %27 = vector.broadcast %c14_i32 : i32 to vector<128x1xi32>
    %28 = arith.cmpi slt, %1, %27 : vector<128x1xi32>
    %29 = arith.extui %28 : vector<128x1xi1> to vector<128x1xi32>
    %30 = arith.sitofp %29 : vector<128x1xi32> to vector<128x1xf32>
    %31 = arith.truncf %30 : vector<128x1xf32> to vector<128x1xbf16>
    %c12_i32 = arith.constant 12 : i32
    %32 = vector.broadcast %c12_i32 : i32 to vector<128x1xi32>
    %33 = arith.cmpi slt, %1, %32 : vector<128x1xi32>
    %34 = arith.extui %33 : vector<128x1xi1> to vector<128x1xi32>
    %35 = arith.sitofp %34 : vector<128x1xi32> to vector<128x1xf32>
    %36 = arith.truncf %35 : vector<128x1xf32> to vector<128x1xbf16>
    %c8_i32_3 = arith.constant 8 : i32
    %37 = vector.broadcast %c8_i32_3 : i32 to vector<128x1xi32>
    %38 = arith.cmpi slt, %1, %37 : vector<128x1xi32>
    %39 = arith.extui %38 : vector<128x1xi1> to vector<128x1xi32>
    %40 = arith.sitofp %39 : vector<128x1xi32> to vector<128x1xf32>
    %41 = arith.truncf %40 : vector<128x1xf32> to vector<128x1xbf16>
    %c0_4 = arith.constant 0 : index
    %c0_5 = arith.constant 0 : index
    %42 = vector.load %arg4[%c0_4, %c0_5] : memref<6x128xf32, #tpu.memory_space<vmem>>, vector<6x128xf32>
    %cst = arith.constant dense<0.000000e+00> : vector<128x128xf32>
    %43 = tpu.matmul %0, %42, %cst {dimension_numbers = #tpu.dot_dimension_numbers<[1], [0], [0], [1], [0, 0, 1, 1], [], []>} : vector<128x6xf32>, vector<6x128xf32>, vector<128x128xf32> -> vector<128x128xf32>
    %c0_6 = arith.constant 0 : index
    %c0_7 = arith.constant 0 : index
    %44 = vector.load %arg5[%c0_6, %c0_7] : memref<1x128xf32, #tpu.memory_space<vmem>>, vector<1x128xf32>
    %45 = vector.broadcast %44 : vector<1x128xf32> to vector<128x128xf32>
    %46 = arith.addf %43, %45 : vector<128x128xf32>
    %47 = arith.truncf %46 : vector<128x128xf32> to vector<128x128xbf16>
    %c2_i32_8 = arith.constant 2 : i32
    %48 = tpu.dynamic_rotate %46 by %c2_i32_8 dim 0 : vector<128x128xf32>, i32 -> vector<128x128xf32>
    %49 = arith.truncf %48 : vector<128x128xf32> to vector<128x128xbf16>
    %50 = vector.broadcast %16 : vector<128x1xbf16> to vector<128x128xbf16>
    %51 = arith.mulf %49, %50 : vector<128x128xbf16>
    %c0_9 = arith.constant 0 : index
    %c0_10 = arith.constant 0 : index
    %52 = vector.load %arg29[%c0_9, %c0_10] : memref<128x1408xbf16, #tpu.memory_space<vmem>>, vector<128x128xbf16>
    tpu.vector_store %arg29[%c0_9, %c0_10], %51 {strides = array<i32>} : memref<128x1408xbf16, #tpu.memory_space<vmem>>, vector<128x128xbf16>,
    %c1_i32_11 = arith.constant 1 : i32
    %53 = tpu.dynamic_rotate %46 by %c1_i32_11 dim 0 : vector<128x128xf32>, i32 -> vector<128x128xf32>
    %54 = arith.truncf %53 : vector<128x128xf32> to vector<128x128xbf16>
    %55 = vector.broadcast %21 : vector<128x1xbf16> to vector<128x128xbf16>
    %56 = arith.mulf %54, %55 : vector<128x128xbf16>
    %c0_12 = arith.constant 0 : index
    %c128 = arith.constant 128 : index
    %57 = vector.load %arg29[%c0_12, %c128] : memref<128x1408xbf16, #tpu.memory_space<vmem>>, vector<128x128xbf16>
    tpu.vector_store %arg29[%c0_12, %c128], %56 {strides = array<i32>} : memref<128x1408xbf16, #tpu.memory_space<vmem>>, vector<128x128xbf16>,
    %c0_13 = arith.constant 0 : index
    %c256 = arith.constant 256 : index
    %58 = vector.load %arg29[%c0_13, %c256] : memref<128x1408xbf16, #tpu.memory_space<vmem>>, vector<128x128xbf16>
    tpu.vector_store %arg29[%c0_13, %c256], %47 {strides = array<i32>} : memref<128x1408xbf16, #tpu.memory_space<vmem>>, vector<128x128xbf16>,
    %c127_i32 = arith.constant 127 : i32
    %59 = tpu.dynamic_rotate %46 by %c127_i32 dim 0 : vector<128x128xf32>, i32 -> vector<128x128xf32>
    %60 = arith.truncf %59 : vector<128x128xf32> to vector<128x128xbf16>
    %61 = vector.broadcast %26 : vector<128x1xbf16> to vector<128x128xbf16>
    %62 = arith.mulf %60, %61 : vector<128x128xbf16>
    %c0_14 = arith.constant 0 : index
    %c384 = arith.constant 384 : index
    %63 = vector.load %arg29[%c0_14, %c384] : memref<128x1408xbf16, #tpu.memory_space<vmem>>, vector<128x128xbf16>
    tpu.vector_store %arg29[%c0_14, %c384], %62 {strides = array<i32>} : memref<128x1408xbf16, #tpu.memory_space<vmem>>, vector<128x128xbf16>,
    %c126_i32 = arith.constant 126 : i32
    %64 = tpu.dynamic_rotate %46 by %c126_i32 dim 0 : vector<128x128xf32>, i32 -> vector<128x128xf32>
    %65 = arith.truncf %64 : vector<128x128xf32> to vector<128x128xbf16>
    %66 = vector.broadcast %31 : vector<128x1xbf16> to vector<128x128xbf16>
    %67 = arith.mulf %65, %66 : vector<128x128xbf16>
    %c0_15 = arith.constant 0 : index
    %c512 = arith.constant 512 : index
    %68 = vector.load %arg29[%c0_15, %c512] : memref<128x1408xbf16, #tpu.memory_space<vmem>>, vector<128x128xbf16>
    tpu.vector_store %arg29[%c0_15, %c512], %67 {strides = array<i32>} : memref<128x1408xbf16, #tpu.memory_space<vmem>>, vector<128x128xbf16>,
    %c0_16 = arith.constant 0 : index
    %c0_17 = arith.constant 0 : index
    %69 = vector.load %arg29[%c0_16, %c0_17] : memref<128x1408xbf16, #tpu.memory_space<vmem>>, vector<128x640xbf16>
    %c0_18 = arith.constant 0 : index
    %c0_19 = arith.constant 0 : index
    %70 = vector.load %arg6[%c0_18, %c0_19] : memref<640x128xbf16, #tpu.memory_space<vmem>>, vector<640x128xbf16>
    %cst_20 = arith.constant dense<0.000000e+00> : vector<128x128xf32>
    %71 = tpu.matmul %69, %70, %cst_20 {dimension_numbers = #tpu.dot_dimension_numbers<[1], [0], [0], [1], [0, 0, 1, 1], [], []>} : vector<128x640xbf16>, vector<640x128xbf16>, vector<128x128xf32> -> vector<128x128xf32>
    %c0_21 = arith.constant 0 : index
    %c0_22 = arith.constant 0 : index
    %72 = vector.load %arg7[%c0_21, %c0_22] : memref<1x128xf32, #tpu.memory_space<vmem>>, vector<1x128xf32>
    %73 = vector.broadcast %72 : vector<1x128xf32> to vector<128x128xf32>
    %74 = arith.addf %71, %73 : vector<128x128xf32>
    %cst_23 = arith.constant 0.000000e+00 : f32
    %75 = vector.broadcast %cst_23 : f32 to vector<128x128xf32>
    %76 = arith.maximumf %74, %75 : vector<128x128xf32>
    %77 = arith.truncf %46 : vector<128x128xf32> to vector<128x128xbf16>
    %78 = arith.truncf %76 : vector<128x128xf32> to vector<128x128xbf16>
    %c2_i32_24 = arith.constant 2 : i32
    %79 = tpu.dynamic_rotate %76 by %c2_i32_24 dim 0 : vector<128x128xf32>, i32 -> vector<128x128xf32>
    %80 = arith.truncf %79 : vector<128x128xf32> to vector<128x128xbf16>
    %81 = vector.broadcast %16 : vector<128x1xbf16> to vector<128x128xbf16>
    %82 = arith.mulf %80, %81 : vector<128x128xbf16>
    %c0_25 = arith.constant 0 : index
    %c0_26 = arith.constant 0 : index
    %83 = vector.load %arg29[%c0_25, %c0_26] : memref<128x1408xbf16, #tpu.memory_space<vmem>>, vector<128x128xbf16>
    tpu.vector_store %arg29[%c0_25, %c0_26], %82 {strides = array<i32>} : memref<128x1408xbf16, #tpu.memory_space<vmem>>, vector<128x128xbf16>,
    %c1_i32_27 = arith.constant 1 : i32
    %84 = tpu.dynamic_rotate %76 by %c1_i32_27 dim 0 : vector<128x128xf32>, i32 -> vector<128x128xf32>
    %85 = arith.truncf %84 : vector<128x128xf32> to vector<128x128xbf16>
    %86 = vector.broadcast %21 : vector<128x1xbf16> to vector<128x128xbf16>
    %87 = arith.mulf %85, %86 : vector<128x128xbf16>
    %c0_28 = arith.constant 0 : index
    %c128_29 = arith.constant 128 : index
    %88 = vector.load %arg29[%c0_28, %c128_29] : memref<128x1408xbf16, #tpu.memory_space<vmem>>, vector<128x128xbf16>
    tpu.vector_store %arg29[%c0_28, %c128_29], %87 {strides = array<i32>} : memref<128x1408xbf16, #tpu.memory_space<vmem>>, vector<128x128xbf16>,
    %c0_30 = arith.constant 0 : index
    %c256_31 = arith.constant 256 : index
    %89 = vector.load %arg29[%c0_30, %c256_31] : memref<128x1408xbf16, #tpu.memory_space<vmem>>, vector<128x128xbf16>
    tpu.vector_store %arg29[%c0_30, %c256_31], %78 {strides = array<i32>} : memref<128x1408xbf16, #tpu.memory_space<vmem>>, vector<128x128xbf16>,
    %c127_i32_32 = arith.constant 127 : i32
    %90 = tpu.dynamic_rotate %76 by %c127_i32_32 dim 0 : vector<128x128xf32>, i32 -> vector<128x128xf32>
    %91 = arith.truncf %90 : vector<128x128xf32> to vector<128x128xbf16>
    %92 = vector.broadcast %26 : vector<128x1xbf16> to vector<128x128xbf16>
    %93 = arith.mulf %91, %92 : vector<128x128xbf16>
    %c0_33 = arith.constant 0 : index
    %c384_34 = arith.constant 384 : index
    %94 = vector.load %arg29[%c0_33, %c384_34] : memref<128x1408xbf16, #tpu.memory_space<vmem>>, vector<128x128xbf16>
    tpu.vector_store %arg29[%c0_33, %c384_34], %93 {strides = array<i32>} : memref<128x1408xbf16, #tpu.memory_space<vmem>>, vector<128x128xbf16>,
    %c126_i32_35 = arith.constant 126 : i32
    %95 = tpu.dynamic_rotate %76 by %c126_i32_35 dim 0 : vector<128x128xf32>, i32 -> vector<128x128xf32>
    %96 = arith.truncf %95 : vector<128x128xf32> to vector<128x128xbf16>
    %97 = vector.broadcast %31 : vector<128x1xbf16> to vector<128x128xbf16>
    %98 = arith.mulf %96, %97 : vector<128x128xbf16>
    %c0_36 = arith.constant 0 : index
    %c512_37 = arith.constant 512 : index
    %99 = vector.load %arg29[%c0_36, %c512_37] : memref<128x1408xbf16, #tpu.memory_space<vmem>>, vector<128x128xbf16>
    tpu.vector_store %arg29[%c0_36, %c512_37], %98 {strides = array<i32>} : memref<128x1408xbf16, #tpu.memory_space<vmem>>, vector<128x128xbf16>,
    %c0_38 = arith.constant 0 : index
    %c640 = arith.constant 640 : index
    %100 = vector.load %arg29[%c0_38, %c640] : memref<128x1408xbf16, #tpu.memory_space<vmem>>, vector<128x128xbf16>
    tpu.vector_store %arg29[%c0_38, %c640], %77 {strides = array<i32>} : memref<128x1408xbf16, #tpu.memory_space<vmem>>, vector<128x128xbf16>,
    %c0_39 = arith.constant 0 : index
    %c0_40 = arith.constant 0 : index
    %101 = vector.load %arg29[%c0_39, %c0_40] : memref<128x1408xbf16, #tpu.memory_space<vmem>>, vector<128x768xbf16>
    %c0_41 = arith.constant 0 : index
    %c0_42 = arith.constant 0 : index
    %102 = vector.load %arg8[%c0_41, %c0_42] : memref<768x128xbf16, #tpu.memory_space<vmem>>, vector<768x128xbf16>
    %cst_43 = arith.constant dense<0.000000e+00> : vector<128x128xf32>
    %103 = tpu.matmul %101, %102, %cst_43 {dimension_numbers = #tpu.dot_dimension_numbers<[1], [0], [0], [1], [0, 0, 1, 1], [], []>} : vector<128x768xbf16>, vector<768x128xbf16>, vector<128x128xf32> -> vector<128x128xf32>
    %c0_44 = arith.constant 0 : index
    %c0_45 = arith.constant 0 : index
    %104 = vector.load %arg9[%c0_44, %c0_45] : memref<1x128xf32, #tpu.memory_space<vmem>>, vector<1x128xf32>
    %105 = vector.broadcast %104 : vector<1x128xf32> to vector<128x128xf32>
    %106 = arith.addf %103, %105 : vector<128x128xf32>
    %cst_46 = arith.constant 0.000000e+00 : f32
    %107 = vector.broadcast %cst_46 : f32 to vector<128x128xf32>
    %108 = arith.maximumf %106, %107 : vector<128x128xf32>
    %109 = arith.truncf %108 : vector<128x128xf32> to vector<128x128xbf16>
    %c4_i32_47 = arith.constant 4 : i32
    %110 = tpu.dynamic_rotate %108 by %c4_i32_47 dim 0 : vector<128x128xf32>, i32 -> vector<128x128xf32>
    %111 = arith.truncf %110 : vector<128x128xf32> to vector<128x128xbf16>
    %112 = vector.broadcast %11 : vector<128x1xbf16> to vector<128x128xbf16>
    %113 = arith.mulf %111, %112 : vector<128x128xbf16>
    %c0_48 = arith.constant 0 : index
    %c0_49 = arith.constant 0 : index
    %114 = vector.load %arg29[%c0_48, %c0_49] : memref<128x1408xbf16, #tpu.memory_space<vmem>>, vector<128x128xbf16>
    tpu.vector_store %arg29[%c0_48, %c0_49], %113 {strides = array<i32>} : memref<128x1408xbf16, #tpu.memory_space<vmem>>, vector<128x128xbf16>,
    %c2_i32_50 = arith.constant 2 : i32
    %115 = tpu.dynamic_rotate %108 by %c2_i32_50 dim 0 : vector<128x128xf32>, i32 -> vector<128x128xf32>
    %116 = arith.truncf %115 : vector<128x128xf32> to vector<128x128xbf16>
    %117 = vector.broadcast %16 : vector<128x1xbf16> to vector<128x128xbf16>
    %118 = arith.mulf %116, %117 : vector<128x128xbf16>
    %c0_51 = arith.constant 0 : index
    %c128_52 = arith.constant 128 : index
    %119 = vector.load %arg29[%c0_51, %c128_52] : memref<128x1408xbf16, #tpu.memory_space<vmem>>, vector<128x128xbf16>
    tpu.vector_store %arg29[%c0_51, %c128_52], %118 {strides = array<i32>} : memref<128x1408xbf16, #tpu.memory_space<vmem>>, vector<128x128xbf16>,
    %c0_53 = arith.constant 0 : index
    %c256_54 = arith.constant 256 : index
    %120 = vector.load %arg29[%c0_53, %c256_54] : memref<128x1408xbf16, #tpu.memory_space<vmem>>, vector<128x128xbf16>
    tpu.vector_store %arg29[%c0_53, %c256_54], %109 {strides = array<i32>} : memref<128x1408xbf16, #tpu.memory_space<vmem>>, vector<128x128xbf16>,
    %c126_i32_55 = arith.constant 126 : i32
    %121 = tpu.dynamic_rotate %108 by %c126_i32_55 dim 0 : vector<128x128xf32>, i32 -> vector<128x128xf32>
    %122 = arith.truncf %121 : vector<128x128xf32> to vector<128x128xbf16>
    %123 = vector.broadcast %31 : vector<128x1xbf16> to vector<128x128xbf16>
    %124 = arith.mulf %122, %123 : vector<128x128xbf16>
    %c0_56 = arith.constant 0 : index
    %c384_57 = arith.constant 384 : index
    %125 = vector.load %arg29[%c0_56, %c384_57] : memref<128x1408xbf16, #tpu.memory_space<vmem>>, vector<128x128xbf16>
    tpu.vector_store %arg29[%c0_56, %c384_57], %124 {strides = array<i32>} : memref<128x1408xbf16, #tpu.memory_space<vmem>>, vector<128x128xbf16>,
    %c124_i32 = arith.constant 124 : i32
    %126 = tpu.dynamic_rotate %108 by %c124_i32 dim 0 : vector<128x128xf32>, i32 -> vector<128x128xf32>
    %127 = arith.truncf %126 : vector<128x128xf32> to vector<128x128xbf16>
    %128 = vector.broadcast %36 : vector<128x1xbf16> to vector<128x128xbf16>
    %129 = arith.mulf %127, %128 : vector<128x128xbf16>
    %c0_58 = arith.constant 0 : index
    %c512_59 = arith.constant 512 : index
    %130 = vector.load %arg29[%c0_58, %c512_59] : memref<128x1408xbf16, #tpu.memory_space<vmem>>, vector<128x128xbf16>
    tpu.vector_store %arg29[%c0_58, %c512_59], %129 {strides = array<i32>} : memref<128x1408xbf16, #tpu.memory_space<vmem>>, vector<128x128xbf16>,
    %c0_60 = arith.constant 0 : index
    %c0_61 = arith.constant 0 : index
    %131 = vector.load %arg29[%c0_60, %c0_61] : memref<128x1408xbf16, #tpu.memory_space<vmem>>, vector<128x640xbf16>
    %c0_62 = arith.constant 0 : index
    %c0_63 = arith.constant 0 : index
    %132 = vector.load %arg10[%c0_62, %c0_63] : memref<640x128xbf16, #tpu.memory_space<vmem>>, vector<640x128xbf16>
    %cst_64 = arith.constant dense<0.000000e+00> : vector<128x128xf32>
    %133 = tpu.matmul %131, %132, %cst_64 {dimension_numbers = #tpu.dot_dimension_numbers<[1], [0], [0], [1], [0, 0, 1, 1], [], []>} : vector<128x640xbf16>, vector<640x128xbf16>, vector<128x128xf32> -> vector<128x128xf32>
    %c0_65 = arith.constant 0 : index
    %c0_66 = arith.constant 0 : index
    %134 = vector.load %arg11[%c0_65, %c0_66] : memref<1x128xf32, #tpu.memory_space<vmem>>, vector<1x128xf32>
    %135 = vector.broadcast %134 : vector<1x128xf32> to vector<128x128xf32>
    %136 = arith.addf %133, %135 : vector<128x128xf32>
    %cst_67 = arith.constant 0.000000e+00 : f32
    %137 = vector.broadcast %cst_67 : f32 to vector<128x128xf32>
    %138 = arith.maximumf %136, %137 : vector<128x128xf32>
    %139 = arith.truncf %138 : vector<128x128xf32> to vector<128x128xbf16>
    %c4_i32_68 = arith.constant 4 : i32
    %140 = tpu.dynamic_rotate %138 by %c4_i32_68 dim 0 : vector<128x128xf32>, i32 -> vector<128x128xf32>
    %141 = arith.truncf %140 : vector<128x128xf32> to vector<128x128xbf16>
    %142 = vector.broadcast %11 : vector<128x1xbf16> to vector<128x128xbf16>
    %143 = arith.mulf %141, %142 : vector<128x128xbf16>
    %c0_69 = arith.constant 0 : index
    %c0_70 = arith.constant 0 : index
    %144 = vector.load %arg29[%c0_69, %c0_70] : memref<128x1408xbf16, #tpu.memory_space<vmem>>, vector<128x128xbf16>
    tpu.vector_store %arg29[%c0_69, %c0_70], %143 {strides = array<i32>} : memref<128x1408xbf16, #tpu.memory_space<vmem>>, vector<128x128xbf16>,
    %c2_i32_71 = arith.constant 2 : i32
    %145 = tpu.dynamic_rotate %138 by %c2_i32_71 dim 0 : vector<128x128xf32>, i32 -> vector<128x128xf32>
    %146 = arith.truncf %145 : vector<128x128xf32> to vector<128x128xbf16>
    %147 = vector.broadcast %16 : vector<128x1xbf16> to vector<128x128xbf16>
    %148 = arith.mulf %146, %147 : vector<128x128xbf16>
    %c0_72 = arith.constant 0 : index
    %c128_73 = arith.constant 128 : index
    %149 = vector.load %arg29[%c0_72, %c128_73] : memref<128x1408xbf16, #tpu.memory_space<vmem>>, vector<128x128xbf16>
    tpu.vector_store %arg29[%c0_72, %c128_73], %148 {strides = array<i32>} : memref<128x1408xbf16, #tpu.memory_space<vmem>>, vector<128x128xbf16>,
    %c0_74 = arith.constant 0 : index
    %c256_75 = arith.constant 256 : index
    %150 = vector.load %arg29[%c0_74, %c256_75] : memref<128x1408xbf16, #tpu.memory_space<vmem>>, vector<128x128xbf16>
    tpu.vector_store %arg29[%c0_74, %c256_75], %139 {strides = array<i32>} : memref<128x1408xbf16, #tpu.memory_space<vmem>>, vector<128x128xbf16>,
    %c126_i32_76 = arith.constant 126 : i32
    %151 = tpu.dynamic_rotate %138 by %c126_i32_76 dim 0 : vector<128x128xf32>, i32 -> vector<128x128xf32>
    %152 = arith.truncf %151 : vector<128x128xf32> to vector<128x128xbf16>
    %153 = vector.broadcast %31 : vector<128x1xbf16> to vector<128x128xbf16>
    %154 = arith.mulf %152, %153 : vector<128x128xbf16>
    %c0_77 = arith.constant 0 : index
    %c384_78 = arith.constant 384 : index
    %155 = vector.load %arg29[%c0_77, %c384_78] : memref<128x1408xbf16, #tpu.memory_space<vmem>>, vector<128x128xbf16>
    tpu.vector_store %arg29[%c0_77, %c384_78], %154 {strides = array<i32>} : memref<128x1408xbf16, #tpu.memory_space<vmem>>, vector<128x128xbf16>,
    %c124_i32_79 = arith.constant 124 : i32
    %156 = tpu.dynamic_rotate %138 by %c124_i32_79 dim 0 : vector<128x128xf32>, i32 -> vector<128x128xf32>
    %157 = arith.truncf %156 : vector<128x128xf32> to vector<128x128xbf16>
    %158 = vector.broadcast %36 : vector<128x1xbf16> to vector<128x128xbf16>
    %159 = arith.mulf %157, %158 : vector<128x128xbf16>
    %c0_80 = arith.constant 0 : index
    %c512_81 = arith.constant 512 : index
    %160 = vector.load %arg29[%c0_80, %c512_81] : memref<128x1408xbf16, #tpu.memory_space<vmem>>, vector<128x128xbf16>
    tpu.vector_store %arg29[%c0_80, %c512_81], %159 {strides = array<i32>} : memref<128x1408xbf16, #tpu.memory_space<vmem>>, vector<128x128xbf16>,
    %c0_82 = arith.constant 0 : index
    %c0_83 = arith.constant 0 : index
    %161 = vector.load %arg29[%c0_82, %c0_83] : memref<128x1408xbf16, #tpu.memory_space<vmem>>, vector<128x640xbf16>
    %c0_84 = arith.constant 0 : index
    %c0_85 = arith.constant 0 : index
    %162 = vector.load %arg12[%c0_84, %c0_85] : memref<640x128xbf16, #tpu.memory_space<vmem>>, vector<640x128xbf16>
    %cst_86 = arith.constant dense<0.000000e+00> : vector<128x128xf32>
    %163 = tpu.matmul %161, %162, %cst_86 {dimension_numbers = #tpu.dot_dimension_numbers<[1], [0], [0], [1], [0, 0, 1, 1], [], []>} : vector<128x640xbf16>, vector<640x128xbf16>, vector<128x128xf32> -> vector<128x128xf32>
    %c0_87 = arith.constant 0 : index
    %c0_88 = arith.constant 0 : index
    %164 = vector.load %arg13[%c0_87, %c0_88] : memref<1x128xf32, #tpu.memory_space<vmem>>, vector<1x128xf32>
    %165 = vector.broadcast %164 : vector<1x128xf32> to vector<128x128xf32>
    %166 = arith.addf %163, %165 : vector<128x128xf32>
    %167 = arith.addf %166, %108 : vector<128x128xf32>
    %cst_89 = arith.constant 0.000000e+00 : f32
    %168 = vector.broadcast %cst_89 : f32 to vector<128x128xf32>
    %169 = arith.maximumf %167, %168 : vector<128x128xf32>
    %170 = arith.truncf %169 : vector<128x128xf32> to vector<128x128xbf16>
    %c8_i32_90 = arith.constant 8 : i32
    %171 = tpu.dynamic_rotate %169 by %c8_i32_90 dim 0 : vector<128x128xf32>, i32 -> vector<128x128xf32>
    %172 = arith.truncf %171 : vector<128x128xf32> to vector<128x128xbf16>
    %173 = vector.broadcast %6 : vector<128x1xbf16> to vector<128x128xbf16>
    %174 = arith.mulf %172, %173 : vector<128x128xbf16>
    %c0_91 = arith.constant 0 : index
    %c0_92 = arith.constant 0 : index
    %175 = vector.load %arg29[%c0_91, %c0_92] : memref<128x1408xbf16, #tpu.memory_space<vmem>>, vector<128x128xbf16>
    tpu.vector_store %arg29[%c0_91, %c0_92], %174 {strides = array<i32>} : memref<128x1408xbf16, #tpu.memory_space<vmem>>, vector<128x128xbf16>,
    %c4_i32_93 = arith.constant 4 : i32
    %176 = tpu.dynamic_rotate %169 by %c4_i32_93 dim 0 : vector<128x128xf32>, i32 -> vector<128x128xf32>
    %177 = arith.truncf %176 : vector<128x128xf32> to vector<128x128xbf16>
    %178 = vector.broadcast %11 : vector<128x1xbf16> to vector<128x128xbf16>
    %179 = arith.mulf %177, %178 : vector<128x128xbf16>
    %c0_94 = arith.constant 0 : index
    %c128_95 = arith.constant 128 : index
    %180 = vector.load %arg29[%c0_94, %c128_95] : memref<128x1408xbf16, #tpu.memory_space<vmem>>, vector<128x128xbf16>
    tpu.vector_store %arg29[%c0_94, %c128_95], %179 {strides = array<i32>} : memref<128x1408xbf16, #tpu.memory_space<vmem>>, vector<128x128xbf16>,
    %c0_96 = arith.constant 0 : index
    %c256_97 = arith.constant 256 : index
    %181 = vector.load %arg29[%c0_96, %c256_97] : memref<128x1408xbf16, #tpu.memory_space<vmem>>, vector<128x128xbf16>
    tpu.vector_store %arg29[%c0_96, %c256_97], %170 {strides = array<i32>} : memref<128x1408xbf16, #tpu.memory_space<vmem>>, vector<128x128xbf16>,
    %c124_i32_98 = arith.constant 124 : i32
    %182 = tpu.dynamic_rotate %169 by %c124_i32_98 dim 0 : vector<128x128xf32>, i32 -> vector<128x128xf32>
    %183 = arith.truncf %182 : vector<128x128xf32> to vector<128x128xbf16>
    %184 = vector.broadcast %36 : vector<128x1xbf16> to vector<128x128xbf16>
    %185 = arith.mulf %183, %184 : vector<128x128xbf16>
    %c0_99 = arith.constant 0 : index
    %c384_100 = arith.constant 384 : index
    %186 = vector.load %arg29[%c0_99, %c384_100] : memref<128x1408xbf16, #tpu.memory_space<vmem>>, vector<128x128xbf16>
    tpu.vector_store %arg29[%c0_99, %c384_100], %185 {strides = array<i32>} : memref<128x1408xbf16, #tpu.memory_space<vmem>>, vector<128x128xbf16>,
    %c120_i32 = arith.constant 120 : i32
    %187 = tpu.dynamic_rotate %169 by %c120_i32 dim 0 : vector<128x128xf32>, i32 -> vector<128x128xf32>
    %188 = arith.truncf %187 : vector<128x128xf32> to vector<128x128xbf16>
    %189 = vector.broadcast %41 : vector<128x1xbf16> to vector<128x128xbf16>
    %190 = arith.mulf %188, %189 : vector<128x128xbf16>
    %c0_101 = arith.constant 0 : index
    %c512_102 = arith.constant 512 : index
    %191 = vector.load %arg29[%c0_101, %c512_102] : memref<128x1408xbf16, #tpu.memory_space<vmem>>, vector<128x128xbf16>
    tpu.vector_store %arg29[%c0_101, %c512_102], %190 {strides = array<i32>} : memref<128x1408xbf16, #tpu.memory_space<vmem>>, vector<128x128xbf16>,
    %c0_103 = arith.constant 0 : index
    %c0_104 = arith.constant 0 : index
    %192 = vector.load %arg29[%c0_103, %c0_104] : memref<128x1408xbf16, #tpu.memory_space<vmem>>, vector<128x640xbf16>
    %c0_105 = arith.constant 0 : index
    %c0_106 = arith.constant 0 : index
    %193 = vector.load %arg14[%c0_105, %c0_106] : memref<640x256xbf16, #tpu.memory_space<vmem>>, vector<640x256xbf16>
    %cst_107 = arith.constant dense<0.000000e+00> : vector<128x256xf32>
    %194 = tpu.matmul %192, %193, %cst_107 {dimension_numbers = #tpu.dot_dimension_numbers<[1], [0], [0], [1], [0, 0, 1, 1], [], []>} : vector<128x640xbf16>, vector<640x256xbf16>, vector<128x256xf32> -> vector<128x256xf32>
    %c0_108 = arith.constant 0 : index
    %c0_109 = arith.constant 0 : index
    %195 = vector.load %arg15[%c0_108, %c0_109] : memref<1x256xf32, #tpu.memory_space<vmem>>, vector<1x256xf32>
    %196 = vector.broadcast %195 : vector<1x256xf32> to vector<128x256xf32>
    %197 = arith.addf %194, %196 : vector<128x256xf32>
    %cst_110 = arith.constant 0.000000e+00 : f32
    %198 = vector.broadcast %cst_110 : f32 to vector<128x256xf32>
    %199 = arith.maximumf %197, %198 : vector<128x256xf32>
    %200 = arith.truncf %169 : vector<128x128xf32> to vector<128x128xbf16>
    %201 = arith.truncf %199 : vector<128x256xf32> to vector<128x256xbf16>
    %c8_i32_111 = arith.constant 8 : i32
    %202 = tpu.dynamic_rotate %199 by %c8_i32_111 dim 0 : vector<128x256xf32>, i32 -> vector<128x256xf32>
    %203 = arith.truncf %202 : vector<128x256xf32> to vector<128x256xbf16>
    %204 = vector.broadcast %6 : vector<128x1xbf16> to vector<128x256xbf16>
    %205 = arith.mulf %203, %204 : vector<128x256xbf16>
    %c0_112 = arith.constant 0 : index
    %c0_113 = arith.constant 0 : index
    %206 = vector.load %arg29[%c0_112, %c0_113] : memref<128x1408xbf16, #tpu.memory_space<vmem>>, vector<128x256xbf16>
    tpu.vector_store %arg29[%c0_112, %c0_113], %205 {strides = array<i32>} : memref<128x1408xbf16, #tpu.memory_space<vmem>>, vector<128x256xbf16>,
    %c4_i32_114 = arith.constant 4 : i32
    %207 = tpu.dynamic_rotate %199 by %c4_i32_114 dim 0 : vector<128x256xf32>, i32 -> vector<128x256xf32>
    %208 = arith.truncf %207 : vector<128x256xf32> to vector<128x256xbf16>
    %209 = vector.broadcast %11 : vector<128x1xbf16> to vector<128x256xbf16>
    %210 = arith.mulf %208, %209 : vector<128x256xbf16>
    %c0_115 = arith.constant 0 : index
    %c256_116 = arith.constant 256 : index
    %211 = vector.load %arg29[%c0_115, %c256_116] : memref<128x1408xbf16, #tpu.memory_space<vmem>>, vector<128x256xbf16>
    tpu.vector_store %arg29[%c0_115, %c256_116], %210 {strides = array<i32>} : memref<128x1408xbf16, #tpu.memory_space<vmem>>, vector<128x256xbf16>,
    %c0_117 = arith.constant 0 : index
    %c512_118 = arith.constant 512 : index
    %212 = vector.load %arg29[%c0_117, %c512_118] : memref<128x1408xbf16, #tpu.memory_space<vmem>>, vector<128x256xbf16>
    tpu.vector_store %arg29[%c0_117, %c512_118], %201 {strides = array<i32>} : memref<128x1408xbf16, #tpu.memory_space<vmem>>, vector<128x256xbf16>,
    %c124_i32_119 = arith.constant 124 : i32
    %213 = tpu.dynamic_rotate %199 by %c124_i32_119 dim 0 : vector<128x256xf32>, i32 -> vector<128x256xf32>
    %214 = arith.truncf %213 : vector<128x256xf32> to vector<128x256xbf16>
    %215 = vector.broadcast %36 : vector<128x1xbf16> to vector<128x256xbf16>
    %216 = arith.mulf %214, %215 : vector<128x256xbf16>
    %c0_120 = arith.constant 0 : index
    %c768 = arith.constant 768 : index
    %217 = vector.load %arg29[%c0_120, %c768] : memref<128x1408xbf16, #tpu.memory_space<vmem>>, vector<128x256xbf16>
    tpu.vector_store %arg29[%c0_120, %c768], %216 {strides = array<i32>} : memref<128x1408xbf16, #tpu.memory_space<vmem>>, vector<128x256xbf16>,
    %c120_i32_121 = arith.constant 120 : i32
    %218 = tpu.dynamic_rotate %199 by %c120_i32_121 dim 0 : vector<128x256xf32>, i32 -> vector<128x256xf32>
    %219 = arith.truncf %218 : vector<128x256xf32> to vector<128x256xbf16>
    %220 = vector.broadcast %41 : vector<128x1xbf16> to vector<128x256xbf16>
    %221 = arith.mulf %219, %220 : vector<128x256xbf16>
    %c0_122 = arith.constant 0 : index
    %c1024 = arith.constant 1024 : index
    %222 = vector.load %arg29[%c0_122, %c1024] : memref<128x1408xbf16, #tpu.memory_space<vmem>>, vector<128x256xbf16>
    tpu.vector_store %arg29[%c0_122, %c1024], %221 {strides = array<i32>} : memref<128x1408xbf16, #tpu.memory_space<vmem>>, vector<128x256xbf16>,
    %c0_123 = arith.constant 0 : index
    %c1280 = arith.constant 1280 : index
    %223 = vector.load %arg29[%c0_123, %c1280] : memref<128x1408xbf16, #tpu.memory_space<vmem>>, vector<128x128xbf16>
    tpu.vector_store %arg29[%c0_123, %c1280], %200 {strides = array<i32>} : memref<128x1408xbf16, #tpu.memory_space<vmem>>, vector<128x128xbf16>,
    %c0_124 = arith.constant 0 : index
    %c0_125 = arith.constant 0 : index
    %224 = vector.load %arg29[%c0_124, %c0_125] : memref<128x1408xbf16, #tpu.memory_space<vmem>>, vector<128x1408xbf16>
    %c0_126 = arith.constant 0 : index
    %c0_127 = arith.constant 0 : index
    %225 = vector.load %arg16[%c0_126, %c0_127] : memref<1408x256xbf16, #tpu.memory_space<vmem>>, vector<1408x256xbf16>
    %cst_128 = arith.constant dense<0.000000e+00> : vector<128x256xf32>
    %226 = tpu.matmul %224, %225, %cst_128 {dimension_numbers = #tpu.dot_dimension_numbers<[1], [0], [0], [1], [0, 0, 1, 1], [], []>} : vector<128x1408xbf16>, vector<1408x256xbf16>, vector<128x256xf32> -> vector<128x256xf32>
    %c0_129 = arith.constant 0 : index
    %c0_130 = arith.constant 0 : index
    %227 = vector.load %arg17[%c0_129, %c0_130] : memref<1x256xf32, #tpu.memory_space<vmem>>, vector<1x256xf32>
    %228 = vector.broadcast %227 : vector<1x256xf32> to vector<128x256xf32>
    %229 = arith.addf %226, %228 : vector<128x256xf32>
    %cst_131 = arith.constant 0.000000e+00 : f32
    %230 = vector.broadcast %cst_131 : f32 to vector<128x256xf32>
    %231 = arith.maximumf %229, %230 : vector<128x256xf32>
    %232 = arith.truncf %231 : vector<128x256xf32> to vector<128x256xbf16>
    %c8_i32_132 = arith.constant 8 : i32
    %233 = tpu.dynamic_rotate %231 by %c8_i32_132 dim 0 : vector<128x256xf32>, i32 -> vector<128x256xf32>
    %234 = arith.truncf %233 : vector<128x256xf32> to vector<128x256xbf16>
    %235 = vector.broadcast %6 : vector<128x1xbf16> to vector<128x256xbf16>
    %236 = arith.mulf %234, %235 : vector<128x256xbf16>
    %c0_133 = arith.constant 0 : index
    %c0_134 = arith.constant 0 : index
    %237 = vector.load %arg29[%c0_133, %c0_134] : memref<128x1408xbf16, #tpu.memory_space<vmem>>, vector<128x256xbf16>
    tpu.vector_store %arg29[%c0_133, %c0_134], %236 {strides = array<i32>} : memref<128x1408xbf16, #tpu.memory_space<vmem>>, vector<128x256xbf16>,
    %c0_135 = arith.constant 0 : index
    %c256_136 = arith.constant 256 : index
    %238 = vector.load %arg29[%c0_135, %c256_136] : memref<128x1408xbf16, #tpu.memory_space<vmem>>, vector<128x256xbf16>
    tpu.vector_store %arg29[%c0_135, %c256_136], %232 {strides = array<i32>} : memref<128x1408xbf16, #tpu.memory_space<vmem>>, vector<128x256xbf16>,
    %c120_i32_137 = arith.constant 120 : i32
    %239 = tpu.dynamic_rotate %231 by %c120_i32_137 dim 0 : vector<128x256xf32>, i32 -> vector<128x256xf32>
    %240 = arith.truncf %239 : vector<128x256xf32> to vector<128x256xbf16>
    %241 = vector.broadcast %41 : vector<128x1xbf16> to vector<128x256xbf16>
    %242 = arith.mulf %240, %241 : vector<128x256xbf16>
    %c0_138 = arith.constant 0 : index
    %c512_139 = arith.constant 512 : index
    %243 = vector.load %arg29[%c0_138, %c512_139] : memref<128x1408xbf16, #tpu.memory_space<vmem>>, vector<128x256xbf16>
    tpu.vector_store %arg29[%c0_138, %c512_139], %242 {strides = array<i32>} : memref<128x1408xbf16, #tpu.memory_space<vmem>>, vector<128x256xbf16>,
    %c0_140 = arith.constant 0 : index
    %c0_141 = arith.constant 0 : index
    %244 = vector.load %arg29[%c0_140, %c0_141] : memref<128x1408xbf16, #tpu.memory_space<vmem>>, vector<128x768xbf16>
    %c0_142 = arith.constant 0 : index
    %c0_143 = arith.constant 0 : index
    %245 = vector.load %arg18[%c0_142, %c0_143] : memref<768x256xbf16, #tpu.memory_space<vmem>>, vector<768x256xbf16>
    %cst_144 = arith.constant dense<0.000000e+00> : vector<128x256xf32>
    %246 = tpu.matmul %244, %245, %cst_144 {dimension_numbers = #tpu.dot_dimension_numbers<[1], [0], [0], [1], [0, 0, 1, 1], [], []>} : vector<128x768xbf16>, vector<768x256xbf16>, vector<128x256xf32> -> vector<128x256xf32>
    %c0_145 = arith.constant 0 : index
    %c0_146 = arith.constant 0 : index
    %247 = vector.load %arg19[%c0_145, %c0_146] : memref<1x256xf32, #tpu.memory_space<vmem>>, vector<1x256xf32>
    %248 = vector.broadcast %247 : vector<1x256xf32> to vector<128x256xf32>
    %249 = arith.addf %246, %248 : vector<128x256xf32>
    %cst_147 = arith.constant 0.000000e+00 : f32
    %250 = vector.broadcast %cst_147 : f32 to vector<128x256xf32>
    %251 = arith.maximumf %249, %250 : vector<128x256xf32>
    %252 = arith.truncf %251 : vector<128x256xf32> to vector<128x256xbf16>
    %c8_i32_148 = arith.constant 8 : i32
    %253 = tpu.dynamic_rotate %251 by %c8_i32_148 dim 0 : vector<128x256xf32>, i32 -> vector<128x256xf32>
    %254 = arith.truncf %253 : vector<128x256xf32> to vector<128x256xbf16>
    %255 = vector.broadcast %6 : vector<128x1xbf16> to vector<128x256xbf16>
    %256 = arith.mulf %254, %255 : vector<128x256xbf16>
    %c0_149 = arith.constant 0 : index
    %c0_150 = arith.constant 0 : index
    %257 = vector.load %arg29[%c0_149, %c0_150] : memref<128x1408xbf16, #tpu.memory_space<vmem>>, vector<128x256xbf16>
    tpu.vector_store %arg29[%c0_149, %c0_150], %256 {strides = array<i32>} : memref<128x1408xbf16, #tpu.memory_space<vmem>>, vector<128x256xbf16>,
    %c0_151 = arith.constant 0 : index
    %c256_152 = arith.constant 256 : index
    %258 = vector.load %arg29[%c0_151, %c256_152] : memref<128x1408xbf16, #tpu.memory_space<vmem>>, vector<128x256xbf16>
    tpu.vector_store %arg29[%c0_151, %c256_152], %252 {strides = array<i32>} : memref<128x1408xbf16, #tpu.memory_space<vmem>>, vector<128x256xbf16>,
    %c120_i32_153 = arith.constant 120 : i32
    %259 = tpu.dynamic_rotate %251 by %c120_i32_153 dim 0 : vector<128x256xf32>, i32 -> vector<128x256xf32>
    %260 = arith.truncf %259 : vector<128x256xf32> to vector<128x256xbf16>
    %261 = vector.broadcast %41 : vector<128x1xbf16> to vector<128x256xbf16>
    %262 = arith.mulf %260, %261 : vector<128x256xbf16>
    %c0_154 = arith.constant 0 : index
    %c512_155 = arith.constant 512 : index
    %263 = vector.load %arg29[%c0_154, %c512_155] : memref<128x1408xbf16, #tpu.memory_space<vmem>>, vector<128x256xbf16>
    tpu.vector_store %arg29[%c0_154, %c512_155], %262 {strides = array<i32>} : memref<128x1408xbf16, #tpu.memory_space<vmem>>, vector<128x256xbf16>,
    %c0_156 = arith.constant 0 : index
    %c0_157 = arith.constant 0 : index
    %264 = vector.load %arg29[%c0_156, %c0_157] : memref<128x1408xbf16, #tpu.memory_space<vmem>>, vector<128x768xbf16>
    %c0_158 = arith.constant 0 : index
    %c0_159 = arith.constant 0 : index
    %265 = vector.load %arg20[%c0_158, %c0_159] : memref<768x256xbf16, #tpu.memory_space<vmem>>, vector<768x256xbf16>
    %cst_160 = arith.constant dense<0.000000e+00> : vector<128x256xf32>
    %266 = tpu.matmul %264, %265, %cst_160 {dimension_numbers = #tpu.dot_dimension_numbers<[1], [0], [0], [1], [0, 0, 1, 1], [], []>} : vector<128x768xbf16>, vector<768x256xbf16>, vector<128x256xf32> -> vector<128x256xf32>
    %c0_161 = arith.constant 0 : index
    %c0_162 = arith.constant 0 : index
    %267 = vector.load %arg21[%c0_161, %c0_162] : memref<1x256xf32, #tpu.memory_space<vmem>>, vector<1x256xf32>
    %268 = vector.broadcast %267 : vector<1x256xf32> to vector<128x256xf32>
    %269 = arith.addf %266, %268 : vector<128x256xf32>
    %270 = arith.addf %269, %231 : vector<128x256xf32>
    %cst_163 = arith.constant 0.000000e+00 : f32
    %271 = vector.broadcast %cst_163 : f32 to vector<128x256xf32>
    %272 = arith.maximumf %270, %271 : vector<128x256xf32>
    %273 = arith.truncf %272 : vector<128x256xf32> to vector<128x256xbf16>
    %c0_164 = arith.constant 0 : index
    %c0_165 = arith.constant 0 : index
    %274 = vector.load %arg22[%c0_164, %c0_165] : memref<256x256xbf16, #tpu.memory_space<vmem>>, vector<256x256xbf16>
    %cst_166 = arith.constant dense<0.000000e+00> : vector<128x256xf32>
    %275 = tpu.matmul %273, %274, %cst_166 {dimension_numbers = #tpu.dot_dimension_numbers<[1], [0], [0], [1], [0, 0, 1, 1], [], []>} : vector<128x256xbf16>, vector<256x256xbf16>, vector<128x256xf32> -> vector<128x256xf32>
    %c0_167 = arith.constant 0 : index
    %c0_168 = arith.constant 0 : index
    %276 = vector.load %arg23[%c0_167, %c0_168] : memref<1x256xf32, #tpu.memory_space<vmem>>, vector<1x256xf32>
    %277 = vector.broadcast %276 : vector<1x256xf32> to vector<128x256xf32>
    %278 = arith.addf %275, %277 : vector<128x256xf32>
    %cst_169 = arith.constant 0.000000e+00 : f32
    %279 = vector.broadcast %cst_169 : f32 to vector<128x256xf32>
    %280 = arith.maximumf %278, %279 : vector<128x256xf32>
    %c0_170 = arith.constant 0 : index
    %c0_171 = arith.constant 0 : index
    %281 = vector.load %arg3[%c0_170, %c0_171] : memref<8x128xbf16, #tpu.memory_space<vmem>>, vector<8x128xbf16>
    %282 = arith.truncf %280 : vector<128x256xf32> to vector<128x256xbf16>
    %cst_172 = arith.constant dense<0.000000e+00> : vector<8x256xf32>
    %283 = tpu.matmul %281, %282, %cst_172 {dimension_numbers = #tpu.dot_dimension_numbers<[1], [0], [0], [1], [0, 0, 1, 1], [], []>} : vector<8x128xbf16>, vector<128x256xbf16>, vector<8x256xf32> -> vector<8x256xf32>
    %284 = arith.truncf %283 : vector<8x256xf32> to vector<8x256xbf16>
    %c0_173 = arith.constant 0 : index
    %c0_174 = arith.constant 0 : index
    %285 = vector.load %arg24[%c0_173, %c0_174] : memref<256x128xbf16, #tpu.memory_space<vmem>>, vector<256x128xbf16>
    %cst_175 = arith.constant dense<0.000000e+00> : vector<8x128xf32>
    %286 = tpu.matmul %284, %285, %cst_175 {dimension_numbers = #tpu.dot_dimension_numbers<[1], [0], [0], [1], [0, 0, 1, 1], [], []>} : vector<8x256xbf16>, vector<256x128xbf16>, vector<8x128xf32> -> vector<8x128xf32>
    %c0_176 = arith.constant 0 : index
    %c0_177 = arith.constant 0 : index
    %287 = vector.load %arg25[%c0_176, %c0_177] : memref<1x128xf32, #tpu.memory_space<vmem>>, vector<1x128xf32>
    %288 = vector.broadcast %287 : vector<1x128xf32> to vector<8x128xf32>
    %289 = arith.addf %286, %288 : vector<8x128xf32>
    %cst_178 = arith.constant 0.000000e+00 : f32
    %290 = vector.broadcast %cst_178 : f32 to vector<8x128xf32>
    %291 = arith.maximumf %289, %290 : vector<8x128xf32>
    %c0_179 = arith.constant 0 : index
    %c0_180 = arith.constant 0 : index
    %292 = vector.load %arg26[%c0_179, %c0_180] : memref<128x128xf32, #tpu.memory_space<vmem>>, vector<128x128xf32>
    %cst_181 = arith.constant dense<0.000000e+00> : vector<8x128xf32>
    %293 = tpu.matmul %291, %292, %cst_181 {dimension_numbers = #tpu.dot_dimension_numbers<[1], [0], [0], [1], [0, 0, 1, 1], [], []>} : vector<8x128xf32>, vector<128x128xf32>, vector<8x128xf32> -> vector<8x128xf32>
    %c0_182 = arith.constant 0 : index
    %c0_183 = arith.constant 0 : index
    %294 = vector.load %arg27[%c0_182, %c0_183] : memref<1x128xf32, #tpu.memory_space<vmem>>, vector<1x128xf32>
    %295 = vector.broadcast %294 : vector<1x128xf32> to vector<8x128xf32>
    %296 = arith.addf %293, %295 : vector<8x128xf32>
    %297 = tpu.iota {dimensions = array<i32: 1>} : vector<1x128xi32>
    %c3_i32 = arith.constant 3 : i32
    %298 = vector.broadcast %c3_i32 : i32 to vector<1x128xi32>
    %299 = arith.cmpi sge, %297, %298 : vector<1x128xi32>
    %c7_i32 = arith.constant 7 : i32
    %300 = vector.broadcast %c7_i32 : i32 to vector<1x128xi32>
    %301 = arith.cmpi slt, %297, %300 : vector<1x128xi32>
    %302 = arith.andi %299, %301 : vector<1x128xi1>
    %303 = arith.extui %302 : vector<1x128xi1> to vector<1x128xi32>
    %304 = arith.sitofp %303 : vector<1x128xi32> to vector<1x128xf32>
    %305 = arith.mulf %296, %296 : vector<8x128xf32>
    %306 = vector.broadcast %304 : vector<1x128xf32> to vector<8x128xf32>
    %307 = arith.mulf %305, %306 : vector<8x128xf32>
    %cst_184 = arith.constant dense<0.000000e+00> : vector<8xf32>
    %308 = vector.multi_reduction <add>, %307, %cst_184 [1] : vector<8x128xf32> to vector<8xf32>
    %309 = vector.shape_cast %308 : vector<8xf32> to vector<8x1xf32>
    %cst_185 = arith.constant 9.99999996E-13 : f32
    %310 = vector.broadcast %cst_185 : f32 to vector<8x1xf32>
    %311 = arith.maximumf %309, %310 : vector<8x1xf32>
    %312 = math.rsqrt %311 : vector<8x1xf32>
    %cst_186 = arith.constant 1.000000e+00 : f32
    %313 = vector.broadcast %cst_186 : f32 to vector<8x1xf32>
    %314 = arith.subf %312, %313 : vector<8x1xf32>
    %315 = vector.broadcast %304 : vector<1x128xf32> to vector<8x128xf32>
    %316 = vector.broadcast %314 : vector<8x1xf32> to vector<8x128xf32>
    %317 = arith.mulf %315, %316 : vector<8x128xf32>
    %cst_187 = arith.constant 1.000000e+00 : f32
    %318 = vector.broadcast %cst_187 : f32 to vector<8x128xf32>
    %319 = arith.addf %317, %318 : vector<8x128xf32>
    %320 = arith.mulf %296, %319 : vector<8x128xf32>
    %c0_188 = arith.constant 0 : index
    %c0_189 = arith.constant 0 : index
    %321 = vector.load %arg28[%c0_188, %c0_189] : memref<8x128xf32, #tpu.memory_space<vmem>>, vector<8x128xf32>
    tpu.vector_store %arg28[%c0_188, %c0_189], %320 {strides = array<i32>} : memref<8x128xf32, #tpu.memory_space<vmem>>, vector<8x128xf32>,
    return
  }
  func.func @transform_0(%arg0: i32) -> (i32, i32) {
    %c0_i32 = arith.constant 0 : i32
    %c0_i32_0 = arith.constant 0 : i32
    return %arg0, %c0_i32 : i32, i32
  }
  func.func @transform_1(%arg0: i32) -> (i32, i32) {
    %c0_i32 = arith.constant 0 : i32
    %c0_i32_0 = arith.constant 0 : i32
    %c0_i32_1 = arith.constant 0 : i32
    return %c0_i32, %c0_i32_0 : i32, i32
  }
  func.func @transform_2(%arg0: i32) -> (i32, i32) {
    %c0_i32 = arith.constant 0 : i32
    %c0_i32_0 = arith.constant 0 : i32
    %c0_i32_1 = arith.constant 0 : i32
    return %c0_i32, %c0_i32_0 : i32, i32
  }
  func.func @transform_3(%arg0: i32) -> (i32, i32) {
    %c0_i32 = arith.constant 0 : i32
    %c0_i32_0 = arith.constant 0 : i32
    %c0_i32_1 = arith.constant 0 : i32
    return %c0_i32, %c0_i32_0 : i32, i32
  }
  func.func @transform_4(%arg0: i32) -> (i32, i32) {
    %c0_i32 = arith.constant 0 : i32
    %c0_i32_0 = arith.constant 0 : i32
    %c0_i32_1 = arith.constant 0 : i32
    return %c0_i32, %c0_i32_0 : i32, i32
  }
  func.func @transform_5(%arg0: i32) -> (i32, i32) {
    %c0_i32 = arith.constant 0 : i32
    %c0_i32_0 = arith.constant 0 : i32
    %c0_i32_1 = arith.constant 0 : i32
    return %c0_i32, %c0_i32_0 : i32, i32
  }
  func.func @transform_6(%arg0: i32) -> (i32, i32) {
    %c0_i32 = arith.constant 0 : i32
    %c0_i32_0 = arith.constant 0 : i32
    %c0_i32_1 = arith.constant 0 : i32
    return %c0_i32, %c0_i32_0 : i32, i32
  }
  func.func @transform_7(%arg0: i32) -> (i32, i32) {
    %c0_i32 = arith.constant 0 : i32
    %c0_i32_0 = arith.constant 0 : i32
    %c0_i32_1 = arith.constant 0 : i32
    return %c0_i32, %c0_i32_0 : i32, i32
  }
  func.func @transform_8(%arg0: i32) -> (i32, i32) {
    %c0_i32 = arith.constant 0 : i32
    %c0_i32_0 = arith.constant 0 : i32
    %c0_i32_1 = arith.constant 0 : i32
    return %c0_i32, %c0_i32_0 : i32, i32
  }
  func.func @transform_9(%arg0: i32) -> (i32, i32) {
    %c0_i32 = arith.constant 0 : i32
    %c0_i32_0 = arith.constant 0 : i32
    %c0_i32_1 = arith.constant 0 : i32
    return %c0_i32, %c0_i32_0 : i32, i32
  }
  func.func @transform_10(%arg0: i32) -> (i32, i32) {
    %c0_i32 = arith.constant 0 : i32
    %c0_i32_0 = arith.constant 0 : i32
    %c0_i32_1 = arith.constant 0 : i32
    return %c0_i32, %c0_i32_0 : i32, i32
  }
  func.func @transform_11(%arg0: i32) -> (i32, i32) {
    %c0_i32 = arith.constant 0 : i32
    %c0_i32_0 = arith.constant 0 : i32
    %c0_i32_1 = arith.constant 0 : i32
    return %c0_i32, %c0_i32_0 : i32, i32
  }
  func.func @transform_12(%arg0: i32) -> (i32, i32) {
    %c0_i32 = arith.constant 0 : i32
    %c0_i32_0 = arith.constant 0 : i32
    %c0_i32_1 = arith.constant 0 : i32
    return %c0_i32, %c0_i32_0 : i32, i32
  }
  func.func @transform_13(%arg0: i32) -> (i32, i32) {
    %c0_i32 = arith.constant 0 : i32
    %c0_i32_0 = arith.constant 0 : i32
    %c0_i32_1 = arith.constant 0 : i32
    return %c0_i32, %c0_i32_0 : i32, i32
  }
  func.func @transform_14(%arg0: i32) -> (i32, i32) {
    %c0_i32 = arith.constant 0 : i32
    %c0_i32_0 = arith.constant 0 : i32
    %c0_i32_1 = arith.constant 0 : i32
    return %c0_i32, %c0_i32_0 : i32, i32
  }
  func.func @transform_15(%arg0: i32) -> (i32, i32) {
    %c0_i32 = arith.constant 0 : i32
    %c0_i32_0 = arith.constant 0 : i32
    %c0_i32_1 = arith.constant 0 : i32
    return %c0_i32, %c0_i32_0 : i32, i32
  }
  func.func @transform_16(%arg0: i32) -> (i32, i32) {
    %c0_i32 = arith.constant 0 : i32
    %c0_i32_0 = arith.constant 0 : i32
    %c0_i32_1 = arith.constant 0 : i32
    return %c0_i32, %c0_i32_0 : i32, i32
  }
  func.func @transform_17(%arg0: i32) -> (i32, i32) {
    %c0_i32 = arith.constant 0 : i32
    %c0_i32_0 = arith.constant 0 : i32
    %c0_i32_1 = arith.constant 0 : i32
    return %c0_i32, %c0_i32_0 : i32, i32
  }
  func.func @transform_18(%arg0: i32) -> (i32, i32) {
    %c0_i32 = arith.constant 0 : i32
    %c0_i32_0 = arith.constant 0 : i32
    %c0_i32_1 = arith.constant 0 : i32
    return %c0_i32, %c0_i32_0 : i32, i32
  }
  func.func @transform_19(%arg0: i32) -> (i32, i32) {
    %c0_i32 = arith.constant 0 : i32
    %c0_i32_0 = arith.constant 0 : i32
    %c0_i32_1 = arith.constant 0 : i32
    return %c0_i32, %c0_i32_0 : i32, i32
  }
  func.func @transform_20(%arg0: i32) -> (i32, i32) {
    %c0_i32 = arith.constant 0 : i32
    %c0_i32_0 = arith.constant 0 : i32
    %c0_i32_1 = arith.constant 0 : i32
    return %c0_i32, %c0_i32_0 : i32, i32
  }
  func.func @transform_21(%arg0: i32) -> (i32, i32) {
    %c0_i32 = arith.constant 0 : i32
    %c0_i32_0 = arith.constant 0 : i32
    %c0_i32_1 = arith.constant 0 : i32
    return %c0_i32, %c0_i32_0 : i32, i32
  }
  func.func @transform_22(%arg0: i32) -> (i32, i32) {
    %c0_i32 = arith.constant 0 : i32
    %c0_i32_0 = arith.constant 0 : i32
    %c0_i32_1 = arith.constant 0 : i32
    return %c0_i32, %c0_i32_0 : i32, i32
  }
  func.func @transform_23(%arg0: i32) -> (i32, i32) {
    %c0_i32 = arith.constant 0 : i32
    %c0_i32_0 = arith.constant 0 : i32
    %c0_i32_1 = arith.constant 0 : i32
    return %c0_i32, %c0_i32_0 : i32, i32
  }
  func.func @transform_24(%arg0: i32) -> (i32, i32) {
    %c0_i32 = arith.constant 0 : i32
    %c0_i32_0 = arith.constant 0 : i32
    %c0_i32_1 = arith.constant 0 : i32
    return %c0_i32, %c0_i32_0 : i32, i32
  }
  func.func @transform_25(%arg0: i32) -> (i32, i32) {
    %c0_i32 = arith.constant 0 : i32
    %c0_i32_0 = arith.constant 0 : i32
    %c0_i32_1 = arith.constant 0 : i32
    return %c0_i32, %c0_i32_0 : i32, i32
  }
  func.func @transform_26(%arg0: i32) -> (i32, i32) {
    %c0_i32 = arith.constant 0 : i32
    %c0_i32_0 = arith.constant 0 : i32
    %c0_i32_1 = arith.constant 0 : i32
    return %c0_i32, %c0_i32_0 : i32, i32
  }
  func.func @transform_27(%arg0: i32) -> (i32, i32) {
    %c0_i32 = arith.constant 0 : i32
    %c0_i32_0 = arith.constant 0 : i32
    return %arg0, %c0_i32 : i32, i32
  }
}

</mosaic_0001>

<bundles_post_ra>
// kernel: tpu_custom_call.1
= control target key start
LH: loop header
LB: loop body
LE: loop exit
PB: predicated region body
PF: predicated region fallthrough
CT: control target
= control target key end

     0   :  { %s19474_s0 = inlined_call_operand.vmem [shape: f32[128,6], index: 0, kind: input, shape index: {}]   ;;  %s19475_s1 = inlined_call_operand.vmem [shape: s32[128,1], index: 1, kind: input, shape index: {}]   ;;  %s19476_s2 = inlined_call_operand.vmem [shape: bf16[8,128], index: 2, kind: input, shape index: {}]   ;;  %s19477_s3 = inlined_call_operand.vmem [shape: f32[6,128], index: 3, kind: input, shape index: {}]   ;;  %s19478_s4 = inlined_call_operand.vmem [shape: f32[1,128], index: 4, kind: input, shape index: {}]   ;;  %s19479_s5 = inlined_call_operand.hbm [shape: bf16[640,128], index: 5, kind: input, shape index: {}]   ;;  %s19480_s6 = inlined_call_operand.vmem [shape: f32[1,128], index: 6, kind: input, shape index: {}]   ;;  %s19481_s7 = inlined_call_operand.hbm [shape: bf16[768,128], index: 7, kind: input, shape index: {}]   ;;  %s19482_s8 = inlined_call_operand.vmem [shape: f32[1,128], index: 8, kind: input, shape index: {}]   ;;  %s19483_s9 = inlined_call_operand.hbm [shape: bf16[640,128], index: 9, kind: input, shape index: {}]   ;;  %s19484_s10 = inlined_call_operand.vmem [shape: f32[1,128], index: 10, kind: input, shape index: {}]   ;;  %s19485_s11 = inlined_call_operand.hbm [shape: bf16[640,128], index: 11, kind: input, shape index: {}]   ;;  %s19486_s12 = inlined_call_operand.vmem [shape: f32[1,128], index: 12, kind: input, shape index: {}]   ;;  %s19487_s13 = inlined_call_operand.hbm [shape: bf16[640,256], index: 13, kind: input, shape index: {}]   ;;  %s19488_s14 = inlined_call_operand.vmem [shape: f32[1,256], index: 14, kind: input, shape index: {}]   ;;  %s19489_s15 = inlined_call_operand.hbm [shape: bf16[1408,256], index: 15, kind: input, shape index: {}]   ;;  %s19490_s16 = inlined_call_operand.vmem [shape: f32[1,256], index: 16, kind: input, shape index: {}]   ;;  %s19491_s17 = inlined_call_operand.hbm [shape: bf16[768,256], index: 17, kind: input, shape index: {}]   ;;  %s19492_s18 = inlined_call_operand.vmem [shape: f32[1,256], index: 18, kind: input, shape index: {}]   ;;  %s19493_s19 = inlined_call_operand.hbm [shape: bf16[768,256], index: 19, kind: input, shape index: {}]   ;;  %s19494_s20 = inlined_call_operand.vmem [shape: f32[1,256], index: 20, kind: input, shape index: {}]   ;;  %s19495_s21 = inlined_call_operand.vmem [shape: bf16[256,256], index: 21, kind: input, shape index: {}]   ;;  %s19496_s22 = inlined_call_operand.vmem [shape: f32[1,256], index: 22, kind: input, shape index: {}]   ;;  %s19497_s23 = inlined_call_operand.hbm [shape: bf16[256,128], index: 23, kind: input, shape index: {}]   ;;  %s19498_s24 = inlined_call_operand.vmem [shape: f32[1,128], index: 24, kind: input, shape index: {}]   ;;  %s19499_s25 = inlined_call_operand.hbm [shape: f32[128,128], index: 25, kind: input, shape index: {}]   ;;  %s19500_s26 = inlined_call_operand.vmem [shape: f32[1,128], index: 26, kind: input, shape index: {}]   ;;  %s19501_s27 = inlined_call_operand.hbm [shape: f32[8,128], index: 27, kind: output, shape index: {}]  }
   0x1   :  { %19779 = sst [smem:[#allocation108_spill]] %s19474_s0 }
   0x2   :  { %19780 = sst [smem:[#allocation109_spill]] %s19475_s1 }
   0x3   :  { %19781 = sst [smem:[#allocation110_spill]] %s19476_s2 }
   0x4   :  { %19782 = sst [smem:[#allocation111_spill]] %s19477_s3 }
   0x5   :  { %19783 = sst [smem:[#allocation112_spill]] %s19478_s4 }
   0x6   :  { %19784 = sst [smem:[#allocation113_spill]] %s19479_s5 }
   0x7   :  { %19785 = sst [smem:[#allocation114_spill]] %s19480_s6 }
   0x8   :  { %19786 = sst [smem:[#allocation115_spill]] %s19481_s7 }
   0x9   :  { %19787 = sst [smem:[#allocation116_spill]] %s19482_s8 }
   0xa   :  { %19788 = sst [smem:[#allocation117_spill]] %s19483_s9 }
   0xb   :  { %19789 = sst [smem:[#allocation118_spill]] %s19484_s10 }
   0xc   :  { %19790 = sst [smem:[#allocation119_spill]] %s19485_s11 }
   0xd   :  { %19791 = sst [smem:[#allocation120_spill]] %s19500_s26 }
   0xe   :  { %19792 = sst [smem:[#allocation121_spill]] %s19501_s27 }
   0xf   :  { %32 = vsyncpa [#allocation4], 0 }
  0x10   :  { %33 = vsyncpa [#allocation7], 0 }
  0x11   :  { %34 = vsyncpa [#allocation10], 0 }
  0x12   :  { %35 = vsyncpa [#allocation13], 0 }
  0x13   :  { %36 = vsyncpa [#allocation16], 0 }
  0x14   :  { %37 = vsyncpa [#allocation19], 0 }
  0x15   :  { %38 = vsyncpa [#allocation5], 0  ;;  %s14465_s7 = smov [#allocation6]   ;;  %s14466_s8 = smov [#allocation9]  }
  0x16   :  { %s68_s4 = sshll.u32 %s14465_s7, 4  ;;  %s96_s30 = sshll.u32 %s14466_s8, 4  ;;  %s69_s4 = int_to_ptr.vmem [resolvable:$true] %s68_s4  ;;  %s14624_s30 = int_to_ptr.vmem [resolvable:$true] %s96_s30 }
  0x17   :  { %s19793_s28 = sld [smem:[#allocation115_spill]] }
  0x1d   :  { %s14209_s0 = scalar_lea.hbm %s19793_s28, 6144 }
  0x1e   :  { %p14210_p0 = scmp.ne.s32.totalorder %s19793_s28, %s14209_s0  ;;  %p14213_p1 = scmp.lt.u32.totalorder %s14209_s0, %s19793_s28 }
  0x20   :  { %p14215_p2 = pnand %p14213_p1, %p14210_p0 }
  0x22   :  { %14218 = shalt.err (!%p14215_p2)
}
  0x23   :  { %s14219_s11 = scalar_lea.vmem %s69_s4, 6144  ;;  %p14224_p4 = scmp.lt.s32.totalorder %s69_s4, %s69_s4 }
  0x24   :  { %p14220_p3 = scmp.ne.s32.totalorder %s69_s4, %s14219_s11  ;;  %p14225_p5 = scmp.lt.s32.totalorder %s14219_s11, %s14219_s11 }
  0x26   :  { %p14226_p6 = por %p14225_p5, %p14224_p4 }
  0x28   :  { %p14227_p7 = pnand %p14226_p6, %p14220_p3 }
  0x2a   :  { %14230 = shalt.err (!%p14227_p7)
}
  0x2b   :  { %s19509_s2 = smov 64   ;;  %s14468_s3 = smov 4  }
  0x2c   :  { %74 = dma.hbm_to_vmem [thread:$0]  %s19793_s28, 6144, %s69_s4, [#allocation7], %s19509_s2, %s19509_s2, %s14468_s3  }
  0x2d   :  { %s19794_s0 = sld [smem:[#allocation119_spill]] }
  0x33   :  { %s14231_s10 = scalar_lea.hbm %s19794_s0, 5120 }
  0x34   :  { %p14232_p8 = scmp.ne.s32.totalorder %s19794_s0, %s14231_s10  ;;  %p14235_p9 = scmp.lt.u32.totalorder %s14231_s10, %s19794_s0 }
  0x36   :  { %p14237_p10 = pnand %p14235_p9, %p14232_p8 }
  0x38   :  { %14240 = shalt.err (!%p14237_p10)
}
  0x39   :  { %s14241_s27 = scalar_lea.vmem %s14624_s30, 5120  ;;  %p14246_p12 = scmp.lt.s32.totalorder %s14624_s30, %s14624_s30 }
  0x3a   :  { %p14242_p11 = scmp.ne.s32.totalorder %s14624_s30, %s14241_s27  ;;  %p14247_p13 = scmp.lt.s32.totalorder %s14241_s27, %s14241_s27 }
  0x3c   :  { %p14248_p0 = por %p14247_p13, %p14246_p12 }
  0x3e   :  { %p14249_p1 = pnand %p14248_p0, %p14242_p11 }
  0x40   :  { %14252 = shalt.err (!%p14249_p1)
}
  0x41   :  { %102 = dma.hbm_to_vmem [thread:$0]  %s19794_s0, 5120, %s14624_s30, [#allocation10], %s19509_s2, %s19509_s2, %s14468_s3  }
  0x42   :  { %s14469_s7 = smov [#allocation12]   ;;  %s14470_s9 = smov [#allocation15]  }
  0x43   :  { %s124_s8 = sshll.u32 %s14469_s7, 4  ;;  %s152_s5 = sshll.u32 %s14470_s9, 4  ;;  %s125_s8 = int_to_ptr.vmem [resolvable:$true] %s124_s8  ;;  %s14661_s5 = int_to_ptr.vmem [resolvable:$true] %s152_s5 }
  0x44   :  { %s14253_s29 = scalar_lea.hbm %s19489_s15, 22528 }
  0x45   :  { %p14254_p2 = scmp.ne.s32.totalorder %s19489_s15, %s14253_s29  ;;  %p14257_p3 = scmp.lt.u32.totalorder %s14253_s29, %s19489_s15 }
  0x47   :  { %p14259_p4 = pnand %p14257_p3, %p14254_p2 }
  0x49   :  { %14262 = shalt.err (!%p14259_p4)
}
  0x4a   :  { %s14263_s30 = scalar_lea.vmem %s125_s8, 22528  ;;  %p14268_p6 = scmp.lt.s32.totalorder %s125_s8, %s125_s8 }
  0x4b   :  { %p14264_p5 = scmp.ne.s32.totalorder %s125_s8, %s14263_s30  ;;  %p14269_p7 = scmp.lt.s32.totalorder %s14263_s30, %s14263_s30 }
  0x4d   :  { %p14270_p8 = por %p14269_p7, %p14268_p6 }
  0x4f   :  { %p14271_p9 = pnand %p14270_p8, %p14264_p5 }
  0x51   :  { %14274 = shalt.err (!%p14271_p9)
}
  0x52   :  { %s14471_s0 = smov 128   ;;  %s14472_s4 = smov 8  }
  0x53   :  { %130 = dma.hbm_to_vmem [thread:$0]  %s19489_s15, 22528, %s125_s8, [#allocation13], %s14471_s0, %s14471_s0, %s14472_s4  }
  0x54   :  { %s14275_s10 = scalar_lea.hbm %s19493_s19, 12288 }
  0x55   :  { %p14276_p10 = scmp.ne.s32.totalorder %s19493_s19, %s14275_s10  ;;  %p14279_p11 = scmp.lt.u32.totalorder %s14275_s10, %s19493_s19 }
  0x57   :  { %p14281_p12 = pnand %p14279_p11, %p14276_p10 }
  0x59   :  { %14284 = shalt.err (!%p14281_p12)
}
  0x5a   :  { %s14285_s11 = scalar_lea.vmem %s14661_s5, 12288  ;;  %p14290_p0 = scmp.lt.s32.totalorder %s14661_s5, %s14661_s5 }
  0x5b   :  { %p14286_p13 = scmp.ne.s32.totalorder %s14661_s5, %s14285_s11  ;;  %p14291_p1 = scmp.lt.s32.totalorder %s14285_s11, %s14285_s11 }
  0x5d   :  { %p14292_p2 = por %p14291_p1, %p14290_p0 }
  0x5f   :  { %p14293_p3 = pnand %p14292_p2, %p14286_p13 }
  0x61   :  { %14296 = shalt.err (!%p14293_p3)
}
  0x62   :  { %158 = dma.hbm_to_vmem [thread:$0]  %s19493_s19, 12288, %s14661_s5, [#allocation16], %s14471_s0, %s14471_s0, %s14472_s4  }
  0x63   :  { %s14473_s30 = smov [#allocation3]   ;;  %s14474_s7 = smov [#allocation8]  }
  0x64   :  { %s54_s28 = sshll.u32 %s14473_s30, 4  ;;  %s82_s26 = sshll.u32 %s14474_s7, 4  ;;  %s55_s28 = int_to_ptr.vmem [resolvable:$true] %s54_s28  ;;  %s14698_s26 = int_to_ptr.vmem [resolvable:$true] %s82_s26 }
  0x65   :  { %s19795_s27 = sld [smem:[#allocation113_spill]] }
  0x6b   :  { %s14297_s29 = scalar_lea.hbm %s19795_s27, 5120 }
  0x6c   :  { %p14298_p4 = scmp.ne.s32.totalorder %s19795_s27, %s14297_s29  ;;  %p14301_p5 = scmp.lt.u32.totalorder %s14297_s29, %s19795_s27 }
  0x6e   :  { %p14303_p6 = pnand %p14301_p5, %p14298_p4 }
  0x70   :  { %14306 = shalt.err (!%p14303_p6)
}
  0x71   :  { %s14307_s19 = scalar_lea.vmem %s55_s28, 5120  ;;  %p14312_p8 = scmp.lt.s32.totalorder %s55_s28, %s55_s28 }
  0x72   :  { %p14308_p7 = scmp.ne.s32.totalorder %s55_s28, %s14307_s19  ;;  %p14313_p9 = scmp.lt.s32.totalorder %s14307_s19, %s14307_s19 }
  0x74   :  { %p14314_p10 = por %p14313_p9, %p14312_p8 }
  0x76   :  { %p14315_p11 = pnand %p14314_p10, %p14308_p7 }
  0x78   :  { %14318 = shalt.err (!%p14315_p11)
}
  0x79   :  { %s19796_s5 = smov 64   ;;  %s19797_s2 = sld [smem:[#allocation117_spill]] }
  0x7a   :  { %60 = dma.hbm_to_vmem [thread:$0]  %s19795_s27, 5120, %s55_s28, [#allocation4], %s19796_s5, %s19796_s5, %s14468_s3  }
  0x7f   :  { %s14319_s9 = scalar_lea.hbm %s19797_s2, 5120 }
  0x80   :  { %p14320_p12 = scmp.ne.s32.totalorder %s19797_s2, %s14319_s9  ;;  %p14323_p13 = scmp.lt.u32.totalorder %s14319_s9, %s19797_s2 }
  0x82   :  { %p14325_p0 = pnand %p14323_p13, %p14320_p12 }
  0x84   :  { %14328 = shalt.err (!%p14325_p0)
}
  0x85   :  { %s14329_s11 = scalar_lea.vmem %s14698_s26, 5120  ;;  %p14334_p2 = scmp.lt.s32.totalorder %s14698_s26, %s14698_s26 }
  0x86   :  { %p14330_p1 = scmp.ne.s32.totalorder %s14698_s26, %s14329_s11  ;;  %p14335_p3 = scmp.lt.s32.totalorder %s14329_s11, %s14329_s11 }
  0x88   :  { %p14336_p4 = por %p14335_p3, %p14334_p2 }
  0x8a   :  { %p14337_p5 = pnand %p14336_p4, %p14330_p1 }
  0x8c   :  { %14340 = shalt.err (!%p14337_p5)
}
  0x8d   :  { %88 = dma.hbm_to_vmem [thread:$0]  %s19797_s2, 5120, %s14698_s26, [#allocation7], %s19796_s5, %s19796_s5, %s14468_s3  }
  0x8e   :  { %s14475_s19 = smov [#allocation11]   ;;  %s14476_s8 = smov [#allocation14]  }
  0x8f   :  { %s110_s15 = sshll.u32 %s14475_s19, 4  ;;  %s138_s30 = sshll.u32 %s14476_s8, 4  ;;  %s111_s15 = int_to_ptr.vmem [resolvable:$true] %s110_s15  ;;  %s14735_s30 = int_to_ptr.vmem [resolvable:$true] %s138_s30 }
  0x90   :  { %s14341_s10 = scalar_lea.hbm %s19487_s13, 10240 }
  0x91   :  { %p14342_p6 = scmp.ne.s32.totalorder %s19487_s13, %s14341_s10  ;;  %p14345_p7 = scmp.lt.u32.totalorder %s14341_s10, %s19487_s13 }
  0x93   :  { %p14347_p8 = pnand %p14345_p7, %p14342_p6 }
  0x95   :  { %14350 = shalt.err (!%p14347_p8)
}
  0x96   :  { %s14351_s26 = scalar_lea.vmem %s111_s15, 10240  ;;  %p14356_p10 = scmp.lt.s32.totalorder %s111_s15, %s111_s15 }
  0x97   :  { %p14352_p9 = scmp.ne.s32.totalorder %s111_s15, %s14351_s26  ;;  %p14357_p11 = scmp.lt.s32.totalorder %s14351_s26, %s14351_s26 }
  0x99   :  { %p14358_p12 = por %p14357_p11, %p14356_p10 }
  0x9b   :  { %p14359_p13 = pnand %p14358_p12, %p14352_p9 }
  0x9d   :  { %14362 = shalt.err (!%p14359_p13)
}
  0x9e   :  { %116 = dma.hbm_to_vmem [thread:$0]  %s19487_s13, 10240, %s111_s15, [#allocation10], %s14471_s0, %s14471_s0, %s14472_s4  }
  0x9f   :  { %s14363_s8 = scalar_lea.hbm %s19491_s17, 12288 }
  0xa0   :  { %p14364_p0 = scmp.ne.s32.totalorder %s19491_s17, %s14363_s8  ;;  %p14367_p1 = scmp.lt.u32.totalorder %s14363_s8, %s19491_s17 }
  0xa2   :  { %p14369_p2 = pnand %p14367_p1, %p14364_p0 }
  0xa4   :  { %14372 = shalt.err (!%p14369_p2)
}
  0xa5   :  { %s14373_s1 = scalar_lea.vmem %s14735_s30, 12288  ;;  %p14378_p4 = scmp.lt.s32.totalorder %s14735_s30, %s14735_s30 }
  0xa6   :  { %p14374_p3 = scmp.ne.s32.totalorder %s14735_s30, %s14373_s1  ;;  %p14379_p5 = scmp.lt.s32.totalorder %s14373_s1, %s14373_s1 }
  0xa8   :  { %p14380_p6 = por %p14379_p5, %p14378_p4 }
  0xaa   :  { %p14381_p7 = pnand %p14380_p6, %p14374_p3 }
  0xac   :  { %14384 = shalt.err (!%p14381_p7)
}
  0xad   :  { %144 = dma.hbm_to_vmem [thread:$0]  %s19491_s17, 12288, %s14735_s30, [#allocation13], %s14471_s0, %s14471_s0, %s14472_s4  }
  0xae   :  { %s14477_s6 = smov [#allocation17]   ;;  %s14478_s26 = smov [#allocation18]  }
  0xaf   :  { %s170_s11 = sshll.u32 %s14477_s6, 4  ;;  %s184_s2 = sshll.u32 %s14478_s26, 4  ;;  %s171_s11 = int_to_ptr.vmem [resolvable:$true] %s170_s11  ;;  %s14772_s2 = int_to_ptr.vmem [resolvable:$true] %s184_s2 }
  0xb0   :  { %s14385_s19 = scalar_lea.hbm %s19497_s23, 2048 }
  0xb1   :  { %p14386_p8 = scmp.ne.s32.totalorder %s19497_s23, %s14385_s19  ;;  %p14389_p9 = scmp.lt.u32.totalorder %s14385_s19, %s19497_s23 }
  0xb3   :  { %p14391_p10 = pnand %p14389_p9, %p14386_p8 }
  0xb5   :  { %14394 = shalt.err (!%p14391_p10)
}
  0xb6   :  { %s14395_s17 = scalar_lea.vmem %s171_s11, 2048  ;;  %p14400_p12 = scmp.lt.s32.totalorder %s171_s11, %s171_s11 }
  0xb7   :  { %p14396_p11 = scmp.ne.s32.totalorder %s171_s11, %s14395_s17  ;;  %p14401_p13 = scmp.lt.s32.totalorder %s14395_s17, %s14395_s17 }
  0xb9   :  { %p14402_p0 = por %p14401_p13, %p14400_p12 }
  0xbb   :  { %p14403_p1 = pnand %p14402_p0, %p14396_p11 }
  0xbd   :  { %14406 = shalt.err (!%p14403_p1)
}
  0xbe   :  { %176 = dma.hbm_to_vmem [thread:$0]  %s19497_s23, 2048, %s171_s11, [#allocation16], %s19796_s5, %s19796_s5, %s14468_s3  }
  0xbf   :  { %s14407_s15 = scalar_lea.hbm %s19499_s25, 2048 }
  0xc0   :  { %p14408_p2 = scmp.ne.s32.totalorder %s19499_s25, %s14407_s15  ;;  %p14411_p3 = scmp.lt.u32.totalorder %s14407_s15, %s19499_s25 }
  0xc2   :  { %p14413_p4 = pnand %p14411_p3, %p14408_p2 }
  0xc4   :  { %14416 = shalt.err (!%p14413_p4)
}
  0xc5   :  { %s14417_s19 = scalar_lea.vmem %s14772_s2, 2048  ;;  %p14422_p6 = scmp.lt.s32.totalorder %s14772_s2, %s14772_s2 }
  0xc6   :  { %p14418_p5 = scmp.ne.s32.totalorder %s14772_s2, %s14417_s19  ;;  %p14423_p7 = scmp.lt.s32.totalorder %s14417_s19, %s14417_s19 }
  0xc8   :  { %p14424_p8 = por %p14423_p7, %p14422_p6 }
  0xca   :  { %p14425_p9 = pnand %p14424_p8, %p14418_p5 }
  0xcc   :  { %14428 = shalt.err (!%p14425_p9)
}
  0xcd   :  { %190 = dma.hbm_to_vmem [thread:$0]  %s19499_s25, 2048, %s14772_s2, [#allocation19], %s14471_s0, %s14471_s0, %s14472_s4  }
  0xce   :  { %14451 = dma.done.wait [#allocation4], 5120  }
  0xcf   :  { %14452 = vsyncadd [#allocation4], 4294962176 }
  0xd0   :  { %14453 = dma.done.wait [#allocation7], 11264  }
  0xd1   :  { %14454 = vsyncadd [#allocation7], 4294956032 }
  0xd2   :  { %14455 = dma.done.wait [#allocation10], 15360  }
  0xd3   :  { %14456 = vsyncadd [#allocation10], 4294951936 }
  0xd4   :  { %14457 = dma.done.wait [#allocation13], 34816  }
  0xd5   :  { %14458 = vsyncadd [#allocation13], 4294932480 }
  0xd6   :  { %14459 = dma.done.wait [#allocation16], 14336  }
  0xd7   :  { %14460 = vsyncadd [#allocation16], 4294952960 }
  0xd8   :  { %14461 = dma.done.wait [#allocation19], 2048  }
  0xd9   :  { %14462 = vsyncadd [#allocation19], 4294965248  ;;  %v19514_v0 = vmov 0   ;;  %vm761_vm0 = vcmask 1045504   ;;  %vm712_vm1 = vcmask 48128   ;;  %s19798_s4 = sld [smem:[#allocation111_spill]] }
  0xda   :  { %13291 = vset.pattern.permute.xlu1 %v19514_v0  ;;  %13290 = vset.pattern.permute.xlu0 %v19514_v0  ;;  %s19799_s2 = sld [smem:[#allocation108_spill]]  ;;  %s19800_s17 = sld [smem:[#allocation109_spill]]  ;;  %v19512_v9 = vmov 0.0  }
  0xdb   :  { %s19880_s8 = sld [smem:[#allocation114_spill]]  ;;  %s19947_s10 = sld [smem:[#allocation116_spill]] }
  0xdc   :  { %s19983_s1 = sld [smem:[#allocation118_spill]] }
  0xdd   :  { %s20345_s7 = sld [smem:[#allocation110_spill]] }
  0xdf   :  { %v704_v1 = vld [vmem:[%s19798_s4] sm:$0x3f]  ;;  %s19805_s4 = sld [smem:[#allocation112_spill]] }
  0xe0   :  { %v224_v2 = vld [vmem:[%s19799_s2] sm:$0xff]  ;;  %v225_v3 = vld [vmem:[%s19799_s2 + $0x8] sm:$0xff]  ;;  %12610 = vmatprep.subr.msk.mxu0 %vm761_vm0, %v704_v1  ;;  %v14824_v4 = vld [vmem:[%s19800_s17 + $0x10] sm:$0xff] }
  0xe1   :  { %12612 = vmatprep.mubr.msk.f32.mxu0 %vm712_vm1, %v224_v2  ;;  %v14829_v5 = vld [vmem:[%s19800_s17 + $0x18] sm:$0xff]  ;;  %v14834_v6 = vld [vmem:[%s19800_s17] sm:$0xff]  ;;  %12611 = vmatpush3.msk.msra.mxu0 %vm761_vm0, %v704_v1  ;;  %vm426_vm2 = vcmp.ge.s32.totalorder %v14824_v4, 1  ;;  %v14841_v7 = vld [vmem:[%s19800_s17 + $0x8] sm:$0xff]  ;;  %vm370_vm6 = vcmp.ge.s32.totalorder %v14824_v4, 2 }
  0xe2   :  { %vm427_vm3 = vcmp.ge.s32.totalorder %v14829_v5, 1  ;;  %vm424_vm4 = vcmp.ge.s32.totalorder %v14834_v6, 1  ;;  %v226_v8 = vld [vmem:[%s19799_s2 + $0x10] sm:$0xff]  ;;  %12613 = vmatmul.mubr.msk.f32.vlgmr.msra.gmra.mrb[0].mxu0 %vm712_vm1, %v225_v3  ;;  %v11162_v10 = vsel %vm426_vm2, 1.0, %v19512_v9  ;;  %vm425_vm5 = vcmp.ge.s32.totalorder %v14841_v7, 1  ;;  %v227_v15 = vld [vmem:[%s19799_s2 + $0x18] sm:$0xff] }
  0xe3   :  { %v11163_v11 = vsel %vm427_vm3, 1.0, %v19512_v9  ;;  %v11160_v12 = vsel %vm424_vm4, 1.0, %v19512_v9  ;;  %v11161_v14 = vsel %vm425_vm5, 1.0, %v19512_v9  ;;  %12615 = vmatprep.mubr.msk.f32.mxu0 %vm712_vm1, %v226_v8  ;;  %vm371_vm7 = vcmp.ge.s32.totalorder %v14829_v5, 2  ;;  %v14862_v16 = vld [vmem:[%s19800_s17 + $0x20] sm:$0xff]  ;;  %v14867_v17 = vld [vmem:[%s19800_s17 + $0x28] sm:$0xff] }
  0xe4   :  { %v473_v13 = vpack.c.bf16 %v11163_v11, %v11162_v10  ;;  %v472_v18 = vpack.c.bf16 %v11161_v14, %v11160_v12  ;;  %v11146_v19 = vsel %vm370_vm6, 1.0, %v19512_v9  ;;  %v11147_v20 = vsel %vm371_vm7, 1.0, %v19512_v9  ;;  %v228_v21 = vld [vmem:[%s19799_s2 + $0x20] sm:$0xff]  ;;  %v14881_v24 = vld [vmem:[%s19800_s17 + $0x30] sm:$0xff]  ;;  %v14886_v25 = vld [vmem:[%s19800_s17 + $0x38] sm:$0xff] }
  0xe5   :  { %vm368_vm8 = vcmp.ge.s32.totalorder %v14834_v6, 2  ;;  %v417_v22 = vpack.c.bf16 %v11147_v20, %v11146_v19  ;;  %vm369_vm9 = vcmp.ge.s32.totalorder %v14841_v7, 2  ;;  %vm372_vm10 = vcmp.ge.s32.totalorder %v14862_v16, 2  ;;  %v229_v29 = vld [vmem:[%s19799_s2 + $0x28] sm:$0xff]  ;;  %v14903_v32 = vld [vmem:[%s19800_s17 + $0x40] sm:$0xff]  ;;  %v230_v34 = vld [vmem:[%s19799_s2 + $0x30] sm:$0xff] }
  0xe6   :  { %1065 = vperm.xlu1 %13291, %v473_v13   ;;  %v11144_v23 = vsel %vm368_vm8, 1.0, %v19512_v9  ;;  %1060 = vperm.xlu0 %13290, %v472_v18   ;;  %v11145_v26 = vsel %vm369_vm9, 1.0, %v19512_v9  ;;  %vm373_vm11 = vcmp.ge.s32.totalorder %v14867_v17, 2  ;;  %v11148_v27 = vsel %vm372_vm10, 1.0, %v19512_v9  ;;  %v14914_v35 = vld [vmem:[%s19800_s17 + $0x48] sm:$0xff]  ;;  %v231_v38 = vld [vmem:[%s19799_s2 + $0x38] sm:$0xff] }
  0xe7   :  { %12616 = vmatmul.mubr.msk.f32.gmra.mrb[2].mxu0 %vm712_vm1, %v227_v15  ;;  %vm428_vm12 = vcmp.ge.s32.totalorder %v14862_v16, 1  ;;  %v416_v28 = vpack.c.bf16 %v11145_v26, %v11144_v23  ;;  %v11149_v30 = vsel %vm373_vm11, 1.0, %v19512_v9  ;;  %vm429_vm13 = vcmp.ge.s32.totalorder %v14867_v17, 1  ;;  %v232_v43 = vld [vmem:[%s19799_s2 + $0x40] sm:$0xff]  ;;  %v233_v45 = vld [vmem:[%s19799_s2 + $0x48] sm:$0xff]  ;;  %v14942_v48 = vld [vmem:[%s19800_s17 + $0x50] sm:$0xff] }
  0xe8   :  { %12618 = vmatprep.mubr.msk.f32.mxu0 %vm712_vm1, %v228_v21  ;;  %v11164_v31 = vsel %vm428_vm12, 1.0, %v19512_v9  ;;  %v11165_v33 = vsel %vm429_vm13, 1.0, %v19512_v9  ;;  %vm374_vm14 = vcmp.ge.s32.totalorder %v14881_v24, 2  ;;  %vm375_vm15 = vcmp.ge.s32.totalorder %v14886_v25, 2  ;;  %v234_v52 = vld [vmem:[%s19799_s2 + $0x50] sm:$0xff]  ;;  %v14958_v53 = vld [vmem:[%s19800_s17 + $0x58] sm:$0xff] }
  0xe9   :  { %v418_v36 = vpack.c.bf16 %v11149_v30, %v11148_v27  ;;  %v474_v37 = vpack.c.bf16 %v11165_v33, %v11164_v31  ;;  %vm430_vm0 = vcmp.ge.s32.totalorder %v14881_v24, 1  ;;  %v11150_v39 = vsel %vm374_vm14, 1.0, %v19512_v9  ;;  %v235_v55 = vld [vmem:[%s19799_s2 + $0x58] sm:$0xff]  ;;  %v236_v61 = vld [vmem:[%s19799_s2 + $0x60] sm:$0xff]  ;;  %v14984_v63 = vld [vmem:[%s19800_s17 + $0x68] sm:$0xff] }
  0xea   :  { %968 = vperm.xlu1 %13291, %v417_v22   ;;  %963 = vperm.xlu0 %13290, %v416_v28   ;;  %v11151_v40 = vsel %vm375_vm15, 1.0, %v19512_v9  ;;  %vm431_vm2 = vcmp.ge.s32.totalorder %v14886_v25, 1  ;;  %vm432_vm3 = vcmp.ge.s32.totalorder %v14903_v32, 1  ;;  %v11166_v41 = vsel %vm430_vm0, 1.0, %v19512_v9  ;;  %v14975_v62 = vld [vmem:[%s19800_s17 + $0x60] sm:$0xff]  ;;  %v237_v2 = vld [vmem:[%s19799_s2 + $0x68] sm:$0xff] }
  0xeb   :  { %12619 = vmatmul.mubr.msk.f32.gmra.mrb[4].mxu0 %vm712_vm1, %v229_v29  ;;  %v11167_v42 = vsel %vm431_vm2, 1.0, %v19512_v9  ;;  %vm433_vm4 = vcmp.ge.s32.totalorder %v14914_v35, 1  ;;  %vm480_vm5 = vcmp.lt.s32.totalorder %v14834_v6, 15  ;;  %vm481_vm6 = vcmp.lt.s32.totalorder %v14841_v7, 15  ;;  %v238_v13 = vld [vmem:[%s19799_s2 + $0x70] sm:$0xff]  ;;  %v239_v18 = vld [vmem:[%s19799_s2 + $0x78] sm:$0xff] }
  0xec   :  { %12621 = vmatprep.mubr.msk.f32.mxu0 %vm712_vm1, %v230_v34  ;;  %v419_v44 = vpack.c.bf16 %v11151_v40, %v11150_v39  ;;  %v11168_v46 = vsel %vm432_vm3, 1.0, %v19512_v9  ;;  %v11169_v47 = vsel %vm433_vm4, 1.0, %v19512_v9  ;;  %v475_v49 = vpack.c.bf16 %v11167_v42, %v11166_v41  ;;  %v15013_v22 = vld [vmem:[%s19800_s17 + $0x70] sm:$0xff]  ;;  %v15023_v26 = vld [vmem:[%s19800_s17 + $0x78] sm:$0xff] }
  0xed   :  { %v11176_v50 = vsel %vm480_vm5, 1.0, %v19512_v9  ;;  %vm482_vm7 = vcmp.lt.s32.totalorder %v14824_v4, 15  ;;  %vm483_vm8 = vcmp.lt.s32.totalorder %v14829_v5, 15  ;;  %v11177_v51 = vsel %vm481_vm6, 1.0, %v19512_v9 }
  0xee   :  { %973 = vperm.xlu1 %13291, %v418_v36   ;;  %1070 = vperm.xlu0 %13290, %v474_v37   ;;  %vm376_vm9 = vcmp.ge.s32.totalorder %v14903_v32, 2  ;;  %vm377_vm10 = vcmp.ge.s32.totalorder %v14914_v35, 2  ;;  %v476_v54 = vpack.c.bf16 %v11169_v47, %v11168_v46  ;;  %v11178_v56 = vsel %vm482_vm7, 1.0, %v19512_v9 }
  0xef   :  { %12622 = vmatmul.mubr.msk.f32.gmra.mrb[6].mxu0 %vm712_vm1, %v231_v38  ;;  %v11179_v57 = vsel %vm483_vm8, 1.0, %v19512_v9  ;;  %v528_v58 = vpack.c.bf16 %v11177_v51, %v11176_v50  ;;  %v11152_v59 = vsel %vm376_vm9, 1.0, %v19512_v9  ;;  %v11153_v60 = vsel %vm377_vm10, 1.0, %v19512_v9 }
  0xf0   :  { %12624 = vmatprep.mubr.msk.f32.mxu0 %vm712_vm1, %v232_v43  ;;  %vm378_vm11 = vcmp.ge.s32.totalorder %v14942_v48, 2  ;;  %vm379_vm12 = vcmp.ge.s32.totalorder %v14958_v53, 2  ;;  %vm434_vm13 = vcmp.ge.s32.totalorder %v14942_v48, 1  ;;  %vm435_vm14 = vcmp.ge.s32.totalorder %v14958_v53, 1 }
  0xf1   :  { %v529_v1 = vpack.c.bf16 %v11179_v57, %v11178_v56  ;;  %v11154_v3 = vsel %vm378_vm11, 1.0, %v19512_v9  ;;  %v420_v8 = vpack.c.bf16 %v11153_v60, %v11152_v59  ;;  %v11155_v10 = vsel %vm379_vm12, 1.0, %v19512_v9 }
  0xf2   :  { %978 = vperm.xlu1 %13291, %v419_v44   ;;  %1075 = vperm.xlu0 %13290, %v475_v49   ;;  %v11170_v11 = vsel %vm434_vm13, 1.0, %v19512_v9  ;;  %v11171_v12 = vsel %vm435_vm14, 1.0, %v19512_v9  ;;  %vm436_vm15 = vcmp.ge.s32.totalorder %v14975_v62, 1  ;;  %vm437_vm0 = vcmp.ge.s32.totalorder %v14984_v63, 1 }
  0xf3   :  { %12625 = vmatmul.mubr.msk.f32.gmra.mrb[8].mxu0 %vm712_vm1, %v233_v45  ;;  %vm484_vm2 = vcmp.lt.s32.totalorder %v14862_v16, 15  ;;  %vm485_vm3 = vcmp.lt.s32.totalorder %v14867_v17, 15  ;;  %v421_v14 = vpack.c.bf16 %v11155_v10, %v11154_v3  ;;  %v477_v15 = vpack.c.bf16 %v11171_v12, %v11170_v11 }
  0xf4   :  { %12627 = vmatprep.mubr.msk.f32.mxu0 %vm712_vm1, %v234_v52  ;;  %v11172_v19 = vsel %vm436_vm15, 1.0, %v19512_v9  ;;  %v11173_v20 = vsel %vm437_vm0, 1.0, %v19512_v9  ;;  %v11180_v21 = vsel %vm484_vm2, 1.0, %v19512_v9  ;;  %vm486_vm4 = vcmp.lt.s32.totalorder %v14881_v24, 15 }
  0xf5   :  { %v11181_v23 = vsel %vm485_vm3, 1.0, %v19512_v9  ;;  %vm487_vm5 = vcmp.lt.s32.totalorder %v14886_v25, 15  ;;  %vm380_vm6 = vcmp.ge.s32.totalorder %v14975_v62, 2  ;;  %vm381_vm7 = vcmp.ge.s32.totalorder %v14984_v63, 2 }
  0xf6   :  { %1080 = vperm.xlu1 %13291, %v476_v54   ;;  %1165 = vperm.xlu0 %13290, %v528_v58   ;;  %v478_v27 = vpack.c.bf16 %v11173_v20, %v11172_v19  ;;  %v530_v28 = vpack.c.bf16 %v11181_v23, %v11180_v21  ;;  %v11182_v29 = vsel %vm486_vm4, 1.0, %v19512_v9  ;;  %v11183_v30 = vsel %vm487_vm5, 1.0, %v19512_v9 }
  0xf7   :  { %12628 = vmatmul.mubr.msk.f32.gmra.mrb[10].mxu0 %vm712_vm1, %v235_v55  ;;  %v11156_v31 = vsel %vm380_vm6, 1.0, %v19512_v9  ;;  %v11157_v33 = vsel %vm381_vm7, 1.0, %v19512_v9  ;;  %vm382_vm8 = vcmp.ge.s32.totalorder %v15013_v22, 2  ;;  %vm383_vm9 = vcmp.ge.s32.totalorder %v15023_v26, 2 }
  0xf8   :  { %12630 = vmatprep.mubr.msk.f32.mxu0 %vm712_vm1, %v236_v61  ;;  %vm438_vm10 = vcmp.ge.s32.totalorder %v15013_v22, 1  ;;  %vm439_vm11 = vcmp.ge.s32.totalorder %v15023_v26, 1  ;;  %vm536_vm12 = vcmp.lt.s32.totalorder %v14834_v6, 14  ;;  %v531_v34 = vpack.c.bf16 %v11183_v30, %v11182_v29 }
  0xf9   :  { %v422_v36 = vpack.c.bf16 %v11157_v33, %v11156_v31  ;;  %v11158_v37 = vsel %vm382_vm8, 1.0, %v19512_v9  ;;  %v11159_v38 = vsel %vm383_vm9, 1.0, %v19512_v9  ;;  %v11174_v39 = vsel %vm438_vm10, 1.0, %v19512_v9 }
  0xfa   :  { %1170 = vperm.xlu1 %13291, %v529_v1   ;;  %983 = vperm.xlu0 %13290, %v420_v8   ;;  %v11175_v40 = vsel %vm439_vm11, 1.0, %v19512_v9  ;;  %v11192_v41 = vsel %vm536_vm12, 1.0, %v19512_v9  ;;  %vm488_vm13 = vcmp.lt.s32.totalorder %v14903_v32, 15  ;;  %vm489_vm14 = vcmp.lt.s32.totalorder %v14914_v35, 15 }
  0xfb   :  { %12631 = vmatmul.mubr.msk.f32.gmra.mrb[12].mxu0 %vm712_vm1, %v237_v2  ;;  %vm490_vm15 = vcmp.lt.s32.totalorder %v14942_v48, 15  ;;  %vm491_vm0 = vcmp.lt.s32.totalorder %v14958_v53, 15  ;;  %v423_v43 = vpack.c.bf16 %v11159_v38, %v11158_v37  ;;  %vm538_vm2 = vcmp.lt.s32.totalorder %v14824_v4, 14 }
  0xfc   :  { %12633 = vmatprep.mubr.msk.f32.mxu0 %vm712_vm1, %v238_v13  ;;  %vm539_vm3 = vcmp.lt.s32.totalorder %v14829_v5, 14  ;;  %vm542_vm4 = vcmp.lt.s32.totalorder %v14881_v24, 14  ;;  %v479_v44 = vpack.c.bf16 %v11175_v40, %v11174_v39  ;;  %v11184_v45 = vsel %vm488_vm13, 1.0, %v19512_v9 }
  0xfd   :  { %vm543_vm5 = vcmp.lt.s32.totalorder %v14886_v25, 14  ;;  %vm540_vm6 = vcmp.lt.s32.totalorder %v14862_v16, 14  ;;  %v11185_v46 = vsel %vm489_vm14, 1.0, %v19512_v9  ;;  %v11186_v47 = vsel %vm490_vm15, 1.0, %v19512_v9 }
  0xfe   :  { %988 = vperm.xlu1 %13291, %v421_v14   ;;  %1085 = vperm.xlu0 %13290, %v477_v15   ;;  %v11187_v49 = vsel %vm491_vm0, 1.0, %v19512_v9  ;;  %v11194_v51 = vsel %vm538_vm2, 1.0, %v19512_v9  ;;  %v11195_v52 = vsel %vm539_vm3, 1.0, %v19512_v9  ;;  %v11198_v54 = vsel %vm542_vm4, 1.0, %v19512_v9 }
  0xff   :  { %12634 = vmatmul.mubr.msk.f32.gmra.mrb[14].mxu0 %vm712_vm1, %v239_v18  ;;  %vm537_vm1 = vcmp.lt.s32.totalorder %v14841_v7, 14  ;;  %v11199_v55 = vsel %vm543_vm5, 1.0, %v19512_v9  ;;  %vm541_vm7 = vcmp.lt.s32.totalorder %v14867_v17, 14  ;;  %v11196_v56 = vsel %vm540_vm6, 1.0, %v19512_v9 }
 0x100   :  { %v11193_v42 = vsel %vm537_vm1, 1.0, %v19512_v9  ;;  %vm544_vm8 = vcmp.lt.s32.totalorder %v14903_v32, 14  ;;  %v532_v57 = vpack.c.bf16 %v11185_v46, %v11184_v45  ;;  %vm545_vm9 = vcmp.lt.s32.totalorder %v14914_v35, 14 }
 0x101   :  { %v584_v50 = vpack.c.bf16 %v11193_v42, %v11192_v41  ;;  %vm492_vm10 = vcmp.lt.s32.totalorder %v14975_v62, 15  ;;  %vm493_vm11 = vcmp.lt.s32.totalorder %v14984_v63, 15  ;;  %vm494_vm12 = vcmp.lt.s32.totalorder %v15013_v22, 15 }
 0x102   :  { %1090 = vperm.xlu1 %13291, %v478_v27   ;;  %1175 = vperm.xlu0 %13290, %v530_v28   ;;  %vm495_vm1 = vcmp.lt.s32.totalorder %v15023_v26, 15  ;;  %vm546_vm13 = vcmp.lt.s32.totalorder %v14942_v48, 14  ;;  %v533_v58 = vpack.c.bf16 %v11187_v49, %v11186_v47  ;;  %v11197_v59 = vsel %vm541_vm7, 1.0, %v19512_v9 }
 0x103   :  { %vm547_vm14 = vcmp.lt.s32.totalorder %v14958_v53, 14  ;;  %vm550_vm15 = vcmp.lt.s32.totalorder %v15013_v22, 14  ;;  %v585_v60 = vpack.c.bf16 %v11195_v52, %v11194_v51  ;;  %v11200_v61 = vsel %vm544_vm8, 1.0, %v19512_v9 }
 0x104   :  { %v11201_v1 = vsel %vm545_vm9, 1.0, %v19512_v9  ;;  %v11188_v2 = vsel %vm492_vm10, 1.0, %v19512_v9  ;;  %v11189_v3 = vsel %vm493_vm11, 1.0, %v19512_v9  ;;  %v11190_v8 = vsel %vm494_vm12, 1.0, %v19512_v9 }
 0x105   :  { %v11191_v10 = vsel %vm495_vm1, 1.0, %v19512_v9  ;;  %v15078_v11 = vsel %vm546_vm13, 1.0, %v19512_v9  ;;  %v15081_v12 = vsel %vm547_vm14, 1.0, %v19512_v9  ;;  %vm551_vm0 = vcmp.lt.s32.totalorder %v15023_v26, 14 }
 0x106   :  { %1180 = vperm.xlu1 %13291, %v531_v34   ;;  %993 = vperm.xlu0 %13290, %v422_v36   ;;  %v15085_v13 = vsel %vm550_vm15, 1.0, %v19512_v9  ;;  %vm548_vm2 = vcmp.lt.s32.totalorder %v14975_v62, 14  ;;  %vm549_vm3 = vcmp.lt.s32.totalorder %v14984_v63, 14  ;;  %vm314_vm4 = vcmp.ge.s32.totalorder %v14824_v4, 4 }
 0x107   :  { %v587_v14 = vpack.c.bf16 %v11199_v55, %v11198_v54  ;;  %vm315_vm5 = vcmp.ge.s32.totalorder %v14829_v5, 4  ;;  %vm312_vm6 = vcmp.ge.s32.totalorder %v14834_v6, 4  ;;  %vm313_vm7 = vcmp.ge.s32.totalorder %v14841_v7, 4 }
 0x108   :  { %v586_v15 = vpack.c.bf16 %v11197_v59, %v11196_v56  ;;  %v15094_v18 = vsel %vm551_vm0, 1.0, %v19512_v9  ;;  %vm318_vm8 = vcmp.ge.s32.totalorder %v14881_v24, 4  ;;  %vm319_vm9 = vcmp.ge.s32.totalorder %v14886_v25, 4 }
 0x109   :  { %v15099_v19 = vsel %vm548_vm2, 1.0, %v19512_v9  ;;  %v15102_v20 = vsel %vm549_vm3, 1.0, %v19512_v9  ;;  %v15105_v21 = vsel %vm314_vm4, 1.0, %v19512_v9  ;;  %vm316_vm10 = vcmp.ge.s32.totalorder %v14862_v16, 4 }
 0x10a   :  { %998 = vperm.xlu1 %13291, %v423_v43   ;;  %1095 = vperm.xlu0 %13290, %v479_v44   ;;  %v15109_v23 = vsel %vm315_vm5, 1.0, %v19512_v9  ;;  %v15112_v27 = vsel %vm312_vm6, 1.0, %v19512_v9  ;;  %v15115_v28 = vsel %vm313_vm7, 1.0, %v19512_v9  ;;  %v588_v29 = vpack.c.bf16 %v11201_v1, %v11200_v61 }
 0x10b   :  { %v15118_v30 = vsel %vm318_vm8, 1.0, %v19512_v9  ;;  %v15121_v31 = vsel %vm319_vm9, 1.0, %v19512_v9  ;;  %vm317_vm11 = vcmp.ge.s32.totalorder %v14867_v17, 4  ;;  %v534_v33 = vpack.c.bf16 %v11189_v3, %v11188_v2 }
 0x10c   :  { %v15125_v34 = vsel %vm316_vm10, 1.0, %v19512_v9  ;;  %vm322_vm12 = vcmp.ge.s32.totalorder %v14942_v48, 4  ;;  %vm323_vm1 = vcmp.ge.s32.totalorder %v14958_v53, 4  ;;  %v535_v36 = vpack.c.bf16 %v11191_v10, %v11190_v8 }
 0x10d   :  { %vm320_vm13 = vcmp.ge.s32.totalorder %v14903_v32, 4  ;;  %vm321_vm14 = vcmp.ge.s32.totalorder %v14914_v35, 4  ;;  %vm602_vm15 = vcmp.lt.s32.totalorder %v14942_v48, 12  ;;  %v15133_v37 = vsel %vm317_vm11, 1.0, %v19512_v9 }
 0x10e   :  { %1262 = vperm.xlu1 %13291, %v584_v50   ;;  %1185 = vperm.xlu0 %13290, %v532_v57   ;;  %vm326_vm0 = vcmp.ge.s32.totalorder %v15013_v22, 4  ;;  %vm603_vm2 = vcmp.lt.s32.totalorder %v14958_v53, 12  ;;  %v15138_v38 = vsel %vm602_vm15, 1.0, %v19512_v9  ;;  %v589_v39 = vpack.c.bf16 %v15081_v12, %v15078_v11 }
 0x10f   :  { %v15143_v40 = vsel %vm322_vm12, 1.0, %v19512_v9  ;;  %v15146_v41 = vsel %vm323_vm1, 1.0, %v19512_v9  ;;  %v15149_v42 = vsel %vm603_vm2, 1.0, %v19512_v9  ;;  %v15152_v43 = vsel %vm320_vm13, 1.0, %v19512_v9 }
 0x110   :  { %v15155_v44 = vsel %vm321_vm14, 1.0, %v19512_v9  ;;  %vm327_vm3 = vcmp.ge.s32.totalorder %v15023_v26, 4  ;;  %v645_v45 = vpack.c.bf16 %v15149_v42, %v15138_v38  ;;  %v591_v46 = vpack.c.bf16 %v15094_v18, %v15085_v13  ;;  %v13292_v18 = vld [vmem:[#allocation3 + $0xc0] sm:$0xff]   ;;  %v13307_v38 = vld [vmem:[#allocation3 + $0xb0] sm:$0xff]  }
 0x111   :  { %v15163_v47 = vsel %vm326_vm0, 1.0, %v19512_v9  ;;  %vm324_vm4 = vcmp.ge.s32.totalorder %v14975_v62, 4  ;;  %vm604_vm5 = vcmp.lt.s32.totalorder %v14975_v62, 12  ;;  %v590_v49 = vpack.c.bf16 %v15102_v20, %v15099_v19  ;;  %v13293_v19 = vld [vmem:[#allocation3 + $0x80] sm:$0xff]   ;;  %12011 = vmatprep.subr.bf16.mxu0 %v13292_v18  ;;  %v13303_v18 = vld [vmem:[#allocation3 + $0xa8] sm:$0xff]  }
 0x112   :  { %1190 = vperm.xlu1 %13291, %v533_v58   ;;  %1267 = vperm.xlu0 %13290, %v585_v60   ;;  %vm325_vm6 = vcmp.ge.s32.totalorder %v14984_v63, 4  ;;  %vm605_vm7 = vcmp.lt.s32.totalorder %v14984_v63, 12  ;;  %v15172_v50 = vsel %vm604_vm5, 1.0, %v19512_v9  ;;  %vm594_vm8 = vcmp.lt.s32.totalorder %v14824_v4, 12 }
 0x113   :  { %vm595_vm9 = vcmp.lt.s32.totalorder %v14829_v5, 12  ;;  %vm592_vm10 = vcmp.lt.s32.totalorder %v14834_v6, 12  ;;  %v15178_v51 = vsel %vm605_vm7, 1.0, %v19512_v9  ;;  %v15183_v52 = vsel %vm327_vm3, 1.0, %v19512_v9  ;;  %12012 = vmatpush3.bf16.msra.mxu0 %v13293_v19 }
 0x114   :  { %vm593_vm11 = vcmp.lt.s32.totalorder %v14841_v7, 12  ;;  %vm598_vm12 = vcmp.lt.s32.totalorder %v14881_v24, 12  ;;  %v646_v54 = vpack.c.bf16 %v15178_v51, %v15172_v50  ;;  %v15192_v55 = vsel %vm324_vm4, 1.0, %v19512_v9 }
 0x115   :  { %v15195_v56 = vsel %vm325_vm6, 1.0, %v19512_v9  ;;  %vm599_vm1 = vcmp.lt.s32.totalorder %v14886_v25, 12  ;;  %v361_v57 = vpack.c.bf16 %v15109_v23, %v15105_v21  ;;  %v15201_v58 = vsel %vm594_vm8, 1.0, %v19512_v9 }
 0x116   :  { %1277 = vperm.xlu1 %13291, %v587_v14   ;;  %1272 = vperm.xlu0 %13290, %v586_v15   ;;  %v15204_v59 = vsel %vm595_vm9, 1.0, %v19512_v9  ;;  %v15207_v60 = vsel %vm592_vm10, 1.0, %v19512_v9  ;;  %v360_v61 = vpack.c.bf16 %v15115_v28, %v15112_v27  ;;  %v15212_v1 = vsel %vm593_vm11, 1.0, %v19512_v9 }
 0x117   :  { %v15215_v2 = vsel %vm598_vm12, 1.0, %v19512_v9  ;;  %vm266_vm13 = vcmp.ge.s32.totalorder %v14942_v48, 8  ;;  %v15219_v3 = vsel %vm599_vm1, 1.0, %v19512_v9  ;;  %vm596_vm14 = vcmp.lt.s32.totalorder %v14862_v16, 12 }
 0x118   :  { %vm267_vm15 = vcmp.ge.s32.totalorder %v14958_v53, 8  ;;  %v15224_v8 = vsel %vm266_vm13, 1.0, %v19512_v9  ;;  %v363_v10 = vpack.c.bf16 %v15121_v31, %v15118_v30  ;;  %vm597_vm0 = vcmp.lt.s32.totalorder %v14867_v17, 12 }
 0x119   :  { %vm600_vm2 = vcmp.lt.s32.totalorder %v14903_v32, 12  ;;  %v15231_v11 = vsel %vm267_vm15, 1.0, %v19512_v9  ;;  %vm601_vm3 = vcmp.lt.s32.totalorder %v14914_v35, 12  ;;  %vm270_vm4 = vcmp.ge.s32.totalorder %v15013_v22, 8 }
 0x11a   :  { %1282 = vperm.xlu1 %13291, %v588_v29   ;;  %1195 = vperm.xlu0 %13290, %v534_v33   ;;  %v309_v12 = vpack.c.bf16 %v15231_v11, %v15224_v8  ;;  %vm271_vm5 = vcmp.ge.s32.totalorder %v15023_v26, 8  ;;  %v362_v13 = vpack.c.bf16 %v15133_v37, %v15125_v34  ;;  %v15241_v14 = vsel %vm270_vm4, 1.0, %v19512_v9  ;;  %v13295_v37 = vld [vmem:[#allocation3 + $0x88] sm:$0xff]  }
 0x11b   :  { %v15244_v15 = vsel %vm271_vm5, 1.0, %v19512_v9  ;;  %vm268_vm6 = vcmp.ge.s32.totalorder %v14975_v62, 8  ;;  %vm606_vm7 = vcmp.lt.s32.totalorder %v15013_v22, 12  ;;  %vm269_vm8 = vcmp.ge.s32.totalorder %v14984_v63, 8  ;;  %v14207_v11 = vld [vmem:[%s19800_s17 + $0x48] sm:$0xff] }
 0x11c   :  { %v311_v20 = vpack.c.bf16 %v15244_v15, %v15241_v14  ;;  %v15252_v21 = vsel %vm268_vm6, 1.0, %v19512_v9  ;;  %v15257_v23 = vsel %vm596_vm14, 1.0, %v19512_v9  ;;  %v15262_v27 = vsel %vm597_vm0, 1.0, %v19512_v9  ;;  %v13320_v15 = vld [vmem:[#allocation3 + $0x70] sm:$0xff]  }
 0x11d   :  { %vm607_vm9 = vcmp.lt.s32.totalorder %v15023_v26, 12  ;;  %v15266_v28 = vsel %vm269_vm8, 1.0, %v19512_v9  ;;  %v15271_v29 = vsel %vm600_vm2, 1.0, %v19512_v9  ;;  %v15276_v30 = vsel %vm601_vm3, 1.0, %v19512_v9 }
 0x11e   :  { %1200 = vperm.xlu1 %13291, %v535_v36   ;;  %1287 = vperm.xlu0 %13290, %v589_v39   ;;  %vm258_vm10 = vcmp.ge.s32.totalorder %v14824_v4, 8  ;;  %v310_v31 = vpack.c.bf16 %v15266_v28, %v15252_v21  ;;  %v365_v33 = vpack.c.bf16 %v15146_v41, %v15143_v40  ;;  %v15286_v34 = vsel %vm606_vm7, 1.0, %v19512_v9  ;;  %v13294_v36 = vld [vmem:[#allocation3 + $0xc8] sm:$0xff]   ;;  %v13323_v21 = vld [vmem:[#allocation3 + $0x38] sm:$0xff]  }
 0x11f   :  { %vm259_vm11 = vcmp.ge.s32.totalorder %v14829_v5, 8  ;;  %vm256_vm12 = vcmp.ge.s32.totalorder %v14834_v6, 8  ;;  %v364_v39 = vpack.c.bf16 %v15155_v44, %v15152_v43  ;;  %vm257_vm1 = vcmp.ge.s32.totalorder %v14841_v7, 8  ;;  %12013 = vmatprep.subr.bf16.mxu0 %v13294_v36  ;;  %v13296_v44 = vld [vmem:[#allocation3 + $0xd0] sm:$0xff]  }
 0x120   :  { %vm262_vm13 = vcmp.ge.s32.totalorder %v14881_v24, 8  ;;  %v367_v5 = vpack.c.bf16 %v15183_v52, %v15163_v47  ;;  %v15304_v6 = vsel %vm258_vm10, 1.0, %v19512_v9  ;;  %vm263_vm14 = vcmp.ge.s32.totalorder %v14886_v25, 8  ;;  %12014 = vmatpush3.bf16.msra.mxu0 %v13295_v37  ;;  %v13297_v47 = vld [vmem:[#allocation3 + $0x90] sm:$0xff]   ;;  %v14201_v37 = vld [vmem:[%s19800_s17 + $0x8] sm:$0xff] }
 0x121   :  { %vm658_vm15 = vcmp.lt.s32.totalorder %v14942_v48, 8  ;;  %v15309_v40 = vsel %vm259_vm11, 1.0, %v19512_v9  ;;  %v15312_v7 = vsel %vm256_vm12, 1.0, %v19512_v9  ;;  %vm659_vm0 = vcmp.lt.s32.totalorder %v14958_v53, 8  ;;  %12015 = vmatprep.subr.bf16.mxu0 %v13296_v44  ;;  %v13306_v36 = vld [vmem:[#allocation3 + $0xf0] sm:$0xff]  }
 0x122   :  { %1297 = vperm.xlu1 %13291, %v591_v46   ;;  %1292 = vperm.xlu0 %13290, %v590_v49   ;;  %v15295_v46 = vsel %vm607_vm9, 1.0, %v19512_v9  ;;  %v15316_v24 = vsel %vm658_vm15, 1.0, %v19512_v9  ;;  %v366_v4 = vpack.c.bf16 %v15195_v56, %v15192_v55  ;;  %v15321_v41 = vsel %vm257_vm1, 1.0, %v19512_v9 }
 0x123   :  { %v15324_v48 = vsel %vm262_vm13, 1.0, %v19512_v9  ;;  %v15327_v43 = vsel %vm659_vm0, 1.0, %v19512_v9  ;;  %v15332_v53 = vsel %vm263_vm14, 1.0, %v19512_v9  ;;  %vm662_vm2 = vcmp.lt.s32.totalorder %v15013_v22, 8 }
 0x124   :  { %v701_v49 = vpack.c.bf16 %v15327_v43, %v15316_v24  ;;  %vm663_vm3 = vcmp.lt.s32.totalorder %v15023_v26, 8  ;;  %v15339_v52 = vsel %vm662_vm2, 1.0, %v19512_v9  ;;  %vm660_vm4 = vcmp.lt.s32.totalorder %v14975_v62, 8  ;;  %12016 = vmatpush3.bf16.msra.mxu0 %v13297_v47  ;;  %v13298_v62 = vld [vmem:[#allocation3 + $0xd8] sm:$0xff]  }
 0x125   :  { %v15342_v55 = vsel %vm663_vm3, 1.0, %v19512_v9  ;;  %vm661_vm5 = vcmp.lt.s32.totalorder %v14984_v63, 8  ;;  %v15349_v56 = vsel %vm660_vm4, 1.0, %v19512_v9  ;;  %v641_v22 = vpack.c.bf16 %v15204_v59, %v15201_v58  ;;  %12017 = vmatprep.subr.bf16.mxu0 %v13298_v62  ;;  %v13300_v59 = vld [vmem:[#allocation3 + $0xe0] sm:$0xff]   ;;  %v13314_v62 = vld [vmem:[#allocation3 + $0x58] sm:$0xff]  }
 0x126   :  { %3040 = vperm.xlu1 %13291, %v361_v57   ;;  %3035 = vperm.xlu0 %13290, %v360_v61   ;;  %v703_v25 = vpack.c.bf16 %v15342_v55, %v15339_v52  ;;  %vm260_vm6 = vcmp.ge.s32.totalorder %v14862_v16, 8  ;;  %v15355_v26 = vsel %vm661_vm5, 1.0, %v19512_v9  ;;  %v13299_v57 = vld [vmem:[#allocation3 + $0x98] sm:$0xff]   ;;  %v640_v61 = vpack.c.bf16 %v15212_v1, %v15207_v60  ;;  %v13301_v1 = vld [vmem:[#allocation3 + $0xa0] sm:$0xff]  }
 0x127   :  { %v702_v63 = vpack.c.bf16 %v15355_v26, %v15349_v56  ;;  %v643_v58 = vpack.c.bf16 %v15219_v3, %v15215_v2  ;;  %vm261_vm7 = vcmp.ge.s32.totalorder %v14867_v17, 8  ;;  %v15365_v16 = vsel %vm260_vm6, 1.0, %v19512_v9  ;;  %v14198_v2 = vld [vmem:[%s19800_s17 + $0x10] sm:$0xff]  ;;  %v13302_v3 = vld [vmem:[#allocation3 + $0xe8] sm:$0xff]  }
 0x128   :  { %12018 = vmatpush3.bf16.msra.mxu0 %v13299_v57  ;;  %vm264_vm8 = vcmp.ge.s32.totalorder %v14903_v32, 8  ;;  %v642_v60 = vpack.c.bf16 %v15262_v27, %v15257_v23  ;;  %vm265_vm9 = vcmp.ge.s32.totalorder %v14914_v35, 8  ;;  %vm650_vm10 = vcmp.lt.s32.totalorder %v14198_v2, 8  ;;  %v14200_v35 = vld [vmem:[%s19800_s17] sm:$0xff]  ;;  %v14205_v57 = vld [vmem:[%s19800_s17 + $0x28] sm:$0xff] }
 0x129   :  { %12019 = vmatprep.subr.bf16.mxu0 %v13300_v59  ;;  %v11117_v19 = vsel %vm261_vm7, 1.0, %v19512_v9  ;;  %v15385_v23 = vsel %vm264_vm8, 1.0, %v19512_v9  ;;  %v15390_v27 = vsel %vm265_vm9, 1.0, %v19512_v9  ;;  %v647_v17 = vpack.c.bf16 %v15295_v46, %v15286_v34  ;;  %v14202_v46 = vld [vmem:[%s19800_s17 + $0x30] sm:$0xff]  ;;  %v13317_v59 = vld [vmem:[#allocation3 + $0x20] sm:$0xff]  }
 0x12a   :  { %3050 = vperm.xlu1 %13291, %v363_v10   ;;  %3045 = vperm.xlu0 %13290, %v362_v13   ;;  %v644_v10 = vpack.c.bf16 %v15276_v30, %v15271_v29  ;;  %v14199_v13 = vld [vmem:[%s19800_s17 + $0x18] sm:$0xff]  ;;  %v15393_v29 = vsel %vm650_vm10, 1.0, %v19512_v9  ;;  %v13304_v30 = vld [vmem:[#allocation3 + $0x40] sm:$0xff]   ;;  %vm648_vm12 = vcmp.lt.s32.totalorder %v14200_v35, 8  ;;  %vm649_vm1 = vcmp.lt.s32.totalorder %v14201_v37, 8 }
 0x12b   :  { %vm651_vm11 = vcmp.lt.s32.totalorder %v14199_v13, 8  ;;  %11947 = vmatprep.subr.bf16.mxu1 %v13304_v30  ;;  %v15410_v42 = vsel %vm648_vm12, 1.0, %v19512_v9  ;;  %v305_v34 = vpack.c.bf16 %v15309_v40, %v15304_v6  ;;  %vm654_vm13 = vcmp.lt.s32.totalorder %v14202_v46, 8  ;;  %v14203_v6 = vld [vmem:[%s19800_s17 + $0x38] sm:$0xff] }
 0x12c   :  { %12020 = vmatpush3.bf16.msra.mxu0 %v13301_v1  ;;  %v15401_v32 = vsel %vm651_vm11, 1.0, %v19512_v9  ;;  %v304_v44 = vpack.c.bf16 %v15321_v41, %v15312_v7  ;;  %vm655_vm14 = vcmp.lt.s32.totalorder %v14203_v6, 8  ;;  %v13311_v40 = vld [vmem:[#allocation3 + $0xb8] sm:$0xff]   ;;  %v11230_v47 = vsel %vm654_vm13, 1.0, %v19512_v9  ;;  %v14204_v41 = vld [vmem:[%s19800_s17 + $0x20] sm:$0xff]  ;;  %v13318_v1 = vld [vmem:[#allocation3 + $0x68] sm:$0xff]  }
 0x12d   :  { %12021 = vmatprep.subr.bf16.mxu0 %v13302_v3  ;;  %v307_v50 = vpack.c.bf16 %v15332_v53, %v15324_v48  ;;  %v11231_v51 = vsel %vm655_vm14, 1.0, %v19512_v9  ;;  %v306_v7 = vpack.c.bf16 %v11117_v19, %v15365_v16  ;;  %vm652_vm15 = vcmp.lt.s32.totalorder %v14204_v41, 8  ;;  %v13315_v48 = vld [vmem:[#allocation3 + $0x18] sm:$0xff]  }
 0x12e   :  { %3060 = vperm.xlu1 %13291, %v365_v33   ;;  %3055 = vperm.xlu0 %13290, %v364_v39   ;;  %v13305_v33 = vld [vmem:[#allocation3] sm:$0xff]   ;;  %v11225_v39 = vsel %vm649_vm1, 1.0, %v19512_v9  ;;  %vm653_vm0 = vcmp.lt.s32.totalorder %v14205_v57, 8  ;;  %v308_v53 = vpack.c.bf16 %v15390_v27, %v15385_v23  ;;  %v697_v8 = vpack.c.bf16 %v15401_v32, %v15393_v29 }
 0x12f   :  { %11948 = vmatpush3.bf16.msra.mxu1 %v13305_v33  ;;  %v11229_v16 = vsel %vm653_vm0, 1.0, %v19512_v9  ;;  %vm657_vm3 = vcmp.lt.s32.totalorder %v14207_v11, 8  ;;  %v696_v2 = vpack.c.bf16 %v11225_v39, %v15410_v42  ;;  %vm14482_vm9 = vmmov 0  }
 0x130   :  { %12022 = vmatpush3.bf16.msra.mxu0 %v13303_v18  ;;  %v11233_v3 = vsel %vm657_vm3, 1.0, %v19512_v9  ;;  %v13322_v18 = vld [vmem:[#allocation3 + $0x78] sm:$0xff]  }
 0x131   :  { %12023 = vmatprep.subr.bf16.mxu0 %v13306_v36 }
 0x132   :  { %3070 = vperm.xlu1 %13291, %v367_v5   ;;  %3065 = vperm.xlu0 %13290, %v366_v4   ;;  %v13309_v5 = vld [vmem:[#allocation3 + $0x8] sm:$0xff]   ;;  %v13310_v4 = vld [vmem:[#allocation3 + $0xf8] sm:$0xff]  }
 0x134   :  { %12024 = vmatpush3.bf16.msra.mxu0 %v13307_v38 }
 0x135   :  { %12025 = vmatprep.subr.bf16.mxu0 %v13310_v4 }
 0x136   :  { %3224 = vperm.xlu1 %13291, %v641_v22   ;;  %3219 = vperm.xlu0 %13290, %v640_v61   ;;  %v13312_v22 = vld [vmem:[#allocation3 + $0x50] sm:$0xff]   ;;  %v11228_v61 = vsel %vm652_vm15, 1.0, %v19512_v9 }
 0x137   :  { %v698_v13 = vpack.c.bf16 %v11229_v16, %v11228_v61 }
 0x138   :  { %12026 = vmatpush3.bf16.msra.mxu0 %v13311_v40 }
 0x13a   :  { %3234 = vperm.xlu1 %13291, %v643_v58   ;;  %3229 = vperm.xlu0 %13290, %v642_v60   ;;  %v13316_v58 = vld [vmem:[#allocation3 + $0x60] sm:$0xff]  }
 0x13b   :  { %v14206_v60 = vld [vmem:[%s19800_s17 + $0x40] sm:$0xff] }
 0x13c   :  { %vm656_vm2 = vcmp.lt.s32.totalorder %v14206_v60, 8 }
 0x13d   :  { %v11232_v14 = vsel %vm656_vm2, 1.0, %v19512_v9 }
 0x13e   :  { %3244 = vperm.xlu1 %13291, %v645_v45   ;;  %3239 = vperm.xlu0 %13290, %v644_v10   ;;  %v13308_v45 = vld [vmem:[#allocation3 + $0x48] sm:$0xff]   ;;  %v13321_v10 = vld [vmem:[#allocation3 + $0x30] sm:$0xff]   ;;  %v700_v28 = vpack.c.bf16 %v11233_v3, %v11232_v14 }
 0x13f   :  { %11949 = vmatprep.subr.bf16.mxu1 %v13308_v45 }
 0x140   :  { %11950 = vmatpush3.bf16.msra.mxu1 %v13309_v5 }
 0x141   :  { %11951 = vmatprep.subr.bf16.mxu1 %v13312_v22 }
 0x142   :  { %3254 = vperm.xlu1 %13291, %v647_v17   ;;  %3249 = vperm.xlu0 %13290, %v646_v54   ;;  %v13313_v54 = vld [vmem:[#allocation3 + $0x10] sm:$0xff]  }
 0x144   :  { %11952 = vmatpush3.bf16.msra.mxu1 %v13313_v54 }
 0x145   :  { %11953 = vmatprep.subr.bf16.mxu1 %v13314_v62 }
 0x146   :  { %4868 = vperm.xlu1 %13291, %v305_v34   ;;  %4863 = vperm.xlu0 %13290, %v304_v44  }
 0x148   :  { %11954 = vmatpush3.bf16.msra.mxu1 %v13315_v48 }
 0x149   :  { %11955 = vmatprep.subr.bf16.mxu1 %v13316_v58 }
 0x14a   :  { %4878 = vperm.xlu1 %13291, %v307_v50   ;;  %4873 = vperm.xlu0 %13290, %v306_v7  }
 0x14c   :  { %11956 = vmatpush3.bf16.msra.mxu1 %v13317_v59 }
 0x14d   :  { %11957 = vmatprep.subr.bf16.mxu1 %v13318_v1 }
 0x14e   :  { %4888 = vperm.xlu1 %13291, %v309_v12   ;;  %4883 = vperm.xlu0 %13290, %v308_v53   ;;  %v13319_v12 = vld [vmem:[#allocation3 + $0x28] sm:$0xff]  }
 0x150   :  { %11958 = vmatpush3.bf16.msra.mxu1 %v13319_v12 }
 0x151   :  { %11959 = vmatprep.subr.bf16.mxu1 %v13320_v15 }
 0x152   :  { %4898 = vperm.xlu1 %13291, %v311_v20   ;;  %4893 = vperm.xlu0 %13290, %v310_v31   ;;  %v699_v20 = vpack.c.bf16 %v11231_v51, %v11230_v47  ;;  %v13324_v31 = vld [vmem:[#allocation3 + $0x100] sm:$0xff]  }
 0x154   :  { %11960 = vmatpush3.bf16.msra.mxu1 %v13321_v10 }
 0x155   :  { %11961 = vmatprep.subr.bf16.mxu1 %v13322_v18 }
 0x156   :  { %5012 = vperm.xlu1 %13291, %v697_v8   ;;  %5007 = vperm.xlu0 %13290, %v696_v2  }
 0x158   :  { %11962 = vmatpush3.bf16.msra.mxu1 %v13323_v21 }
 0x159   :  { %12636 = vmatprep.subr.bf16.mxu1 %v13324_v31 }
 0x15a   :  { %5022 = vperm.xlu1 %13291, %v699_v20   ;;  %5017 = vperm.xlu0 %13290, %v698_v13  }
 0x15e   :  { %5032 = vperm.xlu1 %13291, %v701_v49   ;;  %5027 = vperm.xlu0 %13290, %v700_v28   ;;  %v19511_v49 = vlaneseq }
 0x160   :  { %v15492_v56 = vshrl.u32 %v19511_v49, 7 }
 0x162   :  { %5042 = vperm.xlu1 %13291, %v703_v25   ;;  %5037 = vperm.xlu0 %13290, %v702_v63   ;;  %v15489_v25 = vld [vmem:[%s19805_s4] ss:$0 sm:$0xff]  ;;  %vm936_vm4 = vcmp.lt.s32.totalorder %v15492_v56, 2  ;;  %vm1138_vm5 = vcmp.lt.s32.totalorder %v15492_v56, 7  ;;  %vm1235_vm6 = vcmp.lt.s32.totalorder %v15492_v56, 6  ;;  %vm1033_vm7 = vcmp.lt.s32.totalorder %v15492_v56, 1 }
 0x163   :  { %vm3008_vm8 = vcmp.lt.s32.totalorder %v15492_v56, 4 }
 0x165   :  { %v15470_v19 = vpop.permute.xlu0 %1060  ;;  %v15472_v23 = vpop.permute.xlu1 %1065 }
 0x166   :  { %19801 = vst [vmem:[#allocation28_spill] sm:$0xff] %v15470_v19  ;;  %19802 = vst [vmem:[#allocation29_spill] sm:$0xff] %v15472_v23 }
 0x169   :  { %v15474_v27 = vpop.permute.xlu0 %963  ;;  %v15476_v29 = vpop.permute.xlu1 %968 }
 0x16a   :  { %19803 = vst [vmem:[#allocation30_spill] sm:$0xff] %v15474_v27  ;;  %19804 = vst [vmem:[#allocation31_spill] sm:$0xff] %v15476_v29 }
 0x16d   :  { %v15478_v24 = vpop.permute.xlu0 %1070  ;;  %v15480_v43 = vpop.permute.xlu1 %973 }
 0x171   :  { %v15482_v52 = vpop.permute.xlu0 %1075  ;;  %v15484_v55 = vpop.permute.xlu1 %978 }
 0x175   :  { %v15494_v26 = vpop.permute.xlu0 %1165  ;;  %v15500_v32 = vpop.permute.xlu1 %1080 }
 0x176   :  { %19806 = vst [vmem:[#allocation32_spill] sm:$0xff] %v15494_v26  ;;  %19807 = vst [vmem:[#allocation33_spill] sm:$0xff] %v15500_v32 }
 0x179   :  { %v15523_v6 = vpop.permute.xlu0 %983  ;;  %v15555_v62 = vpop.permute.xlu1 %1170 }
 0x17a   :  { %19809 = vst [vmem:[#allocation35_spill] sm:$0xff] %v15523_v6  ;;  %19810 = vst [vmem:[#allocation36_spill] sm:$0xff] %v15555_v62 }
 0x17d   :  { %v15587_v20 = vpop.permute.xlu0 %1085 }
 0x17e   :  { %19812 = vst [vmem:[#allocation38_spill] sm:$0xff] %v15587_v20 }
 0x1b5   :  { %v12614_v63 = vpop.f32.mrb[0].mxu0 }
 0x1b6   :  { %v15497_v30 = vadd.f32 %v12614_v63, %v15489_v25  ;;  %v831_v17 = vpop.f32.mrb[1].mxu0 }
 0x1b7   :  { %v15503_v35 = vadd.f32 %v15489_v25, %v831_v17 }
 0x1b8   :  { %v1123_v33 = vrot.slane %v15497_v30, 1  ;;  %v1018_v36 = vrot.slane %v15497_v30, 7  ;;  %v919_v37 = vrot.slane %v15497_v30, 6  ;;  %v19517_v38 = vrot.slane %v15497_v30, 2 }
 0x1b9   :  { %v19518_v45 = vrot.slane %v15503_v35, 1  ;;  %v15515_v34 = vpack.c.bf16 %v15497_v30, %v15503_v35  ;;  %v19520_v39 = vrot.slane %v15503_v35, 7  ;;  %v19519_v46 = vrot.slane %v15503_v35, 6 }
 0x1ba   :  { %v12617_v42 = vpop.f32.mrb[2].mxu0  ;;  %v19516_v44 = vrot.slane %v15503_v35, 2 }
 0x1bb   :  { %19808 = vst [vmem:[#allocation34_spill] sm:$0xff] %v15515_v34  ;;  %v15520_v5 = vadd.f32 %v12617_v42, %v15489_v25  ;;  %v841_v4 = vpop.f32.mrb[3].mxu0  ;;  %v1153_v47 = vsel %vm1138_vm5, %v19518_v45, %v1123_v33  ;;  %v15536_v22 = vsel %vm1033_vm7, %v19520_v39, %v1018_v36  ;;  %v15542_v50 = vsel %vm936_vm4, %v19519_v46, %v919_v37 }
 0x1bc   :  { %v15526_v40 = vadd.f32 %v15489_v25, %v841_v4  ;;  %v15553_v41 = vsel %vm1235_vm6, %v19516_v44, %v19517_v38 }
 0x1bd   :  { %v1125_v51 = vrot.slane %v15520_v5, 1  ;;  %v1020_v54 = vrot.slane %v15520_v5, 7  ;;  %v921_v7 = vrot.slane %v15520_v5, 6 }
 0x1be   :  { %v12620_v57 = vpop.f32.mrb[4].mxu0  ;;  %v1124_v48 = vrot.slane %v15526_v40, 1  ;;  %v15560_v53 = vpack.c.bf16 %v15520_v5, %v15526_v40  ;;  %v1019_v61 = vrot.slane %v15526_v40, 7  ;;  %v920_v58 = vrot.slane %v15526_v40, 6 }
 0x1bf   :  { %v15565_v16 = vadd.f32 %v12620_v57, %v15489_v25  ;;  %v851_v59 = vpop.f32.mrb[5].mxu0 }
 0x1c0   :  { %19811 = vst [vmem:[#allocation37_spill] sm:$0xff] %v15560_v53  ;;  %v15568_v60 = vadd.f32 %v15489_v25, %v851_v59  ;;  %v1152_v1 = vsel %vm1138_vm5, %v1123_v33, %v1124_v48  ;;  %v1151_v8 = vsel %vm1138_vm5, %v1124_v48, %v1125_v51  ;;  %v15576_v11 = vsel %vm1033_vm7, %v1019_v61, %v1020_v54 }
 0x1c1   :  { %v1155_v12 = vpack.c.bf16 %v1152_v1, %v1153_v47  ;;  %v1127_v2 = vrot.slane %v15565_v16, 1  ;;  %v15581_v14 = vsel %vm1033_vm7, %v1018_v36, %v1019_v61  ;;  %v15585_v15 = vsel %vm936_vm4, %v920_v58, %v921_v7  ;;  %v15607_v36 = vpop.permute.xlu1 %988 }
 0x1c2   :  { %v12623_v3 = vpop.f32.mrb[6].mxu0  ;;  %v1126_v10 = vrot.slane %v15568_v60, 1  ;;  %v15592_v13 = vpack.c.bf16 %v15565_v16, %v15568_v60  ;;  %v15598_v21 = vsel %vm936_vm4, %v919_v37, %v920_v58  ;;  %v1021_v33 = vrot.slane %v15568_v60, 7  ;;  %19814 = vst [vmem:[#allocation40_spill] sm:$0xff] %v15607_v36 }
 0x1c3   :  { %v15601_v28 = vadd.f32 %v12623_v3, %v15489_v25  ;;  %v861_v31 = vpop.f32.mrb[7].mxu0  ;;  %v1203_v63 = vmul.bf16 %v15494_v26, %v1155_v12  ;;  %v1022_v48 = vrot.slane %v15565_v16, 7  ;;  %v922_v1 = vrot.slane %v15568_v60, 6 }
 0x1c4   :  { %19813 = vst [vmem:[#allocation39_spill] sm:$0xff] %v15592_v13  ;;  %v15610_v42 = vadd.f32 %v15489_v25, %v861_v31  ;;  %v1150_v37 = vsel %vm1138_vm5, %v1125_v51, %v1126_v10  ;;  %v1149_v4 = vsel %vm1138_vm5, %v1126_v10, %v1127_v2  ;;  %v15626_v51 = vsel %vm1033_vm7, %v1020_v54, %v1021_v33 }
 0x1c5   :  { %1812 = vmatprep.mubr.bf16.mxu0 %v1203_v63  ;;  %v1156_v47 = vpack.c.bf16 %v1150_v37, %v1151_v8  ;;  %v1129_v57 = vrot.slane %v15601_v28, 1  ;;  %v15635_v10 = vsel %vm1033_vm7, %v1021_v33, %v1022_v48  ;;  %v923_v31 = vrot.slane %v15565_v16, 6  ;;  %v15638_v63 = vpop.permute.xlu0 %1175  ;;  %v15658_v0 = vpop.permute.xlu1 %1090 }
 0x1c6   :  { %v12626_v61 = vpop.f32.mrb[8].mxu0  ;;  %1813 = vmatmul.mubr.bf16.vlgmr.msra.gmra.mrb[16].mxu0 %v15515_v34  ;;  %v1128_v58 = vrot.slane %v15610_v42, 1  ;;  %v15622_v59 = vpack.c.bf16 %v15601_v28, %v15610_v42  ;;  %19816 = vst [vmem:[#allocation42_spill] sm:$0xff] %v15638_v63  ;;  %19817 = vst [vmem:[#allocation43_spill] sm:$0xff] %v15658_v0 }
 0x1c7   :  { %v15630_v8 = vadd.f32 %v12626_v61, %v15489_v25  ;;  %v871_v12 = vpop.f32.mrb[9].mxu0  ;;  %v1204_v3 = vmul.bf16 %v15555_v62, %v1156_v47  ;;  %v15652_v9 = vsel %vm936_vm4, %v922_v1, %v923_v31  ;;  %v1023_v47 = vrot.slane %v15610_v42, 7 }
 0x1c8   :  { %19815 = vst [vmem:[#allocation41_spill] sm:$0xff] %v15622_v59  ;;  %v15641_v37 = vadd.f32 %v15489_v25, %v871_v12  ;;  %v1148_v54 = vsel %vm1138_vm5, %v1127_v2, %v1128_v58  ;;  %v1147_v61 = vsel %vm1138_vm5, %v1128_v58, %v1129_v57  ;;  %v15656_v12 = vsel %vm936_vm4, %v921_v7, %v922_v1 }
 0x1c9   :  { %1820 = vmatprep.mubr.bf16.mxu0 %v1204_v3  ;;  %v1157_v49 = vpack.c.bf16 %v1148_v54, %v1149_v4  ;;  %v1131_v33 = vrot.slane %v15630_v8, 1  ;;  %v1024_v7 = vrot.slane %v15601_v28, 7  ;;  %v15691_v46 = vpop.permute.xlu0 %993  ;;  %v15707_v34 = vpop.permute.xlu1 %1180 }
 0x1ca   :  { %v12629_v2 = vpop.f32.mrb[10].mxu0  ;;  %v1130_v58 = vrot.slane %v15641_v37, 1  ;;  %v15663_v44 = vpack.c.bf16 %v15630_v8, %v15641_v37  ;;  %19819 = vst [vmem:[#allocation45_spill] sm:$0xff] %v15691_v46  ;;  %19821 = vst [vmem:[#allocation47_spill] sm:$0xff] %v15707_v34 }
 0x1cb   :  { %v15668_v3 = vadd.f32 %v12629_v2, %v15489_v25  ;;  %v881_v54 = vpop.f32.mrb[11].mxu0  ;;  %v1205_v17 = vmul.bf16 %v15638_v63, %v1157_v49  ;;  %v15685_v45 = vsel %vm1033_vm7, %v1023_v47, %v1024_v7 }
 0x1cc   :  { %19818 = vst [vmem:[#allocation44_spill] sm:$0xff] %v15663_v44  ;;  %v15673_v1 = vadd.f32 %v15489_v25, %v881_v54  ;;  %v1146_v38 = vsel %vm1138_vm5, %v1129_v57, %v1130_v58  ;;  %v15680_v18 = vsel %vm1138_vm5, %v1130_v58, %v1131_v33  ;;  %v15689_v54 = vsel %vm1033_vm7, %v1022_v48, %v1023_v47 }
 0x1cd   :  { %v1158_v4 = vpack.c.bf16 %v1146_v38, %v1147_v61  ;;  %v1133_v2 = vrot.slane %v15668_v3, 1  ;;  %v924_v58 = vrot.slane %v15610_v42, 6  ;;  %v925_v47 = vrot.slane %v15601_v28, 6  ;;  %v15744_v20 = vpop.permute.xlu0 %1095 }
 0x1ce   :  { %v12632_v49 = vpop.f32.mrb[12].mxu0  ;;  %1821 = vmatmul.mubr.bf16.gmra.mrb[20].mxu0 %v15560_v53  ;;  %v1132_v57 = vrot.slane %v15673_v1, 1  ;;  %v15699_v61 = vpack.c.bf16 %v15668_v3, %v15673_v1  ;;  %v1025_v53 = vrot.slane %v15641_v37, 7  ;;  %19824 = vst [vmem:[#allocation50_spill] sm:$0xff] %v15744_v20  ;;  %v19827_v20 = vrot.slane %v15503_v35, 7 }
 0x1cf   :  { %v15703_v39 = vadd.f32 %v12632_v49, %v15489_v25  ;;  %v891_v48 = vpop.f32.mrb[13].mxu0  ;;  %1828 = vmatprep.mubr.bf16.mxu0 %v1205_v17  ;;  %v15722_v26 = vsel %vm936_vm4, %v924_v58, %v925_v47  ;;  %v15726_v46 = vsel %vm936_vm4, %v923_v31, %v924_v58  ;;  %v926_v58 = vrot.slane %v15641_v37, 6 }
 0x1d0   :  { %19820 = vst [vmem:[#allocation46_spill] sm:$0xff] %v15699_v61  ;;  %v15710_v63 = vadd.f32 %v15489_v25, %v891_v48  ;;  %v1144_v38 = vsel %vm1138_vm5, %v1131_v33, %v1132_v57  ;;  %v15716_v62 = vsel %vm1138_vm5, %v1132_v57, %v1133_v2  ;;  %v1026_v57 = vrot.slane %v15630_v8, 7 }
 0x1d1   :  { %v1159_v49 = vpack.c.bf16 %v1144_v38, %v15680_v18  ;;  %v1135_v17 = vrot.slane %v15703_v39, 1  ;;  %v15734_v18 = vsel %vm1033_vm7, %v1024_v7, %v1025_v53  ;;  %v1206_v6 = vmul.bf16 %v15707_v34, %v1158_v4 }
 0x1d2   :  { %v12635_v48 = vpop.f32.mrb[14].mxu0  ;;  %v1134_v0 = vrot.slane %v15710_v63, 1  ;;  %19822 = vst [vmem:[#allocation48_spill] sm:$0xff] %v15734_v18  ;;  %v15741_v31 = vpack.c.bf16 %v15703_v39, %v15710_v63  ;;  %v19828_v34 = vrot.slane %v15503_v35, 6 }
 0x1d3   :  { %v15737_v38 = vadd.f32 %v12635_v48, %v15489_v25  ;;  %v901_v36 = vpop.f32.mrb[15].mxu0 }
 0x1d4   :  { %19823 = vst [vmem:[#allocation49_spill] sm:$0xff] %v15741_v31  ;;  %v15747_v33 = vadd.f32 %v15489_v25, %v901_v36  ;;  %v15752_v7 = vsel %vm1138_vm5, %v1133_v2, %v1134_v0  ;;  %v15756_v48 = vsel %vm1138_vm5, %v1134_v0, %v1135_v17  ;;  %v15764_v25 = vsel %vm1033_vm7, %v1025_v53, %v1026_v57  ;;  %v15766_v36 = vpop.permute.xlu1 %998 }
 0x1d5   :  { %v19539_v32 = vrot.slane %v15737_v38, 7  ;;  %19825 = vst [vmem:[#allocation51_spill] sm:$0xff] %v15764_v25  ;;  %19826 = vst [vmem:[#allocation52_spill] sm:$0xff] %v15766_v36  ;;  %v1137_v2 = vrot.slane %v15737_v38, 1  ;;  %v927_v31 = vrot.slane %v15630_v8, 6  ;;  %v15788_v0 = vsel %vm936_vm4, %v925_v47, %v926_v58 }
 0x1d6   :  { %1829 = vmatmul.mubr.bf16.gmra.mrb[24].mxu0 %v15592_v13  ;;  %v1136_v4 = vrot.slane %v15747_v33, 1  ;;  %v19829_v13 = vrot.slane %v15737_v38, 6 }
 0x1d7   :  { %1836 = vmatprep.mubr.bf16.mxu0 %v1206_v6  ;;  %v1049_v53 = vsel %vm1033_vm7, %v19539_v32, %v19827_v20  ;;  %v1221_v20 = vrot.slane %v15526_v40, 2 }
 0x1d8   :  { %v952_v36 = vsel %vm936_vm4, %v19829_v13, %v19828_v34  ;;  %v1050_v6 = vpack.c.bf16 %v15536_v22, %v1049_v53  ;;  %v15794_v25 = vsel %vm1138_vm5, %v1135_v17, %v1136_v4  ;;  %v15800_v32 = vsel %vm1138_vm5, %v1136_v4, %v1137_v2 }
 0x1d9   :  { %v953_v18 = vpack.c.bf16 %v15542_v50, %v952_v36  ;;  %v19830_v34 = vrot.slane %v15503_v35, 1  ;;  %v15810_v22 = vsel %vm936_vm4, %v926_v58, %v927_v31  ;;  %v15812_v50 = vpop.permute.xlu0 %1185  ;;  %v13325_v36 = vld [vmem:[#allocation3 + $0x108] sm:$0xff]   ;;  %v15824_v58 = vpack.c.bf16 %v15737_v38, %v15747_v33 }
 0x1da   :  { %19831 = vst [vmem:[#allocation53_spill] sm:$0xff] %v15812_v50  ;;  %v1098_v47 = vmul.bf16 %v15470_v19, %v1050_v6  ;;  %v15827_v6 = vpop.permute.xlu1 %1262  ;;  %v1207_v53 = vmul.bf16 %v15812_v50, %v1159_v49  ;;  %v929_v19 = vrot.slane %v15668_v3, 6  ;;  %v931_v50 = vrot.slane %v15703_v39, 6 }
 0x1db   :  { %v15806_v13 = vsel %vm1138_vm5, %v1137_v2, %v19830_v34  ;;  %v1001_v17 = vmul.bf16 %v15474_v27, %v953_v18  ;;  %v1027_v2 = vrot.slane %v15673_v1, 7  ;;  %v1028_v34 = vrot.slane %v15668_v3, 7  ;;  %19832 = vst [vmem:[#allocation54_spill] sm:$0xff] %v15824_v58  ;;  %19833 = vst [vmem:[#allocation55_spill] sm:$0xff] %v15827_v6 }
 0x1dc   :  { %1715 = vmatprep.mubr.bf16.mxu1 %v1098_v47  ;;  %v19834_v18 = vpack.c.bf16 %v15576_v11, %v15581_v14  ;;  %v928_v27 = vrot.slane %v15673_v1, 6  ;;  %v1029_v47 = vrot.slane %v15710_v63, 7  ;;  %v1030_v11 = vrot.slane %v15703_v39, 7  ;;  %v13326_v14 = vld [vmem:[#allocation3 + $0x110] sm:$0xff]  }
 0x1dd   :  { %1716 = vmatmul.mubr.bf16.vlgmr.msra.gmra.mrb[0].mxu1 %v1001_v17  ;;  %v15838_v58 = vsel %vm1033_vm7, %v1027_v2, %v1028_v34  ;;  %v15842_v40 = vsel %vm1033_vm7, %v1026_v57, %v1027_v2  ;;  %v930_v57 = vrot.slane %v15710_v63, 6  ;;  %v14208_v2 = vld [vmem:[#allocation3 + $0x100] sm:$0xff]  }
 0x1de   :  { %v1099_v4 = vmul.bf16 %v15472_v23, %v19834_v18  ;;  %1837 = vmatmul.mubr.bf16.gmra.mrb[28].mxu0 %v15622_v59  ;;  %v15851_v17 = vsel %vm936_vm4, %v928_v27, %v929_v19  ;;  %v15855_v18 = vsel %vm936_vm4, %v927_v31, %v928_v27  ;;  %12637 = vmatpush3.bf16.msra.mxu1 %v14208_v2  ;;  %v15869_v27 = vpop.permute.xlu0 %1267  ;;  %v1031_v2 = vrot.slane %v15747_v33, 7  ;;  %v15890_v31 = vpop.permute.xlu1 %1190 }
 0x1df   :  { %1844 = vmatprep.mubr.bf16.mxu0 %v1207_v53  ;;  %v15862_v59 = vsel %vm1033_vm7, %v1029_v47, %v1030_v11  ;;  %v15866_v49 = vsel %vm1033_vm7, %v1028_v34, %v1029_v47  ;;  %19836 = vst [vmem:[#allocation57_spill] sm:$0xff] %v15869_v27  ;;  %12638 = vmatprep.subr.bf16.mxu1 %v13325_v36  ;;  %v932_v47 = vrot.slane %v15747_v33, 6  ;;  %v19837_v23 = vrot.slane %v15497_v30, 2 }
 0x1e0   :  { %1723 = vmatprep.mubr.bf16.mxu1 %v1099_v4  ;;  %19835 = vst [vmem:[#allocation56_spill] sm:$0xff] %v15866_v49  ;;  %v15875_v53 = vsel %vm936_vm4, %v929_v19, %v930_v57  ;;  %v1222_v4 = vrot.slane %v15520_v5, 2  ;;  %v15881_v34 = vsel %vm936_vm4, %v930_v57, %v931_v50  ;;  %v19838_v19 = vpack.c.bf16 %v15585_v15, %v15598_v21  ;;  %v13327_v5 = vld [vmem:[#allocation3 + $0x118] sm:$0xff]  }
 0x1e1   :  { %v15888_v27 = vsel %vm1235_vm6, %v19837_v23, %v1221_v20  ;;  %v19839_v49 = vrot.slane %v15737_v38, 7  ;;  %v15906_v23 = vsel %vm1033_vm7, %v1030_v11, %v1031_v2  ;;  %v19840_v21 = vrot.slane %v15737_v38, 6 }
 0x1e2   :  { %v1002_v6 = vmul.bf16 %v15476_v29, %v19838_v19  ;;  %12639 = vmatpush3.bf16.msra.mxu1 %v13325_v36  ;;  %v15918_v57 = vsel %vm936_vm4, %v931_v50, %v932_v47  ;;  %v19841_v11 = vpack.c.bf16 %v15635_v10, %v15626_v51  ;;  %v1223_v15 = vrot.slane %v15568_v60, 2  ;;  %v13328_v60 = vld [vmem:[#allocation3 + $0x120] sm:$0xff]  }
 0x1e3   :  { %v15902_v30 = vsel %vm1033_vm7, %v1031_v2, %v19839_v49  ;;  %v15914_v19 = vsel %vm936_vm4, %v932_v47, %v19840_v21  ;;  %v1252_v49 = vpack.c.bf16 %v15888_v27, %v15553_v41  ;;  %12640 = vmatprep.subr.bf16.mxu1 %v13326_v14  ;;  %v15931_v21 = vsel %vm1235_vm6, %v1221_v20, %v1222_v4 }
 0x1e4   :  { %v1100_v36 = vmul.bf16 %v15478_v24, %v19841_v11  ;;  %v960_v2 = vpack.c.bf16 %v15914_v19, %v15918_v57  ;;  %v19842_v50 = vpack.c.bf16 %v15752_v7, %v15716_v62  ;;  %v1224_v51 = vrot.slane %v15565_v16, 2  ;;  %v15939_v11 = vpop.permute.xlu0 %1272 }
 0x1e5   :  { %1724 = vmatmul.mubr.bf16.gmra.mrb[4].mxu1 %v1002_v6  ;;  %v1225_v10 = vrot.slane %v15610_v42, 2  ;;  %19843 = vst [vmem:[#allocation58_spill] sm:$0xff] %v15939_v11  ;;  %v15944_v20 = vsel %vm1235_vm6, %v1222_v4, %v1223_v15  ;;  %v1226_v6 = vrot.slane %v15601_v28, 2  ;;  %v1227_v62 = vrot.slane %v15641_v37, 2 }
 0x1e6   :  { %v1208_v47 = vmul.bf16 %v15890_v31, %v19842_v50  ;;  %1731 = vmatprep.mubr.bf16.mxu1 %v1100_v36  ;;  %1845 = vmatmul.mubr.bf16.gmra.mrb[32].mxu0 %v15663_v44  ;;  %v15956_v7 = vsel %vm1235_vm6, %v1223_v15, %v1224_v51  ;;  %v1228_v4 = vrot.slane %v15630_v8, 2  ;;  %v15959_v36 = vpop.permute.xlu1 %1277  ;;  %v1229_v50 = vrot.slane %v15673_v1, 2 }
 0x1e7   :  { %12641 = vmatpush3.bf16.msra.mxu1 %v13326_v14  ;;  %v15952_v42 = vsel %vm1235_vm6, %v1224_v51, %v1225_v10  ;;  %19844 = vst [vmem:[#allocation59_spill] sm:$0xff] %v15959_v36  ;;  %v15965_v37 = vsel %vm1235_vm6, %v1226_v6, %v1227_v62  ;;  %v15969_v14 = vsel %vm1235_vm6, %v1225_v10, %v1226_v6  ;;  %v13329_v51 = vld [vmem:[#allocation3 + $0x128] sm:$0xff]   ;;  %v1231_v16 = vrot.slane %v15710_v63, 2 }
 0x1e8   :  { %1852 = vmatprep.mubr.bf16.mxu0 %v1208_v47  ;;  %12642 = vmatprep.subr.bf16.mxu1 %v13327_v5  ;;  %v15976_v8 = vsel %vm1235_vm6, %v1227_v62, %v1228_v4  ;;  %v1230_v47 = vrot.slane %v15668_v3, 2  ;;  %v15981_v28 = vsel %vm1235_vm6, %v1228_v4, %v1229_v50  ;;  %v1232_v10 = vrot.slane %v15703_v39, 2  ;;  %v15996_v15 = vpop.permute.xlu0 %1195 }
 0x1e9   :  { %v19845_v1 = vpack.c.bf16 %v15652_v9, %v15656_v12  ;;  %v1256_v62 = vpack.c.bf16 %v15981_v28, %v15976_v8  ;;  %v1233_v4 = vrot.slane %v15747_v33, 2  ;;  %v19846_v39 = vpack.c.bf16 %v15685_v45, %v15689_v54  ;;  %v13330_v8 = vld [vmem:[#allocation3 + $0x130] sm:$0xff]  }
 0x1ea   :  { %v15993_v3 = vsel %vm1235_vm6, %v1229_v50, %v1230_v47  ;;  %v1239_v9 = vsel %vm1235_vm6, %v1230_v47, %v1231_v16  ;;  %v1238_v12 = vsel %vm1235_vm6, %v1231_v16, %v1232_v10  ;;  %v19847_v33 = vpack.c.bf16 %v15794_v25, %v15756_v48  ;;  %v16014_v54 = vpop.permute.xlu1 %1282 }
 0x1eb   :  { %v1003_v6 = vmul.bf16 %v15480_v43, %v19845_v1  ;;  %12643 = vmatpush3.bf16.msra.mxu1 %v13327_v5  ;;  %v1101_v63 = vmul.bf16 %v15482_v52, %v19846_v39  ;;  %v1234_v5 = vrot.slane %v15737_v38, 2  ;;  %v1257_v50 = vpack.c.bf16 %v1239_v9, %v15993_v3  ;;  %19848 = vst [vmem:[#allocation60_spill] sm:$0xff] %v16014_v54  ;;  %v19851_v39 = vld [vmem:[#allocation51_spill] sm:$0xff] }
 0x1ec   :  { %12644 = vmatprep.subr.bf16.mxu1 %v13328_v60  ;;  %v1209_v28 = vmul.bf16 %v15996_v15, %v19847_v33  ;;  %v1237_v45 = vsel %vm1235_vm6, %v1232_v10, %v1233_v4  ;;  %v19849_v47 = vrot.slane %v15503_v35, 2  ;;  %v13331_v10 = vld [vmem:[#allocation3 + $0x138] sm:$0xff]   ;;  %v19850_v1 = vpack.c.bf16 %v15722_v26, %v15726_v46  ;;  %v19854_v35 = vld [vmem:[#allocation33_spill] sm:$0xff]  ;;  %v19858_v46 = vld [vmem:[#allocation35_spill] sm:$0xff]  ;;  %v16084_v19 = vpop.permute.xlu0 %1287 }
 0x1ed   :  { %1732 = vmatmul.mubr.bf16.gmra.mrb[8].mxu1 %v1003_v6  ;;  %v1258_v16 = vpack.c.bf16 %v1237_v45, %v1238_v12  ;;  %v1236_v38 = vsel %vm1235_vm6, %v1233_v4, %v1234_v5  ;;  %v19852_v4 = vld [vmem:[#allocation48_spill] sm:$0xff]  ;;  %v19857_v26 = vpack.c.bf16 %v15810_v22, %v15788_v0  ;;  %v19859_v33 = vpack.c.bf16 %v15838_v58, %v15842_v40  ;;  %v19866_v22 = vld [vmem:[#allocation43_spill] sm:$0xff]  ;;  %v19868_v40 = vld [vmem:[#allocation45_spill] sm:$0xff] }
 0x1ee   :  { %1739 = vmatprep.mubr.bf16.mxu1 %v1101_v63  ;;  %1853 = vmatmul.mubr.bf16.gmra.mrb[36].mxu0 %v15699_v61  ;;  %v1251_v48 = vsel %vm1235_vm6, %v1234_v5, %v19849_v47  ;;  %v1004_v6 = vmul.bf16 %v15484_v55, %v19850_v1  ;;  %v16027_v3 = vpop.permute.xlu1 %1200  ;;  %v19853_v63 = vpack.c.bf16 %v19851_v39, %v19852_v4  ;;  %v19856_v5 = vld [vmem:[#allocation49_spill] sm:$0xff]  ;;  %v19864_v47 = vld [vmem:[#allocation56_spill] sm:$0xff] }
 0x1ef   :  { %1860 = vmatprep.mubr.bf16.mxu0 %v1209_v28  ;;  %12645 = vmatpush3.bf16.msra.mxu1 %v13328_v60  ;;  %v1259_v25 = vpack.c.bf16 %v1251_v48, %v1236_v38  ;;  %v19855_v60 = vpack.c.bf16 %v15806_v13, %v15800_v32  ;;  %v19860_v28 = vld [vmem:[#allocation38_spill] sm:$0xff]  ;;  %v19862_v13 = vpack.c.bf16 %v15851_v17, %v15855_v18  ;;  %v19872_v18 = vld [vmem:[#allocation55_spill] sm:$0xff] }
 0x1f0   :  { %12646 = vmatprep.subr.bf16.mxu1 %v13329_v51  ;;  %v1102_v9 = vmul.bf16 %v19854_v35, %v19853_v63  ;;  %v1103_v45 = vmul.bf16 %v19860_v28, %v19859_v33  ;;  %v19861_v32 = vld [vmem:[#allocation54_spill] sm:$0xff]  ;;  %v19865_v0 = vpack.c.bf16 %v15862_v59, %v19864_v47  ;;  %v19867_v58 = vpack.c.bf16 %v15881_v34, %v15875_v53  ;;  %v19871_v59 = vld [vmem:[#allocation52_spill] sm:$0xff]  ;;  %v19874_v34 = vld [vmem:[#allocation57_spill] sm:$0xff] }
 0x1f1   :  { %v1210_v12 = vmul.bf16 %v16027_v3, %v19855_v60  ;;  %v19869_v1 = vpack.c.bf16 %v15902_v30, %v15906_v23  ;;  %v1008_v17 = vmul.bf16 %v19871_v59, %v960_v2  ;;  %v1300_v4 = vmul.bf16 %v19872_v18, %v1252_v49  ;;  %19877 = vst [vmem:[#allocation51_spill] sm:$0xff] %v16084_v19  ;;  %v16086_v49 = vpop.permute.xlu0 %1292  ;;  %v13337_v60 = vld [vmem:[#allocation6 + $0x8] sm:$0xff]   ;;  %v13344_v33 = vld [vmem:[#allocation6 + $0xd8] sm:$0xff]  }
 0x1f2   :  { %v1104_v48 = vmul.bf16 %v19866_v22, %v19865_v0  ;;  %v19873_v53 = vpack.c.bf16 %v15944_v20, %v15931_v21  ;;  %v19875_v23 = vpack.c.bf16 %v15952_v42, %v15956_v7  ;;  %v19876_v57 = vpack.c.bf16 %v15965_v37, %v15969_v14  ;;  %19878 = vst [vmem:[#allocation48_spill] sm:$0xff] %v16086_v49  ;;  %v16090_v20 = vpop.permute.xlu1 %1297  ;;  %v13332_v7 = vld [vmem:[#allocation6 + $0x40] sm:$0xff]   ;;  %v13348_v47 = vld [vmem:[#allocation6 + $0x58] sm:$0xff]  }
 0x1f3   :  { %12647 = vmatpush3.bf16.msra.mxu1 %v13329_v51  ;;  %v1005_v51 = vmul.bf16 %v19858_v46, %v19857_v26  ;;  %v1304_v27 = vmul.bf16 %v16014_v54, %v1256_v62  ;;  %v1305_v2 = vmul.bf16 %v16084_v19, %v1257_v50  ;;  %v1306_v21 = vmul.bf16 %v16086_v49, %v1258_v16  ;;  %v13333_v37 = vld [vmem:[#allocation6] sm:$0xff]   ;;  %v13338_v50 = vld [vmem:[#allocation6 + $0xc8] sm:$0xff]   ;;  %v13340_v16 = vld [vmem:[#allocation6 + $0xd0] sm:$0xff]  }
 0x1f4   :  { %12648 = vmatprep.subr.bf16.mxu1 %v13330_v8  ;;  %v1301_v30 = vmul.bf16 %v19874_v34, %v19873_v53  ;;  %v1302_v63 = vmul.bf16 %v15939_v11, %v19875_v23  ;;  %v1303_v41 = vmul.bf16 %v15959_v36, %v19876_v57  ;;  %19879 = vst [vmem:[#allocation33_spill] sm:$0xff] %v16090_v20  ;;  %v13334_v14 = vld [vmem:[#allocation6 + $0xc0] sm:$0xff]   ;;  %v13342_v26 = vld [vmem:[#allocation6 + $0x50] sm:$0xff]   ;;  %v13349_v0 = vld [vmem:[#allocation6 + $0x18] sm:$0xff]  }
 0x1f5   :  { %1740 = vmatmul.mubr.bf16.gmra.mrb[12].mxu1 %v1004_v6  ;;  %v19870_v6 = vld [vmem:[#allocation50_spill] sm:$0xff]  ;;  %v1307_v42 = vmul.bf16 %v16090_v20, %v1259_v25  ;;  %12091 = vmatprep.subr.bf16.mxu0 %v13332_v7  ;;  %v13335_v62 = vld [vmem:[#allocation6 + $0x80] sm:$0xff]   ;;  %v13341_v25 = vld [vmem:[#allocation6 + $0x90] sm:$0xff]  }
 0x1f6   :  { %1747 = vmatprep.mubr.bf16.mxu1 %v1102_v9  ;;  %1861 = vmatmul.mubr.bf16.gmra.mrb[40].mxu0 %v19856_v5  ;;  %v1105_v39 = vmul.bf16 %v19870_v6, %v19869_v1  ;;  %v13336_v9 = vld [vmem:[#allocation6 + $0x48] sm:$0xff]   ;;  %v13353_v1 = vld [vmem:[#allocation6 + $0xb0] sm:$0xff]   ;;  %v13357_v53 = vld [vmem:[#allocation6 + $0xb8] sm:$0xff]  }
 0x1f7   :  { %1868 = vmatprep.mubr.bf16.mxu0 %v1210_v12  ;;  %12649 = vmatpush3.bf16.msra.mxu1 %v13330_v8  ;;  %v19863_v8 = vld [vmem:[#allocation40_spill] sm:$0xff]  ;;  %v13361_v57 = vld [vmem:[#allocation6 + $0x30] sm:$0xff]  }
 0x1f8   :  { %12650 = vmatprep.subr.bf16.mxu1 %v13331_v10  ;;  %v1006_v38 = vmul.bf16 %v19863_v8, %v19862_v13  ;;  %12092 = vmatpush3.bf16.msra.mxu0 %v13333_v37  ;;  %v13339_v12 = vld [vmem:[#allocation6 + $0x88] sm:$0xff]   ;;  %v13346_v13 = vld [vmem:[#allocation6 + $0xe0] sm:$0xff]  }
 0x1f9   :  { %12093 = vmatprep.subr.bf16.mxu0 %v13336_v9  ;;  %v13359_v23 = vld [vmem:[#allocation6 + $0x28] sm:$0xff]  }
 0x1fb   :  { %12651 = vmatpush3.bf16.msra.mxu1 %v13331_v10  ;;  %v1007_v10 = vmul.bf16 %v19868_v40, %v19867_v58  ;;  %v13351_v58 = vld [vmem:[#allocation6 + $0xa8] sm:$0xff]   ;;  %v13365_v40 = vld [vmem:[#allocation6 + $0x100] sm:$0xff]  }
 0x1fc   :  { %12155 = vmatprep.subr.bf16.mxu1 %v13334_v14  ;;  %12094 = vmatpush3.bf16.msra.mxu0 %v13337_v60 }
 0x1fd   :  { %1748 = vmatmul.mubr.bf16.gmra.mrb[16].mxu1 %v1005_v51  ;;  %v13343_v51 = vld [vmem:[#allocation6 + $0x10] sm:$0xff]   ;;  %12095 = vmatprep.subr.bf16.mxu0 %v13342_v26 }
 0x1fe   :  { %1755 = vmatprep.mubr.bf16.mxu1 %v1103_v45  ;;  %1869 = vmatmul.mubr.bf16.gmra.mrb[44].mxu0 %v19861_v32  ;;  %v13345_v45 = vld [vmem:[#allocation6 + $0x98] sm:$0xff]  }
 0x200   :  { %12096 = vmatpush3.bf16.msra.mxu0 %v13343_v51 }
 0x201   :  { %12097 = vmatprep.subr.bf16.mxu0 %v13348_v47 }
 0x204   :  { %12098 = vmatpush3.bf16.msra.mxu0 %v13349_v0  ;;  %v16096_v0 = vld [vmem:[%s19880_s8] ss:$0 sm:$0xff] }
 0x205   :  { %1756 = vmatmul.mubr.bf16.gmra.mrb[20].mxu1 %v1006_v38  ;;  %v13347_v38 = vld [vmem:[#allocation6 + $0xa0] sm:$0xff]  }
 0x206   :  { %1763 = vmatprep.mubr.bf16.mxu1 %v1104_v48  ;;  %v13350_v48 = vld [vmem:[#allocation6 + $0xe8] sm:$0xff]  }
 0x20d   :  { %1764 = vmatmul.mubr.bf16.gmra.mrb[24].mxu1 %v1007_v10  ;;  %v13352_v10 = vld [vmem:[#allocation6 + $0xf0] sm:$0xff]  }
 0x20e   :  { %1771 = vmatprep.mubr.bf16.mxu1 %v1105_v39  ;;  %v13354_v39 = vld [vmem:[#allocation6 + $0x60] sm:$0xff]  }
 0x20f   :  { %12099 = vmatprep.subr.bf16.mxu0 %v13354_v39 }
 0x215   :  { %1772 = vmatmul.mubr.bf16.gmra.mrb[28].mxu1 %v1008_v17  ;;  %v13355_v17 = vld [vmem:[#allocation6 + $0x20] sm:$0xff]  }
 0x216   :  { %12652 = vmatprep.mubr.bf16.mxu1 %v1300_v4  ;;  %v13356_v4 = vld [vmem:[#allocation6 + $0xf8] sm:$0xff]   ;;  %12100 = vmatpush3.bf16.msra.mxu0 %v13355_v17 }
 0x21d   :  { %12653 = vmatmul.mubr.bf16.vlgmr.msra.gmra.mrb[32].mxu1 %v1301_v30  ;;  %v13358_v30 = vld [vmem:[#allocation6 + $0x68] sm:$0xff]  }
 0x21e   :  { %12656 = vmatprep.mubr.bf16.mxu1 %v1302_v63  ;;  %12156 = vmatpush3.bf16.msra.mxu1 %v13335_v62  ;;  %v13360_v63 = vld [vmem:[#allocation6 + $0x70] sm:$0xff]  }
 0x21f   :  { %12157 = vmatprep.subr.bf16.mxu1 %v13338_v50  ;;  %12101 = vmatprep.subr.bf16.mxu0 %v13358_v30 }
 0x220   :  { %12102 = vmatpush3.bf16.msra.mxu0 %v13359_v23 }
 0x221   :  { %12103 = vmatprep.subr.bf16.mxu0 %v13360_v63 }
 0x222   :  { %12158 = vmatpush3.bf16.msra.mxu1 %v13339_v12 }
 0x223   :  { %12159 = vmatprep.subr.bf16.mxu1 %v13340_v16 }
 0x224   :  { %12104 = vmatpush3.bf16.msra.mxu0 %v13361_v57 }
 0x225   :  { %12657 = vmatmul.mubr.bf16.gmra.mrb[36].mxu1 %v1303_v41  ;;  %v13362_v41 = vld [vmem:[#allocation6 + $0x78] sm:$0xff]  }
 0x226   :  { %12660 = vmatprep.mubr.bf16.mxu1 %v1304_v27  ;;  %12160 = vmatpush3.bf16.msra.mxu1 %v13341_v25  ;;  %v13363_v27 = vld [vmem:[#allocation6 + $0x38] sm:$0xff]  }
 0x227   :  { %12161 = vmatprep.subr.bf16.mxu1 %v13344_v33  ;;  %12105 = vmatprep.subr.bf16.mxu0 %v13362_v41 }
 0x228   :  { %12106 = vmatpush3.bf16.msra.mxu0 %v13363_v27 }
 0x22a   :  { %12162 = vmatpush3.bf16.msra.mxu1 %v13345_v45 }
 0x22b   :  { %12163 = vmatprep.subr.bf16.mxu1 %v13346_v13 }
 0x22d   :  { %12661 = vmatmul.mubr.bf16.gmra.mrb[40].mxu1 %v1305_v2 }
 0x22e   :  { %12664 = vmatprep.mubr.bf16.mxu1 %v1306_v21  ;;  %12164 = vmatpush3.bf16.msra.mxu1 %v13347_v38  ;;  %v13364_v21 = vld [vmem:[#allocation6 + $0x140] sm:$0xff]  }
 0x22f   :  { %12165 = vmatprep.subr.bf16.mxu1 %v13350_v48  ;;  %12219 = vmatprep.subr.bf16.mxu0 %v13364_v21 }
 0x232   :  { %12166 = vmatpush3.bf16.msra.mxu1 %v13351_v58 }
 0x233   :  { %12167 = vmatprep.subr.bf16.mxu1 %v13352_v10 }
 0x235   :  { %12665 = vmatmul.mubr.bf16.gmra.mrb[44].mxu1 %v1307_v42 }
 0x236   :  { %12168 = vmatpush3.bf16.msra.mxu1 %v13353_v1 }
 0x237   :  { %12169 = vmatprep.subr.bf16.mxu1 %v13356_v4 }
 0x23a   :  { %12170 = vmatpush3.bf16.msra.mxu1 %v13357_v53 }
 0x299   :  { %v12027_v2 = vpop.f32.mrb[16].mxu0 }
 0x29a   :  { %v12028_v42 = vpop.f32.mrb[17].mxu0 }
 0x29b   :  { %v12029_v7 = vadd.f32 %v12028_v42, %v12027_v2  ;;  %v12030_v37 = vpop.f32.mrb[18].mxu0 }
 0x29c   :  { %v12031_v14 = vpop.f32.mrb[19].mxu0 }
 0x29d   :  { %v12032_v62 = vadd.f32 %v12031_v14, %v12030_v37 }
 0x2a1   :  { %v12033_v9 = vpop.f32.mrb[20].mxu0 }
 0x2a2   :  { %v12034_v60 = vpop.f32.mrb[21].mxu0 }
 0x2a3   :  { %v12035_v50 = vadd.f32 %v12034_v60, %v12033_v9  ;;  %v12036_v12 = vpop.f32.mrb[22].mxu0 }
 0x2a4   :  { %v12037_v16 = vpop.f32.mrb[23].mxu0 }
 0x2a5   :  { %v12038_v25 = vadd.f32 %v12037_v16, %v12036_v12 }
 0x2a9   :  { %v12039_v26 = vpop.f32.mrb[24].mxu0 }
 0x2aa   :  { %v12040_v51 = vpop.f32.mrb[25].mxu0 }
 0x2ab   :  { %v12041_v33 = vadd.f32 %v12040_v51, %v12039_v26  ;;  %v12042_v45 = vpop.f32.mrb[26].mxu0 }
 0x2ac   :  { %v12043_v13 = vpop.f32.mrb[27].mxu0 }
 0x2ad   :  { %v12044_v38 = vadd.f32 %v12043_v13, %v12042_v45 }
 0x2b0   :  { %v11963_v47 = vpop.f32.mrb[0].mxu1 }
 0x2b1   :  { %v11964_v48 = vpop.f32.mrb[1].mxu1  ;;  %v12045_v58 = vpop.f32.mrb[28].mxu0 }
 0x2b2   :  { %v11965_v10 = vadd.f32 %v11964_v48, %v11963_v47  ;;  %v11966_v1 = vpop.f32.mrb[2].mxu1  ;;  %v12046_v39 = vpop.f32.mrb[29].mxu0 }
 0x2b3   :  { %v12047_v17 = vadd.f32 %v12046_v39, %v12045_v58  ;;  %v11967_v4 = vpop.f32.mrb[3].mxu1  ;;  %v12048_v53 = vpop.f32.mrb[30].mxu0 }
 0x2b4   :  { %v1718_v30 = vadd.f32 %v11965_v10, %v16096_v0  ;;  %v11968_v23 = vadd.f32 %v11967_v4, %v11966_v1  ;;  %v12049_v63 = vpop.f32.mrb[31].mxu0 }
 0x2b5   :  { %v12050_v57 = vadd.f32 %v12049_v63, %v12048_v53 }
 0x2b6   :  { %v1721_v41 = vadd.f32 %v11968_v23, %v16096_v0  ;;  %v16100_v27 = vadd.f32 %v12029_v7, %v1718_v30 }
 0x2b8   :  { %v11969_v2 = vpop.f32.mrb[4].mxu1  ;;  %v16102_v21 = vadd.f32 %v12032_v62, %v1721_v41 }
 0x2b9   :  { %v11970_v42 = vpop.f32.mrb[5].mxu1  ;;  %v12051_v37 = vpop.f32.mrb[32].mxu0 }
 0x2ba   :  { %v11971_v14 = vadd.f32 %v11970_v42, %v11969_v2  ;;  %v11972_v9 = vpop.f32.mrb[6].mxu1  ;;  %v12052_v60 = vpop.f32.mrb[33].mxu0 }
 0x2bb   :  { %v12053_v12 = vadd.f32 %v12052_v60, %v12051_v37  ;;  %v11973_v16 = vpop.f32.mrb[7].mxu1  ;;  %v12054_v26 = vpop.f32.mrb[34].mxu0 }
 0x2bc   :  { %v1726_v51 = vadd.f32 %v11971_v14, %v16096_v0  ;;  %v11974_v45 = vadd.f32 %v11973_v16, %v11972_v9  ;;  %v12055_v13 = vpop.f32.mrb[35].mxu0 }
 0x2bd   :  { %v12056_v47 = vadd.f32 %v12055_v13, %v12054_v26 }
 0x2be   :  { %v1729_v48 = vadd.f32 %v11974_v45, %v16096_v0  ;;  %v16106_v7 = vadd.f32 %v12035_v50, %v1726_v51 }
 0x2c0   :  { %v11975_v58 = vpop.f32.mrb[8].mxu1  ;;  %v16108_v62 = vadd.f32 %v12038_v25, %v1729_v48 }
 0x2c1   :  { %v11976_v10 = vpop.f32.mrb[9].mxu1  ;;  %v12057_v1 = vpop.f32.mrb[36].mxu0 }
 0x2c2   :  { %v11977_v39 = vadd.f32 %v11976_v10, %v11975_v58  ;;  %v11978_v4 = vpop.f32.mrb[10].mxu1  ;;  %v12058_v53 = vpop.f32.mrb[37].mxu0 }
 0x2c3   :  { %v12059_v30 = vadd.f32 %v12058_v53, %v12057_v1  ;;  %v11979_v23 = vpop.f32.mrb[11].mxu1  ;;  %v12060_v63 = vpop.f32.mrb[38].mxu0 }
 0x2c4   :  { %v1734_v41 = vadd.f32 %v11977_v39, %v16096_v0  ;;  %v11980_v2 = vadd.f32 %v11979_v23, %v11978_v4  ;;  %v12061_v42 = vpop.f32.mrb[39].mxu0 }
 0x2c5   :  { %v12062_v37 = vadd.f32 %v12061_v42, %v12060_v63 }
 0x2c6   :  { %v1737_v14 = vadd.f32 %v11980_v2, %v16096_v0  ;;  %v16112_v50 = vadd.f32 %v12041_v33, %v1734_v41 }
 0x2c8   :  { %v11981_v9 = vpop.f32.mrb[12].mxu1  ;;  %v16114_v25 = vadd.f32 %v12044_v38, %v1737_v14 }
 0x2c9   :  { %v11982_v60 = vpop.f32.mrb[13].mxu1  ;;  %v12063_v16 = vpop.f32.mrb[40].mxu0 }
 0x2ca   :  { %v11983_v26 = vadd.f32 %v11982_v60, %v11981_v9  ;;  %v11984_v51 = vpop.f32.mrb[14].mxu1  ;;  %v12064_v45 = vpop.f32.mrb[41].mxu0 }
 0x2cb   :  { %v12065_v13 = vadd.f32 %v12064_v45, %v12063_v16  ;;  %v11985_v48 = vpop.f32.mrb[15].mxu1  ;;  %v12066_v58 = vpop.f32.mrb[42].mxu0 }
 0x2cc   :  { %v1742_v10 = vadd.f32 %v11983_v26, %v16096_v0  ;;  %v11986_v1 = vadd.f32 %v11985_v48, %v11984_v51  ;;  %v12067_v39 = vpop.f32.mrb[43].mxu0 }
 0x2cd   :  { %v12068_v4 = vadd.f32 %v12067_v39, %v12066_v58 }
 0x2ce   :  { %v1745_v53 = vadd.f32 %v11986_v1, %v16096_v0  ;;  %v16118_v33 = vadd.f32 %v12047_v17, %v1742_v10 }
 0x2d0   :  { %v11987_v23 = vpop.f32.mrb[16].mxu1  ;;  %v16120_v38 = vadd.f32 %v12050_v57, %v1745_v53 }
 0x2d1   :  { %v11988_v63 = vpop.f32.mrb[17].mxu1  ;;  %v12069_v41 = vpop.f32.mrb[44].mxu0 }
 0x2d2   :  { %v11989_v2 = vadd.f32 %v11988_v63, %v11987_v23  ;;  %v11990_v42 = vpop.f32.mrb[18].mxu1  ;;  %v12070_v14 = vpop.f32.mrb[45].mxu0 }
 0x2d3   :  { %v12071_v9 = vadd.f32 %v12070_v14, %v12069_v41  ;;  %v11991_v60 = vpop.f32.mrb[19].mxu1  ;;  %v12072_v16 = vpop.f32.mrb[46].mxu0 }
 0x2d4   :  { %v1750_v26 = vadd.f32 %v11989_v2, %v16096_v0  ;;  %v11992_v51 = vadd.f32 %v11991_v60, %v11990_v42  ;;  %v12073_v45 = vpop.f32.mrb[47].mxu0 }
 0x2d5   :  { %v12074_v48 = vadd.f32 %v12073_v45, %v12072_v16 }
 0x2d6   :  { %v1753_v58 = vadd.f32 %v11992_v51, %v16096_v0  ;;  %v16124_v17 = vadd.f32 %v12053_v12, %v1750_v26 }
 0x2d8   :  { %v11993_v10 = vpop.f32.mrb[20].mxu1  ;;  %v16126_v57 = vadd.f32 %v12056_v47, %v1753_v58 }
 0x2d9   :  { %v11994_v1 = vpop.f32.mrb[21].mxu1 }
 0x2da   :  { %v11995_v39 = vadd.f32 %v11994_v1, %v11993_v10  ;;  %v11996_v53 = vpop.f32.mrb[22].mxu1 }
 0x2db   :  { %v11997_v23 = vpop.f32.mrb[23].mxu1 }
 0x2dc   :  { %v1758_v63 = vadd.f32 %v11995_v39, %v16096_v0  ;;  %v11998_v41 = vadd.f32 %v11997_v23, %v11996_v53 }
 0x2de   :  { %v1761_v14 = vadd.f32 %v11998_v41, %v16096_v0  ;;  %v16130_v2 = vadd.f32 %v12059_v30, %v1758_v63 }
 0x2e0   :  { %v11999_v42 = vpop.f32.mrb[24].mxu1  ;;  %v16132_v60 = vadd.f32 %v12062_v37, %v1761_v14 }
 0x2e1   :  { %v12000_v16 = vpop.f32.mrb[25].mxu1 }
 0x2e2   :  { %v12001_v12 = vadd.f32 %v12000_v16, %v11999_v42  ;;  %v12002_v26 = vpop.f32.mrb[26].mxu1 }
 0x2e3   :  { %v12003_v51 = vpop.f32.mrb[27].mxu1 }
 0x2e4   :  { %v1766_v47 = vadd.f32 %v12001_v12, %v16096_v0  ;;  %v12004_v45 = vadd.f32 %v12003_v51, %v12002_v26 }
 0x2e6   :  { %v1769_v58 = vadd.f32 %v12004_v45, %v16096_v0  ;;  %v16136_v10 = vadd.f32 %v12065_v13, %v1766_v47 }
 0x2e8   :  { %v12005_v1 = vpop.f32.mrb[28].mxu1  ;;  %v16138_v39 = vadd.f32 %v12068_v4, %v1769_v58 }
 0x2e9   :  { %v12006_v53 = vpop.f32.mrb[29].mxu1 }
 0x2ea   :  { %v12007_v30 = vadd.f32 %v12006_v53, %v12005_v1  ;;  %v12008_v23 = vpop.f32.mrb[30].mxu1 }
 0x2eb   :  { %v12009_v63 = vpop.f32.mrb[31].mxu1 }
 0x2ec   :  { %v1774_v37 = vadd.f32 %v12007_v30, %v16096_v0  ;;  %v12010_v41 = vadd.f32 %v12009_v63, %v12008_v23 }
 0x2ee   :  { %v1777_v14 = vadd.f32 %v12010_v41, %v16096_v0  ;;  %v16142_v42 = vadd.f32 %v12071_v9, %v1774_v37 }
 0x2f0   :  { %v12654_v16 = vpop.f32.mrb[32].mxu1  ;;  %v16144_v12 = vadd.f32 %v12074_v48, %v1777_v14 }
 0x2f1   :  { %v1920_v13 = vadd.f32 %v12654_v16, %v16106_v7  ;;  %v1911_v26 = vpop.f32.mrb[33].mxu1 }
 0x2f2   :  { %v1912_v4 = vadd.f32 %v1911_v26, %v16100_v27  ;;  %v12655_v51 = vpop.f32.mrb[34].mxu1 }
 0x2f3   :  { %v16148_v47 = vmax.f32 %v1920_v13, 0.0  ;;  %v1923_v45 = vadd.f32 %v12655_v51, %v16108_v62  ;;  %v1914_v58 = vpop.f32.mrb[35].mxu1 }
 0x2f4   :  { %v16151_v1 = vmax.f32 %v1912_v4, 0.0  ;;  %v1915_v0 = vadd.f32 %v1914_v58, %v16102_v21 }
 0x2f5   :  { %v16154_v9 = vmax.f32 %v1923_v45, 0.0  ;;  %v2120_v7 = vrot.slane %v16148_v47, 1  ;;  %v2056_v27 = vrot.slane %v16148_v47, 7 }
 0x2f6   :  { %v19554_v48 = vrot.slane %v16151_v1, 6  ;;  %v16157_v53 = vmax.f32 %v1915_v0, 0.0  ;;  %v19553_v30 = vrot.slane %v16151_v1, 1  ;;  %v19881_v20 = vrot.slane %v16151_v1, 7 }
 0x2f7   :  { %v2121_v23 = vrot.slane %v16154_v9, 1  ;;  %v19550_v63 = vrot.slane %v16154_v9, 7 }
 0x2f8   :  { %v1999_v21 = vrot.slane %v16157_v53, 6  ;;  %v12658_v37 = vpop.f32.mrb[36].mxu1  ;;  %v2119_v41 = vrot.slane %v16157_v53, 1  ;;  %v1990_v14 = vpack.c.bf16 %v16157_v53, %v16151_v1  ;;  %v2055_v51 = vrot.slane %v16157_v53, 7 }
 0x2f9   :  { %v1936_v13 = vadd.f32 %v12658_v37, %v16118_v33  ;;  %v1927_v26 = vpop.f32.mrb[37].mxu1  ;;  %v2146_v4 = vsel %vm1138_vm5, %v2120_v7, %v2121_v23  ;;  %v16179_v45 = vsel %vm1033_vm7, %v2056_v27, %v19550_v63 }
 0x2fa   :  { %v1928_v58 = vadd.f32 %v1927_v26, %v16112_v50  ;;  %v12659_v0 = vpop.f32.mrb[38].mxu1  ;;  %v2147_v62 = vsel %vm1138_vm5, %v2119_v41, %v2120_v7  ;;  %v2148_v33 = vsel %vm1138_vm5, %v19553_v30, %v2119_v41  ;;  %v16192_v37 = vsel %vm936_vm4, %v19554_v48, %v1999_v21 }
 0x2fb   :  { %v16194_v16 = vmax.f32 %v1936_v13, 0.0  ;;  %v1939_v63 = vadd.f32 %v12659_v0, %v16120_v38  ;;  %v1930_v50 = vpop.f32.mrb[39].mxu1  ;;  %v2150_v26 = vpack.c.bf16 %v2147_v62, %v2148_v33  ;;  %v16201_v7 = vsel %vm1033_vm7, %v19881_v20, %v2055_v51  ;;  %v19882_v38 = vld [vmem:[#allocation32_spill] sm:$0xff] }
 0x2fc   :  { %v16203_v32 = vmax.f32 %v1928_v58, 0.0  ;;  %v1931_v41 = vadd.f32 %v1930_v50, %v16114_v25  ;;  %v16208_v30 = vsel %vm1033_vm7, %v2055_v51, %v2056_v27  ;;  %v2000_v13 = vrot.slane %v16148_v47, 6 }
 0x2fd   :  { %v16211_v48 = vmax.f32 %v1939_v63, 0.0  ;;  %v2158_v62 = vmul.bf16 %v2150_v26, %v19882_v38  ;;  %v2001_v58 = vrot.slane %v16154_v9, 6  ;;  %v2124_v27 = vrot.slane %v16194_v16, 1 }
 0x2fe   :  { %v16216_v33 = vmax.f32 %v1931_v41, 0.0  ;;  %v2122_v20 = vrot.slane %v16203_v32, 1  ;;  %v16222_v25 = vsel %vm936_vm4, %v1999_v21, %v2000_v13  ;;  %v2058_v50 = vrot.slane %v16203_v32, 7 }
 0x2ff   :  { %2806 = vmatprep.mubr.bf16.mxu1 %v2158_v62  ;;  %v2125_v63 = vrot.slane %v16211_v48, 1  ;;  %v16236_v62 = vsel %vm936_vm4, %v2000_v13, %v2001_v58 }
 0x300   :  { %v12662_v26 = vpop.f32.mrb[40].mxu1  ;;  %2807 = vmatmul.mubr.bf16.vlgmr.msra.gmra.mrb[48].mxu1 %v1990_v14  ;;  %v2145_v41 = vsel %vm1138_vm5, %v2121_v23, %v2122_v20  ;;  %v2123_v38 = vrot.slane %v16216_v33, 1  ;;  %v2059_v61 = vrot.slane %v16216_v33, 7 }
 0x301   :  { %v1952_v0 = vadd.f32 %v12662_v26, %v16130_v2  ;;  %v1943_v49 = vpop.f32.mrb[41].mxu1  ;;  %v2151_v51 = vpack.c.bf16 %v2145_v41, %v2146_v4  ;;  %v2142_v5 = vsel %vm1138_vm5, %v2124_v27, %v2125_v63  ;;  %v19883_v41 = vld [vmem:[#allocation36_spill] sm:$0xff] }
 0x302   :  { %v1944_v23 = vadd.f32 %v1943_v49, %v16124_v17  ;;  %v12663_v19 = vpop.f32.mrb[42].mxu1  ;;  %v2143_v21 = vsel %vm1138_vm5, %v2123_v38, %v2124_v27  ;;  %v2144_v13 = vsel %vm1138_vm5, %v2122_v20, %v2123_v38  ;;  %v16258_v17 = vsel %vm1033_vm7, %v2058_v50, %v2059_v61  ;;  %v19884_v20 = vld [vmem:[#allocation42_spill] sm:$0xff] }
 0x303   :  { %v16249_v2 = vmax.f32 %v1952_v0, 0.0  ;;  %v1955_v4 = vadd.f32 %v12663_v19, %v16132_v60  ;;  %v1946_v26 = vpop.f32.mrb[43].mxu1  ;;  %v2159_v54 = vmul.bf16 %v2151_v51, %v19883_v41  ;;  %v2152_v44 = vpack.c.bf16 %v2143_v21, %v2144_v13 }
 0x304   :  { %v16253_v14 = vmax.f32 %v1944_v23, 0.0  ;;  %v1947_v49 = vadd.f32 %v1946_v26, %v16126_v57  ;;  %v19885_v38 = vrot.slane %v16154_v9, 7  ;;  %v2002_v21 = vrot.slane %v16203_v32, 6 }
 0x305   :  { %v16260_v27 = vmax.f32 %v1955_v4, 0.0  ;;  %2814 = vmatprep.mubr.bf16.mxu1 %v2159_v54  ;;  %v2160_v0 = vmul.bf16 %v2152_v44, %v19884_v20  ;;  %v2128_v23 = vrot.slane %v16249_v2, 1  ;;  %v2003_v44 = vrot.slane %v16216_v33, 6 }
 0x306   :  { %v16267_v19 = vsel %vm1033_vm7, %v19885_v38, %v2058_v50  ;;  %v16269_v60 = vmax.f32 %v1947_v49, 0.0  ;;  %v2126_v51 = vrot.slane %v16253_v14, 1  ;;  %v2060_v13 = vrot.slane %v16194_v16, 7 }
 0x307   :  { %v2129_v54 = vrot.slane %v16260_v27, 1  ;;  %v19886_v50 = vpack.c.bf16 %v16154_v9, %v16148_v47  ;;  %v2061_v20 = vrot.slane %v16211_v48, 7 }
 0x308   :  { %v12666_v4 = vpop.f32.mrb[44].mxu1  ;;  %v2141_v26 = vsel %vm1138_vm5, %v2125_v63, %v2126_v51  ;;  %v2127_v41 = vrot.slane %v16269_v60, 1 }
 0x309   :  { %2815 = vmatmul.mubr.bf16.gmra.mrb[52].mxu1 %v19886_v50  ;;  %v1968_v38 = vadd.f32 %v12666_v4, %v16142_v42  ;;  %v1959_v57 = vpop.f32.mrb[45].mxu1  ;;  %v2153_v36 = vpack.c.bf16 %v2141_v26, %v2142_v5  ;;  %v16291_v11 = vsel %vm1138_vm5, %v2128_v23, %v2129_v54  ;;  %v16295_v50 = vsel %vm936_vm4, %v2002_v21, %v2003_v44 }
 0x30a   :  { %2822 = vmatprep.mubr.bf16.mxu1 %v2160_v0  ;;  %v1960_v63 = vadd.f32 %v1959_v57, %v16136_v10  ;;  %v12667_v34 = vpop.f32.mrb[46].mxu1  ;;  %v2139_v49 = vsel %vm1138_vm5, %v2127_v41, %v2128_v23  ;;  %v2140_v42 = vsel %vm1138_vm5, %v2126_v51, %v2127_v41  ;;  %v16304_v5 = vsel %vm936_vm4, %v2001_v58, %v2002_v21 }
 0x30b   :  { %v16306_v0 = vmax.f32 %v1968_v38, 0.0  ;;  %v1971_v4 = vadd.f32 %v12667_v34, %v16144_v12  ;;  %v1962_v26 = vpop.f32.mrb[47].mxu1  ;;  %v2154_v18 = vpack.c.bf16 %v2139_v49, %v2140_v42  ;;  %v16316_v51 = vsel %vm1033_vm7, %v2060_v13, %v2061_v20  ;;  %v19887_v49 = vld [vmem:[#allocation47_spill] sm:$0xff] }
 0x30c   :  { %v16309_v59 = vmax.f32 %v1960_v63, 0.0  ;;  %v1963_v10 = vadd.f32 %v1962_v26, %v16138_v39  ;;  %v16322_v58 = vsel %vm1033_vm7, %v2059_v61, %v2060_v13  ;;  %v2161_v38 = vmul.bf16 %v2153_v36, %v19887_v49 }
 0x30d   :  { %v16318_v23 = vmax.f32 %v1971_v4, 0.0  ;;  %v2004_v42 = vrot.slane %v16194_v16, 6  ;;  %v19888_v61 = vpack.c.bf16 %v16216_v33, %v16203_v32  ;;  %v2132_v26 = vrot.slane %v16306_v0, 1 }
 0x30e   :  { %v16326_v12 = vmax.f32 %v1963_v10, 0.0  ;;  %v2130_v39 = vrot.slane %v16309_v59, 1  ;;  %v2005_v10 = vrot.slane %v16211_v48, 6  ;;  %v19889_v36 = vrot.slane %v16151_v1, 7 }
 0x30f   :  { %v19568_v41 = vrot.slane %v16318_v23, 6  ;;  %v19567_v63 = vrot.slane %v16318_v23, 7  ;;  %v2010_v8 = vrot.slane %v16309_v59, 6 }
 0x310   :  { %v16340_v13 = vsel %vm1138_vm5, %v2129_v54, %v2130_v39  ;;  %v2131_v4 = vrot.slane %v16326_v12, 1 }
 0x311   :  { %2823 = vmatmul.mubr.bf16.gmra.mrb[56].mxu1 %v19888_v61  ;;  %v2085_v49 = vsel %vm1033_vm7, %v19567_v63, %v19889_v36  ;;  %v19890_v61 = vrot.slane %v16151_v1, 6 }
 0x312   :  { %2830 = vmatprep.mubr.bf16.mxu1 %v2161_v38  ;;  %v16361_v38 = vsel %vm936_vm4, %v2003_v44, %v2004_v42  ;;  %v2086_v21 = vpack.c.bf16 %v16201_v7, %v2085_v49  ;;  %v16367_v36 = vsel %vm1138_vm5, %v2131_v4, %v2132_v26  ;;  %v16371_v63 = vsel %vm1138_vm5, %v2130_v39, %v2131_v4  ;;  %v19893_v4 = vld [vmem:[#allocation29_spill] sm:$0xff] }
 0x313   :  { %v2029_v54 = vsel %vm936_vm4, %v19568_v41, %v19890_v61  ;;  %v16378_v44 = vsel %vm936_vm4, %v2004_v42, %v2005_v10  ;;  %v2062_v7 = vrot.slane %v16253_v14, 7  ;;  %v2063_v39 = vrot.slane %v16269_v60, 7 }
 0x314   :  { %v2030_v57 = vpack.c.bf16 %v16192_v37, %v2029_v54  ;;  %v19891_v37 = vld [vmem:[#allocation28_spill] sm:$0xff]  ;;  %v19892_v54 = vld [vmem:[#allocation30_spill] sm:$0xff]  ;;  %v19894_v61 = vpack.c.bf16 %v16179_v45, %v16208_v30  ;;  %v2006_v30 = vrot.slane %v16253_v14, 6  ;;  %v2007_v45 = vrot.slane %v16269_v60, 6 }
 0x315   :  { %v2094_v49 = vmul.bf16 %v2086_v21, %v19891_v37  ;;  %v16392_v42 = vsel %vm1033_vm7, %v2061_v20, %v2062_v7  ;;  %v19895_v37 = vld [vmem:[#allocation53_spill] sm:$0xff]  ;;  %v16400_v22 = vsel %vm1033_vm7, %v2062_v7, %v2063_v39  ;;  %v2064_v7 = vrot.slane %v16249_v2, 7 }
 0x316   :  { %v2038_v34 = vmul.bf16 %v2030_v57, %v19892_v54  ;;  %v2095_v41 = vmul.bf16 %v19894_v61, %v19893_v4  ;;  %v2133_v57 = vrot.slane %v16318_v23, 1  ;;  %v2162_v6 = vmul.bf16 %v2154_v18, %v19895_v37  ;;  %v13366_v54 = vld [vmem:[#allocation6 + $0x148] sm:$0xff]  }
 0x317   :  { %2709 = vmatprep.mubr.bf16.mxu0 %v2094_v49  ;;  %v19896_v49 = vrot.slane %v16151_v1, 1  ;;  %v19897_v4 = vpack.c.bf16 %v16211_v48, %v16194_v16  ;;  %v16428_v37 = vsel %vm936_vm4, %v2005_v10, %v2006_v30  ;;  %v16436_v21 = vsel %vm1033_vm7, %v2063_v39, %v2064_v7  ;;  %v13368_v10 = vld [vmem:[#allocation6 + $0x150] sm:$0xff]  }
 0x318   :  { %2710 = vmatmul.mubr.bf16.vlgmr.msra.gmra.mrb[48].mxu0 %v2038_v34  ;;  %v16408_v61 = vsel %vm1138_vm5, %v2132_v26, %v2133_v57  ;;  %v16424_v26 = vsel %vm936_vm4, %v2006_v30, %v2007_v45  ;;  %19898 = vst [vmem:[#allocation35_spill] sm:$0xff] %v16436_v21  ;;  %v2008_v34 = vrot.slane %v16249_v2, 6  ;;  %v2175_v20 = vrot.slane %v16157_v53, 2  ;;  %v13370_v21 = vld [vmem:[#allocation6 + $0x158] sm:$0xff]  }
 0x319   :  { %v16414_v18 = vsel %vm1138_vm5, %v2133_v57, %v19896_v49  ;;  %2717 = vmatprep.mubr.bf16.mxu0 %v2095_v41  ;;  %2831 = vmatmul.mubr.bf16.gmra.mrb[60].mxu1 %v19897_v4  ;;  %v2065_v57 = vrot.slane %v16260_v27, 7  ;;  %v13367_v41 = vld [vmem:[#allocation6 + $0x108] sm:$0xff]   ;;  %v19900_v39 = vpack.c.bf16 %v16236_v62, %v16222_v25  ;;  %v2011_v25 = vrot.slane %v16326_v12, 6 }
 0x31a   :  { %2838 = vmatprep.mubr.bf16.mxu1 %v2162_v6  ;;  %12220 = vmatpush3.bf16.msra.mxu0 %v13365_v40  ;;  %v2009_v6 = vrot.slane %v16260_v27, 6  ;;  %v16455_v53 = vsel %vm936_vm4, %v2007_v45, %v2008_v34  ;;  %v2067_v40 = vrot.slane %v16326_v12, 7  ;;  %v19901_v62 = vpack.c.bf16 %v16258_v17, %v16267_v19  ;;  %v13369_v45 = vld [vmem:[#allocation6 + $0x110] sm:$0xff]  }
 0x31b   :  { %12221 = vmatprep.subr.bf16.mxu0 %v13366_v54  ;;  %v16442_v30 = vsel %vm1033_vm7, %v2064_v7, %v2065_v57  ;;  %v2039_v4 = vmul.bf16 %v19900_v39, %v15476_v29  ;;  %v2066_v54 = vrot.slane %v16309_v59, 7  ;;  %v2068_v29 = vrot.slane %v16306_v0, 7 }
 0x31c   :  { %19899 = vst [vmem:[#allocation38_spill] sm:$0xff] %v16442_v30  ;;  %v16460_v7 = vsel %vm936_vm4, %v2008_v34, %v2009_v6  ;;  %v2096_v39 = vmul.bf16 %v19901_v62, %v15478_v24  ;;  %v16482_v24 = vsel %vm936_vm4, %v2010_v8, %v2011_v25  ;;  %v16486_v17 = vsel %vm936_vm4, %v2009_v6, %v2010_v8 }
 0x31d   :  { %v2035_v49 = vpack.c.bf16 %v16460_v7, %v16455_v53  ;;  %v16473_v34 = vsel %vm1033_vm7, %v2065_v57, %v2066_v54  ;;  %v16478_v30 = vsel %vm1033_vm7, %v2066_v54, %v2067_v40  ;;  %v2012_v19 = vrot.slane %v16306_v0, 6  ;;  %v19930_v7 = vld [vmem:[#allocation34_spill] sm:$0xff] }
 0x31e   :  { %12222 = vmatpush3.bf16.msra.mxu0 %v13367_v41  ;;  %v19902_v57 = vpack.c.bf16 %v16340_v13, %v16291_v11  ;;  %v2036_v54 = vpack.c.bf16 %v16482_v24, %v16486_v17  ;;  %v19903_v62 = vrot.slane %v16318_v23, 7  ;;  %v19905_v11 = vrot.slane %v16318_v23, 6 }
 0x31f   :  { %12223 = vmatprep.subr.bf16.mxu0 %v13368_v10  ;;  %v2092_v10 = vpack.c.bf16 %v16478_v30, %v16473_v34  ;;  %v16518_v6 = vsel %vm936_vm4, %v2011_v25, %v2012_v19  ;;  %v19931_v34 = vld [vmem:[#allocation55_spill] sm:$0xff] }
 0x320   :  { %2718 = vmatmul.mubr.bf16.gmra.mrb[52].mxu0 %v2039_v4  ;;  %v2163_v41 = vmul.bf16 %v19902_v57, %v15890_v31  ;;  %v16501_v8 = vsel %vm1033_vm7, %v2068_v29, %v19903_v62  ;;  %v19904_v4 = vpack.c.bf16 %v16269_v60, %v16253_v14  ;;  %v16508_v31 = vsel %vm1033_vm7, %v2067_v40, %v2068_v29  ;;  %v13371_v57 = vld [vmem:[#allocation6 + $0x118] sm:$0xff]   ;;  %v13372_v40 = vld [vmem:[#allocation6 + $0x160] sm:$0xff]  }
 0x321   :  { %2725 = vmatprep.mubr.bf16.mxu0 %v2096_v39  ;;  %v16514_v13 = vsel %vm936_vm4, %v2012_v19, %v19905_v11  ;;  %v2177_v39 = vrot.slane %v16154_v9, 2  ;;  %v2178_v29 = vrot.slane %v16203_v32, 2  ;;  %v19906_v11 = vrot.slane %v16148_v47, 2  ;;  %v13373_v62 = vld [vmem:[#allocation6 + $0x120] sm:$0xff]  }
 0x322   :  { %2839 = vmatmul.mubr.bf16.gmra.mrb[64].mxu1 %v19904_v4  ;;  %12224 = vmatpush3.bf16.msra.mxu0 %v13369_v45  ;;  %v19907_v9 = vrot.slane %v16151_v1, 2  ;;  %v2181_v4 = vrot.slane %v16211_v48, 2  ;;  %v19929_v53 = vpack.c.bf16 %v16514_v13, %v16518_v6  ;;  %v19936_v13 = vld [vmem:[#allocation58_spill] sm:$0xff] }
 0x323   :  { %2846 = vmatprep.mubr.bf16.mxu1 %v2163_v41  ;;  %12225 = vmatprep.subr.bf16.mxu0 %v13370_v21  ;;  %v16530_v25 = vsel %vm1235_vm6, %v2175_v20, %v19906_v11  ;;  %v19908_v19 = vmov %v19906_v11  ;;  %v16548_v41 = vsel %vm1235_vm6, %v2177_v39, %v2178_v29  ;;  %v2179_v11 = vrot.slane %v16216_v33, 2 }
 0x324   :  { %v16536_v45 = vsel %vm1235_vm6, %v19907_v9, %v2175_v20  ;;  %v16542_v32 = vsel %vm1235_vm6, %v19908_v19, %v2177_v39  ;;  %v19909_v20 = vpack.c.bf16 %v16295_v50, %v16304_v5  ;;  %v2180_v19 = vrot.slane %v16194_v16, 2 }
 0x325   :  { %v2207_v47 = vpack.c.bf16 %v16548_v41, %v16542_v32  ;;  %v19910_v21 = vpack.c.bf16 %v16316_v51, %v16322_v58  ;;  %v16565_v33 = vsel %vm1235_vm6, %v2178_v29, %v2179_v11  ;;  %v2182_v50 = vrot.slane %v16253_v14, 2  ;;  %v19941_v32 = vld [vmem:[#allocation46_spill] sm:$0xff]  ;;  %v19942_v41 = vld [vmem:[#allocation51_spill] sm:$0xff] }
 0x326   :  { %v2040_v9 = vmul.bf16 %v19909_v20, %v15480_v43  ;;  %12226 = vmatpush3.bf16.msra.mxu0 %v13371_v57  ;;  %v2183_v5 = vrot.slane %v16269_v60, 2  ;;  %v19911_v16 = vpack.c.bf16 %v16367_v36, %v16371_v63  ;;  %v13374_v20 = vld [vmem:[#allocation6 + $0x168] sm:$0xff]   ;;  %v16579_v51 = vsel %vm1235_vm6, %v2180_v19, %v2181_v4 }
 0x327   :  { %v2097_v39 = vmul.bf16 %v19910_v21, %v15482_v52  ;;  %12227 = vmatprep.subr.bf16.mxu0 %v13372_v40  ;;  %v16575_v52 = vsel %vm1235_vm6, %v2179_v11, %v2180_v19  ;;  %v2184_v58 = vrot.slane %v16249_v2, 2  ;;  %v16586_v60 = vsel %vm1235_vm6, %v2181_v4, %v2182_v50  ;;  %v13375_v21 = vld [vmem:[#allocation6 + $0x128] sm:$0xff]  }
 0x328   :  { %v2164_v48 = vmul.bf16 %v19911_v16, %v15996_v15  ;;  %2726 = vmatmul.mubr.bf16.gmra.mrb[56].mxu0 %v2040_v9  ;;  %v2208_v14 = vpack.c.bf16 %v16575_v52, %v16565_v33  ;;  %v16590_v15 = vsel %vm1235_vm6, %v2182_v50, %v2183_v5  ;;  %v2185_v63 = vrot.slane %v16260_v27, 2  ;;  %v13376_v9 = vld [vmem:[#allocation6 + $0x170] sm:$0xff]   ;;  %v19944_v33 = vld [vmem:[#allocation48_spill] sm:$0xff] }
 0x329   :  { %2733 = vmatprep.mubr.bf16.mxu0 %v2097_v39  ;;  %v19912_v36 = vpack.c.bf16 %v16260_v27, %v16249_v2  ;;  %v2209_v57 = vpack.c.bf16 %v16586_v60, %v16579_v51  ;;  %v16600_v29 = vsel %vm1235_vm6, %v2183_v5, %v2184_v58  ;;  %v2186_v40 = vrot.slane %v16309_v59, 2 }
 0x32a   :  { %v2187_v4 = vrot.slane %v16326_v12, 2  ;;  %12228 = vmatpush3.bf16.msra.mxu0 %v13373_v62  ;;  %v2210_v11 = vpack.c.bf16 %v16600_v29, %v16590_v15  ;;  %v2194_v2 = vsel %vm1235_vm6, %v2184_v58, %v2185_v63  ;;  %v2188_v27 = vrot.slane %v16306_v0, 2  ;;  %v13377_v15 = vld [vmem:[#allocation6 + $0x130] sm:$0xff]  }
 0x32b   :  { %2847 = vmatmul.mubr.bf16.gmra.mrb[68].mxu1 %v19912_v36  ;;  %12229 = vmatprep.subr.bf16.mxu0 %v13374_v20  ;;  %v2193_v19 = vsel %vm1235_vm6, %v2185_v63, %v2186_v40  ;;  %v2189_v50 = vrot.slane %v16318_v23, 2  ;;  %v19913_v51 = vrot.slane %v16151_v1, 2  ;;  %v19914_v58 = vpack.c.bf16 %v16378_v44, %v16361_v38  ;;  %v13379_v44 = vld [vmem:[#allocation6 + $0x138] sm:$0xff]  }
 0x32c   :  { %2854 = vmatprep.mubr.bf16.mxu1 %v2164_v48  ;;  %v2192_v39 = vsel %vm1235_vm6, %v2186_v40, %v2187_v4  ;;  %v2211_v62 = vpack.c.bf16 %v2193_v19, %v2194_v2  ;;  %v2191_v5 = vsel %vm1235_vm6, %v2187_v4, %v2188_v27  ;;  %v19915_v36 = vpack.c.bf16 %v16400_v22, %v16392_v42  ;;  %v13378_v40 = vld [vmem:[#allocation6 + $0x178] sm:$0xff]   ;;  %v19924_v2 = vld [vmem:[#allocation43_spill] sm:$0xff]  ;;  %v19939_v19 = vld [vmem:[#allocation44_spill] sm:$0xff] }
 0x32d   :  { %v2212_v16 = vpack.c.bf16 %v2191_v5, %v2192_v39  ;;  %v2190_v48 = vsel %vm1235_vm6, %v2188_v27, %v2189_v50  ;;  %v2205_v20 = vsel %vm1235_vm6, %v2189_v50, %v19913_v51  ;;  %v2041_v60 = vmul.bf16 %v19914_v58, %v15484_v55  ;;  %v19919_v42 = vld [vmem:[#allocation38_spill] sm:$0xff]  ;;  %v19940_v39 = vld [vmem:[#allocation60_spill] sm:$0xff]  ;;  %v19943_v5 = vld [vmem:[#allocation49_spill] sm:$0xff] }
 0x32e   :  { %12230 = vmatpush3.bf16.msra.mxu0 %v13375_v21  ;;  %v2213_v63 = vpack.c.bf16 %v2205_v20, %v2190_v48  ;;  %v2098_v29 = vmul.bf16 %v19915_v36, %v19854_v35  ;;  %v19916_v1 = vpack.c.bf16 %v16414_v18, %v16408_v61  ;;  %v19917_v38 = vpack.c.bf16 %v16326_v12, %v16309_v59  ;;  %v19920_v21 = vld [vmem:[#allocation35_spill] sm:$0xff]  ;;  %v19923_v12 = vld [vmem:[#allocation40_spill] sm:$0xff]  ;;  %v19926_v27 = vld [vmem:[#allocation50_spill] sm:$0xff] }
 0x32f   :  { %12231 = vmatprep.subr.bf16.mxu0 %v13376_v9  ;;  %v19918_v35 = vpack.c.bf16 %v16424_v26, %v16428_v37  ;;  %v19921_v61 = vpack.c.bf16 %v19919_v42, %v19920_v21  ;;  %v19922_v59 = vpack.c.bf16 %v16318_v23, %v16306_v0  ;;  %v2043_v18 = vmul.bf16 %v2035_v49, %v19923_v12  ;;  %v19925_v37 = vld [vmem:[#allocation45_spill] sm:$0xff]  ;;  %v19928_v49 = vld [vmem:[#allocation52_spill] sm:$0xff]  ;;  %v13380_v51 = vld [vmem:[#allocation8 + $0xc0] sm:$0xff]  }
 0x330   :  { %2734 = vmatmul.mubr.bf16.gmra.mrb[60].mxu0 %v2041_v60  ;;  %v2165_v4 = vmul.bf16 %v19916_v1, %v16027_v3  ;;  %v2100_v26 = vmul.bf16 %v2092_v10, %v19924_v2  ;;  %v19927_v0 = vpack.c.bf16 %v16501_v8, %v16508_v31  ;;  %v2045_v30 = vmul.bf16 %v19929_v53, %v19928_v49  ;;  %v19933_v10 = vld [vmem:[#allocation37_spill] sm:$0xff]  ;;  %v19935_v31 = vld [vmem:[#allocation39_spill] sm:$0xff]  ;;  %v13383_v58 = vld [vmem:[#allocation8 + $0x88] sm:$0xff]  }
 0x331   :  { %2741 = vmatprep.mubr.bf16.mxu0 %v2098_v29  ;;  %v2042_v22 = vmul.bf16 %v19918_v35, %v19858_v46  ;;  %v2099_v3 = vmul.bf16 %v19921_v61, %v19860_v28  ;;  %v2044_v28 = vmul.bf16 %v2036_v54, %v19925_v37  ;;  %v19932_v24 = vpack.c.bf16 %v16530_v25, %v16536_v45  ;;  %v19934_v54 = vld [vmem:[#allocation57_spill] sm:$0xff]  ;;  %v19938_v25 = vld [vmem:[#allocation59_spill] sm:$0xff]  ;;  %v13396_v35 = vld [vmem:[#allocation8 + $0xf8] sm:$0xff]  }
 0x332   :  { %12232 = vmatpush3.bf16.msra.mxu0 %v13377_v15  ;;  %v2101_v23 = vmul.bf16 %v19927_v0, %v19926_v27  ;;  %v2215_v8 = vmul.bf16 %v2207_v47, %v19934_v54  ;;  %v2216_v6 = vmul.bf16 %v2208_v14, %v19936_v13  ;;  %v19937_v9 = vld [vmem:[#allocation41_spill] sm:$0xff]  ;;  %v2217_v45 = vmul.bf16 %v2209_v57, %v19938_v25  ;;  %v19945_v14 = vld [vmem:[#allocation54_spill] sm:$0xff]  ;;  %v13381_v20 = vld [vmem:[#allocation8 + $0x80] sm:$0xff]  }
 0x333   :  { %2855 = vmatmul.mubr.bf16.gmra.mrb[72].mxu1 %v19917_v38  ;;  %12233 = vmatprep.subr.bf16.mxu0 %v13378_v40  ;;  %v2214_v17 = vmul.bf16 %v19932_v24, %v19931_v34  ;;  %v2218_v50 = vmul.bf16 %v2210_v11, %v19940_v39  ;;  %v2219_v47 = vmul.bf16 %v2211_v62, %v19942_v41  ;;  %v19946_v48 = vld [vmem:[#allocation33_spill] sm:$0xff]  ;;  %v13382_v11 = vld [vmem:[#allocation8 + $0xc8] sm:$0xff]   ;;  %v13386_v15 = vld [vmem:[#allocation8 + $0xd8] sm:$0xff]  }
 0x334   :  { %2862 = vmatprep.mubr.bf16.mxu1 %v2165_v4  ;;  %v2220_v52 = vmul.bf16 %v2212_v16, %v19944_v33  ;;  %v2221_v57 = vmul.bf16 %v2213_v63, %v19946_v48  ;;  %v13384_v60 = vld [vmem:[#allocation8 + $0xd0] sm:$0xff]   ;;  %v13387_v16 = vld [vmem:[#allocation8 + $0x98] sm:$0xff]   ;;  %v13388_v36 = vld [vmem:[#allocation8 + $0xe0] sm:$0xff]  }
 0x335   :  { %v13385_v62 = vld [vmem:[#allocation8 + $0x90] sm:$0xff]   ;;  %v13389_v29 = vld [vmem:[#allocation8 + $0xa0] sm:$0xff]   ;;  %v13390_v63 = vld [vmem:[#allocation8 + $0xe8] sm:$0xff]  }
 0x336   :  { %12234 = vmatpush3.bf16.msra.mxu0 %v13379_v44  ;;  %v13392_v40 = vld [vmem:[#allocation8 + $0x40] sm:$0xff]   ;;  %v13391_v4 = vld [vmem:[#allocation8 + $0xa8] sm:$0xff]   ;;  %v13394_v38 = vld [vmem:[#allocation8 + $0xf0] sm:$0xff]  }
 0x337   :  { %12347 = vmatprep.subr.bf16.mxu0 %v13380_v51  ;;  %v13393_v1 = vld [vmem:[#allocation8] sm:$0xff]   ;;  %12283 = vmatprep.subr.bf16.mxu1 %v13392_v40  ;;  %v13395_v44 = vld [vmem:[#allocation8 + $0xb0] sm:$0xff]   ;;  %v13399_v42 = vld [vmem:[#allocation8 + $0x8] sm:$0xff]  }
 0x338   :  { %2742 = vmatmul.mubr.bf16.gmra.mrb[64].mxu0 %v2042_v22  ;;  %12284 = vmatpush3.bf16.msra.mxu1 %v13393_v1  ;;  %v13398_v22 = vld [vmem:[#allocation8 + $0x48] sm:$0xff]   ;;  %v13397_v21 = vld [vmem:[#allocation8 + $0xb8] sm:$0xff]   ;;  %v13400_v61 = vld [vmem:[#allocation8 + $0x50] sm:$0xff]  }
 0x339   :  { %2749 = vmatprep.mubr.bf16.mxu0 %v2099_v3  ;;  %12285 = vmatprep.subr.bf16.mxu1 %v13398_v22  ;;  %v13401_v3 = vld [vmem:[#allocation8 + $0x10] sm:$0xff]   ;;  %v13404_v53 = vld [vmem:[#allocation8 + $0x60] sm:$0xff]  }
 0x33b   :  { %2863 = vmatmul.mubr.bf16.gmra.mrb[76].mxu1 %v19922_v59  ;;  %v13402_v59 = vld [vmem:[#allocation8 + $0x58] sm:$0xff]  }
 0x33c   :  { %12286 = vmatpush3.bf16.msra.mxu1 %v13399_v42 }
 0x33d   :  { %12287 = vmatprep.subr.bf16.mxu1 %v13400_v61 }
 0x340   :  { %2750 = vmatmul.mubr.bf16.gmra.mrb[68].mxu0 %v2043_v18  ;;  %12288 = vmatpush3.bf16.msra.mxu1 %v13401_v3  ;;  %v13403_v18 = vld [vmem:[#allocation8 + $0x18] sm:$0xff]  }
 0x341   :  { %2757 = vmatprep.mubr.bf16.mxu0 %v2100_v26  ;;  %12289 = vmatprep.subr.bf16.mxu1 %v13402_v59 }
 0x344   :  { %12290 = vmatpush3.bf16.msra.mxu1 %v13403_v18 }
 0x345   :  { %12291 = vmatprep.subr.bf16.mxu1 %v13404_v53 }
 0x348   :  { %2758 = vmatmul.mubr.bf16.gmra.mrb[72].mxu0 %v2044_v28 }
 0x349   :  { %2765 = vmatprep.mubr.bf16.mxu0 %v2101_v23 }
 0x350   :  { %2766 = vmatmul.mubr.bf16.gmra.mrb[76].mxu0 %v2045_v30  ;;  %v13405_v30 = vld [vmem:[#allocation8 + $0x20] sm:$0xff]  }
 0x351   :  { %2903 = vmatprep.mubr.bf16.mxu0 %v19930_v7  ;;  %12292 = vmatpush3.bf16.msra.mxu1 %v13405_v30 }
 0x358   :  { %2904 = vmatmul.mubr.bf16.vlgmr.msra.gmra.mrb[80].mxu0 %v2214_v17 }
 0x359   :  { %2911 = vmatprep.mubr.bf16.mxu0 %v19933_v10  ;;  %12348 = vmatpush3.bf16.msra.mxu0 %v13381_v20 }
 0x35a   :  { %12349 = vmatprep.subr.bf16.mxu0 %v13382_v11 }
 0x35d   :  { %12350 = vmatpush3.bf16.msra.mxu0 %v13383_v58 }
 0x35e   :  { %12351 = vmatprep.subr.bf16.mxu0 %v13384_v60  ;;  %v13408_v60 = vld [vmem:[#allocation8 + $0x70] sm:$0xff]  }
 0x360   :  { %2912 = vmatmul.mubr.bf16.gmra.mrb[84].mxu0 %v2215_v8 }
 0x361   :  { %2919 = vmatprep.mubr.bf16.mxu0 %v19935_v31  ;;  %12352 = vmatpush3.bf16.msra.mxu0 %v13385_v62  ;;  %v13409_v62 = vld [vmem:[#allocation8 + $0x30] sm:$0xff]  }
 0x362   :  { %12353 = vmatprep.subr.bf16.mxu0 %v13386_v15  ;;  %v13410_v15 = vld [vmem:[#allocation8 + $0x78] sm:$0xff]  }
 0x365   :  { %12354 = vmatpush3.bf16.msra.mxu0 %v13387_v16 }
 0x366   :  { %12355 = vmatprep.subr.bf16.mxu0 %v13388_v36 }
 0x368   :  { %2920 = vmatmul.mubr.bf16.gmra.mrb[88].mxu0 %v2216_v6  ;;  %v13406_v6 = vld [vmem:[#allocation8 + $0x68] sm:$0xff]  }
 0x369   :  { %2927 = vmatprep.mubr.bf16.mxu0 %v19937_v9  ;;  %12356 = vmatpush3.bf16.msra.mxu0 %v13389_v29  ;;  %v13407_v9 = vld [vmem:[#allocation8 + $0x28] sm:$0xff]  }
 0x36a   :  { %12357 = vmatprep.subr.bf16.mxu0 %v13390_v63  ;;  %12293 = vmatprep.subr.bf16.mxu1 %v13406_v6 }
 0x36b   :  { %12294 = vmatpush3.bf16.msra.mxu1 %v13407_v9 }
 0x36c   :  { %12295 = vmatprep.subr.bf16.mxu1 %v13408_v60 }
 0x36d   :  { %12358 = vmatpush3.bf16.msra.mxu0 %v13391_v4 }
 0x36e   :  { %12359 = vmatprep.subr.bf16.mxu0 %v13394_v38  ;;  %v13411_v38 = vld [vmem:[#allocation8 + $0x38] sm:$0xff]  }
 0x36f   :  { %12296 = vmatpush3.bf16.msra.mxu1 %v13409_v62 }
 0x370   :  { %2928 = vmatmul.mubr.bf16.gmra.mrb[92].mxu0 %v2217_v45  ;;  %12297 = vmatprep.subr.bf16.mxu1 %v13410_v15 }
 0x371   :  { %2935 = vmatprep.mubr.bf16.mxu0 %v19939_v19  ;;  %12360 = vmatpush3.bf16.msra.mxu0 %v13395_v44 }
 0x372   :  { %12361 = vmatprep.subr.bf16.mxu0 %v13396_v35 }
 0x373   :  { %12298 = vmatpush3.bf16.msra.mxu1 %v13411_v38 }
 0x375   :  { %12362 = vmatpush3.bf16.msra.mxu0 %v13397_v21 }
 0x378   :  { %2936 = vmatmul.mubr.bf16.gmra.mrb[96].mxu0 %v2218_v50 }
 0x379   :  { %2943 = vmatprep.mubr.bf16.mxu0 %v19941_v32 }
 0x380   :  { %2944 = vmatmul.mubr.bf16.gmra.mrb[100].mxu0 %v2219_v47 }
 0x381   :  { %2951 = vmatprep.mubr.bf16.mxu0 %v19943_v5 }
 0x388   :  { %2952 = vmatmul.mubr.bf16.gmra.mrb[104].mxu0 %v2220_v52 }
 0x389   :  { %2959 = vmatprep.mubr.bf16.mxu0 %v19945_v14  ;;  %v16696_v14 = vld [vmem:[%s19947_s10] ss:$0 sm:$0xff] }
 0x390   :  { %2960 = vmatmul.mubr.bf16.gmra.mrb[108].mxu0 %v2221_v57 }
 0x3d3   :  { %v12171_v2 = vpop.f32.mrb[48].mxu1 }
 0x3d4   :  { %v12172_v26 = vpop.f32.mrb[49].mxu1 }
 0x3d5   :  { %v12173_v28 = vadd.f32 %v12172_v26, %v12171_v2  ;;  %v12174_v27 = vpop.f32.mrb[50].mxu1 }
 0x3d6   :  { %v12175_v0 = vpop.f32.mrb[51].mxu1 }
 0x3d7   :  { %v12176_v23 = vadd.f32 %v12175_v0, %v12174_v27  ;;  %v16706_v0 = vld [vmem:[#allocation8 + $0x100] sm:$0xff]  }
 0x3d8   :  { %12668 = vmatprep.subr.bf16.mxu1 %v16706_v0 }
 0x3dc   :  { %v12177_v7 = vpop.f32.mrb[52].mxu1 }
 0x3dd   :  { %v12178_v24 = vpop.f32.mrb[53].mxu1 }
 0x3de   :  { %v12179_v17 = vadd.f32 %v12178_v24, %v12177_v7  ;;  %v12180_v10 = vpop.f32.mrb[54].mxu1 }
 0x3df   :  { %v12181_v8 = vpop.f32.mrb[55].mxu1 }
 0x3e0   :  { %v12182_v31 = vadd.f32 %v12181_v8, %v12180_v10 }
 0x3e4   :  { %v12183_v45 = vpop.f32.mrb[56].mxu1 }
 0x3e5   :  { %v12184_v19 = vpop.f32.mrb[57].mxu1 }
 0x3e6   :  { %v12185_v50 = vadd.f32 %v12184_v19, %v12183_v45  ;;  %v12186_v32 = vpop.f32.mrb[58].mxu1 }
 0x3e7   :  { %v12187_v47 = vpop.f32.mrb[59].mxu1 }
 0x3e8   :  { %v12188_v5 = vadd.f32 %v12187_v47, %v12186_v32 }
 0x3eb   :  { %v12107_v52 = vpop.f32.mrb[48].mxu0 }
 0x3ec   :  { %v12108_v57 = vpop.f32.mrb[49].mxu0  ;;  %v12189_v51 = vpop.f32.mrb[60].mxu1 }
 0x3ed   :  { %v12109_v20 = vadd.f32 %v12108_v57, %v12107_v52  ;;  %v12110_v11 = vpop.f32.mrb[50].mxu0  ;;  %v12190_v58 = vpop.f32.mrb[61].mxu1 }
 0x3ee   :  { %v16698_v16 = vadd.f32 %v12190_v58, %v12189_v51  ;;  %v12111_v36 = vpop.f32.mrb[51].mxu0  ;;  %v12192_v29 = vpop.f32.mrb[62].mxu1 }
 0x3ef   :  { %v2712_v63 = vadd.f32 %v12109_v20, %v16696_v14  ;;  %v12112_v40 = vadd.f32 %v12111_v36, %v12110_v11  ;;  %v12193_v1 = vpop.f32.mrb[63].mxu1 }
 0x3f0   :  { %v12194_v4 = vadd.f32 %v12193_v1, %v12192_v29 }
 0x3f1   :  { %v2715_v44 = vadd.f32 %v12112_v40, %v16696_v14  ;;  %v16702_v35 = vadd.f32 %v12173_v28, %v2712_v63 }
 0x3f3   :  { %v12113_v22 = vpop.f32.mrb[52].mxu0  ;;  %v16704_v42 = vadd.f32 %v12176_v23, %v2715_v44 }
 0x3f4   :  { %v12114_v21 = vpop.f32.mrb[53].mxu0 }
 0x3f5   :  { %v12195_v61 = vpop.f32.mrb[64].mxu1  ;;  %v12115_v3 = vadd.f32 %v12114_v21, %v12113_v22  ;;  %v12116_v59 = vpop.f32.mrb[54].mxu0 }
 0x3f6   :  { %v12196_v18 = vpop.f32.mrb[65].mxu1  ;;  %v12117_v26 = vpop.f32.mrb[55].mxu0 }
 0x3f7   :  { %v12197_v2 = vadd.f32 %v12196_v18, %v12195_v61  ;;  %v12198_v27 = vpop.f32.mrb[66].mxu1  ;;  %v2720_v53 = vadd.f32 %v12115_v3, %v16696_v14  ;;  %v12118_v30 = vadd.f32 %v12117_v26, %v12116_v59 }
 0x3f8   :  { %v12199_v28 = vpop.f32.mrb[67].mxu1 }
 0x3f9   :  { %v12200_v7 = vadd.f32 %v12199_v28, %v12198_v27  ;;  %v2723_v23 = vadd.f32 %v12118_v30, %v16696_v14  ;;  %v16711_v24 = vadd.f32 %v12179_v17, %v2720_v53 }
 0x3fb   :  { %v12119_v10 = vpop.f32.mrb[56].mxu0  ;;  %v16713_v8 = vadd.f32 %v12182_v31, %v2723_v23 }
 0x3fc   :  { %v12120_v6 = vpop.f32.mrb[57].mxu0 }
 0x3fd   :  { %v12121_v45 = vadd.f32 %v12120_v6, %v12119_v10  ;;  %v12122_v19 = vpop.f32.mrb[58].mxu0 }
 0x3fe   :  { %v12201_v9 = vpop.f32.mrb[68].mxu1  ;;  %v12123_v52 = vpop.f32.mrb[59].mxu0 }
 0x3ff   :  { %v12202_v32 = vpop.f32.mrb[69].mxu1  ;;  %v2728_v51 = vadd.f32 %v12121_v45, %v16696_v14  ;;  %v12124_v20 = vadd.f32 %v12123_v52, %v12122_v19 }
 0x400   :  { %v12203_v47 = vadd.f32 %v12202_v32, %v12201_v9  ;;  %v12204_v57 = vpop.f32.mrb[70].mxu1 }
 0x401   :  { %v12205_v11 = vpop.f32.mrb[71].mxu1  ;;  %v2731_v60 = vadd.f32 %v12124_v20, %v16696_v14  ;;  %v16717_v17 = vadd.f32 %v12185_v50, %v2728_v51 }
 0x402   :  { %v12206_v58 = vadd.f32 %v12205_v11, %v12204_v57 }
 0x403   :  { %v12125_v62 = vpop.f32.mrb[60].mxu0  ;;  %v16719_v31 = vadd.f32 %v12188_v5, %v2731_v60 }
 0x404   :  { %v12126_v15 = vpop.f32.mrb[61].mxu0 }
 0x405   :  { %v12127_v29 = vadd.f32 %v12126_v15, %v12125_v62  ;;  %v12128_v63 = vpop.f32.mrb[62].mxu0 }
 0x406   :  { %v12207_v36 = vpop.f32.mrb[72].mxu1  ;;  %v12129_v38 = vpop.f32.mrb[63].mxu0 }
 0x407   :  { %v12208_v40 = vpop.f32.mrb[73].mxu1  ;;  %v2736_v22 = vadd.f32 %v12127_v29, %v16696_v14  ;;  %v12130_v21 = vadd.f32 %v12129_v38, %v12128_v63 }
 0x408   :  { %v12209_v1 = vadd.f32 %v12208_v40, %v12207_v36  ;;  %v12210_v44 = vpop.f32.mrb[74].mxu1 }
 0x409   :  { %v12211_v61 = vpop.f32.mrb[75].mxu1  ;;  %v2739_v59 = vadd.f32 %v12130_v21, %v16696_v14  ;;  %v16724_v50 = vadd.f32 %v16698_v16, %v2736_v22 }
 0x40a   :  { %v12212_v3 = vadd.f32 %v12211_v61, %v12210_v44 }
 0x40b   :  { %v12131_v5 = vpop.f32.mrb[64].mxu0  ;;  %v16726_v18 = vadd.f32 %v12194_v4, %v2739_v59 }
 0x40c   :  { %v12132_v26 = vpop.f32.mrb[65].mxu0 }
 0x40d   :  { %v12133_v53 = vadd.f32 %v12132_v26, %v12131_v5  ;;  %v12134_v30 = vpop.f32.mrb[66].mxu0 }
 0x40e   :  { %v12213_v27 = vpop.f32.mrb[76].mxu1  ;;  %v12135_v10 = vpop.f32.mrb[67].mxu0 }
 0x40f   :  { %v12214_v28 = vpop.f32.mrb[77].mxu1  ;;  %v2744_v9 = vadd.f32 %v12133_v53, %v16696_v14  ;;  %v12136_v45 = vadd.f32 %v12135_v10, %v12134_v30 }
 0x410   :  { %v12215_v23 = vadd.f32 %v12214_v28, %v12213_v27  ;;  %v12216_v6 = vpop.f32.mrb[78].mxu1 }
 0x411   :  { %v12217_v19 = vpop.f32.mrb[79].mxu1  ;;  %v2747_v52 = vadd.f32 %v12136_v45, %v16696_v14  ;;  %v16730_v16 = vadd.f32 %v12197_v2, %v2744_v9 }
 0x412   :  { %v12218_v32 = vadd.f32 %v12217_v19, %v12216_v6 }
 0x413   :  { %v12137_v57 = vpop.f32.mrb[68].mxu0  ;;  %v16732_v4 = vadd.f32 %v12200_v7, %v2747_v52 }
 0x414   :  { %v12138_v51 = vpop.f32.mrb[69].mxu0 }
 0x415   :  { %v12139_v20 = vadd.f32 %v12138_v51, %v12137_v57  ;;  %v12140_v11 = vpop.f32.mrb[70].mxu0 }
 0x416   :  { %v12141_v60 = vpop.f32.mrb[71].mxu0 }
 0x417   :  { %v2752_v62 = vadd.f32 %v12139_v20, %v16696_v14  ;;  %v12142_v15 = vadd.f32 %v12141_v60, %v12140_v11 }
 0x419   :  { %v2755_v36 = vadd.f32 %v12142_v15, %v16696_v14  ;;  %v16736_v29 = vadd.f32 %v12203_v47, %v2752_v62 }
 0x41b   :  { %v12143_v63 = vpop.f32.mrb[72].mxu0  ;;  %v16738_v40 = vadd.f32 %v12206_v58, %v2755_v36 }
 0x41c   :  { %v12144_v38 = vpop.f32.mrb[73].mxu0 }
 0x41d   :  { %v12145_v2 = vadd.f32 %v12144_v38, %v12143_v63  ;;  %v12146_v44 = vpop.f32.mrb[74].mxu0 }
 0x41e   :  { %v12147_v22 = vpop.f32.mrb[75].mxu0 }
 0x41f   :  { %v2760_v7 = vadd.f32 %v12145_v2, %v16696_v14  ;;  %v12148_v21 = vadd.f32 %v12147_v22, %v12146_v44 }
 0x421   :  { %v2763_v61 = vadd.f32 %v12148_v21, %v16696_v14  ;;  %v16742_v59 = vadd.f32 %v12209_v1, %v2760_v7 }
 0x423   :  { %v12149_v5 = vpop.f32.mrb[76].mxu0  ;;  %v16744_v26 = vadd.f32 %v12212_v3, %v2763_v61 }
 0x424   :  { %v12150_v27 = vpop.f32.mrb[77].mxu0 }
 0x425   :  { %v12151_v47 = vadd.f32 %v12150_v27, %v12149_v5  ;;  %v12152_v53 = vpop.f32.mrb[78].mxu0 }
 0x426   :  { %v12153_v30 = vpop.f32.mrb[79].mxu0 }
 0x427   :  { %v2768_v58 = vadd.f32 %v12151_v47, %v16696_v14  ;;  %v12154_v28 = vadd.f32 %v12153_v30, %v12152_v53 }
 0x429   :  { %v2771_v10 = vadd.f32 %v12154_v28, %v16696_v14  ;;  %v16748_v6 = vadd.f32 %v12215_v23, %v2768_v58 }
 0x42b   :  { %v12235_v9 = vpop.f32.mrb[80].mxu0  ;;  %v16750_v45 = vadd.f32 %v12218_v32, %v2771_v10 }
 0x42c   :  { %v12236_v19 = vpop.f32.mrb[81].mxu0 }
 0x42d   :  { %v12237_v1 = vadd.f32 %v12236_v19, %v12235_v9  ;;  %v12238_v52 = vpop.f32.mrb[82].mxu0 }
 0x42e   :  { %v12239_v57 = vpop.f32.mrb[83].mxu0 }
 0x42f   :  { %v2906_v3 = vadd.f32 %v12237_v1, %v16702_v35  ;;  %v12240_v51 = vadd.f32 %v12239_v57, %v12238_v52 }
 0x431   :  { %v2909_v20 = vadd.f32 %v12240_v51, %v16704_v42  ;;  %v16756_v36 = vmax.f32 %v2906_v3, 0.0 }
 0x433   :  { %v12241_v11 = vpop.f32.mrb[84].mxu0  ;;  %v16754_v62 = vmax.f32 %v2909_v20, 0.0  ;;  %19949 = vst [vmem:[#allocation32_spill] sm:$0xff] %v16756_v36  ;;  %v3153_v42 = vrot.slane %v16756_v36, 2 }
 0x434   :  { %v12242_v60 = vpop.f32.mrb[85].mxu0 }
 0x435   :  { %19948 = vst [vmem:[#allocation56_spill] sm:$0xff] %v16754_v62  ;;  %v12243_v15 = vadd.f32 %v12242_v60, %v12241_v11  ;;  %v12244_v14 = vpop.f32.mrb[86].mxu0  ;;  %v3154_v35 = vrot.slane %v16754_v62, 2  ;;  %v2984_v9 = vpack.c.bf16 %v16754_v62, %v16756_v36 }
 0x436   :  { %v12245_v23 = vpop.f32.mrb[87].mxu0 }
 0x437   :  { %v2914_v32 = vadd.f32 %v12243_v15, %v16711_v24  ;;  %v12246_v63 = vadd.f32 %v12245_v23, %v12244_v14 }
 0x439   :  { %v16759_v38 = vmax.f32 %v2914_v32, 0.0  ;;  %v2917_v2 = vadd.f32 %v12246_v63, %v16713_v8  ;;  %v3183_v8 = vsel %vm1235_vm6, %v3153_v42, %v3154_v35 }
 0x43b   :  { %19950 = vst [vmem:[#allocation36_spill] sm:$0xff] %v16759_v38  ;;  %v12247_v44 = vpop.f32.mrb[88].mxu0  ;;  %v3155_v22 = vrot.slane %v16759_v38, 2  ;;  %v16765_v21 = vmax.f32 %v2917_v2, 0.0 }
 0x43c   :  { %v12248_v7 = vpop.f32.mrb[89].mxu0 }
 0x43d   :  { %19951 = vst [vmem:[#allocation42_spill] sm:$0xff] %v16765_v21  ;;  %v12249_v61 = vadd.f32 %v12248_v7, %v12247_v44  ;;  %v12250_v5 = vpop.f32.mrb[90].mxu0  ;;  %v3182_v24 = vsel %vm1235_vm6, %v3154_v35, %v3155_v22  ;;  %v3156_v19 = vrot.slane %v16765_v21, 2  ;;  %v2985_v2 = vpack.c.bf16 %v16765_v21, %v16759_v38 }
 0x43e   :  { %v12251_v27 = vpop.f32.mrb[91].mxu0  ;;  %v3185_v47 = vpack.c.bf16 %v3182_v24, %v3183_v8 }
 0x43f   :  { %v2922_v53 = vadd.f32 %v12249_v61, %v16717_v17  ;;  %v12252_v30 = vadd.f32 %v12251_v27, %v12250_v5 }
 0x440   :  { %v3193_v58 = vmul.bf16 %v3185_v47, %v19931_v34 }
 0x441   :  { %v16775_v28 = vmax.f32 %v2922_v53, 0.0  ;;  %v2925_v10 = vadd.f32 %v12252_v30, %v16719_v31  ;;  %v3181_v31 = vsel %vm1235_vm6, %v3155_v22, %v3156_v19 }
 0x442   :  { %3769 = vmatprep.mubr.bf16.mxu0 %v3193_v58 }
 0x443   :  { %19952 = vst [vmem:[#allocation47_spill] sm:$0xff] %v16775_v28  ;;  %v12253_v1 = vpop.f32.mrb[92].mxu0  ;;  %3770 = vmatmul.mubr.bf16.vlgmr.msra.gmra.mrb[112].mxu0 %v2984_v9  ;;  %v3157_v52 = vrot.slane %v16775_v28, 2  ;;  %v16782_v3 = vmax.f32 %v2925_v10, 0.0 }
 0x444   :  { %v12254_v57 = vpop.f32.mrb[93].mxu0 }
 0x445   :  { %19953 = vst [vmem:[#allocation28_spill] sm:$0xff] %v16782_v3  ;;  %v12255_v17 = vadd.f32 %v12254_v57, %v12253_v1  ;;  %v12256_v51 = vpop.f32.mrb[94].mxu0  ;;  %v3180_v20 = vsel %vm1235_vm6, %v3156_v19, %v3157_v52  ;;  %v3158_v35 = vrot.slane %v16782_v3, 2  ;;  %v2986_v9 = vpack.c.bf16 %v16782_v3, %v16775_v28 }
 0x446   :  { %v12257_v11 = vpop.f32.mrb[95].mxu0  ;;  %v3186_v60 = vpack.c.bf16 %v3180_v20, %v3181_v31 }
 0x447   :  { %v2930_v15 = vadd.f32 %v12255_v17, %v16724_v50  ;;  %v12258_v14 = vadd.f32 %v12257_v11, %v12256_v51 }
 0x448   :  { %v3194_v23 = vmul.bf16 %v3186_v60, %v19934_v54 }
 0x449   :  { %v16790_v32 = vmax.f32 %v2930_v15, 0.0  ;;  %v2933_v63 = vadd.f32 %v12258_v14, %v16726_v18  ;;  %v3179_v18 = vsel %vm1235_vm6, %v3157_v52, %v3158_v35 }
 0x44a   :  { %3777 = vmatprep.mubr.bf16.mxu0 %v3194_v23 }
 0x44b   :  { %19954 = vst [vmem:[#allocation29_spill] sm:$0xff] %v16790_v32  ;;  %v12259_v44 = vpop.f32.mrb[96].mxu0  ;;  %3778 = vmatmul.mubr.bf16.gmra.mrb[116].mxu0 %v2985_v2  ;;  %v3159_v22 = vrot.slane %v16790_v32, 2  ;;  %v16797_v61 = vmax.f32 %v2933_v63, 0.0 }
 0x44c   :  { %v12260_v7 = vpop.f32.mrb[97].mxu0 }
 0x44d   :  { %19955 = vst [vmem:[#allocation53_spill] sm:$0xff] %v16797_v61  ;;  %v12261_v50 = vadd.f32 %v12260_v7, %v12259_v44  ;;  %v12262_v5 = vpop.f32.mrb[98].mxu0  ;;  %v3178_v24 = vsel %vm1235_vm6, %v3158_v35, %v3159_v22  ;;  %v3160_v19 = vrot.slane %v16797_v61, 2  ;;  %v2987_v2 = vpack.c.bf16 %v16797_v61, %v16790_v32 }
 0x44e   :  { %v12263_v8 = vpop.f32.mrb[99].mxu0  ;;  %v3187_v27 = vpack.c.bf16 %v3178_v24, %v3179_v18 }
 0x44f   :  { %v2938_v47 = vadd.f32 %v12261_v50, %v16730_v16  ;;  %v12264_v53 = vadd.f32 %v12263_v8, %v12262_v5 }
 0x450   :  { %v3195_v30 = vmul.bf16 %v3187_v27, %v19936_v13 }
 0x451   :  { %v16805_v58 = vmax.f32 %v2938_v47, 0.0  ;;  %v2941_v10 = vadd.f32 %v12264_v53, %v16732_v4  ;;  %v3177_v4 = vsel %vm1235_vm6, %v3159_v22, %v3160_v19 }
 0x452   :  { %3785 = vmatprep.mubr.bf16.mxu0 %v3195_v30 }
 0x453   :  { %19956 = vst [vmem:[#allocation38_spill] sm:$0xff] %v16805_v58  ;;  %v12265_v1 = vpop.f32.mrb[100].mxu0  ;;  %3786 = vmatmul.mubr.bf16.gmra.mrb[120].mxu0 %v2986_v9  ;;  %v3161_v52 = vrot.slane %v16805_v58, 2  ;;  %v16812_v17 = vmax.f32 %v2941_v10, 0.0 }
 0x454   :  { %v12266_v57 = vpop.f32.mrb[101].mxu0 }
 0x455   :  { %19957 = vst [vmem:[#allocation35_spill] sm:$0xff] %v16812_v17  ;;  %v12267_v16 = vadd.f32 %v12266_v57, %v12265_v1  ;;  %v12268_v51 = vpop.f32.mrb[102].mxu0  ;;  %v3176_v20 = vsel %vm1235_vm6, %v3160_v19, %v3161_v52  ;;  %v3162_v35 = vrot.slane %v16812_v17, 2  ;;  %v2988_v9 = vpack.c.bf16 %v16812_v17, %v16805_v58 }
 0x456   :  { %v12269_v31 = vpop.f32.mrb[103].mxu0  ;;  %v3188_v11 = vpack.c.bf16 %v3176_v20, %v3177_v4 }
 0x457   :  { %v2946_v60 = vadd.f32 %v12267_v16, %v16736_v29  ;;  %v12270_v15 = vadd.f32 %v12269_v31, %v12268_v51 }
 0x458   :  { %v3196_v14 = vmul.bf16 %v3188_v11, %v19938_v25 }
 0x459   :  { %v16820_v23 = vmax.f32 %v2946_v60, 0.0  ;;  %v2949_v63 = vadd.f32 %v12270_v15, %v16738_v40  ;;  %v3175_v40 = vsel %vm1235_vm6, %v3161_v52, %v3162_v35  ;;  %v3092_v15 = vrot.slane %v16765_v21, 6 }
 0x45a   :  { %3793 = vmatprep.mubr.bf16.mxu0 %v3196_v14  ;;  %v2993_v14 = vrot.slane %v16754_v62, 4 }
 0x45b   :  { %19958 = vst [vmem:[#allocation40_spill] sm:$0xff] %v16820_v23  ;;  %v12271_v44 = vpop.f32.mrb[104].mxu0  ;;  %3794 = vmatmul.mubr.bf16.gmra.mrb[124].mxu0 %v2987_v2  ;;  %v3163_v22 = vrot.slane %v16820_v23, 2  ;;  %v16827_v50 = vmax.f32 %v2949_v63, 0.0 }
 0x45c   :  { %v12272_v7 = vpop.f32.mrb[105].mxu0 }
 0x45d   :  { %19959 = vst [vmem:[#allocation43_spill] sm:$0xff] %v16827_v50  ;;  %v12273_v29 = vadd.f32 %v12272_v7, %v12271_v44  ;;  %v12274_v5 = vpop.f32.mrb[106].mxu0  ;;  %v3174_v24 = vsel %vm1235_vm6, %v3162_v35, %v3163_v22  ;;  %v3164_v19 = vrot.slane %v16827_v50, 2  ;;  %v3091_v35 = vrot.slane %v16759_v38, 6 }
 0x45e   :  { %v12275_v18 = vpop.f32.mrb[107].mxu0  ;;  %v3189_v8 = vpack.c.bf16 %v3174_v24, %v3175_v40  ;;  %v2992_v7 = vrot.slane %v16756_v36, 4 }
 0x45f   :  { %v2954_v27 = vadd.f32 %v12273_v29, %v16742_v59  ;;  %v12276_v47 = vadd.f32 %v12275_v18, %v12274_v5  ;;  %v3090_v29 = vrot.slane %v16754_v62, 6  ;;  %v3117_v40 = vsel %vm936_vm4, %v3091_v35, %v3092_v15 }
 0x460   :  { %v3197_v53 = vmul.bf16 %v3189_v8, %v19940_v39  ;;  %v16872_v8 = vsel %vm3008_vm8, %v2992_v7, %v2993_v14 }
 0x461   :  { %v16835_v30 = vmax.f32 %v2954_v27, 0.0  ;;  %v2957_v10 = vadd.f32 %v12276_v47, %v16744_v26  ;;  %v3173_v26 = vsel %vm1235_vm6, %v3163_v22, %v3164_v19  ;;  %v3118_v27 = vsel %vm936_vm4, %v3090_v29, %v3091_v35  ;;  %v19965_v35 = vld [vmem:[#allocation30_spill] sm:$0xff] }
 0x462   :  { %3801 = vmatprep.mubr.bf16.mxu0 %v3197_v53 }
 0x463   :  { %19960 = vst [vmem:[#allocation50_spill] sm:$0xff] %v16835_v30  ;;  %v12277_v1 = vpop.f32.mrb[108].mxu0  ;;  %3802 = vmatmul.mubr.bf16.gmra.mrb[128].mxu0 %v2988_v9  ;;  %v3165_v52 = vrot.slane %v16835_v30, 2  ;;  %v16842_v57 = vmax.f32 %v2957_v10, 0.0 }
 0x464   :  { %v12278_v59 = vpop.f32.mrb[109].mxu0 }
 0x465   :  { %19961 = vst [vmem:[#allocation34_spill] sm:$0xff] %v16842_v57  ;;  %v12279_v16 = vadd.f32 %v12278_v59, %v12277_v1  ;;  %v12280_v51 = vpop.f32.mrb[110].mxu0  ;;  %v3172_v20 = vsel %vm1235_vm6, %v3164_v19, %v3165_v52  ;;  %v3166_v2 = vrot.slane %v16842_v57, 2  ;;  %v2995_v59 = vrot.slane %v16765_v21, 4 }
 0x466   :  { %v12281_v4 = vpop.f32.mrb[111].mxu0  ;;  %v3190_v31 = vpack.c.bf16 %v3172_v20, %v3173_v26 }
 0x467   :  { %v2962_v11 = vadd.f32 %v12279_v16, %v16748_v6  ;;  %v12282_v60 = vadd.f32 %v12281_v4, %v12280_v51  ;;  %v2989_v6 = vpack.c.bf16 %v16827_v50, %v16820_v23  ;;  %v3171_v18 = vsel %vm1235_vm6, %v3165_v52, %v3166_v2 }
 0x468   :  { %v3198_v63 = vmul.bf16 %v3190_v31, %v19942_v41  ;;  %v3122_v52 = vpack.c.bf16 %v3117_v40, %v3118_v27  ;;  %v13413_v40 = vld [vmem:[#allocation8 + $0x108] sm:$0xff]  }
 0x469   :  { %v16855_v44 = vmax.f32 %v2962_v11, 0.0  ;;  %v2965_v22 = vadd.f32 %v12282_v60, %v16750_v45  ;;  %v3089_v45 = vrot.slane %v16756_v36, 6 }
 0x46a   :  { %3809 = vmatprep.mubr.bf16.mxu0 %v3198_v63  ;;  %v16903_v63 = vpop.permute.xlu0 %3035 }
 0x46b   :  { %19962 = vst [vmem:[#allocation55_spill] sm:$0xff] %v16855_v44  ;;  %v16862_v5 = vmax.f32 %v2965_v22, 0.0  ;;  %3810 = vmatmul.mubr.bf16.gmra.mrb[132].mxu0 %v2989_v6  ;;  %v3167_v24 = vrot.slane %v16855_v44, 2  ;;  %v3119_v1 = vsel %vm936_vm4, %v3089_v45, %v3090_v29  ;;  %19964 = vst [vmem:[#allocation57_spill] sm:$0xff] %v16903_v63  ;;  %v2994_v29 = vrot.slane %v16759_v38, 4 }
 0x46d   :  { %19963 = vst [vmem:[#allocation37_spill] sm:$0xff] %v16862_v5  ;;  %v19573_v47 = vrot.slane %v16862_v5, 4  ;;  %v3170_v53 = vsel %vm1235_vm6, %v3166_v2, %v3167_v24  ;;  %v19574_v10 = vrot.slane %v16862_v5, 6  ;;  %v3168_v9 = vrot.slane %v16862_v5, 2 }
 0x46e   :  { %v3191_v19 = vpack.c.bf16 %v3170_v53, %v3171_v18  ;;  %v2990_v2 = vpack.c.bf16 %v16842_v57, %v16835_v30  ;;  %v19966_v18 = vld [vmem:[#allocation31_spill] sm:$0xff]  ;;  %v16916_v27 = vsel %vm3008_vm8, %v2994_v29, %v2995_v59 }
 0x46f   :  { %v3120_v16 = vsel %vm936_vm4, %v19574_v10, %v3089_v45  ;;  %v3169_v51 = vsel %vm1235_vm6, %v3167_v24, %v3168_v9  ;;  %v3184_v20 = vsel %vm1235_vm6, %v3168_v9, %v3153_v42  ;;  %v16898_v26 = vsel %vm3008_vm8, %v19573_v47, %v2992_v7 }
 0x470   :  { %v3199_v4 = vmul.bf16 %v3191_v19, %v19944_v33  ;;  %v3121_v31 = vpack.c.bf16 %v3119_v1, %v3120_v16  ;;  %v3192_v11 = vpack.c.bf16 %v3184_v20, %v3169_v51  ;;  %v3025_v60 = vpack.c.bf16 %v16872_v8, %v16898_v26 }
 0x471   :  { %v3094_v42 = vrot.slane %v16782_v3, 6  ;;  %v3093_v24 = vrot.slane %v16775_v28, 6  ;;  %v3130_v45 = vmul.bf16 %v3122_v52, %v19966_v18  ;;  %v16923_v9 = vsel %vm3008_vm8, %v2993_v14, %v2994_v29  ;;  %v13414_v52 = vld [vmem:[#allocation8 + $0x110] sm:$0xff]  }
 0x472   :  { %3817 = vmatprep.mubr.bf16.mxu0 %v3199_v4  ;;  %v3129_v22 = vmul.bf16 %v3121_v31, %v19965_v35  ;;  %v3200_v6 = vmul.bf16 %v3192_v11, %v19946_v48  ;;  %v3073_v7 = vmul.bf16 %v16903_v63, %v3025_v60  ;;  %v3026_v19 = vpack.c.bf16 %v16916_v27, %v16923_v9  ;;  %v16933_v4 = vpop.permute.xlu1 %3040  ;;  %v13415_v11 = vld [vmem:[#allocation8 + $0x118] sm:$0xff]  }
 0x473   :  { %3818 = vmatmul.mubr.bf16.gmra.mrb[136].mxu0 %v2990_v2  ;;  %v3115_v53 = vsel %vm936_vm4, %v3093_v24, %v3094_v42  ;;  %v3116_v1 = vsel %vm936_vm4, %v3092_v15, %v3093_v24  ;;  %v2997_v51 = vrot.slane %v16782_v3, 4  ;;  %v2991_v20 = vpack.c.bf16 %v16862_v5, %v16855_v44  ;;  %19967 = vst [vmem:[#allocation39_spill] sm:$0xff] %v16933_v4  ;;  %v13416_v24 = vld [vmem:[#allocation8 + $0x120] sm:$0xff]  }
 0x474   :  { %3672 = vmatprep.mubr.bf16.mxu1 %v3129_v22  ;;  %3825 = vmatprep.mubr.bf16.mxu0 %v3200_v6  ;;  %v3123_v16 = vpack.c.bf16 %v3115_v53, %v3116_v1  ;;  %v2996_v14 = vrot.slane %v16775_v28, 4  ;;  %v3074_v31 = vmul.bf16 %v16933_v4, %v3026_v19  ;;  %v3095_v15 = vrot.slane %v16790_v32, 6  ;;  %v16955_v19 = vpop.permute.xlu0 %3045 }
 0x475   :  { %3673 = vmatmul.mubr.bf16.vlgmr.msra.gmra.mrb[80].mxu1 %v3073_v7  ;;  %v3098_v53 = vrot.slane %v16812_v17, 6  ;;  %v2998_v1 = vrot.slane %v16790_v32, 4  ;;  %v3005_v10 = vrot.slane %v16842_v57, 4 }
 0x476   :  { %3680 = vmatprep.mubr.bf16.mxu1 %v3130_v45  ;;  %12669 = vmatpush3.bf16.msra.mxu1 %v16706_v0  ;;  %v3096_v0 = vrot.slane %v16797_v61, 6  ;;  %v3131_v60 = vmul.bf16 %v3123_v16, %v15480_v43  ;;  %v16941_v2 = vsel %vm3008_vm8, %v2996_v14, %v2997_v51  ;;  %v16947_v6 = vsel %vm3008_vm8, %v2995_v59, %v2996_v14  ;;  %v13417_v16 = vld [vmem:[#allocation8 + $0x128] sm:$0xff]  }
 0x477   :  { %12670 = vmatprep.subr.bf16.mxu1 %v13413_v40  ;;  %v3027_v7 = vpack.c.bf16 %v16941_v2, %v16947_v6  ;;  %v3114_v29 = vsel %vm936_vm4, %v3094_v42, %v3095_v15  ;;  %v2999_v45 = vrot.slane %v16797_v61, 4 }
 0x478   :  { %v3113_v22 = vsel %vm936_vm4, %v3095_v15, %v3096_v0  ;;  %v16999_v47 = vpop.permute.xlu0 %3055 }
 0x479   :  { %v3075_v59 = vmul.bf16 %v16955_v19, %v3027_v7  ;;  %v3001_v7 = vrot.slane %v16812_v17, 4  ;;  %19969 = vst [vmem:[#allocation41_spill] sm:$0xff] %v16999_v47 }
 0x47a   :  { %12671 = vmatpush3.bf16.msra.mxu1 %v13413_v40  ;;  %v3124_v40 = vpack.c.bf16 %v3113_v22, %v3114_v29  ;;  %v3100_v29 = vrot.slane %v16827_v50, 6 }
 0x47b   :  { %3826 = vmatmul.mubr.bf16.gmra.mrb[140].mxu0 %v2991_v20  ;;  %12672 = vmatprep.subr.bf16.mxu1 %v13414_v52  ;;  %v16963_v20 = vsel %vm3008_vm8, %v2998_v1, %v2999_v45 }
 0x47c   :  { %v3132_v42 = vmul.bf16 %v3124_v40, %v15484_v55  ;;  %v16977_v40 = vpop.permute.xlu1 %3050 }
 0x47d   :  { %3681 = vmatmul.mubr.bf16.gmra.mrb[84].mxu1 %v3074_v31  ;;  %v16969_v31 = vsel %vm3008_vm8, %v2997_v51, %v2998_v1  ;;  %19968 = vst [vmem:[#allocation58_spill] sm:$0xff] %v16977_v40  ;;  %v13419_v1 = vld [vmem:[#allocation8 + $0x138] sm:$0xff]  }
 0x47e   :  { %3688 = vmatprep.mubr.bf16.mxu1 %v3131_v60  ;;  %12673 = vmatpush3.bf16.msra.mxu1 %v13414_v52  ;;  %v3097_v52 = vrot.slane %v16805_v58, 6  ;;  %v3028_v15 = vpack.c.bf16 %v16963_v20, %v16969_v31  ;;  %v13418_v60 = vld [vmem:[#allocation8 + $0x130] sm:$0xff]  }
 0x47f   :  { %12674 = vmatprep.subr.bf16.mxu1 %v13415_v11 }
 0x480   :  { %v3111_v14 = vsel %vm936_vm4, %v3097_v52, %v3098_v53  ;;  %v3076_v51 = vmul.bf16 %v16977_v40, %v3028_v15  ;;  %v17014_v17 = vpop.permute.xlu1 %3060 }
 0x481   :  { %19970 = vst [vmem:[#allocation59_spill] sm:$0xff] %v17014_v17 }
 0x482   :  { %12675 = vmatpush3.bf16.msra.mxu1 %v13415_v11  ;;  %v3112_v11 = vsel %vm936_vm4, %v3096_v0, %v3097_v52 }
 0x483   :  { %12676 = vmatprep.subr.bf16.mxu1 %v13416_v24  ;;  %v3125_v22 = vpack.c.bf16 %v3111_v14, %v3112_v11 }
 0x485   :  { %3689 = vmatmul.mubr.bf16.gmra.mrb[88].mxu1 %v3075_v59  ;;  %v3000_v59 = vrot.slane %v16805_v58, 4  ;;  %v3133_v0 = vmul.bf16 %v3125_v22, %v19858_v46  ;;  %v3003_v22 = vrot.slane %v16827_v50, 4  ;;  %v3103_v50 = vrot.slane %v16855_v44, 6 }
 0x486   :  { %3696 = vmatprep.mubr.bf16.mxu1 %v3132_v42  ;;  %12677 = vmatpush3.bf16.msra.mxu1 %v13416_v24  ;;  %v3099_v24 = vrot.slane %v16820_v23, 6  ;;  %v19973_v58 = vrot.slane %v16862_v5, 4 }
 0x487   :  { %12678 = vmatprep.subr.bf16.mxu1 %v13417_v16  ;;  %v16985_v52 = vsel %vm3008_vm8, %v3000_v59, %v3001_v7 }
 0x488   :  { %v3109_v42 = vsel %vm936_vm4, %v3099_v24, %v3100_v29  ;;  %v3110_v15 = vsel %vm936_vm4, %v3098_v53, %v3099_v24 }
 0x489   :  { %v3126_v11 = vpack.c.bf16 %v3109_v42, %v3110_v15 }
 0x48a   :  { %12679 = vmatpush3.bf16.msra.mxu1 %v13417_v16  ;;  %v16991_v16 = vsel %vm3008_vm8, %v2999_v45, %v3000_v59 }
 0x48b   :  { %12680 = vmatprep.subr.bf16.mxu1 %v13418_v60  ;;  %v3029_v14 = vpack.c.bf16 %v16985_v52, %v16991_v16  ;;  %v3134_v59 = vmul.bf16 %v3126_v11, %v19923_v12  ;;  %v3004_v11 = vrot.slane %v16835_v30, 4 }
 0x48d   :  { %3697 = vmatmul.mubr.bf16.gmra.mrb[92].mxu1 %v3076_v51  ;;  %v3102_v51 = vrot.slane %v16842_v57, 6  ;;  %v3077_v45 = vmul.bf16 %v16999_v47, %v3029_v14  ;;  %v17030_v57 = vpop.permute.xlu0 %3065 }
 0x48e   :  { %3704 = vmatprep.mubr.bf16.mxu1 %v3133_v0  ;;  %12681 = vmatpush3.bf16.msra.mxu1 %v13418_v60  ;;  %v3002_v0 = vrot.slane %v16820_v23, 4  ;;  %v3101_v60 = vrot.slane %v16835_v30, 6  ;;  %19972 = vst [vmem:[#allocation44_spill] sm:$0xff] %v17030_v57 }
 0x48f   :  { %12682 = vmatprep.subr.bf16.mxu1 %v13419_v1 }
 0x490   :  { %v3013_v53 = vsel %vm3008_vm8, %v3002_v0, %v3003_v22  ;;  %v3107_v24 = vsel %vm936_vm4, %v3101_v60, %v3102_v51  ;;  %v3014_v42 = vsel %vm3008_vm8, %v3001_v7, %v3002_v0  ;;  %v3011_v7 = vsel %vm3008_vm8, %v3004_v11, %v3005_v10 }
 0x491   :  { %v3030_v15 = vpack.c.bf16 %v3013_v53, %v3014_v42  ;;  %v19971_v0 = vrot.slane %v16862_v5, 6  ;;  %v17094_v5 = vld [vmem:[#allocation9 + $0x100] sm:$0xff]  }
 0x492   :  { %12683 = vmatpush3.bf16.msra.mxu1 %v13419_v1  ;;  %v3108_v1 = vsel %vm936_vm4, %v3100_v29, %v3101_v60  ;;  %v3012_v60 = vsel %vm3008_vm8, %v3003_v22, %v3004_v11  ;;  %v17043_v11 = vpop.permute.xlu1 %3070 }
 0x493   :  { %v3127_v14 = vpack.c.bf16 %v3107_v24, %v3108_v1  ;;  %v3105_v29 = vsel %vm936_vm4, %v3103_v50, %v19971_v0  ;;  %v3031_v24 = vpack.c.bf16 %v3011_v7, %v3012_v60  ;;  %19974 = vst [vmem:[#allocation60_spill] sm:$0xff] %v17043_v11  ;;  %v17045_v0 = vpop.permute.xlu0 %3219 }
 0x494   :  { %19975 = vst [vmem:[#allocation46_spill] sm:$0xff] %v17045_v0 }
 0x495   :  { %3705 = vmatmul.mubr.bf16.gmra.mrb[96].mxu1 %v3077_v45  ;;  %v3078_v45 = vmul.bf16 %v17014_v17, %v3030_v15  ;;  %v3106_v15 = vsel %vm936_vm4, %v3102_v51, %v3103_v50  ;;  %v3209_v51 = vpack.c.bf16 %v16923_v9, %v16872_v8 }
 0x496   :  { %3712 = vmatprep.mubr.bf16.mxu1 %v3134_v59  ;;  %v3135_v59 = vmul.bf16 %v3127_v14, %v19925_v37  ;;  %v3128_v1 = vpack.c.bf16 %v3105_v29, %v3106_v15  ;;  %v3006_v14 = vrot.slane %v16855_v44, 4 }
 0x497   :  { %v17055_v15 = vpop.permute.xlu0 %3229 }
 0x498   :  { %v3136_v30 = vmul.bf16 %v3128_v1, %v19928_v49  ;;  %v3010_v22 = vsel %vm3008_vm8, %v3005_v10, %v3006_v14  ;;  %v17053_v10 = vpop.permute.xlu1 %3224  ;;  %19977 = vst [vmem:[#allocation49_spill] sm:$0xff] %v17055_v15  ;;  %v3212_v1 = vpack.c.bf16 %v16991_v16, %v16963_v20 }
 0x499   :  { %19976 = vst [vmem:[#allocation51_spill] sm:$0xff] %v17053_v10 }
 0x49d   :  { %3713 = vmatmul.mubr.bf16.gmra.mrb[100].mxu1 %v3078_v45  ;;  %v3079_v45 = vmul.bf16 %v17030_v57, %v3031_v24  ;;  %v3257_v24 = vmul.bf16 %v17045_v0, %v3209_v51 }
 0x49e   :  { %3720 = vmatprep.mubr.bf16.mxu1 %v3135_v59  ;;  %v3009_v59 = vsel %vm3008_vm8, %v3006_v14, %v19973_v58  ;;  %v3210_v58 = vpack.c.bf16 %v16947_v6, %v16916_v27  ;;  %v3213_v14 = vpack.c.bf16 %v3014_v42, %v16985_v52  ;;  %v17064_v27 = vpop.permute.xlu0 %3239 }
 0x49f   :  { %v3032_v50 = vpack.c.bf16 %v3009_v59, %v3010_v22  ;;  %19979 = vst [vmem:[#allocation54_spill] sm:$0xff] %v17064_v27  ;;  %v3216_v16 = vpack.c.bf16 %v16898_v26, %v3009_v59  ;;  %v13428_v26 = vld [vmem:[#allocation9 + $0xe0] sm:$0xff]  }
 0x4a0   :  { %v3258_v8 = vmul.bf16 %v17053_v10, %v3210_v58  ;;  %v3261_v6 = vmul.bf16 %v17064_v27, %v3213_v14  ;;  %v13420_v58 = vld [vmem:[#allocation9 + $0xc0] sm:$0xff]   ;;  %v13431_v14 = vld [vmem:[#allocation9 + $0xa8] sm:$0xff]  }
 0x4a1   :  { %v3080_v29 = vmul.bf16 %v17043_v11, %v3032_v50  ;;  %v3215_v50 = vpack.c.bf16 %v3010_v22, %v3011_v7  ;;  %12491 = vmatprep.subr.bf16.mxu0 %v13420_v58  ;;  %v13422_v7 = vld [vmem:[#allocation9 + $0xc8] sm:$0xff]   ;;  %v13424_v22 = vld [vmem:[#allocation9 + $0xd0] sm:$0xff]   ;;  %v13429_v59 = vld [vmem:[#allocation9 + $0xa0] sm:$0xff]  }
 0x4a2   :  { %v13436_v58 = vld [vmem:[#allocation9 + $0x48] sm:$0xff]  }
 0x4a5   :  { %3721 = vmatmul.mubr.bf16.gmra.mrb[104].mxu1 %v3079_v45  ;;  %v17062_v45 = vpop.permute.xlu1 %3234 }
 0x4a6   :  { %3728 = vmatprep.mubr.bf16.mxu1 %v3136_v30  ;;  %v3211_v30 = vpack.c.bf16 %v16969_v31, %v16941_v2  ;;  %19978 = vst [vmem:[#allocation48_spill] sm:$0xff] %v17062_v45  ;;  %v3260_v2 = vmul.bf16 %v17062_v45, %v3212_v1  ;;  %v3214_v31 = vpack.c.bf16 %v3012_v60, %v3013_v53  ;;  %v13421_v53 = vld [vmem:[#allocation9 + $0x80] sm:$0xff]   ;;  %v13423_v60 = vld [vmem:[#allocation9 + $0x88] sm:$0xff]  }
 0x4a7   :  { %12492 = vmatpush3.bf16.msra.mxu0 %v13421_v53  ;;  %v13430_v1 = vld [vmem:[#allocation9 + $0xe8] sm:$0xff]  }
 0x4a8   :  { %v3259_v9 = vmul.bf16 %v17055_v15, %v3211_v30  ;;  %12493 = vmatprep.subr.bf16.mxu0 %v13422_v7  ;;  %v13425_v30 = vld [vmem:[#allocation9 + $0x90] sm:$0xff]   ;;  %v13437_v53 = vld [vmem:[#allocation9 + $0x8] sm:$0xff]   ;;  %v13438_v7 = vld [vmem:[#allocation9 + $0xf8] sm:$0xff]  }
 0x4a9   :  { %v17068_v51 = vpop.permute.xlu1 %3244 }
 0x4aa   :  { %19980 = vst [vmem:[#allocation33_spill] sm:$0xff] %v17068_v51  ;;  %v3262_v20 = vmul.bf16 %v17068_v51, %v3214_v31  ;;  %v13434_v31 = vld [vmem:[#allocation9 + $0xf0] sm:$0xff]  }
 0x4ab   :  { %12494 = vmatpush3.bf16.msra.mxu0 %v13423_v60 }
 0x4ac   :  { %12495 = vmatprep.subr.bf16.mxu0 %v13424_v22  ;;  %v13439_v22 = vld [vmem:[#allocation9 + $0xb8] sm:$0xff]  }
 0x4ad   :  { %3729 = vmatmul.mubr.bf16.gmra.mrb[108].mxu1 %v3080_v29  ;;  %v17070_v29 = vpop.permute.xlu0 %3249  ;;  %v17075_v42 = vpop.permute.xlu1 %3254 }
 0x4ae   :  { %12684 = vmatprep.mubr.bf16.mxu1 %v3257_v24  ;;  %19981 = vst [vmem:[#allocation30_spill] sm:$0xff] %v17070_v29  ;;  %v3263_v52 = vmul.bf16 %v17070_v29, %v3215_v50  ;;  %19982 = vst [vmem:[#allocation31_spill] sm:$0xff] %v17075_v42  ;;  %v3264_v24 = vmul.bf16 %v17075_v42, %v3216_v16 }
 0x4af   :  { %12496 = vmatpush3.bf16.msra.mxu0 %v13425_v30  ;;  %v13440_v30 = vld [vmem:[#allocation9 + $0x50] sm:$0xff]  }
 0x4b5   :  { %12685 = vmatmul.mubr.bf16.vlgmr.msra.gmra.mrb[112].mxu1 %v3258_v8  ;;  %v13426_v8 = vld [vmem:[#allocation9 + $0xd8] sm:$0xff]  }
 0x4b6   :  { %12688 = vmatprep.mubr.bf16.mxu1 %v3259_v9  ;;  %v13427_v9 = vld [vmem:[#allocation9 + $0x98] sm:$0xff]   ;;  %12497 = vmatprep.subr.bf16.mxu0 %v13426_v8 }
 0x4b7   :  { %12498 = vmatpush3.bf16.msra.mxu0 %v13427_v9  ;;  %v13441_v9 = vld [vmem:[#allocation9 + $0x10] sm:$0xff]  }
 0x4b8   :  { %12499 = vmatprep.subr.bf16.mxu0 %v13428_v26 }
 0x4bb   :  { %12500 = vmatpush3.bf16.msra.mxu0 %v13429_v59 }
 0x4bc   :  { %12501 = vmatprep.subr.bf16.mxu0 %v13430_v1 }
 0x4bd   :  { %12689 = vmatmul.mubr.bf16.gmra.mrb[116].mxu1 %v3260_v2  ;;  %v13432_v2 = vld [vmem:[#allocation9 + $0x40] sm:$0xff]  }
 0x4be   :  { %12692 = vmatprep.mubr.bf16.mxu1 %v3261_v6  ;;  %12427 = vmatprep.subr.bf16.mxu1 %v13432_v2  ;;  %v13433_v6 = vld [vmem:[#allocation9] sm:$0xff]   ;;  %v13442_v2 = vld [vmem:[#allocation9 + $0x58] sm:$0xff]  }
 0x4bf   :  { %12502 = vmatpush3.bf16.msra.mxu0 %v13431_v14  ;;  %12428 = vmatpush3.bf16.msra.mxu1 %v13433_v6  ;;  %v13443_v6 = vld [vmem:[#allocation9 + $0x18] sm:$0xff]  }
 0x4c0   :  { %12503 = vmatprep.subr.bf16.mxu0 %v13434_v31  ;;  %12429 = vmatprep.subr.bf16.mxu1 %v13436_v58  ;;  %v13444_v31 = vld [vmem:[#allocation9 + $0x60] sm:$0xff]  }
 0x4c3   :  { %12430 = vmatpush3.bf16.msra.mxu1 %v13437_v53 }
 0x4c4   :  { %12431 = vmatprep.subr.bf16.mxu1 %v13440_v30  ;;  %v13447_v30 = vld [vmem:[#allocation9 + $0x28] sm:$0xff]  }
 0x4c5   :  { %12693 = vmatmul.mubr.bf16.gmra.mrb[120].mxu1 %v3262_v20  ;;  %v13435_v20 = vld [vmem:[#allocation9 + $0xb0] sm:$0xff]  }
 0x4c6   :  { %12696 = vmatprep.mubr.bf16.mxu1 %v3263_v52  ;;  %12504 = vmatpush3.bf16.msra.mxu0 %v13435_v20 }
 0x4c7   :  { %12505 = vmatprep.subr.bf16.mxu0 %v13438_v7  ;;  %12432 = vmatpush3.bf16.msra.mxu1 %v13441_v9  ;;  %v13448_v9 = vld [vmem:[#allocation9 + $0x70] sm:$0xff]  }
 0x4c8   :  { %12433 = vmatprep.subr.bf16.mxu1 %v13442_v2 }
 0x4ca   :  { %12506 = vmatpush3.bf16.msra.mxu0 %v13439_v22  ;;  %v13446_v22 = vld [vmem:[#allocation9 + $0x68] sm:$0xff]  }
 0x4cb   :  { %12434 = vmatpush3.bf16.msra.mxu1 %v13443_v6 }
 0x4cc   :  { %12435 = vmatprep.subr.bf16.mxu1 %v13444_v31 }
 0x4cd   :  { %12697 = vmatmul.mubr.bf16.gmra.mrb[124].mxu1 %v3264_v24 }
 0x516   :  { %v12363_v50 = vpop.f32.mrb[112].mxu0 }
 0x517   :  { %v12364_v52 = vpop.f32.mrb[113].mxu0 }
 0x518   :  { %v17078_v16 = vadd.f32 %v12364_v52, %v12363_v50  ;;  %v12366_v24 = vpop.f32.mrb[114].mxu0  ;;  %v13445_v52 = vld [vmem:[#allocation9 + $0x20] sm:$0xff]  }
 0x519   :  { %v12367_v60 = vpop.f32.mrb[115].mxu0  ;;  %12436 = vmatpush3.bf16.msra.mxu1 %v13445_v52  ;;  %v13451_v52 = vld [vmem:[#allocation9 + $0x38] sm:$0xff]  }
 0x51a   :  { %v17080_v8 = vadd.f32 %v12367_v60, %v12366_v24  ;;  %12437 = vmatprep.subr.bf16.mxu1 %v13446_v22 }
 0x51d   :  { %12438 = vmatpush3.bf16.msra.mxu1 %v13447_v30 }
 0x51e   :  { %v12369_v26 = vpop.f32.mrb[116].mxu0  ;;  %12439 = vmatprep.subr.bf16.mxu1 %v13448_v9 }
 0x51f   :  { %v12370_v59 = vpop.f32.mrb[117].mxu0 }
 0x520   :  { %v17082_v1 = vadd.f32 %v12370_v59, %v12369_v26  ;;  %v12372_v14 = vpop.f32.mrb[118].mxu0  ;;  %v13449_v59 = vld [vmem:[#allocation9 + $0x30] sm:$0xff]  }
 0x521   :  { %v12373_v50 = vpop.f32.mrb[119].mxu0  ;;  %12440 = vmatpush3.bf16.msra.mxu1 %v13449_v59 }
 0x522   :  { %v17084_v20 = vadd.f32 %v12373_v50, %v12372_v14  ;;  %v13450_v14 = vld [vmem:[#allocation9 + $0x78] sm:$0xff]  }
 0x523   :  { %12441 = vmatprep.subr.bf16.mxu1 %v13450_v14 }
 0x525   :  { %12442 = vmatpush3.bf16.msra.mxu1 %v13451_v52 }
 0x526   :  { %v12375_v24 = vpop.f32.mrb[120].mxu0  ;;  %12700 = vmatprep.subr.bf16.mxu1 %v17094_v5 }
 0x527   :  { %v12376_v58 = vpop.f32.mrb[121].mxu0 }
 0x528   :  { %v17086_v53 = vadd.f32 %v12376_v58, %v12375_v24  ;;  %v12378_v7 = vpop.f32.mrb[122].mxu0 }
 0x529   :  { %v12379_v60 = vpop.f32.mrb[123].mxu0 }
 0x52a   :  { %v17088_v26 = vadd.f32 %v12379_v60, %v12378_v7 }
 0x52e   :  { %v12381_v2 = vpop.f32.mrb[124].mxu0 }
 0x52f   :  { %v12382_v6 = vpop.f32.mrb[125].mxu0 }
 0x530   :  { %v17090_v31 = vadd.f32 %v12382_v6, %v12381_v2  ;;  %v12384_v50 = vpop.f32.mrb[126].mxu0 }
 0x531   :  { %v12385_v24 = vpop.f32.mrb[127].mxu0 }
 0x532   :  { %v17092_v58 = vadd.f32 %v12385_v24, %v12384_v50 }
 0x536   :  { %v12387_v7 = vpop.f32.mrb[128].mxu0 }
 0x537   :  { %v12388_v60 = vpop.f32.mrb[129].mxu0 }
 0x538   :  { %v17097_v22 = vadd.f32 %v12388_v60, %v12387_v7  ;;  %v12390_v30 = vpop.f32.mrb[130].mxu0  ;;  %v17110_v7 = vld [vmem:[%s19983_s1] ss:$0 sm:$0xff]  ;;  %s20348_s1 = sld [smem:[#allocation120_spill]] }
 0x539   :  { %v12391_v9 = vpop.f32.mrb[131].mxu0 }
 0x53a   :  { %v17099_v2 = vadd.f32 %v12391_v9, %v12390_v30 }
 0x53e   :  { %v12393_v6 = vpop.f32.mrb[132].mxu0 }
 0x53f   :  { %v12394_v59 = vpop.f32.mrb[133].mxu0 }
 0x540   :  { %v17101_v44 = vadd.f32 %v12394_v59, %v12393_v6  ;;  %v12396_v14 = vpop.f32.mrb[134].mxu0 }
 0x541   :  { %v12397_v50 = vpop.f32.mrb[135].mxu0 }
 0x542   :  { %v17103_v24 = vadd.f32 %v12397_v50, %v12396_v14 }
 0x546   :  { %v12399_v23 = vpop.f32.mrb[136].mxu0 }
 0x547   :  { %v12400_v52 = vpop.f32.mrb[137].mxu0 }
 0x548   :  { %v17105_v3 = vadd.f32 %v12400_v52, %v12399_v23  ;;  %v12299_v61 = vpop.f32.mrb[80].mxu1  ;;  %v12402_v28 = vpop.f32.mrb[138].mxu0 }
 0x549   :  { %v12300_v60 = vpop.f32.mrb[81].mxu1  ;;  %v12403_v30 = vpop.f32.mrb[139].mxu0 }
 0x54a   :  { %v12301_v9 = vadd.f32 %v12300_v60, %v12299_v61  ;;  %v17112_v6 = vadd.f32 %v12403_v30, %v12402_v28  ;;  %v12302_v59 = vpop.f32.mrb[82].mxu1 }
 0x54b   :  { %v12303_v32 = vpop.f32.mrb[83].mxu1 }
 0x54c   :  { %v3675_v14 = vadd.f32 %v12301_v9, %v17110_v7  ;;  %v12304_v50 = vadd.f32 %v12303_v32, %v12302_v59 }
 0x54e   :  { %v3678_v23 = vadd.f32 %v12304_v50, %v17110_v7  ;;  %v12405_v52 = vpop.f32.mrb[140].mxu0  ;;  %v17117_v62 = vadd.f32 %v17078_v16, %v3675_v14 }
 0x54f   :  { %v12406_v21 = vpop.f32.mrb[141].mxu0 }
 0x550   :  { %v17119_v36 = vadd.f32 %v12406_v21, %v12405_v52  ;;  %v12305_v38 = vpop.f32.mrb[84].mxu1  ;;  %v12408_v42 = vpop.f32.mrb[142].mxu0  ;;  %v17122_v61 = vadd.f32 %v17080_v8, %v3678_v23 }
 0x551   :  { %v12306_v28 = vpop.f32.mrb[85].mxu1  ;;  %v12409_v60 = vpop.f32.mrb[143].mxu0 }
 0x552   :  { %v12307_v30 = vadd.f32 %v12306_v28, %v12305_v38  ;;  %v17124_v29 = vadd.f32 %v12409_v60, %v12408_v42  ;;  %v12308_v32 = vpop.f32.mrb[86].mxu1 }
 0x553   :  { %v12309_v9 = vpop.f32.mrb[87].mxu1 }
 0x554   :  { %v3683_v59 = vadd.f32 %v12307_v30, %v17110_v7  ;;  %v12310_v50 = vadd.f32 %v12309_v9, %v12308_v32 }
 0x556   :  { %v3686_v16 = vadd.f32 %v12310_v50, %v17110_v7  ;;  %v17129_v21 = vadd.f32 %v17082_v1, %v3683_v59 }
 0x558   :  { %v12311_v14 = vpop.f32.mrb[88].mxu1  ;;  %v17132_v52 = vadd.f32 %v17084_v20, %v3686_v16 }
 0x559   :  { %v12312_v8 = vpop.f32.mrb[89].mxu1 }
 0x55a   :  { %v12313_v23 = vadd.f32 %v12312_v8, %v12311_v14  ;;  %v12314_v51 = vpop.f32.mrb[90].mxu1 }
 0x55b   :  { %v12315_v38 = vpop.f32.mrb[91].mxu1 }
 0x55c   :  { %v3691_v42 = vadd.f32 %v12313_v23, %v17110_v7  ;;  %v12316_v28 = vadd.f32 %v12315_v38, %v12314_v51 }
 0x55e   :  { %v3694_v60 = vadd.f32 %v12316_v28, %v17110_v7  ;;  %v17137_v30 = vadd.f32 %v17086_v53, %v3691_v42 }
 0x560   :  { %v12317_v32 = vpop.f32.mrb[92].mxu1  ;;  %v17140_v1 = vadd.f32 %v17088_v26, %v3694_v60 }
 0x561   :  { %v12318_v9 = vpop.f32.mrb[93].mxu1 }
 0x562   :  { %v12319_v59 = vadd.f32 %v12318_v9, %v12317_v32  ;;  %v12320_v20 = vpop.f32.mrb[94].mxu1 }
 0x563   :  { %v12321_v50 = vpop.f32.mrb[95].mxu1 }
 0x564   :  { %v3699_v16 = vadd.f32 %v12319_v59, %v17110_v7  ;;  %v12322_v14 = vadd.f32 %v12321_v50, %v12320_v20 }
 0x566   :  { %v3702_v8 = vadd.f32 %v12322_v14, %v17110_v7  ;;  %v17145_v51 = vadd.f32 %v17090_v31, %v3699_v16 }
 0x568   :  { %v12323_v23 = vpop.f32.mrb[96].mxu1  ;;  %v17148_v53 = vadd.f32 %v17092_v58, %v3702_v8 }
 0x569   :  { %v12324_v38 = vpop.f32.mrb[97].mxu1 }
 0x56a   :  { %v12325_v42 = vadd.f32 %v12324_v38, %v12323_v23  ;;  %v12326_v26 = vpop.f32.mrb[98].mxu1 }
 0x56b   :  { %v12327_v28 = vpop.f32.mrb[99].mxu1 }
 0x56c   :  { %v3707_v60 = vadd.f32 %v12325_v42, %v17110_v7  ;;  %v12328_v32 = vadd.f32 %v12327_v28, %v12326_v26 }
 0x56e   :  { %v3710_v9 = vadd.f32 %v12328_v32, %v17110_v7  ;;  %v17153_v59 = vadd.f32 %v17097_v22, %v3707_v60 }
 0x570   :  { %v12329_v20 = vpop.f32.mrb[100].mxu1  ;;  %v17156_v31 = vadd.f32 %v17099_v2, %v3710_v9 }
 0x571   :  { %v12330_v50 = vpop.f32.mrb[101].mxu1 }
 0x572   :  { %v12331_v16 = vadd.f32 %v12330_v50, %v12329_v20  ;;  %v12332_v58 = vpop.f32.mrb[102].mxu1 }
 0x573   :  { %v12333_v14 = vpop.f32.mrb[103].mxu1 }
 0x574   :  { %v3715_v8 = vadd.f32 %v12331_v16, %v17110_v7  ;;  %v12334_v23 = vadd.f32 %v12333_v14, %v12332_v58 }
 0x576   :  { %v3718_v38 = vadd.f32 %v12334_v23, %v17110_v7  ;;  %v17161_v42 = vadd.f32 %v17101_v44, %v3715_v8 }
 0x578   :  { %v12335_v26 = vpop.f32.mrb[104].mxu1  ;;  %v17164_v22 = vadd.f32 %v17103_v24, %v3718_v38 }
 0x579   :  { %v12336_v28 = vpop.f32.mrb[105].mxu1 }
 0x57a   :  { %v12337_v60 = vadd.f32 %v12336_v28, %v12335_v26  ;;  %v12338_v2 = vpop.f32.mrb[106].mxu1 }
 0x57b   :  { %v12339_v32 = vpop.f32.mrb[107].mxu1 }
 0x57c   :  { %v3723_v9 = vadd.f32 %v12337_v60, %v17110_v7  ;;  %v12340_v20 = vadd.f32 %v12339_v32, %v12338_v2 }
 0x57e   :  { %v3726_v50 = vadd.f32 %v12340_v20, %v17110_v7  ;;  %v17169_v16 = vadd.f32 %v17105_v3, %v3723_v9 }
 0x580   :  { %v12341_v58 = vpop.f32.mrb[108].mxu1  ;;  %v17172_v44 = vadd.f32 %v17112_v6, %v3726_v50 }
 0x581   :  { %v12342_v14 = vpop.f32.mrb[109].mxu1 }
 0x582   :  { %v12343_v8 = vadd.f32 %v12342_v14, %v12341_v58  ;;  %v12344_v24 = vpop.f32.mrb[110].mxu1 }
 0x583   :  { %v12345_v23 = vpop.f32.mrb[111].mxu1 }
 0x584   :  { %v3731_v38 = vadd.f32 %v12343_v8, %v17110_v7  ;;  %v12346_v26 = vadd.f32 %v12345_v23, %v12344_v24 }
 0x586   :  { %v3734_v28 = vadd.f32 %v12346_v26, %v17110_v7  ;;  %v17177_v60 = vadd.f32 %v17119_v36, %v3731_v38 }
 0x588   :  { %v12686_v2 = vpop.f32.mrb[112].mxu1  ;;  %v17180_v3 = vadd.f32 %v17124_v29, %v3734_v28 }
 0x589   :  { %v3877_v32 = vadd.f32 %v12686_v2, %v17129_v21  ;;  %v3868_v6 = vpop.f32.mrb[113].mxu1 }
 0x58a   :  { %v3869_v9 = vadd.f32 %v3868_v6, %v17117_v62  ;;  %v12687_v20 = vpop.f32.mrb[114].mxu1 }
 0x58b   :  { %v17184_v50 = vmax.f32 %v3877_v32, 0.0  ;;  %v3880_v58 = vadd.f32 %v12687_v20, %v17132_v52  ;;  %v3871_v14 = vpop.f32.mrb[115].mxu1 }
 0x58c   :  { %v17187_v8 = vmax.f32 %v3869_v9, 0.0  ;;  %v3872_v36 = vadd.f32 %v3871_v14, %v17122_v61 }
 0x58d   :  { %v3957_v7 = vrot.slane %v17184_v50, 4  ;;  %v4013_v29 = vrot.slane %v17184_v50, 6  ;;  %v4077_v24 = vrot.slane %v17184_v50, 2  ;;  %v17193_v21 = vmax.f32 %v3880_v58, 0.0 }
 0x58e   :  { %v19609_v62 = vrot.slane %v17187_v8, 4  ;;  %v3932_v52 = vmax.f32 %v3872_v36, 0.0 }
 0x58f   :  { %v19604_v26 = vrot.slane %v17193_v21, 4  ;;  %v19599_v28 = vrot.slane %v17193_v21, 6  ;;  %v4078_v61 = vrot.slane %v17193_v21, 2 }
 0x590   :  { %v3947_v32 = vpack.c.bf16 %v3932_v52, %v17187_v8  ;;  %v3956_v6 = vrot.slane %v3932_v52, 4  ;;  %v4012_v9 = vrot.slane %v3932_v52, 6  ;;  %v4076_v20 = vrot.slane %v3932_v52, 2  ;;  %v12690_v58 = vpop.f32.mrb[116].mxu1 }
 0x591   :  { %v3893_v14 = vadd.f32 %v12690_v58, %v17145_v51  ;;  %v3884_v23 = vpop.f32.mrb[117].mxu1  ;;  %v4103_v36 = vsel %vm1235_vm6, %v4077_v24, %v4078_v61  ;;  %v17211_v38 = vsel %vm936_vm4, %v4013_v29, %v19599_v28  ;;  %v17217_v2 = vsel %vm3008_vm8, %v3957_v7, %v19604_v26 }
 0x592   :  { %19984 = vst [vmem:[#allocation61_spill] sm:$0xff] %v17217_v2  ;;  %v17223_v51 = vsel %vm3008_vm8, %v19609_v62, %v3956_v6  ;;  %v3885_v52 = vadd.f32 %v3884_v23, %v17137_v30  ;;  %v12691_v58 = vpop.f32.mrb[118].mxu1  ;;  %v4104_v27 = vsel %vm1235_vm6, %v4076_v20, %v4077_v24  ;;  %v19985_v28 = vrot.slane %v17187_v8, 2 }
 0x593   :  { %v17232_v15 = vmax.f32 %v3893_v14, 0.0  ;;  %v3896_v26 = vadd.f32 %v12691_v58, %v17148_v53  ;;  %v3887_v10 = vpop.f32.mrb[119].mxu1  ;;  %v19986_v62 = vrot.slane %v17187_v8, 6  ;;  %v17246_v11 = vsel %vm936_vm4, %v4012_v9, %v4013_v29 }
 0x594   :  { %v4105_v45 = vsel %vm1235_vm6, %v19985_v28, %v4076_v20  ;;  %v17241_v23 = vmax.f32 %v3885_v52, 0.0  ;;  %v3888_v24 = vadd.f32 %v3887_v10, %v17140_v1  ;;  %v17250_v28 = vsel %vm3008_vm8, %v3956_v6, %v3957_v7 }
 0x595   :  { %v4107_v0 = vpack.c.bf16 %v4104_v27, %v4105_v45  ;;  %v17239_v30 = vsel %vm936_vm4, %v19986_v62, %v4012_v9  ;;  %v17252_v53 = vmax.f32 %v3896_v26, 0.0  ;;  %v4081_v62 = vrot.slane %v17232_v15, 2 }
 0x596   :  { %v4079_v45 = vrot.slane %v17241_v23, 2  ;;  %v17255_v27 = vmax.f32 %v3888_v24, 0.0 }
 0x597   :  { %v4082_v20 = vrot.slane %v17252_v53, 2  ;;  %v4115_v10 = vmul.bf16 %v4107_v0, %v19931_v34 }
 0x598   :  { %v4080_v1 = vrot.slane %v17255_v27, 2  ;;  %v12694_v29 = vpop.f32.mrb[120].mxu1  ;;  %v4102_v9 = vsel %vm1235_vm6, %v4078_v61, %v4079_v45  ;;  %v3949_v14 = vpack.c.bf16 %v17255_v27, %v17241_v23 }
 0x599   :  { %4651 = vmatprep.mubr.bf16.mxu0 %v4115_v10  ;;  %v3909_v7 = vadd.f32 %v12694_v29, %v17161_v42  ;;  %v3900_v26 = vpop.f32.mrb[121].mxu1  ;;  %v4108_v6 = vpack.c.bf16 %v4102_v9, %v4103_v36  ;;  %v17268_v52 = vsel %vm1235_vm6, %v4081_v62, %v4082_v20  ;;  %v4044_v42 = vpack.c.bf16 %v17211_v38, %v17246_v11 }
 0x59a   :  { %4652 = vmatmul.mubr.bf16.vlgmr.msra.gmra.mrb[144].mxu0 %v3947_v32  ;;  %v3901_v34 = vadd.f32 %v3900_v26, %v17153_v59  ;;  %v12695_v0 = vpop.f32.mrb[122].mxu1  ;;  %v4100_v58 = vsel %vm1235_vm6, %v4080_v1, %v4081_v62  ;;  %v4101_v61 = vsel %vm1235_vm6, %v4079_v45, %v4080_v1  ;;  %v19612_v1 = vrot.slane %v17255_v27, 6 }
 0x59b   :  { %v17277_v36 = vmax.f32 %v3909_v7, 0.0  ;;  %v3912_v24 = vadd.f32 %v12695_v0, %v17164_v22  ;;  %v3903_v10 = vpop.f32.mrb[123].mxu1  ;;  %v4116_v29 = vmul.bf16 %v4108_v6, %v19934_v54  ;;  %v4109_v32 = vpack.c.bf16 %v4100_v58, %v4101_v61 }
 0x59c   :  { %v17281_v9 = vmax.f32 %v3901_v34, 0.0  ;;  %v3904_v59 = vadd.f32 %v3903_v10, %v17156_v31  ;;  %v4015_v22 = vrot.slane %v17241_v23, 6  ;;  %v3959_v7 = vrot.slane %v17241_v23, 4 }
 0x59d   :  { %4659 = vmatprep.mubr.bf16.mxu0 %v4116_v29  ;;  %v19615_v26 = vrot.slane %v17252_v53, 6  ;;  %v4085_v6 = vrot.slane %v17277_v36, 2  ;;  %v17297_v34 = vmax.f32 %v3912_v24, 0.0  ;;  %v4117_v61 = vmul.bf16 %v4109_v32, %v19936_v13 }
 0x59e   :  { %v4083_v38 = vrot.slane %v17281_v9, 2  ;;  %v17291_v54 = vmax.f32 %v3904_v59, 0.0  ;;  %v3988_v45 = vpack.c.bf16 %v17217_v2, %v17250_v28  ;;  %v17311_v24 = vsel %vm936_vm4, %v4015_v22, %v19612_v1 }
 0x59f   :  { %v19987_v13 = vpack.c.bf16 %v17193_v21, %v17184_v50  ;;  %v3960_v31 = vrot.slane %v17255_v27, 4  ;;  %v19991_v23 = vrot.slane %v17193_v21, 4 }
 0x5a0   :  { %v4084_v0 = vrot.slane %v17291_v54, 2  ;;  %v12698_v58 = vpop.f32.mrb[124].mxu1  ;;  %v4098_v10 = vsel %vm1235_vm6, %v4082_v20, %v4083_v38 }
 0x5a1   :  { %v3925_v29 = vadd.f32 %v12698_v58, %v17177_v60  ;;  %v3916_v59 = vpop.f32.mrb[125].mxu1  ;;  %v4110_v62 = vpack.c.bf16 %v4098_v10, %v17268_v52  ;;  %v19988_v58 = vrot.slane %v17193_v21, 6 }
 0x5a2   :  { %4660 = vmatmul.mubr.bf16.gmra.mrb[148].mxu0 %v19987_v13  ;;  %v3917_v20 = vadd.f32 %v3916_v59, %v17169_v16  ;;  %v12699_v32 = vpop.f32.mrb[126].mxu1  ;;  %v4096_v60 = vsel %vm1235_vm6, %v4084_v0, %v4085_v6  ;;  %v4097_v52 = vsel %vm1235_vm6, %v4083_v38, %v4084_v0  ;;  %v4052_v16 = vmul.bf16 %v4044_v42, %v19966_v18 }
 0x5a3   :  { %v17325_v10 = vsel %vm936_vm4, %v19988_v58, %v4015_v22  ;;  %4667 = vmatprep.mubr.bf16.mxu0 %v4117_v61  ;;  %v3928_v50 = vadd.f32 %v12699_v32, %v17180_v3  ;;  %v3919_v13 = vpop.f32.mrb[127].mxu1  ;;  %v4111_v59 = vpack.c.bf16 %v4096_v60, %v4097_v52  ;;  %v17330_v1 = vmax.f32 %v3925_v29, 0.0 }
 0x5a4   :  { %v17332_v11 = vmax.f32 %v3917_v20, 0.0  ;;  %v3920_v38 = vadd.f32 %v3919_v13, %v17172_v44  ;;  %v4019_v18 = vrot.slane %v17281_v9, 6  ;;  %v4086_v42 = vrot.slane %v17297_v34, 2 }
 0x5a5   :  { %v17340_v3 = vmax.f32 %v3928_v50, 0.0  ;;  %v4020_v13 = vrot.slane %v17291_v54, 6  ;;  %v4089_v50 = vrot.slane %v17330_v1, 2  ;;  %v4118_v22 = vmul.bf16 %v4110_v62, %v19938_v25 }
 0x5a6   :  { %v4087_v29 = vrot.slane %v17332_v11, 2  ;;  %v17345_v20 = vmax.f32 %v3920_v38, 0.0  ;;  %v19989_v58 = vrot.slane %v17187_v8, 4  ;;  %v19990_v44 = vrot.slane %v17187_v8, 6 }
 0x5a7   :  { %v19613_v60 = vrot.slane %v17340_v3, 4  ;;  %v19614_v52 = vrot.slane %v17340_v3, 6  ;;  %v19995_v61 = vrot.slane %v17252_v53, 4 }
 0x5a8   :  { %v4088_v0 = vrot.slane %v17345_v20, 2  ;;  %v17373_v25 = vsel %vm1235_vm6, %v4086_v42, %v4087_v29 }
 0x5a9   :  { %v17361_v38 = vsel %vm3008_vm8, %v19613_v60, %v19989_v58  ;;  %v4042_v32 = vsel %vm936_vm4, %v19614_v52, %v19990_v44  ;;  %v17383_v60 = vsel %vm1235_vm6, %v4085_v6, %v4086_v42  ;;  %v17387_v44 = vsel %vm3008_vm8, %v3959_v7, %v3960_v31  ;;  %v13453_v52 = vld [vmem:[#allocation9 + $0x108] sm:$0xff]  }
 0x5aa   :  { %4668 = vmatmul.mubr.bf16.gmra.mrb[152].mxu0 %v3949_v14  ;;  %v4043_v62 = vpack.c.bf16 %v17239_v30, %v4042_v32  ;;  %v3987_v58 = vpack.c.bf16 %v17223_v51, %v17361_v38  ;;  %v17395_v30 = vsel %vm3008_vm8, %v19991_v23, %v3959_v7  ;;  %v19992_v14 = vrot.slane %v17232_v15, 6 }
 0x5ab   :  { %4675 = vmatprep.mubr.bf16.mxu0 %v4118_v22  ;;  %v19994_v22 = vrot.slane %v17255_v27, 6  ;;  %v19996_v27 = vrot.slane %v17232_v15, 4  ;;  %v4119_v23 = vmul.bf16 %v4111_v59, %v19940_v39  ;;  %v19998_v59 = vrot.slane %v17252_v53, 6 }
 0x5ac   :  { %v17403_v6 = vsel %vm936_vm4, %v19992_v14, %v19615_v26  ;;  %v19993_v42 = vmov %v19992_v14  ;;  %v4051_v21 = vmul.bf16 %v4043_v62, %v19965_v35  ;;  %v3995_v7 = vmul.bf16 %v3987_v58, %v16903_v63 }
 0x5ad   :  { %v17411_v32 = vsel %vm936_vm4, %v19994_v22, %v19993_v42  ;;  %v4090_v14 = vrot.slane %v17340_v3, 2  ;;  %v17426_v35 = vsel %vm1235_vm6, %v4088_v0, %v4089_v50  ;;  %v3964_v62 = vrot.slane %v17291_v54, 4 }
 0x5ae   :  { %4554 = vmatprep.mubr.bf16.mxu1 %v4051_v21  ;;  %v3996_v58 = vmul.bf16 %v3988_v45, %v16933_v4  ;;  %v17432_v22 = vsel %vm1235_vm6, %v4087_v29, %v4088_v0  ;;  %v17440_v42 = vsel %vm3008_vm8, %v19996_v27, %v19995_v61  ;;  %v19997_v45 = vmov %v19996_v27  ;;  %v13454_v27 = vld [vmem:[#allocation9 + $0x110] sm:$0xff]  }
 0x5af   :  { %4555 = vmatmul.mubr.bf16.vlgmr.msra.gmra.mrb[128].mxu1 %v3995_v7  ;;  %v17449_v0 = vsel %vm3008_vm8, %v3960_v31, %v19997_v45  ;;  %v17453_v29 = vsel %vm936_vm4, %v4019_v18, %v4020_v13  ;;  %v4023_v26 = vrot.slane %v17332_v11, 6  ;;  %v17463_v61 = vsel %vm936_vm4, %v19998_v59, %v4019_v18 }
 0x5b0   :  { %4562 = vmatprep.mubr.bf16.mxu1 %v4052_v16  ;;  %12701 = vmatpush3.bf16.msra.mxu1 %v17094_v5  ;;  %v4024_v7 = vrot.slane %v17345_v20, 6  ;;  %v17472_v5 = vsel %vm1235_vm6, %v4089_v50, %v4090_v14  ;;  %v19999_v45 = vrot.slane %v17187_v8, 2  ;;  %v3968_v59 = vrot.slane %v17345_v20, 4 }
 0x5b1   :  { %12702 = vmatprep.subr.bf16.mxu1 %v13453_v52  ;;  %v20000_v31 = vpack.c.bf16 %v17252_v53, %v17232_v15  ;;  %v20001_v16 = vrot.slane %v17281_v9, 4  ;;  %v3967_v15 = vrot.slane %v17332_v11, 4  ;;  %v20004_v39 = vrot.slane %v17297_v34, 6 }
 0x5b2   :  { %v17478_v18 = vsel %vm1235_vm6, %v4090_v14, %v19999_v45  ;;  %v20003_v14 = vrot.slane %v17252_v53, 4  ;;  %v20005_v21 = vrot.slane %v17277_v36, 6  ;;  %v20007_v4 = vrot.slane %v17297_v34, 4 }
 0x5b3   :  { %4676 = vmatmul.mubr.bf16.gmra.mrb[156].mxu0 %v20000_v31  ;;  %v17490_v50 = vsel %vm3008_vm8, %v20001_v16, %v3964_v62  ;;  %v20002_v8 = vmov %v20001_v16  ;;  %v4029_v31 = vsel %vm936_vm4, %v4023_v26, %v4024_v7  ;;  %v20010_v63 = vrot.slane %v17297_v34, 6 }
 0x5b4   :  { %v17498_v45 = vsel %vm3008_vm8, %v20003_v14, %v20002_v8  ;;  %4683 = vmatprep.mubr.bf16.mxu0 %v4119_v23  ;;  %v17509_v16 = vsel %vm936_vm4, %v20005_v21, %v20004_v39  ;;  %v20006_v53 = vmov %v20005_v21  ;;  %v3969_v14 = vrot.slane %v17330_v1, 4  ;;  %12703 = vmatpush3.bf16.msra.mxu1 %v13453_v52 }
 0x5b5   :  { %v17515_v8 = vsel %vm936_vm4, %v4020_v13, %v20006_v53  ;;  %v20008_v21 = vrot.slane %v17277_v36, 4  ;;  %v4025_v13 = vrot.slane %v17330_v1, 6  ;;  %12704 = vmatprep.subr.bf16.mxu1 %v13454_v27  ;;  %v13455_v53 = vld [vmem:[#allocation9 + $0x118] sm:$0xff]   ;;  %v4030_v2 = vsel %vm936_vm4, %v20010_v63, %v4023_v26 }
 0x5b6   :  { %v4049_v57 = vpack.c.bf16 %v4029_v31, %v4030_v2  ;;  %v20013_v63 = vrot.slane %v17340_v3, 6  ;;  %v20014_v2 = vrot.slane %v17340_v3, 4  ;;  %v13456_v31 = vld [vmem:[#allocation9 + $0x120] sm:$0xff]  }
 0x5b7   :  { %v17528_v39 = vsel %vm3008_vm8, %v20008_v21, %v20007_v4  ;;  %v20009_v52 = vmov %v20008_v21  ;;  %v20011_v4 = vpack.c.bf16 %v17311_v24, %v17325_v10  ;;  %4563 = vmatmul.mubr.bf16.gmra.mrb[132].mxu1 %v3996_v58  ;;  %v4028_v26 = vsel %vm936_vm4, %v4024_v7, %v4025_v13 }
 0x5b8   :  { %v17535_v23 = vsel %vm3008_vm8, %v3964_v62, %v20009_v52  ;;  %v17551_v62 = vsel %vm3008_vm8, %v3967_v15, %v3968_v59  ;;  %v20012_v52 = vrot.slane %v17297_v34, 4  ;;  %v17569_v24 = vsel %vm3008_vm8, %v3969_v14, %v20014_v2  ;;  %12705 = vmatpush3.bf16.msra.mxu1 %v13454_v27  ;;  %v20038_v2 = vld [vmem:[#allocation54_spill] sm:$0xff] }
 0x5b9   :  { %v4053_v21 = vmul.bf16 %v20011_v4, %v15480_v43  ;;  %v3992_v49 = vpack.c.bf16 %v17528_v39, %v17535_v23  ;;  %v4027_v43 = vsel %vm936_vm4, %v4025_v13, %v20013_v63  ;;  %v20015_v10 = vpack.c.bf16 %v17373_v25, %v17383_v60  ;;  %12706 = vmatprep.subr.bf16.mxu1 %v13455_v53 }
 0x5ba   :  { %v17557_v37 = vsel %vm3008_vm8, %v20012_v52, %v3967_v15  ;;  %v4050_v4 = vpack.c.bf16 %v4027_v43, %v4028_v26  ;;  %v17579_v7 = vsel %vm3008_vm8, %v3968_v59, %v3969_v14  ;;  %v4131_v13 = vpack.c.bf16 %v17250_v28, %v17223_v51  ;;  %v13457_v59 = vld [vmem:[#allocation9 + $0x128] sm:$0xff]  }
 0x5bb   :  { %4570 = vmatprep.mubr.bf16.mxu1 %v4053_v21  ;;  %v4120_v58 = vmul.bf16 %v20015_v10, %v19942_v41  ;;  %v3993_v15 = vpack.c.bf16 %v17551_v62, %v17557_v37  ;;  %v4133_v21 = vpack.c.bf16 %v17449_v0, %v17387_v44  ;;  %v20016_v41 = vpack.c.bf16 %v17291_v54, %v17281_v9  ;;  %v20037_v43 = vld [vmem:[#allocation48_spill] sm:$0xff]  ;;  %v20039_v10 = vld [vmem:[#allocation33_spill] sm:$0xff] }
 0x5bc   :  { %v3994_v60 = vpack.c.bf16 %v17569_v24, %v17579_v7  ;;  %v4134_v25 = vpack.c.bf16 %v17498_v45, %v17440_v42  ;;  %v4135_v27 = vpack.c.bf16 %v17535_v23, %v17490_v50  ;;  %v4136_v51 = vpack.c.bf16 %v17557_v37, %v17528_v39  ;;  %12707 = vmatpush3.bf16.msra.mxu1 %v13455_v53 }
 0x5bd   :  { %4684 = vmatmul.mubr.bf16.gmra.mrb[160].mxu0 %v20016_v41  ;;  %v4137_v28 = vpack.c.bf16 %v17579_v7, %v17551_v62  ;;  %v20017_v9 = vpack.c.bf16 %v17387_v44, %v17395_v30  ;;  %12708 = vmatprep.subr.bf16.mxu1 %v13456_v31  ;;  %v4138_v14 = vpack.c.bf16 %v17361_v38, %v17569_v24  ;;  %v13458_v44 = vld [vmem:[#allocation9 + $0x130] sm:$0xff]  }
 0x5be   :  { %4691 = vmatprep.mubr.bf16.mxu0 %v4120_v58  ;;  %v20018_v23 = vpack.c.bf16 %v17403_v6, %v17411_v32  ;;  %v20019_v37 = vpack.c.bf16 %v17426_v35, %v17432_v22  ;;  %v20020_v53 = vpack.c.bf16 %v17297_v34, %v17277_v36  ;;  %v13459_v6 = vld [vmem:[#allocation9 + $0x138] sm:$0xff]   ;;  %v20022_v32 = vpack.c.bf16 %v17453_v29, %v17463_v61  ;;  %v20029_v61 = vld [vmem:[#allocation44_spill] sm:$0xff] }
 0x5bf   :  { %v3997_v54 = vmul.bf16 %v20017_v9, %v16955_v19  ;;  %v20023_v36 = vpack.c.bf16 %v17478_v18, %v17472_v5  ;;  %v20025_v35 = vpack.c.bf16 %v17490_v50, %v17498_v45  ;;  %v20026_v22 = vpack.c.bf16 %v17509_v16, %v17515_v8  ;;  %v20030_v18 = vld [vmem:[#allocation52_spill] sm:$0xff]  ;;  %v20032_v16 = vld [vmem:[#allocation46_spill] sm:$0xff] }
 0x5c0   :  { %v4054_v52 = vmul.bf16 %v20018_v23, %v15484_v55  ;;  %12709 = vmatpush3.bf16.msra.mxu1 %v13456_v31  ;;  %v4121_v39 = vmul.bf16 %v20019_v37, %v19944_v33  ;;  %v20021_v55 = vpack.c.bf16 %v17440_v42, %v17449_v0  ;;  %v4055_v33 = vmul.bf16 %v20022_v32, %v19858_v46  ;;  %v20031_v45 = vld [vmem:[#allocation60_spill] sm:$0xff]  ;;  %v13463_v41 = vld [vmem:[#allocation11 + $0x10] ss:$8 sps:$4 sm:$0xff]   ;;  %v13495_v32 = vld [vmem:[#allocation11 + $0xb4] ss:$8 sps:$4 sm:$0xff]  }
 0x5c1   :  { %4571 = vmatmul.mubr.bf16.gmra.mrb[136].mxu1 %v3997_v54  ;;  %12710 = vmatprep.subr.bf16.mxu1 %v13457_v59  ;;  %v4122_v34 = vmul.bf16 %v20023_v36, %v19946_v48  ;;  %v20024_v42 = vpack.c.bf16 %v17345_v20, %v17332_v11  ;;  %v3999_v46 = vmul.bf16 %v20025_v35, %v16999_v47  ;;  %v20028_v20 = vld [vmem:[#allocation45_spill] sm:$0xff]  ;;  %v13474_v9 = vld [vmem:[#allocation11 + $0x44] ss:$8 sps:$4 sm:$0xff]   ;;  %v13496_v36 = vld [vmem:[#allocation11 + $0xc0] ss:$8 sps:$4 sm:$0xff]  }
 0x5c2   :  { %4578 = vmatprep.mubr.bf16.mxu1 %v4054_v52  ;;  %v3998_v38 = vmul.bf16 %v20021_v55, %v16977_v40  ;;  %v4056_v0 = vmul.bf16 %v20026_v22, %v19923_v12  ;;  %v20027_v48 = vpack.c.bf16 %v17340_v3, %v17330_v1  ;;  %v4000_v11 = vmul.bf16 %v3992_v49, %v17014_v17  ;;  %v20033_v1 = vld [vmem:[#allocation51_spill] sm:$0xff]  ;;  %v20034_v3 = vld [vmem:[#allocation61_spill] sm:$0xff] }
 0x5c3   :  { %v4057_v29 = vmul.bf16 %v4049_v57, %v20028_v20  ;;  %v4001_v5 = vmul.bf16 %v3993_v15, %v20029_v61  ;;  %v4058_v50 = vmul.bf16 %v4050_v4, %v20030_v18  ;;  %v4002_v12 = vmul.bf16 %v3994_v60, %v20031_v45  ;;  %v20036_v57 = vld [vmem:[#allocation49_spill] sm:$0xff]  ;;  %v20040_v15 = vld [vmem:[#allocation30_spill] sm:$0xff]  ;;  %v20041_v4 = vld [vmem:[#allocation31_spill] sm:$0xff] }
 0x5c4   :  { %12711 = vmatpush3.bf16.msra.mxu1 %v13457_v59  ;;  %v4139_v8 = vmul.bf16 %v4131_v13, %v20032_v16  ;;  %v20035_v49 = vpack.c.bf16 %v17395_v30, %v20034_v3  ;;  %v4141_v63 = vmul.bf16 %v4133_v21, %v20036_v57  ;;  %v4142_v26 = vmul.bf16 %v4134_v25, %v20037_v43  ;;  %v13460_v30 = vld [vmem:[#allocation11] ss:$8 sps:$4 sm:$0xff]   ;;  %v13462_v13 = vld [vmem:[#allocation11 + $0x4] ss:$8 sps:$4 sm:$0xff]   ;;  %v13465_v21 = vld [vmem:[#allocation11 + $0x14] ss:$8 sps:$4 sm:$0xff]  }
 0x5c5   :  { %4692 = vmatmul.mubr.bf16.gmra.mrb[164].mxu0 %v20020_v53  ;;  %12712 = vmatprep.subr.bf16.mxu1 %v13458_v44  ;;  %v4143_v24 = vmul.bf16 %v4135_v27, %v20038_v2  ;;  %v4144_v58 = vmul.bf16 %v4136_v51, %v20039_v10  ;;  %v4145_v31 = vmul.bf16 %v4137_v28, %v20040_v15  ;;  %v13466_v60 = vld [vmem:[#allocation11 + $0x20] ss:$8 sps:$4 sm:$0xff]   ;;  %v13468_v25 = vld [vmem:[#allocation11 + $0x24] ss:$8 sps:$4 sm:$0xff]   ;;  %v13471_v27 = vld [vmem:[#allocation11 + $0x34] ss:$8 sps:$4 sm:$0xff]  }
 0x5c6   :  { %4699 = vmatprep.mubr.bf16.mxu0 %v4121_v39  ;;  %v4140_v62 = vmul.bf16 %v20035_v49, %v20033_v1  ;;  %v4146_v7 = vmul.bf16 %v4138_v14, %v20041_v4  ;;  %5593 = vmatprep.subr.bf16.mxu0 %v13462_v13  ;;  %v13469_v51 = vld [vmem:[#allocation11 + $0x30] ss:$8 sps:$4 sm:$0xff]   ;;  %v13472_v28 = vld [vmem:[#allocation11 + $0x40] ss:$8 sps:$4 sm:$0xff]   ;;  %v13477_v54 = vld [vmem:[#allocation11 + $0x54] ss:$8 sps:$4 sm:$0xff]  }
 0x5c7   :  { %5594 = vmatpush1.bf16.msra.mxu0 %v13460_v30  ;;  %v13475_v59 = vld [vmem:[#allocation11 + $0x50] ss:$8 sps:$4 sm:$0xff]   ;;  %v13478_v14 = vld [vmem:[#allocation11 + $0x60] ss:$8 sps:$4 sm:$0xff]   ;;  %v13480_v23 = vld [vmem:[#allocation11 + $0x64] ss:$8 sps:$4 sm:$0xff]  }
 0x5c8   :  { %12713 = vmatpush3.bf16.msra.mxu1 %v13458_v44  ;;  %5595 = vmatprep.subr.bf16.mxu0 %v13465_v21  ;;  %v13483_v52 = vld [vmem:[#allocation11 + $0x74] ss:$8 sps:$4 sm:$0xff]   ;;  %v13481_v37 = vld [vmem:[#allocation11 + $0x70] ss:$8 sps:$4 sm:$0xff]   ;;  %v13484_v39 = vld [vmem:[#allocation11 + $0x80] ss:$8 sps:$4 sm:$0xff]  }
 0x5c9   :  { %4579 = vmatmul.mubr.bf16.gmra.mrb[140].mxu1 %v3998_v38  ;;  %12714 = vmatprep.subr.bf16.mxu1 %v13459_v6  ;;  %v13486_v44 = vld [vmem:[#allocation11 + $0x84] ss:$8 sps:$4 sm:$0xff]   ;;  %v13489_v53 = vld [vmem:[#allocation11 + $0x94] ss:$8 sps:$4 sm:$0xff]   ;;  %v13487_v55 = vld [vmem:[#allocation11 + $0x90] ss:$8 sps:$4 sm:$0xff]  }
 0x5ca   :  { %4586 = vmatprep.mubr.bf16.mxu1 %v4055_v33  ;;  %v13490_v38 = vld [vmem:[#allocation11 + $0xa0] ss:$8 sps:$4 sm:$0xff]   ;;  %v13493_v33 = vld [vmem:[#allocation11 + $0xb0] ss:$8 sps:$4 sm:$0xff]   ;;  %v13501_v35 = vld [vmem:[#allocation11 + $0xd4] ss:$8 sps:$4 sm:$0xff]  }
 0x5cb   :  { %5596 = vmatpush1.bf16.msra.mxu0 %v13463_v41  ;;  %v13502_v22 = vld [vmem:[#allocation11 + $0xe0] ss:$8 sps:$4 sm:$0xff]  }
 0x5cc   :  { %12715 = vmatpush3.bf16.msra.mxu1 %v13459_v6  ;;  %5597 = vmatprep.subr.bf16.mxu0 %v13468_v25  ;;  %v13492_v6 = vld [vmem:[#allocation11 + $0xa4] ss:$8 sps:$4 sm:$0xff]   ;;  %v17660_v41 = vld [vmem:[%s19486_s12] ss:$0 sm:$0xff] }
 0x5cd   :  { %4700 = vmatmul.mubr.bf16.gmra.mrb[168].mxu0 %v20024_v42  ;;  %v13499_v42 = vld [vmem:[#allocation11 + $0xd0] ss:$8 sps:$4 sm:$0xff]  }
 0x5ce   :  { %4707 = vmatprep.mubr.bf16.mxu0 %v4122_v34  ;;  %v13498_v34 = vld [vmem:[#allocation11 + $0xc4] ss:$8 sps:$4 sm:$0xff]  }
 0x5cf   :  { %5598 = vmatpush1.bf16.msra.mxu0 %v13466_v60 }
 0x5d0   :  { %5599 = vmatprep.subr.bf16.mxu0 %v13471_v27 }
 0x5d1   :  { %4587 = vmatmul.mubr.bf16.gmra.mrb[144].mxu1 %v3999_v46  ;;  %v13504_v46 = vld [vmem:[#allocation11 + $0xe4] ss:$8 sps:$4 sm:$0xff]  }
 0x5d2   :  { %4594 = vmatprep.mubr.bf16.mxu1 %v4056_v0  ;;  %v13507_v0 = vld [vmem:[#allocation11 + $0xf4] ss:$8 sps:$4 sm:$0xff]  }
 0x5d3   :  { %5600 = vmatpush1.bf16.msra.mxu0 %v13469_v51 }
 0x5d4   :  { %5601 = vmatprep.subr.bf16.mxu0 %v13474_v9 }
 0x5d5   :  { %4708 = vmatmul.mubr.bf16.gmra.mrb[172].mxu0 %v20027_v48 }
 0x5d7   :  { %5602 = vmatpush1.bf16.msra.mxu0 %v13472_v28 }
 0x5d8   :  { %5603 = vmatprep.subr.bf16.mxu0 %v13477_v54 }
 0x5d9   :  { %4595 = vmatmul.mubr.bf16.gmra.mrb[148].mxu1 %v4000_v11  ;;  %v13505_v11 = vld [vmem:[#allocation11 + $0xf0] ss:$8 sps:$4 sm:$0xff]  }
 0x5da   :  { %4602 = vmatprep.mubr.bf16.mxu1 %v4057_v29  ;;  %v13510_v29 = vld [vmem:[#allocation11 + $0x104] ss:$8 sps:$4 sm:$0xff]  }
 0x5db   :  { %5604 = vmatpush1.bf16.msra.mxu0 %v13475_v59 }
 0x5dc   :  { %5605 = vmatprep.subr.bf16.mxu0 %v13480_v23 }
 0x5df   :  { %5606 = vmatpush1.bf16.msra.mxu0 %v13478_v14 }
 0x5e0   :  { %5607 = vmatprep.subr.bf16.mxu0 %v13483_v52 }
 0x5e1   :  { %4603 = vmatmul.mubr.bf16.gmra.mrb[152].mxu1 %v4001_v5 }
 0x5e2   :  { %4610 = vmatprep.mubr.bf16.mxu1 %v4058_v50 }
 0x5e3   :  { %5608 = vmatpush1.bf16.msra.mxu0 %v13481_v37 }
 0x5e4   :  { %5609 = vmatprep.subr.bf16.mxu0 %v13486_v44 }
 0x5e7   :  { %5610 = vmatpush1.bf16.msra.mxu0 %v13484_v39 }
 0x5e8   :  { %5611 = vmatprep.subr.bf16.mxu0 %v13489_v53 }
 0x5e9   :  { %4611 = vmatmul.mubr.bf16.gmra.mrb[156].mxu1 %v4002_v12 }
 0x5ea   :  { %12716 = vmatprep.mubr.bf16.mxu1 %v4139_v8 }
 0x5eb   :  { %5612 = vmatpush1.bf16.msra.mxu0 %v13487_v55 }
 0x5ec   :  { %5613 = vmatprep.subr.bf16.mxu0 %v13492_v6 }
 0x5ef   :  { %5614 = vmatpush1.bf16.msra.mxu0 %v13490_v38 }
 0x5f0   :  { %5615 = vmatprep.subr.bf16.mxu0 %v13495_v32 }
 0x5f1   :  { %12717 = vmatmul.mubr.bf16.vlgmr.msra.gmra.mrb[160].mxu1 %v4140_v62 }
 0x5f2   :  { %12720 = vmatprep.mubr.bf16.mxu1 %v4141_v63 }
 0x5f3   :  { %5616 = vmatpush1.bf16.msra.mxu0 %v13493_v33 }
 0x5f4   :  { %5617 = vmatprep.subr.bf16.mxu0 %v13498_v34 }
 0x5f7   :  { %5618 = vmatpush1.bf16.msra.mxu0 %v13496_v36 }
 0x5f8   :  { %5619 = vmatprep.subr.bf16.mxu0 %v13501_v35 }
 0x5f9   :  { %12721 = vmatmul.mubr.bf16.gmra.mrb[164].mxu1 %v4142_v26 }
 0x5fa   :  { %12724 = vmatprep.mubr.bf16.mxu1 %v4143_v24 }
 0x5fb   :  { %5620 = vmatpush1.bf16.msra.mxu0 %v13499_v42 }
 0x5fc   :  { %5621 = vmatprep.subr.bf16.mxu0 %v13504_v46 }
 0x5ff   :  { %5622 = vmatpush1.bf16.msra.mxu0 %v13502_v22 }
 0x600   :  { %5623 = vmatprep.subr.bf16.mxu0 %v13507_v0 }
 0x601   :  { %12725 = vmatmul.mubr.bf16.gmra.mrb[168].mxu1 %v4144_v58 }
 0x602   :  { %12728 = vmatprep.mubr.bf16.mxu1 %v4145_v31 }
 0x603   :  { %5624 = vmatpush1.bf16.msra.mxu0 %v13505_v11 }
 0x604   :  { %5706 = vmatprep.subr.bf16.mxu0 %v13510_v29 }
 0x609   :  { %12729 = vmatmul.mubr.bf16.gmra.mrb[172].mxu1 %v4146_v7 }
 0x66d   :  { %v12507_v48 = vpop.f32.mrb[144].mxu0 }
 0x66e   :  { %v12508_v20 = vpop.f32.mrb[145].mxu0 }
 0x66f   :  { %v12509_v5 = vadd.f32 %v12508_v20, %v12507_v48  ;;  %v12510_v18 = vpop.f32.mrb[146].mxu0 }
 0x670   :  { %v12511_v50 = vpop.f32.mrb[147].mxu0 }
 0x671   :  { %v12512_v12 = vadd.f32 %v12511_v50, %v12510_v18 }
 0x675   :  { %v12513_v8 = vpop.f32.mrb[148].mxu0 }
 0x676   :  { %v12514_v3 = vpop.f32.mrb[149].mxu0 }
 0x677   :  { %v12515_v49 = vadd.f32 %v12514_v3, %v12513_v8  ;;  %v12516_v62 = vpop.f32.mrb[150].mxu0 }
 0x678   :  { %v12517_v63 = vpop.f32.mrb[151].mxu0 }
 0x679   :  { %v12518_v26 = vadd.f32 %v12517_v63, %v12516_v62 }
 0x67d   :  { %v12519_v24 = vpop.f32.mrb[152].mxu0 }
 0x67e   :  { %v12520_v58 = vpop.f32.mrb[153].mxu0 }
 0x67f   :  { %v12521_v31 = vadd.f32 %v12520_v58, %v12519_v24  ;;  %v12522_v7 = vpop.f32.mrb[154].mxu0 }
 0x680   :  { %v12523_v30 = vpop.f32.mrb[155].mxu0 }
 0x681   :  { %v12524_v13 = vadd.f32 %v12523_v30, %v12522_v7 }
 0x682   :  { %v12443_v21 = vpop.f32.mrb[128].mxu1 }
 0x683   :  { %v12444_v60 = vpop.f32.mrb[129].mxu1 }
 0x684   :  { %v12445_v25 = vadd.f32 %v12444_v60, %v12443_v21  ;;  %v12446_v27 = vpop.f32.mrb[130].mxu1 }
 0x685   :  { %v12447_v28 = vpop.f32.mrb[131].mxu1 }
 0x686   :  { %v12525_v51 = vpop.f32.mrb[156].mxu0  ;;  %v4557_v9 = vadd.f32 %v12445_v25, %v17660_v41  ;;  %v12448_v59 = vadd.f32 %v12447_v28, %v12446_v27 }
 0x687   :  { %v12526_v54 = vpop.f32.mrb[157].mxu0 }
 0x688   :  { %v12527_v14 = vadd.f32 %v12526_v54, %v12525_v51  ;;  %v12528_v23 = vpop.f32.mrb[158].mxu0  ;;  %v4560_v52 = vadd.f32 %v12448_v59, %v17660_v41  ;;  %v17664_v39 = vadd.f32 %v12509_v5, %v4557_v9 }
 0x689   :  { %v12529_v37 = vpop.f32.mrb[159].mxu0 }
 0x68a   :  { %v12530_v44 = vadd.f32 %v12529_v37, %v12528_v23  ;;  %v12449_v53 = vpop.f32.mrb[132].mxu1  ;;  %v17666_v55 = vadd.f32 %v12512_v12, %v4560_v52 }
 0x68b   :  { %v12450_v38 = vpop.f32.mrb[133].mxu1 }
 0x68c   :  { %v12451_v6 = vadd.f32 %v12450_v38, %v12449_v53  ;;  %v12452_v32 = vpop.f32.mrb[134].mxu1 }
 0x68d   :  { %v12453_v36 = vpop.f32.mrb[135].mxu1 }
 0x68e   :  { %v4565_v34 = vadd.f32 %v12451_v6, %v17660_v41  ;;  %v12454_v35 = vadd.f32 %v12453_v36, %v12452_v32 }
 0x690   :  { %v12531_v33 = vpop.f32.mrb[160].mxu0  ;;  %v4568_v0 = vadd.f32 %v12454_v35, %v17660_v41  ;;  %v17670_v11 = vadd.f32 %v12515_v49, %v4565_v34 }
 0x691   :  { %v12532_v42 = vpop.f32.mrb[161].mxu0 }
 0x692   :  { %v12533_v46 = vadd.f32 %v12532_v42, %v12531_v33  ;;  %v12534_v22 = vpop.f32.mrb[162].mxu0  ;;  %v17672_v5 = vadd.f32 %v12518_v26, %v4568_v0 }
 0x693   :  { %v12535_v48 = vpop.f32.mrb[163].mxu0 }
 0x694   :  { %v12536_v20 = vadd.f32 %v12535_v48, %v12534_v22  ;;  %v12455_v29 = vpop.f32.mrb[136].mxu1 }
 0x695   :  { %v12456_v18 = vpop.f32.mrb[137].mxu1 }
 0x696   :  { %v12457_v50 = vadd.f32 %v12456_v18, %v12455_v29  ;;  %v12458_v12 = vpop.f32.mrb[138].mxu1 }
 0x697   :  { %v12459_v3 = vpop.f32.mrb[139].mxu1 }
 0x698   :  { %v12537_v8 = vpop.f32.mrb[164].mxu0  ;;  %v4573_v62 = vadd.f32 %v12457_v50, %v17660_v41  ;;  %v12460_v24 = vadd.f32 %v12459_v3, %v12458_v12 }
 0x699   :  { %v12538_v63 = vpop.f32.mrb[165].mxu0 }
 0x69a   :  { %v12539_v58 = vadd.f32 %v12538_v63, %v12537_v8  ;;  %v12540_v7 = vpop.f32.mrb[166].mxu0  ;;  %v4576_v30 = vadd.f32 %v12460_v24, %v17660_v41  ;;  %v17676_v49 = vadd.f32 %v12521_v31, %v4573_v62 }
 0x69b   :  { %v12541_v21 = vpop.f32.mrb[167].mxu0 }
 0x69c   :  { %v12542_v60 = vadd.f32 %v12541_v21, %v12540_v7  ;;  %v12461_v25 = vpop.f32.mrb[140].mxu1  ;;  %v17678_v26 = vadd.f32 %v12524_v13, %v4576_v30 }
 0x69d   :  { %v12462_v27 = vpop.f32.mrb[141].mxu1 }
 0x69e   :  { %v12463_v51 = vadd.f32 %v12462_v27, %v12461_v25  ;;  %v12464_v28 = vpop.f32.mrb[142].mxu1 }
 0x69f   :  { %v12465_v54 = vpop.f32.mrb[143].mxu1 }
 0x6a0   :  { %v12543_v9 = vpop.f32.mrb[168].mxu0  ;;  %v4581_v59 = vadd.f32 %v12463_v51, %v17660_v41  ;;  %v12466_v52 = vadd.f32 %v12465_v54, %v12464_v28 }
 0x6a1   :  { %v12544_v23 = vpop.f32.mrb[169].mxu0 }
 0x6a2   :  { %v12545_v37 = vadd.f32 %v12544_v23, %v12543_v9  ;;  %v12546_v53 = vpop.f32.mrb[170].mxu0  ;;  %v4584_v38 = vadd.f32 %v12466_v52, %v17660_v41  ;;  %v17682_v31 = vadd.f32 %v12527_v14, %v4581_v59 }
 0x6a3   :  { %v12547_v6 = vpop.f32.mrb[171].mxu0 }
 0x6a4   :  { %v12548_v32 = vadd.f32 %v12547_v6, %v12546_v53  ;;  %v12467_v33 = vpop.f32.mrb[144].mxu1  ;;  %v17684_v13 = vadd.f32 %v12530_v44, %v4584_v38 }
 0x6a5   :  { %v12468_v36 = vpop.f32.mrb[145].mxu1 }
 0x6a6   :  { %v12469_v34 = vadd.f32 %v12468_v36, %v12467_v33  ;;  %v12470_v42 = vpop.f32.mrb[146].mxu1 }
 0x6a7   :  { %v12471_v22 = vpop.f32.mrb[147].mxu1 }
 0x6a8   :  { %v12549_v35 = vpop.f32.mrb[172].mxu0  ;;  %v4589_v0 = vadd.f32 %v12469_v34, %v17660_v41  ;;  %v12472_v29 = vadd.f32 %v12471_v22, %v12470_v42 }
 0x6a9   :  { %v12550_v48 = vpop.f32.mrb[173].mxu0 }
 0x6aa   :  { %v12551_v18 = vadd.f32 %v12550_v48, %v12549_v35  ;;  %v12552_v50 = vpop.f32.mrb[174].mxu0  ;;  %v4592_v12 = vadd.f32 %v12472_v29, %v17660_v41  ;;  %v17688_v14 = vadd.f32 %v12533_v46, %v4589_v0 }
 0x6ab   :  { %v12553_v8 = vpop.f32.mrb[175].mxu0 }
 0x6ac   :  { %v12554_v3 = vadd.f32 %v12553_v8, %v12552_v50  ;;  %v12473_v62 = vpop.f32.mrb[148].mxu1  ;;  %v17690_v44 = vadd.f32 %v12536_v20, %v4592_v12  ;;  %v20042_v8 = vld [vmem:[#allocation36_spill] sm:$0xff] }
 0x6ad   :  { %v12474_v63 = vpop.f32.mrb[149].mxu1 }
 0x6ae   :  { %v12475_v24 = vadd.f32 %v12474_v63, %v12473_v62  ;;  %v12476_v7 = vpop.f32.mrb[150].mxu1 }
 0x6af   :  { %v12477_v30 = vpop.f32.mrb[151].mxu1 }
 0x6b0   :  { %v4597_v21 = vadd.f32 %v12475_v24, %v17660_v41  ;;  %v12478_v25 = vadd.f32 %v12477_v30, %v12476_v7  ;;  %v20043_v7 = vld [vmem:[#allocation32_spill] sm:$0xff] }
 0x6b2   :  { %v4600_v27 = vadd.f32 %v12478_v25, %v17660_v41  ;;  %v17694_v51 = vadd.f32 %v12539_v58, %v4597_v21  ;;  %v20044_v21 = vld [vmem:[#allocation42_spill] sm:$0xff] }
 0x6b4   :  { %v12479_v28 = vpop.f32.mrb[152].mxu1  ;;  %v17696_v9 = vadd.f32 %v12542_v60, %v4600_v27  ;;  %v20045_v27 = vld [vmem:[#allocation56_spill] sm:$0xff] }
 0x6b5   :  { %v12480_v46 = vpop.f32.mrb[153].mxu1 }
 0x6b6   :  { %v12481_v54 = vadd.f32 %v12480_v46, %v12479_v28  ;;  %v12482_v59 = vpop.f32.mrb[154].mxu1 }
 0x6b7   :  { %v12483_v23 = vpop.f32.mrb[155].mxu1 }
 0x6b8   :  { %v4605_v20 = vadd.f32 %v12481_v54, %v17660_v41  ;;  %v12484_v52 = vadd.f32 %v12483_v23, %v12482_v59 }
 0x6ba   :  { %v4608_v53 = vadd.f32 %v12484_v52, %v17660_v41  ;;  %v17700_v38 = vadd.f32 %v12545_v37, %v4605_v20 }
 0x6bc   :  { %v12485_v6 = vpop.f32.mrb[156].mxu1  ;;  %v17702_v33 = vadd.f32 %v12548_v32, %v4608_v53 }
 0x6bd   :  { %v12486_v36 = vpop.f32.mrb[157].mxu1 }
 0x6be   :  { %v12487_v58 = vadd.f32 %v12486_v36, %v12485_v6  ;;  %v12488_v34 = vpop.f32.mrb[158].mxu1 }
 0x6bf   :  { %v12489_v42 = vpop.f32.mrb[159].mxu1 }
 0x6c0   :  { %v4613_v60 = vadd.f32 %v12487_v58, %v17660_v41  ;;  %v12490_v35 = vadd.f32 %v12489_v42, %v12488_v34  ;;  %v20048_v34 = vld [vmem:[#allocation29_spill] sm:$0xff] }
 0x6c2   :  { %v4616_v22 = vadd.f32 %v12490_v35, %v17660_v41  ;;  %v17706_v0 = vadd.f32 %v12551_v18, %v4613_v60 }
 0x6c4   :  { %v12718_v48 = vpop.f32.mrb[160].mxu1  ;;  %v17708_v29 = vadd.f32 %v12554_v3, %v4616_v22  ;;  %v20049_v22 = vld [vmem:[#allocation47_spill] sm:$0xff] }
 0x6c5   :  { %v4759_v37 = vadd.f32 %v12718_v48, %v17670_v11  ;;  %v4750_v50 = vpop.f32.mrb[161].mxu1 }
 0x6c6   :  { %v4751_v32 = vadd.f32 %v4750_v50, %v17664_v39  ;;  %v12719_v12 = vpop.f32.mrb[162].mxu1 }
 0x6c7   :  { %v4815_v62 = vadd.f32 %v4759_v37, %v20042_v8  ;;  %v4762_v63 = vadd.f32 %v12719_v12, %v17672_v5  ;;  %v4753_v24 = vpop.f32.mrb[163].mxu1 }
 0x6c8   :  { %v4813_v30 = vadd.f32 %v4751_v32, %v20043_v7  ;;  %v4754_v41 = vadd.f32 %v4753_v24, %v17666_v55  ;;  %v20050_v32 = vld [vmem:[#allocation53_spill] sm:$0xff] }
 0x6c9   :  { %v4831_v18 = vmax.f32 %v4815_v62, 0.0  ;;  %v4816_v25 = vadd.f32 %v4762_v63, %v20044_v21  ;;  %v20051_v63 = vld [vmem:[#allocation28_spill] sm:$0xff] }
 0x6ca   :  { %v17717_v3 = vmax.f32 %v4813_v30, 0.0  ;;  %v4814_v11 = vadd.f32 %v4754_v41, %v20045_v27 }
 0x6cb   :  { %v4832_v28 = vmax.f32 %v4816_v25, 0.0  ;;  %v4919_v46 = vrot.slane %v4831_v18, 4 }
 0x6cc   :  { %v4830_v39 = vmax.f32 %v4814_v11, 0.0  ;;  %v12722_v54 = vpop.f32.mrb[164].mxu1  ;;  %v4917_v59 = vrot.slane %v17717_v3, 4 }
 0x6cd   :  { %v4920_v23 = vrot.slane %v4832_v28, 4  ;;  %v4775_v5 = vadd.f32 %v12722_v54, %v17682_v31  ;;  %v4766_v20 = vpop.f32.mrb[165].mxu1  ;;  %v17722_v52 = vpack.c.bf16 %v4832_v28, %v4831_v18 }
 0x6ce   :  { %v17725_v55 = vpack.c.bf16 %v4830_v39, %v17717_v3  ;;  %v4918_v53 = vrot.slane %v4830_v39, 4  ;;  %v4767_v6 = vadd.f32 %v4766_v20, %v17676_v49  ;;  %v12723_v36 = vpop.f32.mrb[166].mxu1  ;;  %v17728_v58 = vpack.c.bf16 %v4831_v18, %v4830_v39 }
 0x6cf   :  { %20046 = vst [vmem:[#allocation45_spill] sm:$0xff] %v17722_v52  ;;  %v4819_v42 = vadd.f32 %v4775_v5, %v20048_v34  ;;  %v4778_v60 = vadd.f32 %v12723_v36, %v17684_v13  ;;  %v4769_v35 = vpop.f32.mrb[167].mxu1  ;;  %v17734_v31 = vsel %vm3008_vm8, %v4919_v46, %v4920_v23 }
 0x6d0   :  { %20047 = vst [vmem:[#allocation52_spill] sm:$0xff] %v17725_v55  ;;  %v4817_v48 = vadd.f32 %v4767_v6, %v20049_v22  ;;  %v4770_v37 = vadd.f32 %v4769_v35, %v17678_v26  ;;  %v17742_v49 = vsel %vm3008_vm8, %v4917_v59, %v4918_v53  ;;  %v17746_v50 = vsel %vm3008_vm8, %v4918_v53, %v4919_v46  ;;  %v20053_v6 = vld [vmem:[#allocation40_spill] sm:$0xff] }
 0x6d1   :  { %v4835_v13 = vmax.f32 %v4819_v42, 0.0  ;;  %v4820_v12 = vadd.f32 %v4778_v60, %v20050_v32  ;;  %v4950_v8 = vpack.c.bf16 %v17734_v31, %v17746_v50  ;;  %v20054_v60 = vld [vmem:[#allocation38_spill] sm:$0xff] }
 0x6d2   :  { %v4833_v62 = vmax.f32 %v4817_v48, 0.0  ;;  %v4818_v24 = vadd.f32 %v4770_v37, %v20051_v63  ;;  %v20055_v48 = vld [vmem:[#allocation43_spill] sm:$0xff] }
 0x6d3   :  { %v4836_v7 = vmax.f32 %v4820_v12, 0.0  ;;  %v4923_v25 = vrot.slane %v4835_v13, 4  ;;  %v20056_v63 = vld [vmem:[#allocation35_spill] sm:$0xff] }
 0x6d4   :  { %v4921_v30 = vrot.slane %v4833_v62, 4  ;;  %v4834_v41 = vmax.f32 %v4818_v24, 0.0  ;;  %v12726_v18 = vpop.f32.mrb[168].mxu1  ;;  %v17754_v21 = vpack.c.bf16 %v4833_v62, %v4832_v28 }
 0x6d5   :  { %v4924_v27 = vrot.slane %v4836_v7, 4  ;;  %v4791_v11 = vadd.f32 %v12726_v18, %v17694_v51  ;;  %v4782_v46 = vpop.f32.mrb[169].mxu1  ;;  %v17757_v39 = vpack.c.bf16 %v4836_v7, %v4835_v13 }
 0x6d6   :  { %v4922_v54 = vrot.slane %v4834_v41, 4  ;;  %v4783_v5 = vadd.f32 %v4782_v46, %v17688_v14  ;;  %v12727_v20 = vpop.f32.mrb[170].mxu1  ;;  %v17762_v53 = vsel %vm3008_vm8, %v4920_v23, %v4921_v30  ;;  %v17770_v51 = vpack.c.bf16 %v4835_v13, %v4834_v41  ;;  %v13513_v13 = vld [vmem:[#allocation11 + $0x114] ss:$8 sps:$4 sm:$0xff]  }
 0x6d7   :  { %20052 = vst [vmem:[#allocation61_spill] sm:$0xff] %v17757_v39  ;;  %v4823_v36 = vadd.f32 %v4791_v11, %v20053_v6  ;;  %v4794_v28 = vadd.f32 %v12727_v20, %v17696_v9  ;;  %v4785_v34 = vpop.f32.mrb[171].mxu1  ;;  %v17768_v42 = vsel %vm3008_vm8, %v4923_v25, %v4924_v27 }
 0x6d8   :  { %v4821_v35 = vadd.f32 %v4783_v5, %v20054_v60  ;;  %v4786_v14 = vadd.f32 %v4785_v34, %v17690_v44  ;;  %v17776_v22 = vsel %vm3008_vm8, %v4921_v30, %v4922_v54  ;;  %v17780_v23 = vsel %vm3008_vm8, %v4922_v54, %v4923_v25 }
 0x6d9   :  { %v4839_v9 = vmax.f32 %v4823_v36, 0.0  ;;  %v4824_v37 = vadd.f32 %v4794_v28, %v20055_v48  ;;  %v4951_v32 = vpack.c.bf16 %v17776_v22, %v17762_v53  ;;  %v17795_v28 = vpack.c.bf16 %v4834_v41, %v4833_v62  ;;  %v20058_v48 = vld [vmem:[#allocation55_spill] sm:$0xff]  ;;  %v20059_v62 = vld [vmem:[#allocation50_spill] sm:$0xff] }
 0x6da   :  { %v4837_v12 = vmax.f32 %v4821_v35, 0.0  ;;  %v4822_v44 = vadd.f32 %v4786_v14, %v20056_v63 }
 0x6db   :  { %v4840_v30 = vmax.f32 %v4824_v37, 0.0  ;;  %v4927_v18 = vrot.slane %v4839_v9, 4  ;;  %20057 = vst [vmem:[#allocation36_spill] sm:$0xff] %v17795_v28 }
 0x6dc   :  { %v4925_v11 = vrot.slane %v4837_v12, 4  ;;  %v4838_v25 = vmax.f32 %v4822_v44, 0.0  ;;  %v12730_v46 = vpop.f32.mrb[172].mxu1  ;;  %v17790_v54 = vpack.c.bf16 %v4837_v12, %v4836_v7 }
 0x6dd   :  { %v4928_v5 = vrot.slane %v4840_v30, 4  ;;  %v4807_v20 = vadd.f32 %v12730_v46, %v17706_v0  ;;  %v4798_v6 = vpop.f32.mrb[173].mxu1 }
 0x6de   :  { %v4926_v34 = vrot.slane %v4838_v25, 4  ;;  %v4799_v60 = vadd.f32 %v4798_v6, %v17700_v38  ;;  %v12731_v35 = vpop.f32.mrb[174].mxu1  ;;  %v17800_v14 = vsel %vm3008_vm8, %v4924_v27, %v4925_v11  ;;  %v17808_v44 = vpack.c.bf16 %v4839_v9, %v4838_v25 }
 0x6df   :  { %v4827_v7 = vadd.f32 %v4807_v20, %v20058_v48  ;;  %v4810_v37 = vadd.f32 %v12731_v35, %v17708_v29  ;;  %v4801_v63 = vpop.f32.mrb[175].mxu1  ;;  %v17806_v0 = vsel %vm3008_vm8, %v4927_v18, %v4928_v5  ;;  %v20060_v20 = vld [vmem:[#allocation37_spill] sm:$0xff]  ;;  %v13508_v35 = vld [vmem:[#allocation11 + $0x100] ss:$8 sps:$4 sm:$0xff]  }
 0x6e0   :  { %v4825_v41 = vadd.f32 %v4799_v60, %v20059_v62  ;;  %v4802_v38 = vadd.f32 %v4801_v63, %v17702_v33  ;;  %v17814_v46 = vsel %vm3008_vm8, %v4925_v11, %v4926_v34  ;;  %v17818_v27 = vsel %vm3008_vm8, %v4926_v34, %v4927_v18  ;;  %v20061_v62 = vld [vmem:[#allocation34_spill] sm:$0xff]  ;;  %v20064_v18 = vld [vmem:[#allocation57_spill] sm:$0xff] }
 0x6e1   :  { %v4843_v29 = vmax.f32 %v4827_v7, 0.0  ;;  %v4828_v6 = vadd.f32 %v4810_v37, %v20060_v20  ;;  %v17835_v20 = vpack.c.bf16 %v4838_v25, %v4837_v12  ;;  %v17869_v37 = vpop.permute.xlu0 %4863 }
 0x6e2   :  { %v4841_v60 = vmax.f32 %v4825_v41, 0.0  ;;  %v4826_v33 = vadd.f32 %v4802_v38, %v20061_v62  ;;  %20063 = vst [vmem:[#allocation42_spill] sm:$0xff] %v17869_v37 }
 0x6e3   :  { %v4931_v63 = vrot.slane %v4843_v29, 4  ;;  %v4844_v36 = vmax.f32 %v4828_v6, 0.0  ;;  %20062 = vst [vmem:[#allocation32_spill] sm:$0xff] %v17835_v20 }
 0x6e4   :  { %v4929_v11 = vrot.slane %v4841_v60, 4  ;;  %v4842_v24 = vmax.f32 %v4826_v33, 0.0  ;;  %v17826_v26 = vpack.c.bf16 %v4841_v60, %v4840_v30 }
 0x6e5   :  { %v17831_v34 = vpack.c.bf16 %v17717_v3, %v4844_v36  ;;  %v4932_v7 = vrot.slane %v4844_v36, 4 }
 0x6e6   :  { %v4930_v41 = vrot.slane %v4842_v24, 4  ;;  %v17839_v38 = vsel %vm3008_vm8, %v4928_v5, %v4929_v11  ;;  %v17841_v6 = vpack.c.bf16 %v4843_v29, %v4842_v24 }
 0x6e7   :  { %v17847_v62 = vsel %vm3008_vm8, %v4932_v7, %v4917_v59  ;;  %v17851_v33 = vsel %vm3008_vm8, %v4931_v63, %v4932_v7  ;;  %v4901_v3 = vmul.bf16 %v17869_v37, %v17831_v34  ;;  %v20067_v7 = vld [vmem:[#allocation39_spill] sm:$0xff]  ;;  %v13519_v59 = vld [vmem:[#allocation11 + $0x134] ss:$8 sps:$4 sm:$0xff]  }
 0x6e8   :  { %v4949_v12 = vpack.c.bf16 %v17742_v49, %v17847_v62  ;;  %v17857_v25 = vsel %vm3008_vm8, %v4929_v11, %v4930_v41  ;;  %v17861_v5 = vsel %vm3008_vm8, %v4930_v41, %v4931_v63  ;;  %v17872_v11 = vpack.c.bf16 %v4840_v30, %v4839_v9  ;;  %v13516_v30 = vld [vmem:[#allocation11 + $0x124] ss:$8 sps:$4 sm:$0xff]   ;;  %v13514_v63 = vld [vmem:[#allocation11 + $0x120] ss:$8 sps:$4 sm:$0xff]  }
 0x6e9   :  { %v17876_v41 = vpack.c.bf16 %v4842_v24, %v4841_v60  ;;  %v17886_v9 = vpack.c.bf16 %v4844_v36, %v4843_v29  ;;  %v13511_v24 = vld [vmem:[#allocation11 + $0x110] ss:$8 sps:$4 sm:$0xff]   ;;  %v17888_v60 = vpop.permute.xlu1 %4868  ;;  %v17896_v29 = vpop.permute.xlu0 %4873 }
 0x6ea   :  { %v4957_v48 = vmul.bf16 %v4949_v12, %v20064_v18  ;;  %20065 = vst [vmem:[#allocation56_spill] sm:$0xff] %v17872_v11  ;;  %v4958_v12 = vmul.bf16 %v4950_v8, %v20067_v7  ;;  %20069 = vst [vmem:[#allocation53_spill] sm:$0xff] %v17888_v60  ;;  %v4959_v8 = vmul.bf16 %v4951_v32, %v16955_v19  ;;  %v13517_v36 = vld [vmem:[#allocation11 + $0x130] ss:$8 sps:$4 sm:$0xff]  }
 0x6eb   :  { %20066 = vst [vmem:[#allocation29_spill] sm:$0xff] %v17876_v41  ;;  %20068 = vst [vmem:[#allocation47_spill] sm:$0xff] %v17886_v9 }
 0x6ec   :  { %5625 = vmatprep.mubr.bf16.mxu0 %v4957_v48  ;;  %v4902_v48 = vmul.bf16 %v17888_v60, %v17728_v58  ;;  %20070 = vst [vmem:[#allocation28_spill] sm:$0xff] %v17896_v29 }
 0x6ed   :  { %5626 = vmatmul.mubr.bf16.vlgmr.msra.gmra.mrb[176].mxu0 %v4901_v3  ;;  %v4903_v3 = vmul.bf16 %v17896_v29, %v17754_v21 }
 0x6ee   :  { %5635 = vmatprep.mubr.bf16.mxu0 %v4958_v12  ;;  %5707 = vmatpush1.bf16.msra.mxu0 %v13508_v35  ;;  %v13520_v35 = vld [vmem:[#allocation11 + $0x140] ss:$8 sps:$4 sm:$0xff]   ;;  %v13525_v12 = vld [vmem:[#allocation11 + $0x154] ss:$8 sps:$4 sm:$0xff]  }
 0x6ef   :  { %5708 = vmatprep.subr.bf16.mxu0 %v13513_v13  ;;  %v13522_v13 = vld [vmem:[#allocation11 + $0x144] ss:$8 sps:$4 sm:$0xff]  }
 0x6f2   :  { %5709 = vmatpush1.bf16.msra.mxu0 %v13511_v24  ;;  %v20071_v24 = vpack.c.bf16 %v17768_v42, %v17780_v23 }
 0x6f3   :  { %5710 = vmatprep.subr.bf16.mxu0 %v13516_v30  ;;  %v17904_v30 = vpop.permute.xlu1 %4878 }
 0x6f4   :  { %v4960_v32 = vmul.bf16 %v20071_v24, %v16977_v40  ;;  %20072 = vst [vmem:[#allocation40_spill] sm:$0xff] %v17904_v30  ;;  %v20075_v40 = vpack.c.bf16 %v17806_v0, %v17818_v27 }
 0x6f5   :  { %5636 = vmatmul.mubr.bf16.gmra.mrb[180].mxu0 %v4902_v48  ;;  %v13526_v48 = vld [vmem:[#allocation11 + $0x160] ss:$8 sps:$4 sm:$0xff]  }
 0x6f6   :  { %5645 = vmatprep.mubr.bf16.mxu0 %v4959_v8  ;;  %5711 = vmatpush1.bf16.msra.mxu0 %v13514_v63  ;;  %v13523_v63 = vld [vmem:[#allocation11 + $0x150] ss:$8 sps:$4 sm:$0xff]   ;;  %v4904_v8 = vmul.bf16 %v17904_v30, %v17770_v51 }
 0x6f7   :  { %5712 = vmatprep.subr.bf16.mxu0 %v13519_v59  ;;  %v13528_v59 = vld [vmem:[#allocation11 + $0x164] ss:$8 sps:$4 sm:$0xff]  }
 0x6fa   :  { %5713 = vmatpush1.bf16.msra.mxu0 %v13517_v36  ;;  %v13531_v36 = vld [vmem:[#allocation11 + $0x174] ss:$8 sps:$4 sm:$0xff]  }
 0x6fb   :  { %5714 = vmatprep.subr.bf16.mxu0 %v13522_v13  ;;  %v20073_v13 = vpack.c.bf16 %v17814_v46, %v17800_v14 }
 0x6fd   :  { %5646 = vmatmul.mubr.bf16.gmra.mrb[184].mxu0 %v4903_v3  ;;  %v4961_v24 = vmul.bf16 %v20073_v13, %v16999_v47  ;;  %v13534_v3 = vld [vmem:[#allocation11 + $0x184] ss:$8 sps:$4 sm:$0xff]   ;;  %v4962_v13 = vmul.bf16 %v20075_v40, %v17014_v17  ;;  %v20077_v47 = vpack.c.bf16 %v17857_v25, %v17839_v38  ;;  %v20079_v17 = vpack.c.bf16 %v17851_v33, %v17861_v5 }
 0x6fe   :  { %5655 = vmatprep.mubr.bf16.mxu0 %v4960_v32  ;;  %5715 = vmatpush1.bf16.msra.mxu0 %v13520_v35  ;;  %v13529_v35 = vld [vmem:[#allocation11 + $0x170] ss:$8 sps:$4 sm:$0xff]   ;;  %v13532_v32 = vld [vmem:[#allocation11 + $0x180] ss:$8 sps:$4 sm:$0xff]  }
 0x6ff   :  { %5716 = vmatprep.subr.bf16.mxu0 %v13525_v12  ;;  %v17912_v12 = vpop.permute.xlu0 %4883  ;;  %v4963_v40 = vmul.bf16 %v20077_v47, %v20029_v61  ;;  %v4964_v47 = vmul.bf16 %v20079_v17, %v20031_v45  ;;  %v20081_v61 = vpack.c.bf16 %v17746_v50, %v17742_v49  ;;  %v13564_v49 = vld [vmem:[#allocation11 + $0x224] ss:$8 sps:$4 sm:$0xff]   ;;  %v13562_v50 = vld [vmem:[#allocation11 + $0x220] ss:$8 sps:$4 sm:$0xff]  }
 0x700   :  { %20074 = vst [vmem:[#allocation38_spill] sm:$0xff] %v17912_v12 }
 0x701   :  { %v4989_v17 = vmul.bf16 %v20081_v61, %v20032_v16  ;;  %v13559_v61 = vld [vmem:[#allocation11 + $0x210] ss:$8 sps:$4 sm:$0xff]  }
 0x702   :  { %5717 = vmatpush1.bf16.msra.mxu0 %v13523_v63  ;;  %v4905_v63 = vmul.bf16 %v17912_v12, %v17790_v54 }
 0x703   :  { %5718 = vmatprep.subr.bf16.mxu0 %v13528_v59  ;;  %v13537_v59 = vld [vmem:[#allocation11 + $0x194] ss:$8 sps:$4 sm:$0xff]  }
 0x705   :  { %5656 = vmatmul.mubr.bf16.gmra.mrb[188].mxu0 %v4904_v8  ;;  %v13540_v8 = vld [vmem:[#allocation11 + $0x1a4] ss:$8 sps:$4 sm:$0xff]  }
 0x706   :  { %5665 = vmatprep.mubr.bf16.mxu0 %v4961_v24  ;;  %5719 = vmatpush1.bf16.msra.mxu0 %v13526_v48  ;;  %v13535_v48 = vld [vmem:[#allocation11 + $0x190] ss:$8 sps:$4 sm:$0xff]   ;;  %v13538_v24 = vld [vmem:[#allocation11 + $0x1a0] ss:$8 sps:$4 sm:$0xff]  }
 0x707   :  { %5720 = vmatprep.subr.bf16.mxu0 %v13531_v36  ;;  %v17920_v36 = vpop.permute.xlu1 %4888 }
 0x708   :  { %20076 = vst [vmem:[#allocation43_spill] sm:$0xff] %v17920_v36 }
 0x70a   :  { %5721 = vmatpush1.bf16.msra.mxu0 %v13529_v35  ;;  %v4906_v35 = vmul.bf16 %v17920_v36, %v17808_v44 }
 0x70b   :  { %5722 = vmatprep.subr.bf16.mxu0 %v13534_v3  ;;  %v13543_v3 = vld [vmem:[#allocation11 + $0x1b4] ss:$8 sps:$4 sm:$0xff]  }
 0x70d   :  { %5666 = vmatmul.mubr.bf16.gmra.mrb[192].mxu0 %v4905_v63  ;;  %v13546_v63 = vld [vmem:[#allocation11 + $0x1c4] ss:$8 sps:$4 sm:$0xff]  }
 0x70e   :  { %5675 = vmatprep.mubr.bf16.mxu0 %v4962_v13  ;;  %5723 = vmatpush1.bf16.msra.mxu0 %v13532_v32  ;;  %v13541_v32 = vld [vmem:[#allocation11 + $0x1b0] ss:$8 sps:$4 sm:$0xff]   ;;  %v13544_v13 = vld [vmem:[#allocation11 + $0x1c0] ss:$8 sps:$4 sm:$0xff]  }
 0x70f   :  { %5724 = vmatprep.subr.bf16.mxu0 %v13537_v59  ;;  %v17928_v59 = vpop.permute.xlu0 %4893 }
 0x710   :  { %20078 = vst [vmem:[#allocation35_spill] sm:$0xff] %v17928_v59 }
 0x712   :  { %5725 = vmatpush1.bf16.msra.mxu0 %v13535_v48  ;;  %v4907_v48 = vmul.bf16 %v17928_v59, %v17826_v26 }
 0x713   :  { %5726 = vmatprep.subr.bf16.mxu0 %v13540_v8  ;;  %v13549_v8 = vld [vmem:[#allocation11 + $0x1d4] ss:$8 sps:$4 sm:$0xff]  }
 0x715   :  { %5676 = vmatmul.mubr.bf16.gmra.mrb[196].mxu0 %v4906_v35  ;;  %v13552_v35 = vld [vmem:[#allocation11 + $0x1e4] ss:$8 sps:$4 sm:$0xff]  }
 0x716   :  { %5685 = vmatprep.mubr.bf16.mxu0 %v4963_v40  ;;  %5727 = vmatpush1.bf16.msra.mxu0 %v13538_v24  ;;  %v13547_v24 = vld [vmem:[#allocation11 + $0x1d0] ss:$8 sps:$4 sm:$0xff]   ;;  %v13550_v40 = vld [vmem:[#allocation11 + $0x1e0] ss:$8 sps:$4 sm:$0xff]  }
 0x717   :  { %5728 = vmatprep.subr.bf16.mxu0 %v13543_v3  ;;  %v17936_v3 = vpop.permute.xlu1 %4898 }
 0x718   :  { %20080 = vst [vmem:[#allocation55_spill] sm:$0xff] %v17936_v3 }
 0x71a   :  { %5729 = vmatpush1.bf16.msra.mxu0 %v13541_v32  ;;  %v4908_v32 = vmul.bf16 %v17936_v3, %v17841_v6 }
 0x71b   :  { %5730 = vmatprep.subr.bf16.mxu0 %v13546_v63  ;;  %v13555_v63 = vld [vmem:[#allocation11 + $0x1f4] ss:$8 sps:$4 sm:$0xff]  }
 0x71d   :  { %5686 = vmatmul.mubr.bf16.gmra.mrb[200].mxu0 %v4907_v48  ;;  %v13558_v48 = vld [vmem:[#allocation11 + $0x204] ss:$8 sps:$4 sm:$0xff]  }
 0x71e   :  { %5695 = vmatprep.mubr.bf16.mxu0 %v4964_v47  ;;  %5731 = vmatpush1.bf16.msra.mxu0 %v13544_v13  ;;  %v13553_v13 = vld [vmem:[#allocation11 + $0x1f0] ss:$8 sps:$4 sm:$0xff]   ;;  %v13561_v47 = vld [vmem:[#allocation11 + $0x214] ss:$8 sps:$4 sm:$0xff]  }
 0x71f   :  { %5732 = vmatprep.subr.bf16.mxu0 %v13549_v8  ;;  %v13556_v8 = vld [vmem:[#allocation11 + $0x200] ss:$8 sps:$4 sm:$0xff]  }
 0x722   :  { %5733 = vmatpush1.bf16.msra.mxu0 %v13547_v24  ;;  %v20082_v24 = vpack.c.bf16 %v17762_v53, %v17734_v31  ;;  %v13565_v31 = vld [vmem:[#allocation11 + $0x230] ss:$8 sps:$4 sm:$0xff]   ;;  %v13570_v53 = vld [vmem:[#allocation11 + $0x244] ss:$8 sps:$4 sm:$0xff]  }
 0x723   :  { %5734 = vmatprep.subr.bf16.mxu0 %v13552_v35 }
 0x724   :  { %v4990_v35 = vmul.bf16 %v20082_v24, %v20033_v1  ;;  %v13579_v24 = vld [vmem:[#allocation11 + $0x274] ss:$8 sps:$4 sm:$0xff]  }
 0x725   :  { %5696 = vmatmul.mubr.bf16.gmra.mrb[204].mxu0 %v4908_v32  ;;  %v20083_v32 = vpack.c.bf16 %v17780_v23, %v17776_v22  ;;  %v13571_v22 = vld [vmem:[#allocation11 + $0x250] ss:$8 sps:$4 sm:$0xff]   ;;  %v13576_v23 = vld [vmem:[#allocation11 + $0x264] ss:$8 sps:$4 sm:$0xff]  }
 0x726   :  { %5735 = vmatpush1.bf16.msra.mxu0 %v13550_v40  ;;  %5738 = vmatprep.mubr.bf16.mxu0 %v4989_v17  ;;  %v13567_v40 = vld [vmem:[#allocation11 + $0x234] ss:$8 sps:$4 sm:$0xff]   ;;  %v13568_v17 = vld [vmem:[#allocation11 + $0x240] ss:$8 sps:$4 sm:$0xff]  }
 0x727   :  { %5736 = vmatprep.subr.bf16.mxu0 %v13555_v63  ;;  %v4991_v63 = vmul.bf16 %v20083_v32, %v20036_v57 }
 0x72a   :  { %5737 = vmatpush1.bf16.msra.mxu0 %v13553_v13  ;;  %v13573_v13 = vld [vmem:[#allocation11 + $0x254] ss:$8 sps:$4 sm:$0xff]  }
 0x72b   :  { %5819 = vmatprep.subr.bf16.mxu0 %v13558_v48  ;;  %v20084_v48 = vpack.c.bf16 %v17800_v14, %v17768_v42  ;;  %v13577_v42 = vld [vmem:[#allocation11 + $0x270] ss:$8 sps:$4 sm:$0xff]   ;;  %v20086_v14 = vpack.c.bf16 %v17839_v38, %v17806_v0  ;;  %v20089_v0 = vmov 0   ;;  %v17981_v38 = vpop.permute.xlu0 %5007 }
 0x72c   :  { %20090 = vst [vmem:[#allocation50_spill] sm:$0xff] %v17981_v38 }
 0x72d   :  { %5739 = vmatmul.mubr.bf16.vlgmr.msra.gmra.mrb[176].mxu0 %v17725_v55 }
 0x72e   :  { %5748 = vmatprep.mubr.bf16.mxu0 %v4990_v35  ;;  %5820 = vmatpush1.bf16.msra.mxu0 %v13556_v8  ;;  %v4992_v8 = vmul.bf16 %v20084_v48, %v20037_v43  ;;  %v20085_v35 = vpack.c.bf16 %v17818_v27, %v17814_v46  ;;  %v20087_v46 = vpack.c.bf16 %v17861_v5, %v17857_v25  ;;  %v17986_v5 = vpop.permute.xlu1 %5012  ;;  %v13580_v48 = vld [vmem:[#allocation12] ss:$8 sps:$4 sm:$0xff]  }
 0x72f   :  { %5821 = vmatprep.subr.bf16.mxu0 %v13561_v47  ;;  %v13574_v47 = vld [vmem:[#allocation11 + $0x260] ss:$8 sps:$4 sm:$0xff]   ;;  %v5045_v25 = vmul.bf16 %v17981_v38, %v17728_v58  ;;  %20091 = vst [vmem:[#allocation37_spill] sm:$0xff] %v17986_v5 }
 0x730   :  { %v4995_v27 = vmul.bf16 %v20087_v46, %v20040_v15  ;;  %v13601_v46 = vld [vmem:[#allocation12 + $0x70] ss:$8 sps:$4 sm:$0xff]  }
 0x732   :  { %5822 = vmatpush1.bf16.msra.mxu0 %v13559_v61  ;;  %v4993_v61 = vmul.bf16 %v20085_v35, %v20038_v2  ;;  %v17996_v58 = vpop.permute.xlu1 %5022  ;;  %v13594_v35 = vld [vmem:[#allocation12 + $0x44] ss:$8 sps:$4 sm:$0xff]  }
 0x733   :  { %5823 = vmatprep.subr.bf16.mxu0 %v13564_v49  ;;  %v4994_v49 = vmul.bf16 %v20086_v14, %v20039_v10  ;;  %20093 = vst [vmem:[#allocation57_spill] sm:$0xff] %v17996_v58  ;;  %v13600_v14 = vld [vmem:[#allocation12 + $0x64] ss:$8 sps:$4 sm:$0xff]  }
 0x735   :  { %5749 = vmatmul.mubr.bf16.gmra.mrb[180].mxu0 %v17722_v52 }
 0x736   :  { %5758 = vmatprep.mubr.bf16.mxu0 %v4991_v63  ;;  %5824 = vmatpush1.bf16.msra.mxu0 %v13562_v50  ;;  %v20088_v50 = vpack.c.bf16 %v17847_v62, %v17851_v33  ;;  %v5046_v62 = vmul.bf16 %v17986_v5, %v17754_v21  ;;  %v17991_v33 = vpop.permute.xlu0 %5017  ;;  %v5048_v63 = vmul.bf16 %v17996_v58, %v17790_v54 }
 0x737   :  { %5825 = vmatprep.subr.bf16.mxu0 %v13567_v40  ;;  %20092 = vst [vmem:[#allocation34_spill] sm:$0xff] %v17991_v33  ;;  %v5047_v32 = vmul.bf16 %v17991_v33, %v17770_v51  ;;  %v18006_v51 = vpop.permute.xlu1 %5032 }
 0x738   :  { %v4996_v40 = vmul.bf16 %v20088_v50, %v20041_v4  ;;  %20095 = vst [vmem:[#allocation62_spill] sm:$0xff] %v18006_v51  ;;  %v13606_v50 = vld [vmem:[#allocation12 + $0x84] ss:$8 sps:$4 sm:$0xff]  }
 0x73a   :  { %5826 = vmatpush1.bf16.msra.mxu0 %v13565_v31  ;;  %v18001_v21 = vpop.permute.xlu0 %5027 }
 0x73b   :  { %5827 = vmatprep.subr.bf16.mxu0 %v13570_v53  ;;  %20094 = vst [vmem:[#allocation39_spill] sm:$0xff] %v18001_v21  ;;  %v5049_v31 = vmul.bf16 %v18001_v21, %v17808_v44  ;;  %v5050_v53 = vmul.bf16 %v18006_v51, %v17826_v26  ;;  %v18016_v44 = vpop.permute.xlu1 %5042  ;;  %v13583_v26 = vld [vmem:[#allocation12 + $0x10] ss:$8 sps:$4 sm:$0xff]  }
 0x73c   :  { %20097 = vst [vmem:[#allocation64_spill] sm:$0xff] %v18016_v44 }
 0x73d   :  { %5759 = vmatmul.mubr.bf16.gmra.mrb[184].mxu0 %v17795_v28 }
 0x73e   :  { %5768 = vmatprep.mubr.bf16.mxu0 %v4992_v8  ;;  %5828 = vmatpush1.bf16.msra.mxu0 %v13568_v17  ;;  %v18011_v54 = vpop.permute.xlu0 %5037  ;;  %v13582_v8 = vld [vmem:[#allocation12 + $0x4] ss:$8 sps:$4 sm:$0xff]  }
 0x73f   :  { %5829 = vmatprep.subr.bf16.mxu0 %v13573_v13  ;;  %20096 = vst [vmem:[#allocation63_spill] sm:$0xff] %v18011_v54  ;;  %v5051_v17 = vmul.bf16 %v18011_v54, %v17841_v6  ;;  %v5052_v13 = vmul.bf16 %v18016_v44, %v17831_v34  ;;  %7400 = vmatprep.subr.bf16.mxu1 %v13582_v8  ;;  %v13589_v6 = vld [vmem:[#allocation12 + $0x30] ss:$8 sps:$4 sm:$0xff]   ;;  %v13621_v8 = vld [vmem:[#allocation12 + $0xd4] ss:$8 sps:$4 sm:$0xff]  }
 0x740   :  { %7401 = vmatpush1.bf16.msra.mxu1 %v13580_v48  ;;  %v13595_v34 = vld [vmem:[#allocation12 + $0x50] ss:$8 sps:$4 sm:$0xff]  }
 0x741   :  { %v13619_v48 = vld [vmem:[#allocation12 + $0xd0] ss:$8 sps:$4 sm:$0xff]  }
 0x742   :  { %5830 = vmatpush1.bf16.msra.mxu0 %v13571_v22  ;;  %v13585_v22 = vld [vmem:[#allocation12 + $0x14] ss:$8 sps:$4 sm:$0xff]  }
 0x743   :  { %5831 = vmatprep.subr.bf16.mxu0 %v13576_v23  ;;  %v13588_v23 = vld [vmem:[#allocation12 + $0x24] ss:$8 sps:$4 sm:$0xff]   ;;  %7402 = vmatprep.subr.bf16.mxu1 %v13585_v22 }
 0x744   :  { %7403 = vmatpush1.bf16.msra.mxu1 %v13583_v26  ;;  %v13622_v26 = vld [vmem:[#allocation12 + $0xe0] ss:$8 sps:$4 sm:$0xff]   ;;  %v13624_v22 = vld [vmem:[#allocation12 + $0xe4] ss:$8 sps:$4 sm:$0xff]  }
 0x745   :  { %5769 = vmatmul.mubr.bf16.gmra.mrb[188].mxu0 %v17757_v39  ;;  %7404 = vmatprep.subr.bf16.mxu1 %v13588_v23  ;;  %v13627_v23 = vld [vmem:[#allocation12 + $0xf4] ss:$8 sps:$4 sm:$0xff]  }
 0x746   :  { %5778 = vmatprep.mubr.bf16.mxu0 %v4993_v61  ;;  %5832 = vmatpush1.bf16.msra.mxu0 %v13574_v47  ;;  %v13586_v47 = vld [vmem:[#allocation12 + $0x20] ss:$8 sps:$4 sm:$0xff]  }
 0x747   :  { %5833 = vmatprep.subr.bf16.mxu0 %v13579_v24  ;;  %v13591_v24 = vld [vmem:[#allocation12 + $0x34] ss:$8 sps:$4 sm:$0xff]   ;;  %v13592_v61 = vld [vmem:[#allocation12 + $0x40] ss:$8 sps:$4 sm:$0xff]  }
 0x748   :  { %7405 = vmatpush1.bf16.msra.mxu1 %v13586_v47  ;;  %v13625_v47 = vld [vmem:[#allocation12 + $0xf0] ss:$8 sps:$4 sm:$0xff]  }
 0x749   :  { %7406 = vmatprep.subr.bf16.mxu1 %v13591_v24  ;;  %v18021_v24 = vsub.s32 0, %v15492_v56 }
 0x74a   :  { %5834 = vmatpush1.bf16.msra.mxu0 %v13577_v42  ;;  %v13597_v42 = vld [vmem:[#allocation12 + $0x54] ss:$8 sps:$4 sm:$0xff]  }
 0x74b   :  { %20098 = vst [vmem:[#allocation65_spill] sm:$0xff] %v18021_v24 }
 0x74c   :  { %7407 = vmatpush1.bf16.msra.mxu1 %v13589_v6  ;;  %v13630_v6 = vld [vmem:[#allocation12 + $0x104] ss:$8 sps:$4 sm:$0xff]  }
 0x74d   :  { %5779 = vmatmul.mubr.bf16.gmra.mrb[192].mxu0 %v17835_v20  ;;  %7408 = vmatprep.subr.bf16.mxu1 %v13594_v35  ;;  %v5181_v35 = vld [vmem:[%s19488_s14] sm:$0x3] }
 0x74e   :  { %5788 = vmatprep.mubr.bf16.mxu0 %v4994_v49  ;;  %v13598_v49 = vld [vmem:[#allocation12 + $0x60] ss:$8 sps:$4 sm:$0xff]  }
 0x750   :  { %7409 = vmatpush1.bf16.msra.mxu1 %v13592_v61  ;;  %v18027_v61 = vsub.s32 1, %v15492_v56 }
 0x751   :  { %7410 = vmatprep.subr.bf16.mxu1 %v13597_v42 }
 0x752   :  { %20099 = vst [vmem:[#allocation66_spill] sm:$0xff] %v18027_v61  ;;  %v18033_v42 = vrot.slane %v5181_v35, %v18027_v61 }
 0x754   :  { %7411 = vmatpush1.bf16.msra.mxu1 %v13595_v34  ;;  %v18030_v34 = vrot.slane %v5181_v35, %v18021_v24 }
 0x755   :  { %5789 = vmatmul.mubr.bf16.gmra.mrb[196].mxu0 %v17872_v11  ;;  %7412 = vmatprep.subr.bf16.mxu1 %v13600_v14 }
 0x756   :  { %5798 = vmatprep.mubr.bf16.mxu0 %v4995_v27  ;;  %v13603_v27 = vld [vmem:[#allocation12 + $0x74] ss:$8 sps:$4 sm:$0xff]  }
 0x758   :  { %7413 = vmatpush1.bf16.msra.mxu1 %v13598_v49 }
 0x759   :  { %7414 = vmatprep.subr.bf16.mxu1 %v13603_v27 }
 0x75c   :  { %7415 = vmatpush1.bf16.msra.mxu1 %v13601_v46 }
 0x75d   :  { %5799 = vmatmul.mubr.bf16.gmra.mrb[200].mxu0 %v17876_v41  ;;  %7416 = vmatprep.subr.bf16.mxu1 %v13606_v50 }
 0x75e   :  { %5808 = vmatprep.mubr.bf16.mxu0 %v4996_v40  ;;  %v13604_v40 = vld [vmem:[#allocation12 + $0x80] ss:$8 sps:$4 sm:$0xff]  }
 0x760   :  { %7417 = vmatpush1.bf16.msra.mxu1 %v13604_v40 }
 0x765   :  { %5809 = vmatmul.mubr.bf16.gmra.mrb[204].mxu0 %v17886_v9 }
 0x766   :  { %5851 = vmatprep.mubr.bf16.mxu0 %v20089_v0 }
 0x76d   :  { %5852 = vmatmul.mubr.bf16.vlgmr.msra.gmra.mrb[176].mxu0 %v5045_v25  ;;  %v13607_v25 = vld [vmem:[#allocation12 + $0x90] ss:$8 sps:$4 sm:$0xff]  }
 0x76e   :  { %5861 = vmatprep.mubr.bf16.mxu0 %v20089_v0 }
 0x775   :  { %5862 = vmatmul.mubr.bf16.gmra.mrb[180].mxu0 %v5046_v62  ;;  %v13609_v62 = vld [vmem:[#allocation12 + $0x94] ss:$8 sps:$4 sm:$0xff]  }
 0x776   :  { %5871 = vmatprep.mubr.bf16.mxu0 %v20089_v0  ;;  %7418 = vmatprep.subr.bf16.mxu1 %v13609_v62 }
 0x777   :  { %7419 = vmatpush1.bf16.msra.mxu1 %v13607_v25 }
 0x77d   :  { %5872 = vmatmul.mubr.bf16.gmra.mrb[184].mxu0 %v5047_v32  ;;  %v13612_v32 = vld [vmem:[#allocation12 + $0xa4] ss:$8 sps:$4 sm:$0xff]  }
 0x77e   :  { %5881 = vmatprep.mubr.bf16.mxu0 %v20089_v0  ;;  %7420 = vmatprep.subr.bf16.mxu1 %v13612_v32 }
 0x785   :  { %5882 = vmatmul.mubr.bf16.gmra.mrb[188].mxu0 %v5048_v63  ;;  %v13610_v63 = vld [vmem:[#allocation12 + $0xa0] ss:$8 sps:$4 sm:$0xff]  }
 0x786   :  { %5891 = vmatprep.mubr.bf16.mxu0 %v20089_v0  ;;  %7421 = vmatpush1.bf16.msra.mxu1 %v13610_v63 }
 0x78d   :  { %5892 = vmatmul.mubr.bf16.gmra.mrb[192].mxu0 %v5049_v31  ;;  %v13613_v31 = vld [vmem:[#allocation12 + $0xb0] ss:$8 sps:$4 sm:$0xff]  }
 0x78e   :  { %5901 = vmatprep.mubr.bf16.mxu0 %v20089_v0 }
 0x795   :  { %5902 = vmatmul.mubr.bf16.gmra.mrb[196].mxu0 %v5050_v53  ;;  %v13615_v53 = vld [vmem:[#allocation12 + $0xb4] ss:$8 sps:$4 sm:$0xff]  }
 0x796   :  { %5911 = vmatprep.mubr.bf16.mxu0 %v20089_v0  ;;  %7422 = vmatprep.subr.bf16.mxu1 %v13615_v53 }
 0x797   :  { %7423 = vmatpush1.bf16.msra.mxu1 %v13613_v31 }
 0x79d   :  { %5912 = vmatmul.mubr.bf16.gmra.mrb[200].mxu0 %v5051_v17  ;;  %v13618_v17 = vld [vmem:[#allocation12 + $0xc4] ss:$8 sps:$4 sm:$0xff]  }
 0x79e   :  { %5921 = vmatprep.mubr.bf16.mxu0 %v20089_v0  ;;  %7424 = vmatprep.subr.bf16.mxu1 %v13618_v17 }
 0x7a5   :  { %5922 = vmatmul.mubr.bf16.gmra.mrb[204].mxu0 %v5052_v13  ;;  %v13616_v13 = vld [vmem:[#allocation12 + $0xc0] ss:$8 sps:$4 sm:$0xff]  }
 0x7a6   :  { %7425 = vmatpush1.bf16.msra.mxu1 %v13616_v13 }
 0x7a7   :  { %7426 = vmatprep.subr.bf16.mxu1 %v13621_v8 }
 0x7aa   :  { %7427 = vmatpush1.bf16.msra.mxu1 %v13619_v48 }
 0x7ab   :  { %7428 = vmatprep.subr.bf16.mxu1 %v13624_v22 }
 0x7ae   :  { %7429 = vmatpush1.bf16.msra.mxu1 %v13622_v26 }
 0x7af   :  { %7430 = vmatprep.subr.bf16.mxu1 %v13627_v23 }
 0x7b2   :  { %7431 = vmatpush1.bf16.msra.mxu1 %v13625_v47 }
 0x7b3   :  { %7513 = vmatprep.subr.bf16.mxu1 %v13630_v6 }
 0x840   :  { %v5853_v14 = vpop.f32.mrb[176].mxu0 }
 0x841   :  { %v12791_v49 = vadd.f32 %v5853_v14, %v18030_v34  ;;  %v5855_v46 = vpop.f32.mrb[177].mxu0 }
 0x842   :  { %v12792_v27 = vadd.f32 %v5855_v46, %v18033_v42  ;;  %v5857_v50 = vpop.f32.mrb[178].mxu0 }
 0x843   :  { %v18037_v40 = vmax.f32 %v12791_v49, 0.0  ;;  %v12793_v25 = vadd.f32 %v5857_v50, %v18030_v34  ;;  %v5859_v62 = vpop.f32.mrb[179].mxu0 }
 0x844   :  { %v18040_v32 = vmax.f32 %v12792_v27, 0.0  ;;  %v12794_v63 = vadd.f32 %v5859_v62, %v18033_v42 }
 0x845   :  { %20100 = vst [vmem:[#allocation67_spill] sm:$0xff] %v18037_v40  ;;  %v18043_v31 = vmax.f32 %v12793_v25, 0.0  ;;  %v19633_v17 = vrot.slane %v18037_v40, 4 }
 0x846   :  { %v18045_v53 = vmax.f32 %v12794_v63, 0.0  ;;  %v19632_v8 = vrot.slane %v18040_v32, 4 }
 0x847   :  { %20101 = vst [vmem:[#allocation68_spill] sm:$0xff] %v18043_v31  ;;  %v6030_v48 = vrot.slane %v18043_v31, 4 }
 0x848   :  { %20102 = vst [vmem:[#allocation69_spill] sm:$0xff] %v18045_v53  ;;  %v6031_v26 = vrot.slane %v18045_v53, 4  ;;  %v5863_v22 = vpop.f32.mrb[180].mxu0 }
 0x849   :  { %v18059_v47 = vsel %vm3008_vm8, %v19633_v17, %v6030_v48  ;;  %v12795_v6 = vadd.f32 %v5863_v22, %v18030_v34  ;;  %v5865_v35 = vpop.f32.mrb[181].mxu0 }
 0x84a   :  { %v12796_v14 = vadd.f32 %v5865_v35, %v18033_v42  ;;  %v5867_v49 = vpop.f32.mrb[182].mxu0  ;;  %v18067_v46 = vsel %vm3008_vm8, %v19632_v8, %v6031_v26 }
 0x84b   :  { %v18069_v27 = vmax.f32 %v12795_v6, 0.0  ;;  %v12797_v50 = vadd.f32 %v5867_v49, %v18030_v34  ;;  %v5869_v25 = vpop.f32.mrb[183].mxu0 }
 0x84c   :  { %v18072_v62 = vmax.f32 %v12796_v14, 0.0  ;;  %v12798_v63 = vadd.f32 %v5869_v25, %v18033_v42 }
 0x84d   :  { %20103 = vst [vmem:[#allocation70_spill] sm:$0xff] %v18069_v27  ;;  %v18077_v22 = vpack.c.bf16 %v18069_v27, %v18043_v31  ;;  %v6032_v35 = vrot.slane %v18069_v27, 4  ;;  %v18080_v13 = vmax.f32 %v12797_v50, 0.0 }
 0x84e   :  { %20104 = vst [vmem:[#allocation71_spill] sm:$0xff] %v18072_v62  ;;  %v18084_v23 = vpack.c.bf16 %v18072_v62, %v18045_v53  ;;  %v6033_v6 = vrot.slane %v18072_v62, 4  ;;  %v18087_v49 = vmax.f32 %v12798_v63, 0.0 }
 0x84f   :  { %20105 = vst [vmem:[#allocation72_spill] sm:$0xff] %v18080_v13  ;;  %v6034_v14 = vrot.slane %v18080_v13, 4  ;;  %v18092_v25 = vsel %vm3008_vm8, %v6030_v48, %v6032_v35  ;;  %v5998_v56 = vmul.bf16 %v18077_v22, %v17888_v60 }
 0x850   :  { %20106 = vst [vmem:[#allocation73_spill] sm:$0xff] %v18087_v49  ;;  %v6035_v8 = vrot.slane %v18087_v49, 4  ;;  %v5873_v17 = vpop.f32.mrb[184].mxu0  ;;  %v18097_v50 = vsel %vm3008_vm8, %v6031_v26, %v6033_v6 }
 0x851   :  { %v12799_v24 = vadd.f32 %v5873_v17, %v18030_v34  ;;  %v5875_v63 = vpop.f32.mrb[185].mxu0  ;;  %v18104_v9 = vsel %vm3008_vm8, %v6032_v35, %v6034_v14 }
 0x852   :  { %v12800_v11 = vadd.f32 %v5875_v63, %v18033_v42  ;;  %v5877_v26 = vpop.f32.mrb[186].mxu0  ;;  %v18113_v20 = vsel %vm3008_vm8, %v6033_v6, %v6035_v8 }
 0x853   :  { %v18117_v61 = vmax.f32 %v12799_v24, 0.0  ;;  %v12801_v35 = vadd.f32 %v5877_v26, %v18030_v34  ;;  %v5879_v39 = vpop.f32.mrb[187].mxu0 }
 0x854   :  { %v18124_v63 = vmax.f32 %v12800_v11, 0.0  ;;  %v12802_v28 = vadd.f32 %v5879_v39, %v18033_v42 }
 0x855   :  { %20107 = vst [vmem:[#allocation74_spill] sm:$0xff] %v18117_v61  ;;  %v18129_v6 = vpack.c.bf16 %v18117_v61, %v18080_v13  ;;  %v6036_v24 = vrot.slane %v18117_v61, 4  ;;  %v18132_v17 = vmax.f32 %v12801_v35, 0.0 }
 0x856   :  { %20108 = vst [vmem:[#allocation75_spill] sm:$0xff] %v18124_v63  ;;  %v18136_v26 = vpack.c.bf16 %v18124_v63, %v18087_v49  ;;  %v6037_v48 = vrot.slane %v18124_v63, 4  ;;  %v18139_v52 = vmax.f32 %v12802_v28, 0.0 }
 0x857   :  { %20109 = vst [vmem:[#allocation76_spill] sm:$0xff] %v18132_v17  ;;  %v6038_v11 = vrot.slane %v18132_v17, 4  ;;  %v18144_v39 = vsel %vm3008_vm8, %v6034_v14, %v6036_v24 }
 0x858   :  { %20110 = vst [vmem:[#allocation77_spill] sm:$0xff] %v18139_v52  ;;  %v6039_v35 = vrot.slane %v18139_v52, 4  ;;  %v5883_v55 = vpop.f32.mrb[188].mxu0  ;;  %v18151_v0 = vsel %vm3008_vm8, %v6035_v8, %v6037_v48 }
 0x859   :  { %v12803_v44 = vadd.f32 %v5883_v55, %v18030_v34  ;;  %v5885_v54 = vpop.f32.mrb[189].mxu0  ;;  %v18158_v14 = vsel %vm3008_vm8, %v6036_v24, %v6038_v11 }
 0x85a   :  { %v12804_v21 = vadd.f32 %v5885_v54, %v18033_v42  ;;  %v5887_v8 = vpop.f32.mrb[190].mxu0  ;;  %v18167_v58 = vsel %vm3008_vm8, %v6037_v48, %v6039_v35 }
 0x85b   :  { %v18171_v28 = vmax.f32 %v12803_v44, 0.0  ;;  %v12805_v24 = vadd.f32 %v5887_v8, %v18030_v34  ;;  %v5889_v33 = vpop.f32.mrb[191].mxu0 }
 0x85c   :  { %v18176_v5 = vmax.f32 %v12804_v21, 0.0  ;;  %v12806_v54 = vadd.f32 %v5889_v33, %v18033_v42 }
 0x85d   :  { %20111 = vst [vmem:[#allocation78_spill] sm:$0xff] %v18171_v28  ;;  %v18181_v51 = vpack.c.bf16 %v18171_v28, %v18132_v17  ;;  %v6040_v48 = vrot.slane %v18171_v28, 4  ;;  %v18184_v38 = vmax.f32 %v12805_v24, 0.0 }
 0x85e   :  { %20112 = vst [vmem:[#allocation79_spill] sm:$0xff] %v18176_v5  ;;  %v18188_v44 = vpack.c.bf16 %v18176_v5, %v18139_v52  ;;  %v6041_v8 = vrot.slane %v18176_v5, 4  ;;  %v18191_v55 = vmax.f32 %v12806_v54, 0.0 }
 0x85f   :  { %20113 = vst [vmem:[#allocation80_spill] sm:$0xff] %v18184_v38  ;;  %v6042_v21 = vrot.slane %v18184_v38, 4  ;;  %v18196_v33 = vsel %vm3008_vm8, %v6038_v11, %v6040_v48 }
 0x860   :  { %20114 = vst [vmem:[#allocation81_spill] sm:$0xff] %v18191_v55  ;;  %v6043_v24 = vrot.slane %v18191_v55, 4  ;;  %v5893_v4 = vpop.f32.mrb[192].mxu0  ;;  %v18203_v15 = vsel %vm3008_vm8, %v6039_v35, %v6041_v8 }
 0x861   :  { %v12807_v10 = vadd.f32 %v5893_v4, %v18030_v34  ;;  %v5895_v2 = vpop.f32.mrb[193].mxu0  ;;  %v18210_v11 = vsel %vm3008_vm8, %v6040_v48, %v6042_v21 }
 0x862   :  { %v12808_v57 = vadd.f32 %v5895_v2, %v18033_v42  ;;  %v5897_v35 = vpop.f32.mrb[194].mxu0  ;;  %v18219_v1 = vsel %vm3008_vm8, %v6041_v8, %v6043_v24 }
 0x863   :  { %v18223_v54 = vmax.f32 %v12807_v10, 0.0  ;;  %v12809_v48 = vadd.f32 %v5897_v35, %v18030_v34  ;;  %v5899_v16 = vpop.f32.mrb[195].mxu0 }
 0x864   :  { %v18228_v28 = vmax.f32 %v12808_v57, 0.0  ;;  %v12810_v2 = vadd.f32 %v5899_v16, %v18033_v42 }
 0x865   :  { %20115 = vst [vmem:[#allocation82_spill] sm:$0xff] %v18223_v54  ;;  %v18233_v43 = vpack.c.bf16 %v18223_v54, %v18184_v38  ;;  %v6044_v8 = vrot.slane %v18223_v54, 4  ;;  %v18236_v5 = vmax.f32 %v12809_v48, 0.0 }
 0x866   :  { %20116 = vst [vmem:[#allocation83_spill] sm:$0xff] %v18228_v28  ;;  %v18240_v10 = vpack.c.bf16 %v18228_v28, %v18191_v55  ;;  %v6045_v35 = vrot.slane %v18228_v28, 4  ;;  %v18243_v4 = vmax.f32 %v12810_v2, 0.0 }
 0x867   :  { %20117 = vst [vmem:[#allocation84_spill] sm:$0xff] %v18236_v5  ;;  %v6046_v57 = vrot.slane %v18236_v5, 4  ;;  %v18248_v16 = vsel %vm3008_vm8, %v6042_v21, %v6044_v8 }
 0x868   :  { %20118 = vst [vmem:[#allocation85_spill] sm:$0xff] %v18243_v4  ;;  %20119 = vst [vmem:[#allocation86_spill] sm:$0xff] %v18248_v16  ;;  %v6047_v48 = vrot.slane %v18243_v4, 4  ;;  %v5903_v38 = vpop.f32.mrb[196].mxu0  ;;  %v18255_v55 = vsel %vm3008_vm8, %v6043_v24, %v6045_v35 }
 0x869   :  { %20120 = vst [vmem:[#allocation87_spill] sm:$0xff] %v18255_v55  ;;  %v12811_v61 = vadd.f32 %v5903_v38, %v18030_v34  ;;  %v5905_v17 = vpop.f32.mrb[197].mxu0  ;;  %v18262_v21 = vsel %vm3008_vm8, %v6044_v8, %v6046_v57 }
 0x86a   :  { %20121 = vst [vmem:[#allocation88_spill] sm:$0xff] %v18262_v21  ;;  %v12812_v63 = vadd.f32 %v5905_v17, %v18033_v42  ;;  %v5907_v24 = vpop.f32.mrb[198].mxu0  ;;  %v18271_v52 = vsel %vm3008_vm8, %v6045_v35, %v6047_v48 }
 0x86b   :  { %v18275_v2 = vmax.f32 %v12811_v61, 0.0  ;;  %v12813_v8 = vadd.f32 %v5907_v24, %v18030_v34  ;;  %v5909_v28 = vpop.f32.mrb[199].mxu0 }
 0x86c   :  { %v18280_v27 = vmax.f32 %v12812_v63, 0.0  ;;  %v12814_v17 = vadd.f32 %v5909_v28, %v18033_v42 }
 0x86d   :  { %20122 = vst [vmem:[#allocation89_spill] sm:$0xff] %v18275_v2  ;;  %v18285_v54 = vpack.c.bf16 %v18275_v2, %v18236_v5  ;;  %v6048_v35 = vrot.slane %v18275_v2, 4  ;;  %v18288_v13 = vmax.f32 %v12813_v8, 0.0 }
 0x86e   :  { %20123 = vst [vmem:[#allocation90_spill] sm:$0xff] %v18280_v27  ;;  %v18292_v61 = vpack.c.bf16 %v18280_v27, %v18243_v4  ;;  %v6049_v24 = vrot.slane %v18280_v27, 4  ;;  %v18295_v38 = vmax.f32 %v12814_v17, 0.0 }
 0x86f   :  { %20124 = vst [vmem:[#allocation91_spill] sm:$0xff] %v18288_v13  ;;  %v6050_v63 = vrot.slane %v18288_v13, 4  ;;  %v18300_v28 = vsel %vm3008_vm8, %v6046_v57, %v6048_v35 }
 0x870   :  { %20125 = vst [vmem:[#allocation92_spill] sm:$0xff] %v18295_v38  ;;  %20126 = vst [vmem:[#allocation93_spill] sm:$0xff] %v18300_v28  ;;  %v6051_v8 = vrot.slane %v18295_v38, 4  ;;  %v5913_v5 = vpop.f32.mrb[200].mxu0  ;;  %v18307_v4 = vsel %vm3008_vm8, %v6047_v48, %v6049_v24 }
 0x871   :  { %20127 = vst [vmem:[#allocation94_spill] sm:$0xff] %v18307_v4  ;;  %v12815_v62 = vadd.f32 %v5913_v5, %v18030_v34  ;;  %v5915_v49 = vpop.f32.mrb[201].mxu0  ;;  %v18314_v57 = vsel %vm3008_vm8, %v6048_v35, %v6050_v63 }
 0x872   :  { %20128 = vst [vmem:[#allocation95_spill] sm:$0xff] %v18314_v57  ;;  %v12816_v31 = vadd.f32 %v5915_v49, %v18033_v42  ;;  %v5917_v48 = vpop.f32.mrb[202].mxu0  ;;  %v18323_v53 = vsel %vm3008_vm8, %v6049_v24, %v6051_v8 }
 0x873   :  { %20129 = vst [vmem:[#allocation96_spill] sm:$0xff] %v18323_v53  ;;  %v18327_v17 = vmax.f32 %v12815_v62, 0.0  ;;  %v12817_v35 = vadd.f32 %v5917_v48, %v18030_v34  ;;  %v5919_v27 = vpop.f32.mrb[203].mxu0 }
 0x874   :  { %v18332_v45 = vmax.f32 %v12816_v31, 0.0  ;;  %v12818_v49 = vadd.f32 %v5919_v27, %v18033_v42 }
 0x875   :  { %20130 = vst [vmem:[#allocation97_spill] sm:$0xff] %v18327_v17  ;;  %v18337_v2 = vpack.c.bf16 %v18327_v17, %v18288_v13  ;;  %v6052_v24 = vrot.slane %v18327_v17, 4  ;;  %v18340_v16 = vmax.f32 %v12817_v35, 0.0 }
 0x876   :  { %20131 = vst [vmem:[#allocation98_spill] sm:$0xff] %v18332_v45  ;;  %v18344_v62 = vpack.c.bf16 %v18332_v45, %v18295_v38  ;;  %v6053_v48 = vrot.slane %v18332_v45, 4  ;;  %v18347_v5 = vmax.f32 %v12818_v49, 0.0 }
 0x877   :  { %20132 = vst [vmem:[#allocation99_spill] sm:$0xff] %v18337_v2  ;;  %20133 = vst [vmem:[#allocation100_spill] sm:$0xff] %v18340_v16  ;;  %v6054_v31 = vrot.slane %v18340_v16, 4  ;;  %v18352_v27 = vsel %vm3008_vm8, %v6050_v63, %v6052_v24 }
 0x878   :  { %20134 = vst [vmem:[#allocation101_spill] sm:$0xff] %v18347_v5  ;;  %20135 = vst [vmem:[#allocation102_spill] sm:$0xff] %v18352_v27  ;;  %v6055_v35 = vrot.slane %v18347_v5, 4  ;;  %v5923_v13 = vpop.f32.mrb[204].mxu0  ;;  %v18359_v38 = vsel %vm3008_vm8, %v6051_v8, %v6053_v48  ;;  %v13639_v27 = vld [vmem:[#allocation12 + $0x134] ss:$8 sps:$4 sm:$0xff]  }
 0x879   :  { %20136 = vst [vmem:[#allocation103_spill] sm:$0xff] %v18359_v38  ;;  %v12819_v28 = vadd.f32 %v5923_v13, %v18030_v34  ;;  %v5925_v4 = vpop.f32.mrb[205].mxu0  ;;  %v18366_v63 = vsel %vm3008_vm8, %v6052_v24, %v6054_v31 }
 0x87a   :  { %v12820_v21 = vadd.f32 %v5925_v4, %v18033_v42  ;;  %v5927_v8 = vpop.f32.mrb[206].mxu0  ;;  %v18375_v55 = vsel %vm3008_vm8, %v6053_v48, %v6055_v35 }
 0x87b   :  { %v18379_v49 = vmax.f32 %v12819_v28, 0.0  ;;  %v12821_v24 = vadd.f32 %v5927_v8, %v18030_v34  ;;  %v5929_v45 = vpop.f32.mrb[207].mxu0 }
 0x87c   :  { %v18384_v53 = vmax.f32 %v12820_v21, 0.0  ;;  %v12822_v4 = vadd.f32 %v5929_v45, %v18033_v42 }
 0x87d   :  { %v18389_v17 = vpack.c.bf16 %v18379_v49, %v18340_v16  ;;  %v6056_v48 = vrot.slane %v18379_v49, 4  ;;  %v18392_v57 = vmax.f32 %v12821_v24, 0.0  ;;  %v20141_v16 = vrot.slane %v18037_v40, 4 }
 0x87e   :  { %v18396_v28 = vpack.c.bf16 %v18384_v53, %v18347_v5  ;;  %v6057_v34 = vrot.slane %v18384_v53, 4  ;;  %v18399_v8 = vmax.f32 %v12822_v4, 0.0 }
 0x87f   :  { %20137 = vst [vmem:[#allocation104_spill] sm:$0xff] %v18389_v17  ;;  %v18403_v21 = vpack.c.bf16 %v18037_v40, %v18392_v57  ;;  %v6058_v45 = vrot.slane %v18392_v57, 4  ;;  %v18408_v42 = vsel %vm3008_vm8, %v6054_v31, %v6056_v48  ;;  %v20142_v40 = vrot.slane %v18040_v32, 4 }
 0x880   :  { %20138 = vst [vmem:[#allocation105_spill] sm:$0xff] %v18396_v28  ;;  %v18412_v24 = vpack.c.bf16 %v18040_v32, %v18399_v8  ;;  %v6059_v13 = vrot.slane %v18399_v8, 4  ;;  %v18417_v4 = vsel %vm3008_vm8, %v6055_v35, %v6057_v34  ;;  %v13634_v35 = vld [vmem:[#allocation12 + $0x120] ss:$8 sps:$4 sm:$0xff]  }
 0x881   :  { %20139 = vst [vmem:[#allocation106_spill] sm:$0xff] %v18403_v21  ;;  %v5996_v41 = vmul.bf16 %v18403_v21, %v17869_v37  ;;  %v18425_v5 = vsel %vm3008_vm8, %v6058_v45, %v20141_v16  ;;  %v18429_v31 = vsel %vm3008_vm8, %v6056_v48, %v6058_v45  ;;  %v13628_v21 = vld [vmem:[#allocation12 + $0x100] ss:$8 sps:$4 sm:$0xff]   ;;  %v13633_v45 = vld [vmem:[#allocation12 + $0x114] ss:$8 sps:$4 sm:$0xff]  }
 0x882   :  { %20140 = vst [vmem:[#allocation107_spill] sm:$0xff] %v18412_v24  ;;  %v5997_v38 = vmul.bf16 %v18412_v24, %v17869_v37  ;;  %v18441_v16 = vsel %vm3008_vm8, %v6059_v13, %v20142_v40  ;;  %v18445_v48 = vsel %vm3008_vm8, %v6057_v34, %v6059_v13  ;;  %v5999_v40 = vmul.bf16 %v18084_v23, %v17888_v60  ;;  %v13631_v24 = vld [vmem:[#allocation12 + $0x110] ss:$8 sps:$4 sm:$0xff]  }
 0x883   :  { %v6001_v13 = vmul.bf16 %v18136_v26, %v17896_v29  ;;  %v13643_v37 = vld [vmem:[#allocation12 + $0x150] ss:$8 sps:$4 sm:$0xff]   ;;  %v20145_v34 = vpack.c.bf16 %v18113_v20, %v18097_v50 }
 0x884   :  { %7432 = vmatprep.mubr.bf16.mxu1 %v5997_v38  ;;  %v13636_v38 = vld [vmem:[#allocation12 + $0x124] ss:$8 sps:$4 sm:$0xff]  }
 0x885   :  { %7433 = vmatmul.mubr.bf16.vlgmr.msra.gmra.mrb[176].mxu1 %v5996_v41  ;;  %v13637_v41 = vld [vmem:[#allocation12 + $0x130] ss:$8 sps:$4 sm:$0xff]  }
 0x886   :  { %7442 = vmatprep.mubr.bf16.mxu1 %v5999_v40  ;;  %7514 = vmatpush1.bf16.msra.mxu1 %v13628_v21  ;;  %v13642_v40 = vld [vmem:[#allocation12 + $0x144] ss:$8 sps:$4 sm:$0xff]   ;;  %v13640_v21 = vld [vmem:[#allocation12 + $0x140] ss:$8 sps:$4 sm:$0xff]  }
 0x887   :  { %7515 = vmatprep.subr.bf16.mxu1 %v13633_v45  ;;  %v13645_v45 = vld [vmem:[#allocation12 + $0x154] ss:$8 sps:$4 sm:$0xff]  }
 0x88a   :  { %7516 = vmatpush1.bf16.msra.mxu1 %v13631_v24  ;;  %v6000_v24 = vmul.bf16 %v18129_v6, %v17896_v29  ;;  %v20166_v29 = vld [vmem:[#allocation103_spill] sm:$0xff] }
 0x88b   :  { %7517 = vmatprep.subr.bf16.mxu1 %v13636_v38  ;;  %v6003_v38 = vmul.bf16 %v18188_v44, %v17904_v30  ;;  %v20167_v60 = vpack.c.bf16 %v18375_v55, %v20166_v29 }
 0x88d   :  { %7443 = vmatmul.mubr.bf16.gmra.mrb[180].mxu1 %v5998_v56  ;;  %v13648_v56 = vld [vmem:[#allocation12 + $0x164] ss:$8 sps:$4 sm:$0xff]  }
 0x88e   :  { %7452 = vmatprep.mubr.bf16.mxu1 %v6001_v13  ;;  %7518 = vmatpush1.bf16.msra.mxu1 %v13634_v35  ;;  %v13646_v35 = vld [vmem:[#allocation12 + $0x160] ss:$8 sps:$4 sm:$0xff]   ;;  %v13651_v13 = vld [vmem:[#allocation12 + $0x174] ss:$8 sps:$4 sm:$0xff]  }
 0x88f   :  { %7519 = vmatprep.subr.bf16.mxu1 %v13639_v27  ;;  %v6002_v27 = vmul.bf16 %v18181_v51, %v17904_v30 }
 0x892   :  { %7520 = vmatpush1.bf16.msra.mxu1 %v13637_v41  ;;  %v6005_v41 = vmul.bf16 %v18240_v10, %v17912_v12 }
 0x893   :  { %7521 = vmatprep.subr.bf16.mxu1 %v13642_v40  ;;  %v13649_v40 = vld [vmem:[#allocation12 + $0x170] ss:$8 sps:$4 sm:$0xff]  }
 0x895   :  { %7453 = vmatmul.mubr.bf16.gmra.mrb[184].mxu1 %v6000_v24  ;;  %v13654_v24 = vld [vmem:[#allocation12 + $0x184] ss:$8 sps:$4 sm:$0xff]  }
 0x896   :  { %7462 = vmatprep.mubr.bf16.mxu1 %v6003_v38  ;;  %7522 = vmatpush1.bf16.msra.mxu1 %v13640_v21  ;;  %v13652_v21 = vld [vmem:[#allocation12 + $0x180] ss:$8 sps:$4 sm:$0xff]   ;;  %v6007_v38 = vmul.bf16 %v18292_v61, %v17920_v36 }
 0x897   :  { %7523 = vmatprep.subr.bf16.mxu1 %v13645_v45  ;;  %v13657_v45 = vld [vmem:[#allocation12 + $0x194] ss:$8 sps:$4 sm:$0xff]  }
 0x89a   :  { %7524 = vmatpush1.bf16.msra.mxu1 %v13643_v37  ;;  %v6004_v37 = vmul.bf16 %v18233_v43, %v17912_v12 }
 0x89b   :  { %7525 = vmatprep.subr.bf16.mxu1 %v13648_v56  ;;  %v13655_v56 = vld [vmem:[#allocation12 + $0x190] ss:$8 sps:$4 sm:$0xff]  }
 0x89d   :  { %7463 = vmatmul.mubr.bf16.gmra.mrb[188].mxu1 %v6002_v27  ;;  %v13660_v27 = vld [vmem:[#allocation12 + $0x1a4] ss:$8 sps:$4 sm:$0xff]  }
 0x89e   :  { %7472 = vmatprep.mubr.bf16.mxu1 %v6005_v41  ;;  %7526 = vmatpush1.bf16.msra.mxu1 %v13646_v35  ;;  %v13658_v35 = vld [vmem:[#allocation12 + $0x1a0] ss:$8 sps:$4 sm:$0xff]   ;;  %v13663_v41 = vld [vmem:[#allocation12 + $0x1b4] ss:$8 sps:$4 sm:$0xff]  }
 0x89f   :  { %7527 = vmatprep.subr.bf16.mxu1 %v13651_v13  ;;  %v6006_v13 = vmul.bf16 %v18285_v54, %v17920_v36  ;;  %v20160_v36 = vld [vmem:[#allocation94_spill] sm:$0xff] }
 0x8a2   :  { %7528 = vmatpush1.bf16.msra.mxu1 %v13649_v40  ;;  %v6009_v40 = vmul.bf16 %v18344_v62, %v17928_v59 }
 0x8a3   :  { %7529 = vmatprep.subr.bf16.mxu1 %v13654_v24  ;;  %v13661_v24 = vld [vmem:[#allocation12 + $0x1b0] ss:$8 sps:$4 sm:$0xff]  }
 0x8a5   :  { %7473 = vmatmul.mubr.bf16.gmra.mrb[192].mxu1 %v6004_v37  ;;  %v13666_v37 = vld [vmem:[#allocation12 + $0x1c4] ss:$8 sps:$4 sm:$0xff]  }
 0x8a6   :  { %7482 = vmatprep.mubr.bf16.mxu1 %v6007_v38  ;;  %7530 = vmatpush1.bf16.msra.mxu1 %v13652_v21  ;;  %v13664_v21 = vld [vmem:[#allocation12 + $0x1c0] ss:$8 sps:$4 sm:$0xff]   ;;  %v13669_v38 = vld [vmem:[#allocation12 + $0x1d4] ss:$8 sps:$4 sm:$0xff]  }
 0x8a7   :  { %7531 = vmatprep.subr.bf16.mxu1 %v13657_v45  ;;  %v6008_v45 = vmul.bf16 %v18337_v2, %v17928_v59  ;;  %v20159_v59 = vld [vmem:[#allocation96_spill] sm:$0xff]  ;;  %v20185_v2 = vld [vmem:[#allocation75_spill] sm:$0xff] }
 0x8a8   :  { %v20161_v12 = vpack.c.bf16 %v20159_v59, %v20160_v36 }
 0x8aa   :  { %7532 = vmatpush1.bf16.msra.mxu1 %v13655_v56  ;;  %v6011_v56 = vmul.bf16 %v18396_v28, %v17936_v3 }
 0x8ab   :  { %7533 = vmatprep.subr.bf16.mxu1 %v13660_v27  ;;  %v13667_v27 = vld [vmem:[#allocation12 + $0x1d0] ss:$8 sps:$4 sm:$0xff]  }
 0x8ad   :  { %7483 = vmatmul.mubr.bf16.gmra.mrb[196].mxu1 %v6006_v13  ;;  %v13672_v13 = vld [vmem:[#allocation12 + $0x1e4] ss:$8 sps:$4 sm:$0xff]  }
 0x8ae   :  { %7492 = vmatprep.mubr.bf16.mxu1 %v6009_v40  ;;  %7534 = vmatpush1.bf16.msra.mxu1 %v13658_v35  ;;  %v13670_v35 = vld [vmem:[#allocation12 + $0x1e0] ss:$8 sps:$4 sm:$0xff]   ;;  %v13675_v40 = vld [vmem:[#allocation12 + $0x1f4] ss:$8 sps:$4 sm:$0xff]  }
 0x8af   :  { %7535 = vmatprep.subr.bf16.mxu1 %v13663_v41  ;;  %v6010_v41 = vmul.bf16 %v18389_v17, %v17936_v3  ;;  %v20171_v17 = vpack.c.bf16 %v18445_v48, %v18417_v4 }
 0x8b2   :  { %7536 = vmatpush1.bf16.msra.mxu1 %v13661_v24  ;;  %v20143_v24 = vpack.c.bf16 %v18067_v46, %v18441_v16 }
 0x8b3   :  { %7537 = vmatprep.subr.bf16.mxu1 %v13666_v37 }
 0x8b4   :  { %v6109_v37 = vmul.bf16 %v20143_v24, %v20064_v18  ;;  %v6111_v24 = vmul.bf16 %v20145_v34, %v20067_v7 }
 0x8b5   :  { %7493 = vmatmul.mubr.bf16.gmra.mrb[200].mxu1 %v6008_v45  ;;  %v13673_v45 = vld [vmem:[#allocation12 + $0x1f0] ss:$8 sps:$4 sm:$0xff]  }
 0x8b6   :  { %7502 = vmatprep.mubr.bf16.mxu1 %v6011_v56  ;;  %7538 = vmatpush1.bf16.msra.mxu1 %v13664_v21  ;;  %v13678_v21 = vld [vmem:[#allocation12 + $0x204] ss:$8 sps:$4 sm:$0xff]   ;;  %v20144_v56 = vpack.c.bf16 %v18059_v47, %v18425_v5 }
 0x8b7   :  { %7539 = vmatprep.subr.bf16.mxu1 %v13669_v38  ;;  %v13676_v38 = vld [vmem:[#allocation12 + $0x200] ss:$8 sps:$4 sm:$0xff]  }
 0x8ba   :  { %7540 = vmatpush1.bf16.msra.mxu1 %v13667_v27  ;;  %v6108_v27 = vmul.bf16 %v20144_v56, %v20064_v18  ;;  %v13690_v56 = vld [vmem:[#allocation12 + $0x244] ss:$8 sps:$4 sm:$0xff]  }
 0x8bb   :  { %7541 = vmatprep.subr.bf16.mxu1 %v13672_v13  ;;  %v13681_v13 = vld [vmem:[#allocation12 + $0x214] ss:$8 sps:$4 sm:$0xff]  }
 0x8bd   :  { %7503 = vmatmul.mubr.bf16.gmra.mrb[204].mxu1 %v6010_v41  ;;  %v13684_v41 = vld [vmem:[#allocation12 + $0x224] ss:$8 sps:$4 sm:$0xff]  }
 0x8be   :  { %7542 = vmatpush1.bf16.msra.mxu1 %v13670_v35  ;;  %7545 = vmatprep.mubr.bf16.mxu1 %v6109_v37  ;;  %v13679_v35 = vld [vmem:[#allocation12 + $0x210] ss:$8 sps:$4 sm:$0xff]   ;;  %v20146_v37 = vpack.c.bf16 %v18104_v9, %v18092_v25 }
 0x8bf   :  { %7543 = vmatprep.subr.bf16.mxu1 %v13675_v40  ;;  %v13682_v40 = vld [vmem:[#allocation12 + $0x220] ss:$8 sps:$4 sm:$0xff]  }
 0x8c0   :  { %v6110_v18 = vmul.bf16 %v20146_v37, %v20067_v7 }
 0x8c2   :  { %7544 = vmatpush1.bf16.msra.mxu1 %v13673_v45  ;;  %v13687_v45 = vld [vmem:[#allocation12 + $0x234] ss:$8 sps:$4 sm:$0xff]  }
 0x8c3   :  { %7626 = vmatprep.subr.bf16.mxu1 %v13678_v21  ;;  %v20147_v21 = vpack.c.bf16 %v18167_v58, %v18151_v0 }
 0x8c5   :  { %7546 = vmatmul.mubr.bf16.vlgmr.msra.gmra.mrb[176].mxu1 %v6108_v27  ;;  %v6113_v34 = vmul.bf16 %v20147_v21, %v16955_v19  ;;  %v13688_v27 = vld [vmem:[#allocation12 + $0x240] ss:$8 sps:$4 sm:$0xff]   ;;  %v20151_v21 = vpack.c.bf16 %v18210_v11, %v18196_v33 }
 0x8c6   :  { %7555 = vmatprep.mubr.bf16.mxu1 %v6111_v24  ;;  %7627 = vmatpush1.bf16.msra.mxu1 %v13676_v38  ;;  %v13685_v38 = vld [vmem:[#allocation12 + $0x230] ss:$8 sps:$4 sm:$0xff]   ;;  %v13693_v24 = vld [vmem:[#allocation12 + $0x254] ss:$8 sps:$4 sm:$0xff]  }
 0x8c7   :  { %7628 = vmatprep.subr.bf16.mxu1 %v13681_v13  ;;  %v20148_v13 = vpack.c.bf16 %v18158_v14, %v18144_v39 }
 0x8c9   :  { %v6112_v7 = vmul.bf16 %v20148_v13, %v16955_v19 }
 0x8ca   :  { %7629 = vmatpush1.bf16.msra.mxu1 %v13679_v35  ;;  %v20149_v35 = vld [vmem:[#allocation58_spill] sm:$0xff] }
 0x8cb   :  { %7630 = vmatprep.subr.bf16.mxu1 %v13684_v41  ;;  %v20150_v41 = vpack.c.bf16 %v18219_v1, %v18203_v15  ;;  %v6114_v19 = vmul.bf16 %v20151_v21, %v20149_v35  ;;  %v20158_v21 = vld [vmem:[#allocation59_spill] sm:$0xff] }
 0x8cd   :  { %7556 = vmatmul.mubr.bf16.gmra.mrb[180].mxu1 %v6110_v18  ;;  %v6115_v37 = vmul.bf16 %v20150_v41, %v20149_v35  ;;  %v13696_v18 = vld [vmem:[#allocation12 + $0x264] ss:$8 sps:$4 sm:$0xff]  }
 0x8ce   :  { %7565 = vmatprep.mubr.bf16.mxu1 %v6113_v34  ;;  %7631 = vmatpush1.bf16.msra.mxu1 %v13682_v40  ;;  %v13691_v40 = vld [vmem:[#allocation12 + $0x250] ss:$8 sps:$4 sm:$0xff]   ;;  %v13699_v34 = vld [vmem:[#allocation12 + $0x274] ss:$8 sps:$4 sm:$0xff]  }
 0x8cf   :  { %7632 = vmatprep.subr.bf16.mxu1 %v13687_v45  ;;  %v13694_v45 = vld [vmem:[#allocation12 + $0x260] ss:$8 sps:$4 sm:$0xff]  }
 0x8d2   :  { %7633 = vmatpush1.bf16.msra.mxu1 %v13685_v38  ;;  %v20152_v38 = vld [vmem:[#allocation41_spill] sm:$0xff] }
 0x8d3   :  { %7634 = vmatprep.subr.bf16.mxu1 %v13690_v56  ;;  %v20153_v56 = vld [vmem:[#allocation87_spill] sm:$0xff] }
 0x8d4   :  { %v20154_v13 = vpack.c.bf16 %v18271_v52, %v20153_v56 }
 0x8d5   :  { %7566 = vmatmul.mubr.bf16.gmra.mrb[184].mxu1 %v6112_v7  ;;  %v13702_v7 = vld [vmem:[#allocation12 + $0x284] ss:$8 sps:$4 sm:$0xff]  }
 0x8d6   :  { %7575 = vmatprep.mubr.bf16.mxu1 %v6115_v37  ;;  %7635 = vmatpush1.bf16.msra.mxu1 %v13688_v27  ;;  %v6117_v41 = vmul.bf16 %v20154_v13, %v20152_v38  ;;  %v13697_v27 = vld [vmem:[#allocation12 + $0x270] ss:$8 sps:$4 sm:$0xff]   ;;  %v20155_v37 = vld [vmem:[#allocation88_spill] sm:$0xff]  ;;  %v6119_v13 = vmul.bf16 %v20161_v12, %v20158_v21 }
 0x8d7   :  { %7636 = vmatprep.subr.bf16.mxu1 %v13693_v24  ;;  %v13700_v24 = vld [vmem:[#allocation12 + $0x280] ss:$8 sps:$4 sm:$0xff]  }
 0x8da   :  { %7637 = vmatpush1.bf16.msra.mxu1 %v13691_v40  ;;  %v20156_v40 = vld [vmem:[#allocation86_spill] sm:$0xff] }
 0x8db   :  { %7638 = vmatprep.subr.bf16.mxu1 %v13696_v18  ;;  %v20157_v3 = vpack.c.bf16 %v20155_v37, %v20156_v40  ;;  %v13705_v18 = vld [vmem:[#allocation12 + $0x294] ss:$8 sps:$4 sm:$0xff]  }
 0x8dd   :  { %7576 = vmatmul.mubr.bf16.gmra.mrb[188].mxu1 %v6114_v19  ;;  %v6116_v35 = vmul.bf16 %v20157_v3, %v20152_v38  ;;  %v13708_v19 = vld [vmem:[#allocation12 + $0x2a4] ss:$8 sps:$4 sm:$0xff]   ;;  %v13711_v38 = vld [vmem:[#allocation12 + $0x2b4] ss:$8 sps:$4 sm:$0xff]  }
 0x8de   :  { %7585 = vmatprep.mubr.bf16.mxu1 %v6117_v41  ;;  %7639 = vmatpush1.bf16.msra.mxu1 %v13694_v45  ;;  %v13703_v45 = vld [vmem:[#allocation12 + $0x290] ss:$8 sps:$4 sm:$0xff]   ;;  %v20162_v41 = vld [vmem:[#allocation95_spill] sm:$0xff] }
 0x8df   :  { %7640 = vmatprep.subr.bf16.mxu1 %v13699_v34  ;;  %v13706_v34 = vld [vmem:[#allocation12 + $0x2a0] ss:$8 sps:$4 sm:$0xff]  }
 0x8e2   :  { %7641 = vmatpush1.bf16.msra.mxu1 %v13697_v27  ;;  %v20163_v27 = vld [vmem:[#allocation93_spill] sm:$0xff] }
 0x8e3   :  { %7642 = vmatprep.subr.bf16.mxu1 %v13702_v7  ;;  %v20164_v30 = vpack.c.bf16 %v20162_v41, %v20163_v27  ;;  %v20165_v7 = vld [vmem:[#allocation44_spill] sm:$0xff] }
 0x8e4   :  { %v6121_v12 = vmul.bf16 %v20167_v60, %v20165_v7 }
 0x8e5   :  { %7586 = vmatmul.mubr.bf16.gmra.mrb[192].mxu1 %v6116_v35  ;;  %v6118_v3 = vmul.bf16 %v20164_v30, %v20158_v21  ;;  %v13714_v35 = vld [vmem:[#allocation12 + $0x2c4] ss:$8 sps:$4 sm:$0xff]   ;;  %v13717_v21 = vld [vmem:[#allocation12 + $0x2d4] ss:$8 sps:$4 sm:$0xff]  }
 0x8e6   :  { %7595 = vmatprep.mubr.bf16.mxu1 %v6119_v13  ;;  %7643 = vmatpush1.bf16.msra.mxu1 %v13700_v24  ;;  %v13709_v24 = vld [vmem:[#allocation12 + $0x2b0] ss:$8 sps:$4 sm:$0xff]  }
 0x8e7   :  { %7644 = vmatprep.subr.bf16.mxu1 %v13705_v18  ;;  %v13712_v18 = vld [vmem:[#allocation12 + $0x2c0] ss:$8 sps:$4 sm:$0xff]   ;;  %v20168_v13 = vld [vmem:[#allocation102_spill] sm:$0xff] }
 0x8ea   :  { %7645 = vmatpush1.bf16.msra.mxu1 %v13703_v45  ;;  %v20169_v45 = vpack.c.bf16 %v18366_v63, %v20168_v13 }
 0x8eb   :  { %7646 = vmatprep.subr.bf16.mxu1 %v13708_v19  ;;  %v20170_v19 = vld [vmem:[#allocation60_spill] sm:$0xff] }
 0x8ec   :  { %v6120_v30 = vmul.bf16 %v20169_v45, %v20165_v7  ;;  %v6123_v60 = vmul.bf16 %v20171_v17, %v20170_v19  ;;  %v13721_v45 = vld [vmem:[#allocation12 + $0x2f0] ss:$8 sps:$4 sm:$0xff]  }
 0x8ed   :  { %7596 = vmatmul.mubr.bf16.gmra.mrb[196].mxu1 %v6118_v3  ;;  %v13720_v3 = vld [vmem:[#allocation12 + $0x2e4] ss:$8 sps:$4 sm:$0xff]  }
 0x8ee   :  { %7605 = vmatprep.mubr.bf16.mxu1 %v6121_v12  ;;  %7647 = vmatpush1.bf16.msra.mxu1 %v13706_v34  ;;  %v13715_v34 = vld [vmem:[#allocation12 + $0x2d0] ss:$8 sps:$4 sm:$0xff]   ;;  %v20172_v12 = vpack.c.bf16 %v18429_v31, %v18408_v42 }
 0x8ef   :  { %7648 = vmatprep.subr.bf16.mxu1 %v13711_v38  ;;  %v13718_v38 = vld [vmem:[#allocation12 + $0x2e0] ss:$8 sps:$4 sm:$0xff]  }
 0x8f0   :  { %v6122_v7 = vmul.bf16 %v20172_v12, %v20170_v19  ;;  %v20178_v19 = vld [vmem:[#allocation73_spill] sm:$0xff] }
 0x8f2   :  { %7649 = vmatpush1.bf16.msra.mxu1 %v13709_v24  ;;  %v13723_v24 = vld [vmem:[#allocation12 + $0x2f4] ss:$8 sps:$4 sm:$0xff]  }
 0x8f3   :  { %7650 = vmatprep.subr.bf16.mxu1 %v13714_v35  ;;  %v20173_v35 = vld [vmem:[#allocation69_spill] sm:$0xff] }
 0x8f4   :  { %v20174_v17 = vpack.c.bf16 %v20173_v35, %v18040_v32  ;;  %v13732_v32 = vld [vmem:[#allocation12 + $0x324] ss:$8 sps:$4 sm:$0xff]  }
 0x8f5   :  { %7606 = vmatmul.mubr.bf16.gmra.mrb[200].mxu1 %v6120_v30  ;;  %v13724_v30 = vld [vmem:[#allocation12 + $0x300] ss:$8 sps:$4 sm:$0xff]  }
 0x8f6   :  { %7615 = vmatprep.mubr.bf16.mxu1 %v6123_v60  ;;  %7651 = vmatpush1.bf16.msra.mxu1 %v13712_v18  ;;  %v13726_v18 = vld [vmem:[#allocation12 + $0x304] ss:$8 sps:$4 sm:$0xff]  }
 0x8f7   :  { %7652 = vmatprep.subr.bf16.mxu1 %v13717_v21  ;;  %v13729_v21 = vld [vmem:[#allocation12 + $0x314] ss:$8 sps:$4 sm:$0xff]   ;;  %v20175_v60 = vld [vmem:[#allocation68_spill] sm:$0xff] }
 0x8f8   :  { %v20181_v35 = vld [vmem:[#allocation72_spill] sm:$0xff] }
 0x8fa   :  { %7653 = vmatpush1.bf16.msra.mxu1 %v13715_v34  ;;  %v20176_v34 = vld [vmem:[#allocation67_spill] sm:$0xff] }
 0x8fb   :  { %7654 = vmatprep.subr.bf16.mxu1 %v13720_v3  ;;  %v20177_v28 = vpack.c.bf16 %v20175_v60, %v20176_v34  ;;  %v20179_v3 = vld [vmem:[#allocation71_spill] sm:$0xff] }
 0x8fc   :  { %v20180_v12 = vpack.c.bf16 %v20178_v19, %v20179_v3  ;;  %v13738_v34 = vld [vmem:[#allocation12 + $0x344] ss:$8 sps:$4 sm:$0xff]   ;;  %v20188_v3 = vld [vmem:[#allocation74_spill] sm:$0xff] }
 0x8fd   :  { %7616 = vmatmul.mubr.bf16.gmra.mrb[204].mxu1 %v6122_v7  ;;  %v13730_v7 = vld [vmem:[#allocation12 + $0x320] ss:$8 sps:$4 sm:$0xff]  }
 0x8fe   :  { %7655 = vmatpush1.bf16.msra.mxu1 %v13718_v38  ;;  %7658 = vmatprep.mubr.bf16.mxu1 %v20174_v17  ;;  %v13727_v38 = vld [vmem:[#allocation12 + $0x310] ss:$8 sps:$4 sm:$0xff]   ;;  %v20187_v19 = vld [vmem:[#allocation76_spill] sm:$0xff] }
 0x8ff   :  { %7656 = vmatprep.subr.bf16.mxu1 %v13723_v24  ;;  %v13735_v24 = vld [vmem:[#allocation12 + $0x334] ss:$8 sps:$4 sm:$0xff]  }
 0x900   :  { %v20182_v17 = vld [vmem:[#allocation70_spill] sm:$0xff] }
 0x902   :  { %7657 = vmatpush1.bf16.msra.mxu1 %v13721_v45  ;;  %v20183_v45 = vpack.c.bf16 %v20181_v35, %v20182_v17  ;;  %v13739_v17 = vld [vmem:[#allocation12 + $0x350] ss:$8 sps:$4 sm:$0xff]  }
 0x903   :  { %7739 = vmatprep.subr.bf16.mxu1 %v13726_v18  ;;  %v20184_v18 = vld [vmem:[#allocation77_spill] sm:$0xff] }
 0x904   :  { %v20186_v60 = vpack.c.bf16 %v20184_v18, %v20185_v2  ;;  %v13744_v2 = vld [vmem:[#allocation12 + $0x364] ss:$8 sps:$4 sm:$0xff]   ;;  %v20194_v18 = vld [vmem:[#allocation78_spill] sm:$0xff] }
 0x905   :  { %7659 = vmatmul.mubr.bf16.vlgmr.msra.gmra.mrb[176].mxu1 %v20177_v28  ;;  %v13733_v28 = vld [vmem:[#allocation12 + $0x330] ss:$8 sps:$4 sm:$0xff]  }
 0x906   :  { %7668 = vmatprep.mubr.bf16.mxu1 %v20180_v12  ;;  %7740 = vmatpush1.bf16.msra.mxu1 %v13724_v30  ;;  %v13736_v30 = vld [vmem:[#allocation12 + $0x340] ss:$8 sps:$4 sm:$0xff]   ;;  %v20189_v12 = vpack.c.bf16 %v20187_v19, %v20188_v3  ;;  %v13745_v3 = vld [vmem:[#allocation12 + $0x370] ss:$8 sps:$4 sm:$0xff]  }
 0x907   :  { %7741 = vmatprep.subr.bf16.mxu1 %v13729_v21  ;;  %v13741_v21 = vld [vmem:[#allocation12 + $0x354] ss:$8 sps:$4 sm:$0xff]  }
 0x90a   :  { %7742 = vmatpush1.bf16.msra.mxu1 %v13727_v38  ;;  %v20190_v38 = vld [vmem:[#allocation81_spill] sm:$0xff] }
 0x90b   :  { %7743 = vmatprep.subr.bf16.mxu1 %v13732_v32  ;;  %v20191_v32 = vld [vmem:[#allocation79_spill] sm:$0xff] }
 0x90c   :  { %v20192_v35 = vpack.c.bf16 %v20190_v38, %v20191_v32  ;;  %v20199_v38 = vld [vmem:[#allocation84_spill] sm:$0xff]  ;;  %v20200_v32 = vld [vmem:[#allocation82_spill] sm:$0xff] }
 0x90d   :  { %7669 = vmatmul.mubr.bf16.gmra.mrb[180].mxu1 %v20183_v45  ;;  %v20193_v45 = vld [vmem:[#allocation80_spill] sm:$0xff] }
 0x90e   :  { %7678 = vmatprep.mubr.bf16.mxu1 %v20186_v60  ;;  %7744 = vmatpush1.bf16.msra.mxu1 %v13730_v7  ;;  %v13742_v7 = vld [vmem:[#allocation12 + $0x360] ss:$8 sps:$4 sm:$0xff]   ;;  %v20195_v60 = vpack.c.bf16 %v20193_v45, %v20194_v18  ;;  %v13751_v18 = vld [vmem:[#allocation12 + $0x390] ss:$8 sps:$4 sm:$0xff]  }
 0x90f   :  { %7745 = vmatprep.subr.bf16.mxu1 %v13735_v24  ;;  %v13747_v24 = vld [vmem:[#allocation12 + $0x374] ss:$8 sps:$4 sm:$0xff]  }
 0x912   :  { %7746 = vmatpush1.bf16.msra.mxu1 %v13733_v28  ;;  %v20196_v28 = vld [vmem:[#allocation85_spill] sm:$0xff] }
 0x913   :  { %7747 = vmatprep.subr.bf16.mxu1 %v13738_v34  ;;  %v20197_v34 = vld [vmem:[#allocation83_spill] sm:$0xff] }
 0x914   :  { %v20198_v19 = vpack.c.bf16 %v20196_v28, %v20197_v34  ;;  %v20205_v28 = vld [vmem:[#allocation91_spill] sm:$0xff]  ;;  %v20206_v34 = vld [vmem:[#allocation89_spill] sm:$0xff] }
 0x915   :  { %7679 = vmatmul.mubr.bf16.gmra.mrb[184].mxu1 %v20189_v12  ;;  %v13750_v12 = vld [vmem:[#allocation12 + $0x384] ss:$8 sps:$4 sm:$0xff]  }
 0x916   :  { %7688 = vmatprep.mubr.bf16.mxu1 %v20192_v35  ;;  %7748 = vmatpush1.bf16.msra.mxu1 %v13736_v30  ;;  %v13748_v30 = vld [vmem:[#allocation12 + $0x380] ss:$8 sps:$4 sm:$0xff]   ;;  %v20201_v35 = vpack.c.bf16 %v20199_v38, %v20200_v32  ;;  %v13757_v32 = vld [vmem:[#allocation12 + $0x3b0] ss:$8 sps:$4 sm:$0xff]  }
 0x917   :  { %7749 = vmatprep.subr.bf16.mxu1 %v13741_v21  ;;  %v13753_v21 = vld [vmem:[#allocation12 + $0x394] ss:$8 sps:$4 sm:$0xff]  }
 0x91a   :  { %7750 = vmatpush1.bf16.msra.mxu1 %v13739_v17  ;;  %v20202_v17 = vld [vmem:[#allocation92_spill] sm:$0xff] }
 0x91b   :  { %7751 = vmatprep.subr.bf16.mxu1 %v13744_v2  ;;  %v20203_v2 = vld [vmem:[#allocation90_spill] sm:$0xff] }
 0x91c   :  { %v20204_v45 = vpack.c.bf16 %v20202_v17, %v20203_v2  ;;  %v20211_v17 = vld [vmem:[#allocation100_spill] sm:$0xff]  ;;  %v20212_v2 = vld [vmem:[#allocation97_spill] sm:$0xff] }
 0x91d   :  { %7689 = vmatmul.mubr.bf16.gmra.mrb[188].mxu1 %v20195_v60  ;;  %v13756_v60 = vld [vmem:[#allocation12 + $0x3a4] ss:$8 sps:$4 sm:$0xff]  }
 0x91e   :  { %7698 = vmatprep.mubr.bf16.mxu1 %v20198_v19  ;;  %7752 = vmatpush1.bf16.msra.mxu1 %v13742_v7  ;;  %v13754_v7 = vld [vmem:[#allocation12 + $0x3a0] ss:$8 sps:$4 sm:$0xff]   ;;  %v20207_v19 = vpack.c.bf16 %v20205_v28, %v20206_v34  ;;  %v13768_v28 = vld [vmem:[#allocation12 + $0x3e4] ss:$8 sps:$4 sm:$0xff]   ;;  %v20215_v34 = vld [vmem:[#allocation46_spill] sm:$0xff] }
 0x91f   :  { %7753 = vmatprep.subr.bf16.mxu1 %v13747_v24  ;;  %v13759_v24 = vld [vmem:[#allocation12 + $0x3b4] ss:$8 sps:$4 sm:$0xff]  }
 0x922   :  { %7754 = vmatpush1.bf16.msra.mxu1 %v13745_v3  ;;  %v20208_v3 = vld [vmem:[#allocation101_spill] sm:$0xff] }
 0x923   :  { %7755 = vmatprep.subr.bf16.mxu1 %v13750_v12  ;;  %v20209_v12 = vld [vmem:[#allocation98_spill] sm:$0xff] }
 0x924   :  { %v20210_v38 = vpack.c.bf16 %v20208_v3, %v20209_v12  ;;  %v20217_v12 = vpack.c.bf16 %v18392_v57, %v18379_v49  ;;  %v13775_v49 = vld [vmem:[#allocation12 + $0x410] ss:$8 sps:$4 sm:$0xff]  }
 0x925   :  { %7699 = vmatmul.mubr.bf16.gmra.mrb[192].mxu1 %v20201_v35  ;;  %v13762_v35 = vld [vmem:[#allocation12 + $0x3c4] ss:$8 sps:$4 sm:$0xff]  }
 0x926   :  { %7708 = vmatprep.mubr.bf16.mxu1 %v20204_v45  ;;  %7756 = vmatpush1.bf16.msra.mxu1 %v13748_v30  ;;  %v13760_v30 = vld [vmem:[#allocation12 + $0x3c0] ss:$8 sps:$4 sm:$0xff]   ;;  %v20213_v45 = vpack.c.bf16 %v20211_v17, %v20212_v2  ;;  %v13783_v2 = vld [vmem:[#allocation12 + $0x434] ss:$8 sps:$4 sm:$0xff]  }
 0x927   :  { %7757 = vmatprep.subr.bf16.mxu1 %v13753_v21  ;;  %v13765_v21 = vld [vmem:[#allocation12 + $0x3d4] ss:$8 sps:$4 sm:$0xff]   ;;  %v13778_v17 = vld [vmem:[#allocation12 + $0x420] ss:$8 sps:$4 sm:$0xff]  }
 0x92a   :  { %7758 = vmatpush1.bf16.msra.mxu1 %v13751_v18  ;;  %v20214_v18 = vpack.c.bf16 %v18399_v8, %v18384_v53  ;;  %v13769_v53 = vld [vmem:[#allocation12 + $0x3f0] ss:$8 sps:$4 sm:$0xff]   ;;  %v13774_v8 = vld [vmem:[#allocation12 + $0x404] ss:$8 sps:$4 sm:$0xff]  }
 0x92b   :  { %7759 = vmatprep.subr.bf16.mxu1 %v13756_v60  ;;  %v13763_v60 = vld [vmem:[#allocation12 + $0x3d0] ss:$8 sps:$4 sm:$0xff]  }
 0x92d   :  { %7709 = vmatmul.mubr.bf16.gmra.mrb[196].mxu1 %v20207_v19  ;;  %v20216_v19 = vpack.c.bf16 %v18097_v50, %v18067_v46  ;;  %v20219_v46 = vld [vmem:[#allocation51_spill] sm:$0xff]  ;;  %v20220_v50 = vpack.c.bf16 %v18151_v0, %v18113_v20  ;;  %v20223_v20 = vpack.c.bf16 %v18203_v15, %v18167_v58  ;;  %v20226_v15 = vpack.c.bf16 %v20153_v56, %v18219_v1 }
 0x92e   :  { %7718 = vmatprep.mubr.bf16.mxu1 %v20210_v38  ;;  %7760 = vmatpush1.bf16.msra.mxu1 %v13754_v7  ;;  %v13766_v7 = vld [vmem:[#allocation12 + $0x3e0] ss:$8 sps:$4 sm:$0xff]   ;;  %v20229_v1 = vpack.c.bf16 %v20160_v36, %v18271_v52  ;;  %v20232_v52 = vpack.c.bf16 %v20166_v29, %v20159_v59  ;;  %v20235_v29 = vpack.c.bf16 %v18417_v4, %v18375_v55 }
 0x92f   :  { %7761 = vmatprep.subr.bf16.mxu1 %v13759_v24  ;;  %v13771_v24 = vld [vmem:[#allocation12 + $0x3f4] ss:$8 sps:$4 sm:$0xff]   ;;  %v6173_v3 = vmul.bf16 %v20216_v19, %v20215_v34  ;;  %v13772_v38 = vld [vmem:[#allocation12 + $0x400] ss:$8 sps:$4 sm:$0xff]   ;;  %v6175_v57 = vmul.bf16 %v20220_v50, %v20219_v46  ;;  %v13792_v19 = vld [vmem:[#allocation12 + $0x464] ss:$8 sps:$4 sm:$0xff]   ;;  %v20238_v55 = vpack.c.bf16 %v18441_v16, %v18445_v48 }
 0x930   :  { %v13804_v50 = vld [vmem:[#allocation12 + $0x4a4] ss:$8 sps:$4 sm:$0xff]   ;;  %v13817_v16 = vld [vmem:[#allocation12 + $0x4f0] ss:$8 sps:$4 sm:$0xff]  }
 0x931   :  { %v13822_v48 = vld [vmem:[#allocation12 + $0x504] ss:$8 sps:$4 sm:$0xff]  }
 0x932   :  { %7762 = vmatpush1.bf16.msra.mxu1 %v13757_v32  ;;  %v20218_v32 = vpack.c.bf16 %v18092_v25, %v18059_v47  ;;  %v20221_v47 = vpack.c.bf16 %v18144_v39, %v18104_v9  ;;  %v20224_v9 = vpack.c.bf16 %v18196_v33, %v18158_v14  ;;  %v20227_v14 = vpack.c.bf16 %v20156_v40, %v18210_v11 }
 0x933   :  { %7763 = vmatprep.subr.bf16.mxu1 %v13762_v35  ;;  %v20230_v11 = vpack.c.bf16 %v20163_v27, %v20155_v37  ;;  %v20233_v37 = vpack.c.bf16 %v20168_v13, %v20162_v41  ;;  %v20236_v41 = vpack.c.bf16 %v18408_v42, %v18366_v63  ;;  %v20239_v63 = vpack.c.bf16 %v18425_v5, %v18429_v31  ;;  %v20241_v5 = vld [vmem:[#allocation37_spill] sm:$0xff] }
 0x934   :  { %v6172_v35 = vmul.bf16 %v20218_v32, %v20215_v34  ;;  %v6174_v25 = vmul.bf16 %v20221_v47, %v20219_v46  ;;  %v13787_v34 = vld [vmem:[#allocation12 + $0x450] ss:$8 sps:$4 sm:$0xff]   ;;  %v13796_v32 = vld [vmem:[#allocation12 + $0x480] ss:$8 sps:$4 sm:$0xff]   ;;  %v13810_v47 = vld [vmem:[#allocation12 + $0x4c4] ss:$8 sps:$4 sm:$0xff]   ;;  %v6207_v31 = vmul.bf16 %v18136_v26, %v20241_v5 }
 0x935   :  { %7719 = vmatmul.mubr.bf16.gmra.mrb[200].mxu1 %v20213_v45  ;;  %v20222_v45 = vld [vmem:[#allocation49_spill] sm:$0xff] }
 0x936   :  { %7728 = vmatprep.mubr.bf16.mxu1 %v20214_v18  ;;  %7764 = vmatpush1.bf16.msra.mxu1 %v13760_v30  ;;  %v13777_v30 = vld [vmem:[#allocation12 + $0x414] ss:$8 sps:$4 sm:$0xff]   ;;  %v6177_v0 = vmul.bf16 %v20223_v20, %v20222_v45  ;;  %v13781_v18 = vld [vmem:[#allocation12 + $0x430] ss:$8 sps:$4 sm:$0xff]   ;;  %v6176_v39 = vmul.bf16 %v20224_v9, %v20222_v45  ;;  %v20237_v45 = vld [vmem:[#allocation31_spill] sm:$0xff] }
 0x937   :  { %7765 = vmatprep.subr.bf16.mxu1 %v13765_v21  ;;  %v13780_v21 = vld [vmem:[#allocation12 + $0x424] ss:$8 sps:$4 sm:$0xff]   ;;  %v13799_v46 = vld [vmem:[#allocation12 + $0x490] ss:$8 sps:$4 sm:$0xff]   ;;  %v6187_v4 = vmul.bf16 %v20238_v55, %v20237_v45  ;;  %v6186_v42 = vmul.bf16 %v20239_v63, %v20237_v45  ;;  %v13844_v45 = vld [vmem:[#allocation14] ss:$8 sps:$4 sm:$0xff]  }
 0x938   :  { %v13811_v20 = vld [vmem:[#allocation12 + $0x4d0] ss:$8 sps:$4 sm:$0xff]   ;;  %v13846_v55 = vld [vmem:[#allocation14 + $0x4] ss:$8 sps:$4 sm:$0xff]  }
 0x939   :  { %v13829_v26 = vld [vmem:[#allocation12 + $0x530] ss:$8 sps:$4 sm:$0xff]   ;;  %8858 = vmatprep.subr.bf16.mxu0 %v13846_v55 }
 0x93a   :  { %7766 = vmatpush1.bf16.msra.mxu1 %v13763_v60  ;;  %v13786_v60 = vld [vmem:[#allocation12 + $0x444] ss:$8 sps:$4 sm:$0xff]   ;;  %8859 = vmatpush1.bf16.msra.mxu0 %v13844_v45  ;;  %v13853_v63 = vld [vmem:[#allocation14 + $0x30] ss:$8 sps:$4 sm:$0xff]  }
 0x93b   :  { %7767 = vmatprep.subr.bf16.mxu1 %v13768_v28  ;;  %v13784_v28 = vld [vmem:[#allocation12 + $0x440] ss:$8 sps:$4 sm:$0xff]  }
 0x93d   :  { %7729 = vmatmul.mubr.bf16.gmra.mrb[204].mxu1 %v20217_v12  ;;  %v13795_v12 = vld [vmem:[#allocation12 + $0x474] ss:$8 sps:$4 sm:$0xff]  }
 0x93e   :  { %7768 = vmatpush1.bf16.msra.mxu1 %v13766_v7  ;;  %7771 = vmatprep.mubr.bf16.mxu1 %v6173_v3  ;;  %v13789_v7 = vld [vmem:[#allocation12 + $0x454] ss:$8 sps:$4 sm:$0xff]   ;;  %v13790_v3 = vld [vmem:[#allocation12 + $0x460] ss:$8 sps:$4 sm:$0xff]  }
 0x93f   :  { %7769 = vmatprep.subr.bf16.mxu1 %v13771_v24  ;;  %v20225_v24 = vld [vmem:[#allocation48_spill] sm:$0xff] }
 0x940   :  { %v6179_v58 = vmul.bf16 %v20226_v15, %v20225_v24  ;;  %v6178_v33 = vmul.bf16 %v20227_v14, %v20225_v24  ;;  %v13825_v24 = vld [vmem:[#allocation12 + $0x514] ss:$8 sps:$4 sm:$0xff]   ;;  %v13828_v15 = vld [vmem:[#allocation12 + $0x524] ss:$8 sps:$4 sm:$0xff]  }
 0x941   :  { %v13834_v14 = vld [vmem:[#allocation12 + $0x544] ss:$8 sps:$4 sm:$0xff]  }
 0x942   :  { %7770 = vmatpush1.bf16.msra.mxu1 %v13769_v53  ;;  %v20228_v53 = vld [vmem:[#allocation54_spill] sm:$0xff] }
 0x943   :  { %7852 = vmatprep.subr.bf16.mxu1 %v13774_v8  ;;  %v6181_v56 = vmul.bf16 %v20229_v1, %v20228_v53  ;;  %v13793_v8 = vld [vmem:[#allocation12 + $0x470] ss:$8 sps:$4 sm:$0xff]   ;;  %v6180_v40 = vmul.bf16 %v20230_v11, %v20228_v53  ;;  %v13837_v53 = vld [vmem:[#allocation12 + $0x554] ss:$8 sps:$4 sm:$0xff]   ;;  %v20244_v11 = vld [vmem:[#allocation39_spill] sm:$0xff] }
 0x944   :  { %v20243_v1 = vld [vmem:[#allocation57_spill] sm:$0xff] }
 0x945   :  { %7772 = vmatmul.mubr.bf16.vlgmr.msra.gmra.mrb[176].mxu1 %v6172_v35  ;;  %v13801_v35 = vld [vmem:[#allocation12 + $0x494] ss:$8 sps:$4 sm:$0xff]  }
 0x946   :  { %7781 = vmatprep.mubr.bf16.mxu1 %v6175_v57  ;;  %7853 = vmatpush1.bf16.msra.mxu1 %v13772_v38  ;;  %v13798_v38 = vld [vmem:[#allocation12 + $0x484] ss:$8 sps:$4 sm:$0xff]   ;;  %v13802_v57 = vld [vmem:[#allocation12 + $0x4a0] ss:$8 sps:$4 sm:$0xff]  }
 0x947   :  { %7854 = vmatprep.subr.bf16.mxu1 %v13777_v30  ;;  %v20231_v30 = vld [vmem:[#allocation33_spill] sm:$0xff] }
 0x948   :  { %v6183_v36 = vmul.bf16 %v20232_v52, %v20231_v30  ;;  %v6182_v27 = vmul.bf16 %v20233_v37, %v20231_v30  ;;  %v20250_v37 = vld [vmem:[#allocation64_spill] sm:$0xff] }
 0x94a   :  { %7855 = vmatpush1.bf16.msra.mxu1 %v13775_v49  ;;  %v13807_v49 = vld [vmem:[#allocation12 + $0x4b4] ss:$8 sps:$4 sm:$0xff]  }
 0x94b   :  { %7856 = vmatprep.subr.bf16.mxu1 %v13780_v21  ;;  %v20234_v21 = vld [vmem:[#allocation30_spill] sm:$0xff] }
 0x94c   :  { %v6185_v59 = vmul.bf16 %v20235_v29, %v20234_v21  ;;  %v6184_v13 = vmul.bf16 %v20236_v41, %v20234_v21  ;;  %v20253_v21 = vmov 0   ;;  %v20254_v29 = vld [vmem:[#allocation52_spill] sm:$0xff] }
 0x94d   :  { %7782 = vmatmul.mubr.bf16.gmra.mrb[180].mxu1 %v6174_v25  ;;  %v13808_v25 = vld [vmem:[#allocation12 + $0x4c0] ss:$8 sps:$4 sm:$0xff]  }
 0x94e   :  { %7791 = vmatprep.mubr.bf16.mxu1 %v6177_v0  ;;  %7857 = vmatpush1.bf16.msra.mxu1 %v13778_v17  ;;  %v13805_v17 = vld [vmem:[#allocation12 + $0x4b0] ss:$8 sps:$4 sm:$0xff]   ;;  %v13816_v0 = vld [vmem:[#allocation12 + $0x4e4] ss:$8 sps:$4 sm:$0xff]  }
 0x94f   :  { %7858 = vmatprep.subr.bf16.mxu1 %v13783_v2  ;;  %v13813_v2 = vld [vmem:[#allocation12 + $0x4d4] ss:$8 sps:$4 sm:$0xff]   ;;  %v20259_v41 = vld [vmem:[#allocation56_spill] sm:$0xff] }
 0x952   :  { %7859 = vmatpush1.bf16.msra.mxu1 %v13781_v18  ;;  %v13814_v18 = vld [vmem:[#allocation12 + $0x4e0] ss:$8 sps:$4 sm:$0xff]  }
 0x953   :  { %7860 = vmatprep.subr.bf16.mxu1 %v13786_v60  ;;  %v13819_v60 = vld [vmem:[#allocation12 + $0x4f4] ss:$8 sps:$4 sm:$0xff]  }
 0x955   :  { %7792 = vmatmul.mubr.bf16.gmra.mrb[184].mxu1 %v6176_v39  ;;  %v13820_v39 = vld [vmem:[#allocation12 + $0x500] ss:$8 sps:$4 sm:$0xff]  }
 0x956   :  { %7801 = vmatprep.mubr.bf16.mxu1 %v6179_v58  ;;  %7861 = vmatpush1.bf16.msra.mxu1 %v13784_v28  ;;  %v20240_v28 = vld [vmem:[#allocation50_spill] sm:$0xff]  ;;  %v13826_v58 = vld [vmem:[#allocation12 + $0x520] ss:$8 sps:$4 sm:$0xff]  }
 0x957   :  { %7862 = vmatprep.subr.bf16.mxu1 %v13789_v7  ;;  %v6205_v9 = vmul.bf16 %v18084_v23, %v20240_v28  ;;  %v6204_v7 = vmul.bf16 %v18077_v22, %v20240_v28  ;;  %v13823_v23 = vld [vmem:[#allocation12 + $0x510] ss:$8 sps:$4 sm:$0xff]  }
 0x95a   :  { %7863 = vmatpush1.bf16.msra.mxu1 %v13787_v34  ;;  %v6206_v34 = vmul.bf16 %v18129_v6, %v20241_v5  ;;  %v6211_v6 = vmul.bf16 %v18240_v10, %v20243_v1  ;;  %v13841_v10 = vld [vmem:[#allocation12 + $0x570] ss:$8 sps:$4 sm:$0xff]  }
 0x95b   :  { %7864 = vmatprep.subr.bf16.mxu1 %v13792_v19  ;;  %v13831_v19 = vld [vmem:[#allocation12 + $0x534] ss:$8 sps:$4 sm:$0xff]  }
 0x95d   :  { %7802 = vmatmul.mubr.bf16.gmra.mrb[188].mxu1 %v6178_v33  ;;  %v13832_v33 = vld [vmem:[#allocation12 + $0x540] ss:$8 sps:$4 sm:$0xff]  }
 0x95e   :  { %7811 = vmatprep.mubr.bf16.mxu1 %v6181_v56  ;;  %7865 = vmatpush1.bf16.msra.mxu1 %v13790_v3  ;;  %v20242_v3 = vld [vmem:[#allocation34_spill] sm:$0xff]  ;;  %v13840_v56 = vld [vmem:[#allocation12 + $0x564] ss:$8 sps:$4 sm:$0xff]  }
 0x95f   :  { %7866 = vmatprep.subr.bf16.mxu1 %v13795_v12  ;;  %v6209_v22 = vmul.bf16 %v18188_v44, %v20242_v3  ;;  %v6208_v12 = vmul.bf16 %v18181_v51, %v20242_v3  ;;  %v13835_v44 = vld [vmem:[#allocation12 + $0x550] ss:$8 sps:$4 sm:$0xff]   ;;  %v6213_v51 = vmul.bf16 %v18292_v61, %v20244_v11 }
 0x962   :  { %7867 = vmatpush1.bf16.msra.mxu1 %v13793_v8  ;;  %v13838_v8 = vld [vmem:[#allocation12 + $0x560] ss:$8 sps:$4 sm:$0xff]  }
 0x963   :  { %7868 = vmatprep.subr.bf16.mxu1 %v13798_v38  ;;  %v6210_v38 = vmul.bf16 %v18233_v43, %v20243_v1  ;;  %v20246_v43 = vld [vmem:[#allocation99_spill] sm:$0xff] }
 0x965   :  { %7812 = vmatmul.mubr.bf16.gmra.mrb[192].mxu1 %v6180_v40  ;;  %v6212_v40 = vmul.bf16 %v18285_v54, %v20244_v11  ;;  %v20252_v54 = vld [vmem:[#allocation106_spill] sm:$0xff] }
 0x966   :  { %7821 = vmatprep.mubr.bf16.mxu1 %v6183_v36  ;;  %7869 = vmatpush1.bf16.msra.mxu1 %v13796_v32  ;;  %v13843_v32 = vld [vmem:[#allocation12 + $0x574] ss:$8 sps:$4 sm:$0xff]   ;;  %v20247_v36 = vld [vmem:[#allocation63_spill] sm:$0xff] }
 0x967   :  { %7870 = vmatprep.subr.bf16.mxu1 %v13801_v35  ;;  %v20245_v35 = vld [vmem:[#allocation62_spill] sm:$0xff] }
 0x968   :  { %v6215_v30 = vmul.bf16 %v18344_v62, %v20245_v35  ;;  %v6214_v52 = vmul.bf16 %v20246_v43, %v20245_v35  ;;  %v6218_v62 = vmul.bf16 %v20252_v54, %v20250_v37 }
 0x96a   :  { %7871 = vmatpush1.bf16.msra.mxu1 %v13799_v46  ;;  %v20248_v46 = vld [vmem:[#allocation105_spill] sm:$0xff] }
 0x96b   :  { %7872 = vmatprep.subr.bf16.mxu1 %v13804_v50  ;;  %v6217_v61 = vmul.bf16 %v20248_v46, %v20247_v36  ;;  %v20249_v50 = vld [vmem:[#allocation104_spill] sm:$0xff] }
 0x96d   :  { %7822 = vmatmul.mubr.bf16.gmra.mrb[196].mxu1 %v6182_v27  ;;  %v20251_v27 = vld [vmem:[#allocation107_spill] sm:$0xff] }
 0x96e   :  { %7831 = vmatprep.mubr.bf16.mxu1 %v6185_v59  ;;  %7873 = vmatpush1.bf16.msra.mxu1 %v13802_v57  ;;  %v6216_v57 = vmul.bf16 %v20249_v50, %v20247_v36  ;;  %v20255_v59 = vld [vmem:[#allocation45_spill] sm:$0xff] }
 0x96f   :  { %7874 = vmatprep.subr.bf16.mxu1 %v13807_v49  ;;  %v6219_v49 = vmul.bf16 %v20251_v27, %v20250_v37  ;;  %v20296_v37 = vld [vmem:[#allocation35_spill] sm:$0xff] }
 0x972   :  { %7875 = vmatpush1.bf16.msra.mxu1 %v13805_v17  ;;  %v20256_v17 = vld [vmem:[#allocation36_spill] sm:$0xff] }
 0x973   :  { %7876 = vmatprep.subr.bf16.mxu1 %v13810_v47  ;;  %v20257_v47 = vld [vmem:[#allocation61_spill] sm:$0xff] }
 0x975   :  { %7832 = vmatmul.mubr.bf16.gmra.mrb[200].mxu1 %v6184_v13  ;;  %v20260_v13 = vld [vmem:[#allocation29_spill] sm:$0xff] }
 0x976   :  { %7841 = vmatprep.mubr.bf16.mxu1 %v6187_v4  ;;  %7877 = vmatpush1.bf16.msra.mxu1 %v13808_v25  ;;  %v20258_v25 = vld [vmem:[#allocation32_spill] sm:$0xff]  ;;  %v13847_v4 = vld [vmem:[#allocation14 + $0x10] ss:$8 sps:$4 sm:$0xff]  }
 0x977   :  { %7878 = vmatprep.subr.bf16.mxu1 %v13813_v2  ;;  %v20261_v2 = vld [vmem:[#allocation47_spill] sm:$0xff] }
 0x97a   :  { %7879 = vmatpush1.bf16.msra.mxu1 %v13811_v20  ;;  %v13849_v20 = vld [vmem:[#allocation14 + $0x14] ss:$8 sps:$4 sm:$0xff]  }
 0x97b   :  { %7880 = vmatprep.subr.bf16.mxu1 %v13816_v0  ;;  %v13852_v0 = vld [vmem:[#allocation14 + $0x24] ss:$8 sps:$4 sm:$0xff]   ;;  %8860 = vmatprep.subr.bf16.mxu0 %v13849_v20 }
 0x97c   :  { %8861 = vmatpush1.bf16.msra.mxu0 %v13847_v4 }
 0x97d   :  { %7842 = vmatmul.mubr.bf16.gmra.mrb[204].mxu1 %v6186_v42  ;;  %8862 = vmatprep.subr.bf16.mxu0 %v13852_v0  ;;  %v13855_v42 = vld [vmem:[#allocation14 + $0x34] ss:$8 sps:$4 sm:$0xff]   ;;  %v6508_v0 = vld [vmem:[%s19490_s16] sm:$0x3] }
 0x97e   :  { %7881 = vmatpush1.bf16.msra.mxu1 %v13814_v18  ;;  %7884 = vmatprep.mubr.bf16.mxu1 %v6205_v9  ;;  %v13850_v18 = vld [vmem:[#allocation14 + $0x20] ss:$8 sps:$4 sm:$0xff]  }
 0x97f   :  { %7882 = vmatprep.subr.bf16.mxu1 %v13819_v60  ;;  %v13858_v60 = vld [vmem:[#allocation14 + $0x44] ss:$8 sps:$4 sm:$0xff]   ;;  %v13856_v9 = vld [vmem:[#allocation14 + $0x40] ss:$8 sps:$4 sm:$0xff]  }
 0x980   :  { %8863 = vmatpush1.bf16.msra.mxu0 %v13850_v18 }
 0x981   :  { %8864 = vmatprep.subr.bf16.mxu0 %v13855_v42  ;;  %v20262_v42 = vld [vmem:[#allocation65_spill] sm:$0xff] }
 0x982   :  { %7883 = vmatpush1.bf16.msra.mxu1 %v13817_v16  ;;  %v13859_v16 = vld [vmem:[#allocation14 + $0x50] ss:$8 sps:$4 sm:$0xff]  }
 0x983   :  { %7965 = vmatprep.subr.bf16.mxu1 %v13822_v48  ;;  %v13861_v48 = vld [vmem:[#allocation14 + $0x54] ss:$8 sps:$4 sm:$0xff]  }
 0x984   :  { %8865 = vmatpush1.bf16.msra.mxu0 %v13853_v63 }
 0x985   :  { %7885 = vmatmul.mubr.bf16.vlgmr.msra.gmra.mrb[176].mxu1 %v6204_v7  ;;  %8866 = vmatprep.subr.bf16.mxu0 %v13858_v60  ;;  %v13862_v7 = vld [vmem:[#allocation14 + $0x60] ss:$8 sps:$4 sm:$0xff]   ;;  %v18755_v60 = vrot.slane %v6508_v0, %v20262_v42 }
 0x986   :  { %7894 = vmatprep.mubr.bf16.mxu1 %v6207_v31  ;;  %7966 = vmatpush1.bf16.msra.mxu1 %v13820_v39  ;;  %v13864_v39 = vld [vmem:[#allocation14 + $0x64] ss:$8 sps:$4 sm:$0xff]   ;;  %v13867_v31 = vld [vmem:[#allocation14 + $0x74] ss:$8 sps:$4 sm:$0xff]  }
 0x987   :  { %7967 = vmatprep.subr.bf16.mxu1 %v13825_v24  ;;  %v13865_v24 = vld [vmem:[#allocation14 + $0x70] ss:$8 sps:$4 sm:$0xff]  }
 0x988   :  { %8867 = vmatpush1.bf16.msra.mxu0 %v13856_v9  ;;  %v20263_v9 = vld [vmem:[#allocation66_spill] sm:$0xff] }
 0x989   :  { %8868 = vmatprep.subr.bf16.mxu0 %v13861_v48 }
 0x98a   :  { %7968 = vmatpush1.bf16.msra.mxu1 %v13823_v23  ;;  %v13870_v23 = vld [vmem:[#allocation14 + $0x84] ss:$8 sps:$4 sm:$0xff]  }
 0x98b   :  { %7969 = vmatprep.subr.bf16.mxu1 %v13828_v15  ;;  %v13868_v15 = vld [vmem:[#allocation14 + $0x80] ss:$8 sps:$4 sm:$0xff]  }
 0x98c   :  { %8869 = vmatpush1.bf16.msra.mxu0 %v13859_v16  ;;  %v18758_v16 = vrot.slane %v6508_v0, %v20263_v9  ;;  %v20286_v9 = vld [vmem:[#allocation38_spill] sm:$0xff] }
 0x98d   :  { %7895 = vmatmul.mubr.bf16.gmra.mrb[180].mxu1 %v6206_v34  ;;  %8870 = vmatprep.subr.bf16.mxu0 %v13864_v39  ;;  %v13873_v34 = vld [vmem:[#allocation14 + $0x94] ss:$8 sps:$4 sm:$0xff]  }
 0x98e   :  { %7904 = vmatprep.mubr.bf16.mxu1 %v6209_v22  ;;  %7970 = vmatpush1.bf16.msra.mxu1 %v13826_v58  ;;  %v13871_v58 = vld [vmem:[#allocation14 + $0x90] ss:$8 sps:$4 sm:$0xff]   ;;  %v13874_v22 = vld [vmem:[#allocation14 + $0xa0] ss:$8 sps:$4 sm:$0xff]  }
 0x98f   :  { %7971 = vmatprep.subr.bf16.mxu1 %v13831_v19  ;;  %v13876_v19 = vld [vmem:[#allocation14 + $0xa4] ss:$8 sps:$4 sm:$0xff]  }
 0x990   :  { %8871 = vmatpush1.bf16.msra.mxu0 %v13862_v7 }
 0x991   :  { %8872 = vmatprep.subr.bf16.mxu0 %v13867_v31 }
 0x992   :  { %7972 = vmatpush1.bf16.msra.mxu1 %v13829_v26  ;;  %v13877_v26 = vld [vmem:[#allocation14 + $0xb0] ss:$8 sps:$4 sm:$0xff]  }
 0x993   :  { %7973 = vmatprep.subr.bf16.mxu1 %v13834_v14  ;;  %v13879_v14 = vld [vmem:[#allocation14 + $0xb4] ss:$8 sps:$4 sm:$0xff]  }
 0x994   :  { %8873 = vmatpush1.bf16.msra.mxu0 %v13865_v24 }
 0x995   :  { %7905 = vmatmul.mubr.bf16.gmra.mrb[184].mxu1 %v6208_v12  ;;  %8874 = vmatprep.subr.bf16.mxu0 %v13870_v23  ;;  %v13880_v12 = vld [vmem:[#allocation14 + $0xc0] ss:$8 sps:$4 sm:$0xff]  }
 0x996   :  { %7914 = vmatprep.mubr.bf16.mxu1 %v6211_v6  ;;  %7974 = vmatpush1.bf16.msra.mxu1 %v13832_v33  ;;  %v13882_v33 = vld [vmem:[#allocation14 + $0xc4] ss:$8 sps:$4 sm:$0xff]   ;;  %v13885_v6 = vld [vmem:[#allocation14 + $0xd4] ss:$8 sps:$4 sm:$0xff]  }
 0x997   :  { %7975 = vmatprep.subr.bf16.mxu1 %v13837_v53  ;;  %v13883_v53 = vld [vmem:[#allocation14 + $0xd0] ss:$8 sps:$4 sm:$0xff]  }
 0x998   :  { %8875 = vmatpush1.bf16.msra.mxu0 %v13868_v15 }
 0x999   :  { %8876 = vmatprep.subr.bf16.mxu0 %v13873_v34 }
 0x99a   :  { %7976 = vmatpush1.bf16.msra.mxu1 %v13835_v44  ;;  %v13888_v44 = vld [vmem:[#allocation14 + $0xe4] ss:$8 sps:$4 sm:$0xff]  }
 0x99b   :  { %7977 = vmatprep.subr.bf16.mxu1 %v13840_v56  ;;  %v13886_v56 = vld [vmem:[#allocation14 + $0xe0] ss:$8 sps:$4 sm:$0xff]  }
 0x99c   :  { %8877 = vmatpush1.bf16.msra.mxu0 %v13871_v58 }
 0x99d   :  { %7915 = vmatmul.mubr.bf16.gmra.mrb[188].mxu1 %v6210_v38  ;;  %8878 = vmatprep.subr.bf16.mxu0 %v13876_v19  ;;  %v13889_v38 = vld [vmem:[#allocation14 + $0xf0] ss:$8 sps:$4 sm:$0xff]  }
 0x99e   :  { %7924 = vmatprep.mubr.bf16.mxu1 %v6213_v51  ;;  %7978 = vmatpush1.bf16.msra.mxu1 %v13838_v8  ;;  %v13891_v8 = vld [vmem:[#allocation14 + $0xf4] ss:$8 sps:$4 sm:$0xff]  }
 0x99f   :  { %7979 = vmatprep.subr.bf16.mxu1 %v13843_v32  ;;  %v13894_v32 = vld [vmem:[#allocation14 + $0x104] ss:$8 sps:$4 sm:$0xff]  }
 0x9a0   :  { %8879 = vmatpush1.bf16.msra.mxu0 %v13874_v22 }
 0x9a1   :  { %8880 = vmatprep.subr.bf16.mxu0 %v13879_v14 }
 0x9a2   :  { %7980 = vmatpush1.bf16.msra.mxu1 %v13841_v10 }
 0x9a4   :  { %8881 = vmatpush1.bf16.msra.mxu0 %v13877_v26 }
 0x9a5   :  { %7925 = vmatmul.mubr.bf16.gmra.mrb[192].mxu1 %v6212_v40  ;;  %8882 = vmatprep.subr.bf16.mxu0 %v13882_v33 }
 0x9a6   :  { %7934 = vmatprep.mubr.bf16.mxu1 %v6215_v30 }
 0x9a8   :  { %8883 = vmatpush1.bf16.msra.mxu0 %v13880_v12 }
 0x9a9   :  { %8884 = vmatprep.subr.bf16.mxu0 %v13885_v6 }
 0x9ac   :  { %8885 = vmatpush1.bf16.msra.mxu0 %v13883_v53 }
 0x9ad   :  { %7935 = vmatmul.mubr.bf16.gmra.mrb[196].mxu1 %v6214_v52  ;;  %8886 = vmatprep.subr.bf16.mxu0 %v13888_v44 }
 0x9ae   :  { %7944 = vmatprep.mubr.bf16.mxu1 %v6217_v61 }
 0x9b0   :  { %8887 = vmatpush1.bf16.msra.mxu0 %v13886_v56 }
 0x9b1   :  { %8888 = vmatprep.subr.bf16.mxu0 %v13891_v8 }
 0x9b4   :  { %8889 = vmatpush1.bf16.msra.mxu0 %v13889_v38 }
 0x9b5   :  { %7945 = vmatmul.mubr.bf16.gmra.mrb[200].mxu1 %v6216_v57  ;;  %8971 = vmatprep.subr.bf16.mxu0 %v13894_v32 }
 0x9b6   :  { %7954 = vmatprep.mubr.bf16.mxu1 %v6219_v49 }
 0x9bd   :  { %7955 = vmatmul.mubr.bf16.gmra.mrb[204].mxu1 %v6218_v62 }
 0x9be   :  { %7997 = vmatprep.mubr.bf16.mxu1 %v20253_v21 }
 0x9c5   :  { %7998 = vmatmul.mubr.bf16.vlgmr.msra.gmra.mrb[176].mxu1 %v20254_v29 }
 0x9c6   :  { %8007 = vmatprep.mubr.bf16.mxu1 %v20253_v21 }
 0x9cd   :  { %8008 = vmatmul.mubr.bf16.gmra.mrb[180].mxu1 %v20255_v59 }
 0x9ce   :  { %8017 = vmatprep.mubr.bf16.mxu1 %v20253_v21 }
 0x9d5   :  { %8018 = vmatmul.mubr.bf16.gmra.mrb[184].mxu1 %v20256_v17 }
 0x9d6   :  { %8027 = vmatprep.mubr.bf16.mxu1 %v20253_v21 }
 0x9dd   :  { %8028 = vmatmul.mubr.bf16.gmra.mrb[188].mxu1 %v20257_v47 }
 0x9de   :  { %8037 = vmatprep.mubr.bf16.mxu1 %v20253_v21 }
 0x9e5   :  { %8038 = vmatmul.mubr.bf16.gmra.mrb[192].mxu1 %v20258_v25 }
 0x9e6   :  { %8047 = vmatprep.mubr.bf16.mxu1 %v20253_v21 }
 0x9ed   :  { %8048 = vmatmul.mubr.bf16.gmra.mrb[196].mxu1 %v20259_v41 }
 0x9ee   :  { %8057 = vmatprep.mubr.bf16.mxu1 %v20253_v21 }
 0x9f5   :  { %8058 = vmatmul.mubr.bf16.gmra.mrb[200].mxu1 %v20260_v13 }
 0x9f6   :  { %8067 = vmatprep.mubr.bf16.mxu1 %v20253_v21 }
 0x9fd   :  { %8068 = vmatmul.mubr.bf16.gmra.mrb[204].mxu1 %v20261_v2 }
 0xa98   :  { %v7999_v51 = vpop.f32.mrb[176].mxu1 }
 0xa99   :  { %v8001_v10 = vpop.f32.mrb[177].mxu1  ;;  %v12823_v7 = vadd.f32 %v7999_v51, %v18755_v60 }
 0xa9a   :  { %v8003_v40 = vpop.f32.mrb[178].mxu1  ;;  %v12824_v31 = vadd.f32 %v8001_v10, %v18758_v16  ;;  %v20270_v10 = vld [vmem:[#allocation42_spill] sm:$0xff] }
 0xa9b   :  { %v8005_v30 = vpop.f32.mrb[179].mxu1  ;;  %v18772_v26 = vmax.f32 %v12823_v7, 0.0  ;;  %v12825_v32 = vadd.f32 %v8003_v40, %v18755_v60 }
 0xa9c   :  { %v12826_v23 = vadd.f32 %v8005_v30, %v18758_v16  ;;  %v18776_v33 = vmax.f32 %v12824_v31, 0.0 }
 0xa9e   :  { %v18778_v12 = vmax.f32 %v12826_v23, 0.0  ;;  %v18808_v23 = vmax.f32 %v12825_v32, 0.0 }
 0xaa0   :  { %v8009_v43 = vpop.f32.mrb[180].mxu1  ;;  %20266 = vst [vmem:[#allocation87_spill] sm:$0xff] %v18778_v12 }
 0xaa1   :  { %v8011_v52 = vpop.f32.mrb[181].mxu1  ;;  %v12827_v6 = vadd.f32 %v8009_v43, %v18755_v60  ;;  %v13892_v43 = vld [vmem:[#allocation14 + $0x100] ss:$8 sps:$4 sm:$0xff]  }
 0xaa2   :  { %v18715_v46 = vpop.f32.mrb[182].mxu1  ;;  %v12828_v48 = vadd.f32 %v8011_v52, %v18758_v16 }
 0xaa3   :  { %v8015_v61 = vpop.f32.mrb[183].mxu1  ;;  %v18800_v52 = vmax.f32 %v12827_v6, 0.0 }
 0xaa4   :  { %v18769_v19 = vmax.f32 %v12828_v48, 0.0  ;;  %v12830_v51 = vadd.f32 %v8015_v61, %v18758_v16  ;;  %v13897_v48 = vld [vmem:[#allocation14 + $0x114] ss:$8 sps:$4 sm:$0xff]   ;;  %v13895_v61 = vld [vmem:[#allocation14 + $0x110] ss:$8 sps:$4 sm:$0xff]  }
 0xaa6   :  { %20264 = vst [vmem:[#allocation58_spill] sm:$0xff] %v18769_v19  ;;  %v18789_v56 = vpack.c.bf16 %v18769_v19, %v18778_v12  ;;  %v18810_v40 = vmax.f32 %v12830_v51, 0.0  ;;  %v13898_v51 = vld [vmem:[#allocation14 + $0x120] ss:$8 sps:$4 sm:$0xff]  }
 0xaa8   :  { %v8019_v50 = vpop.f32.mrb[184].mxu1  ;;  %20273 = vst [vmem:[#allocation94_spill] sm:$0xff] %v18810_v40 }
 0xaa9   :  { %v8021_v57 = vpop.f32.mrb[185].mxu1 }
 0xaaa   :  { %v18717_v27 = vpop.f32.mrb[186].mxu1  ;;  %v12832_v8 = vadd.f32 %v8021_v57, %v18758_v16  ;;  %v20272_v57 = vld [vmem:[#allocation53_spill] sm:$0xff] }
 0xaab   :  { %v18719_v49 = vpop.f32.mrb[187].mxu1  ;;  %v8145_v31 = vmul.bf16 %v18789_v56, %v20272_v57 }
 0xaac   :  { %v18804_v7 = vmax.f32 %v12832_v8, 0.0  ;;  %v12829_v8 = vadd.f32 %v18715_v46, %v18755_v60  ;;  %v12834_v32 = vadd.f32 %v18719_v49, %v18758_v16  ;;  %v13901_v49 = vld [vmem:[#allocation14 + $0x130] ss:$8 sps:$4 sm:$0xff]  }
 0xaae   :  { %20271 = vst [vmem:[#allocation96_spill] sm:$0xff] %v18804_v7  ;;  %v18836_v46 = vmax.f32 %v12834_v32, 0.0  ;;  %v12833_v32 = vadd.f32 %v18717_v27, %v18755_v60 }
 0xab0   :  { %v18721_v54 = vpop.f32.mrb[188].mxu1  ;;  %20278 = vst [vmem:[#allocation103_spill] sm:$0xff] %v18836_v46 }
 0xab1   :  { %v8031_v62 = vpop.f32.mrb[189].mxu1 }
 0xab2   :  { %v18723_v29 = vpop.f32.mrb[190].mxu1  ;;  %v12836_v6 = vadd.f32 %v8031_v62, %v18758_v16 }
 0xab3   :  { %v18725_v59 = vpop.f32.mrb[191].mxu1 }
 0xab8   :  { %v18727_v17 = vpop.f32.mrb[192].mxu1 }
 0xab9   :  { %v18729_v47 = vpop.f32.mrb[193].mxu1 }
 0xaba   :  { %v18731_v25 = vpop.f32.mrb[194].mxu1 }
 0xabb   :  { %v18733_v41 = vpop.f32.mrb[195].mxu1 }
 0xac0   :  { %v18735_v13 = vpop.f32.mrb[196].mxu1 }
 0xac1   :  { %v18737_v2 = vpop.f32.mrb[197].mxu1 }
 0xac2   :  { %v18739_v45 = vpop.f32.mrb[198].mxu1 }
 0xac3   :  { %v18741_v55 = vpop.f32.mrb[199].mxu1 }
 0xac8   :  { %v18743_v4 = vpop.f32.mrb[200].mxu1 }
 0xac9   :  { %v18745_v20 = vpop.f32.mrb[201].mxu1 }
 0xaca   :  { %v18750_v18 = vpop.f32.mrb[202].mxu1 }
 0xacb   :  { %v18752_v63 = vpop.f32.mrb[203].mxu1 }
 0xad0   :  { %v18761_v39 = vpop.f32.mrb[204].mxu1 }
 0xad1   :  { %v18764_v24 = vpop.f32.mrb[205].mxu1 }
 0xad2   :  { %v8073_v15 = vpop.f32.mrb[206].mxu1 }
 0xad3   :  { %v12853_v58 = vadd.f32 %v8073_v15, %v18755_v60  ;;  %v8075_v34 = vpop.f32.mrb[207].mxu1  ;;  %v18814_v15 = vpack.c.bf16 %v18800_v52, %v18808_v23 }
 0xad4   :  { %v12854_v22 = vadd.f32 %v8075_v34, %v18758_v16  ;;  %v13900_v34 = vld [vmem:[#allocation14 + $0x124] ss:$8 sps:$4 sm:$0xff]  }
 0xad5   :  { %v18774_v14 = vmax.f32 %v12853_v58, 0.0  ;;  %v12831_v58 = vadd.f32 %v8019_v50, %v18755_v60  ;;  %v8144_v50 = vmul.bf16 %v18814_v15, %v20272_v57  ;;  %v20281_v57 = vld [vmem:[#allocation40_spill] sm:$0xff] }
 0xad6   :  { %v18780_v53 = vmax.f32 %v12854_v22, 0.0  ;;  %v18819_v22 = vpack.c.bf16 %v18804_v7, %v18810_v40 }
 0xad7   :  { %20265 = vst [vmem:[#allocation41_spill] sm:$0xff] %v18774_v14  ;;  %v18785_v44 = vpack.c.bf16 %v18772_v26, %v18774_v14 }
 0xad8   :  { %20267 = vst [vmem:[#allocation88_spill] sm:$0xff] %v18780_v53  ;;  %v18794_v38 = vpack.c.bf16 %v18776_v33, %v18780_v53 }
 0xad9   :  { %20268 = vst [vmem:[#allocation86_spill] sm:$0xff] %v18785_v44  ;;  %v8142_v0 = vmul.bf16 %v18785_v44, %v20270_v10  ;;  %v20291_v44 = vld [vmem:[#allocation43_spill] sm:$0xff] }
 0xada   :  { %20269 = vst [vmem:[#allocation59_spill] sm:$0xff] %v18794_v38  ;;  %v8143_v30 = vmul.bf16 %v18794_v38, %v20270_v10  ;;  %v18862_v10 = vmax.f32 %v12833_v32, 0.0  ;;  %v12844_v32 = vadd.f32 %v18737_v2, %v18758_v16 }
 0xadc   :  { %8890 = vmatprep.mubr.bf16.mxu0 %v8143_v30  ;;  %v18826_v30 = vmax.f32 %v12831_v58, 0.0  ;;  %v12835_v58 = vadd.f32 %v18721_v54, %v18755_v60  ;;  %20282 = vst [vmem:[#allocation69_spill] sm:$0xff] %v18862_v10 }
 0xadd   :  { %8891 = vmatmul.mubr.bf16.vlgmr.msra.gmra.mrb[208].mxu0 %v8142_v0  ;;  %v18830_v0 = vmax.f32 %v12836_v6, 0.0 }
 0xade   :  { %8900 = vmatprep.mubr.bf16.mxu0 %v8145_v31  ;;  %8972 = vmatpush1.bf16.msra.mxu0 %v13892_v43  ;;  %20274 = vst [vmem:[#allocation95_spill] sm:$0xff] %v18826_v30  ;;  %v13903_v43 = vld [vmem:[#allocation14 + $0x134] ss:$8 sps:$4 sm:$0xff]   ;;  %v18834_v31 = vmax.f32 %v12829_v8, 0.0  ;;  %v12840_v8 = vadd.f32 %v18729_v47, %v18758_v16 }
 0xadf   :  { %8973 = vmatprep.subr.bf16.mxu0 %v13897_v48  ;;  %20275 = vst [vmem:[#allocation93_spill] sm:$0xff] %v18830_v0  ;;  %v20276_v48 = vld [vmem:[#allocation28_spill] sm:$0xff]  ;;  %v18846_v6 = vpack.c.bf16 %v18830_v0, %v18836_v46 }
 0xae0   :  { %v8147_v62 = vmul.bf16 %v18819_v22, %v20276_v48  ;;  %20277 = vst [vmem:[#allocation44_spill] sm:$0xff] %v18834_v31  ;;  %v18858_v21 = vmax.f32 %v12840_v8, 0.0 }
 0xae1   :  { %v8149_v47 = vmul.bf16 %v18846_v6, %v20281_v57 }
 0xae2   :  { %8974 = vmatpush1.bf16.msra.mxu0 %v13895_v61  ;;  %v18840_v61 = vpack.c.bf16 %v18826_v30, %v18834_v31  ;;  %20280 = vst [vmem:[#allocation60_spill] sm:$0xff] %v18858_v21 }
 0xae3   :  { %8975 = vmatprep.subr.bf16.mxu0 %v13900_v34  ;;  %v13906_v34 = vld [vmem:[#allocation14 + $0x144] ss:$8 sps:$4 sm:$0xff]  }
 0xae4   :  { %v8146_v54 = vmul.bf16 %v18840_v61, %v20276_v48  ;;  %v18886_v48 = vmax.f32 %v12844_v32, 0.0 }
 0xae5   :  { %8901 = vmatmul.mubr.bf16.gmra.mrb[212].mxu0 %v8144_v50  ;;  %v13904_v50 = vld [vmem:[#allocation14 + $0x140] ss:$8 sps:$4 sm:$0xff]  }
 0xae6   :  { %8910 = vmatprep.mubr.bf16.mxu0 %v8147_v62  ;;  %8976 = vmatpush1.bf16.msra.mxu0 %v13898_v51  ;;  %v12838_v51 = vadd.f32 %v18725_v59, %v18758_v16  ;;  %v18854_v62 = vmax.f32 %v12835_v58, 0.0  ;;  %v13907_v59 = vld [vmem:[#allocation14 + $0x150] ss:$8 sps:$4 sm:$0xff]   ;;  %v12839_v58 = vadd.f32 %v18727_v17, %v18755_v60  ;;  %20285 = vst [vmem:[#allocation73_spill] sm:$0xff] %v18886_v48 }
 0xae7   :  { %8977 = vmatprep.subr.bf16.mxu0 %v13903_v43  ;;  %v13909_v43 = vld [vmem:[#allocation14 + $0x154] ss:$8 sps:$4 sm:$0xff]  }
 0xae8   :  { %20279 = vst [vmem:[#allocation102_spill] sm:$0xff] %v18854_v62  ;;  %v18864_v27 = vmax.f32 %v12838_v51, 0.0  ;;  %v12837_v51 = vadd.f32 %v18723_v29, %v18755_v60 }
 0xaea   :  { %8978 = vmatpush1.bf16.msra.mxu0 %v13901_v49  ;;  %20283 = vst [vmem:[#allocation68_spill] sm:$0xff] %v18864_v27  ;;  %v18868_v49 = vpack.c.bf16 %v18854_v62, %v18862_v10  ;;  %v18874_v8 = vpack.c.bf16 %v18858_v21, %v18864_v27  ;;  %v18890_v42 = vmax.f32 %v12837_v51, 0.0  ;;  %v12848_v51 = vadd.f32 %v18745_v20, %v18758_v16 }
 0xaeb   :  { %8979 = vmatprep.subr.bf16.mxu0 %v13906_v34  ;;  %v13912_v34 = vld [vmem:[#allocation14 + $0x164] ss:$8 sps:$4 sm:$0xff]  }
 0xaec   :  { %v8148_v17 = vmul.bf16 %v18868_v49, %v20281_v57  ;;  %v8151_v2 = vmul.bf16 %v18874_v8, %v20286_v9  ;;  %20287 = vst [vmem:[#allocation71_spill] sm:$0xff] %v18890_v42  ;;  %v18914_v57 = vmax.f32 %v12848_v51, 0.0 }
 0xaed   :  { %8911 = vmatmul.mubr.bf16.gmra.mrb[216].mxu0 %v8146_v54  ;;  %v13910_v54 = vld [vmem:[#allocation14 + $0x160] ss:$8 sps:$4 sm:$0xff]  }
 0xaee   :  { %8920 = vmatprep.mubr.bf16.mxu0 %v8149_v47  ;;  %8980 = vmatpush1.bf16.msra.mxu0 %v13904_v50  ;;  %v12842_v50 = vadd.f32 %v18733_v41, %v18758_v16  ;;  %v18882_v47 = vmax.f32 %v12839_v58, 0.0  ;;  %v13913_v41 = vld [vmem:[#allocation14 + $0x170] ss:$8 sps:$4 sm:$0xff]   ;;  %v12843_v58 = vadd.f32 %v18735_v13, %v18755_v60  ;;  %20290 = vst [vmem:[#allocation77_spill] sm:$0xff] %v18914_v57 }
 0xaef   :  { %8981 = vmatprep.subr.bf16.mxu0 %v13909_v43  ;;  %v13915_v43 = vld [vmem:[#allocation14 + $0x174] ss:$8 sps:$4 sm:$0xff]  }
 0xaf0   :  { %20284 = vst [vmem:[#allocation67_spill] sm:$0xff] %v18882_v47  ;;  %v18892_v29 = vmax.f32 %v12842_v50, 0.0  ;;  %v12841_v50 = vadd.f32 %v18731_v25, %v18755_v60 }
 0xaf2   :  { %8982 = vmatpush1.bf16.msra.mxu0 %v13907_v59  ;;  %20288 = vst [vmem:[#allocation72_spill] sm:$0xff] %v18892_v29  ;;  %v18896_v59 = vpack.c.bf16 %v18882_v47, %v18890_v42  ;;  %v18902_v32 = vpack.c.bf16 %v18886_v48, %v18892_v29  ;;  %v18918_v38 = vmax.f32 %v12841_v50, 0.0  ;;  %v12852_v50 = vadd.f32 %v18764_v24, %v18758_v16 }
 0xaf3   :  { %8983 = vmatprep.subr.bf16.mxu0 %v13912_v34  ;;  %v13918_v34 = vld [vmem:[#allocation14 + $0x184] ss:$8 sps:$4 sm:$0xff]  }
 0xaf4   :  { %v8150_v13 = vmul.bf16 %v18896_v59, %v20286_v9  ;;  %v8153_v20 = vmul.bf16 %v18902_v32, %v20291_v44  ;;  %20292 = vst [vmem:[#allocation75_spill] sm:$0xff] %v18918_v38  ;;  %v18942_v9 = vmax.f32 %v12852_v50, 0.0  ;;  %v12849_v50 = vadd.f32 %v18750_v18, %v18755_v60 }
 0xaf5   :  { %8921 = vmatmul.mubr.bf16.gmra.mrb[220].mxu0 %v8148_v17  ;;  %v13916_v17 = vld [vmem:[#allocation14 + $0x180] ss:$8 sps:$4 sm:$0xff]  }
 0xaf6   :  { %8930 = vmatprep.mubr.bf16.mxu0 %v8151_v2  ;;  %8984 = vmatpush1.bf16.msra.mxu0 %v13910_v54  ;;  %v12846_v54 = vadd.f32 %v18741_v55, %v18758_v16  ;;  %v18910_v2 = vmax.f32 %v12843_v58, 0.0  ;;  %v13919_v55 = vld [vmem:[#allocation14 + $0x190] ss:$8 sps:$4 sm:$0xff]   ;;  %v12847_v58 = vadd.f32 %v18743_v4, %v18755_v60  ;;  %20295 = vst [vmem:[#allocation81_spill] sm:$0xff] %v18942_v9 }
 0xaf7   :  { %8985 = vmatprep.subr.bf16.mxu0 %v13915_v43  ;;  %v13921_v43 = vld [vmem:[#allocation14 + $0x194] ss:$8 sps:$4 sm:$0xff]  }
 0xaf8   :  { %20289 = vst [vmem:[#allocation70_spill] sm:$0xff] %v18910_v2  ;;  %v18920_v25 = vmax.f32 %v12846_v54, 0.0  ;;  %v12845_v54 = vadd.f32 %v18739_v45, %v18755_v60 }
 0xafa   :  { %8986 = vmatpush1.bf16.msra.mxu0 %v13913_v41  ;;  %20293 = vst [vmem:[#allocation76_spill] sm:$0xff] %v18920_v25  ;;  %v18924_v41 = vpack.c.bf16 %v18910_v2, %v18918_v38  ;;  %v18930_v51 = vpack.c.bf16 %v18914_v57, %v18920_v25  ;;  %v18946_v36 = vmax.f32 %v12845_v54, 0.0  ;;  %v13928_v54 = vld [vmem:[#allocation14 + $0x1c0] ss:$8 sps:$4 sm:$0xff]  }
 0xafb   :  { %8987 = vmatprep.subr.bf16.mxu0 %v13918_v34  ;;  %v13924_v34 = vld [vmem:[#allocation14 + $0x1a4] ss:$8 sps:$4 sm:$0xff]  }
 0xafc   :  { %v8152_v4 = vmul.bf16 %v18924_v41, %v20291_v44  ;;  %v8155_v24 = vmul.bf16 %v18930_v51, %v20296_v37  ;;  %20297 = vst [vmem:[#allocation79_spill] sm:$0xff] %v18946_v36  ;;  %v13931_v44 = vld [vmem:[#allocation14 + $0x1d0] ss:$8 sps:$4 sm:$0xff]  }
 0xafd   :  { %8931 = vmatmul.mubr.bf16.gmra.mrb[224].mxu0 %v8150_v13  ;;  %v13922_v13 = vld [vmem:[#allocation14 + $0x1a0] ss:$8 sps:$4 sm:$0xff]  }
 0xafe   :  { %8940 = vmatprep.mubr.bf16.mxu0 %v8153_v20  ;;  %8988 = vmatpush1.bf16.msra.mxu0 %v13916_v17  ;;  %v12850_v17 = vadd.f32 %v18752_v63, %v18758_v16  ;;  %v18938_v20 = vmax.f32 %v12847_v58, 0.0  ;;  %v13925_v63 = vld [vmem:[#allocation14 + $0x1b0] ss:$8 sps:$4 sm:$0xff]   ;;  %v13930_v58 = vld [vmem:[#allocation14 + $0x1c4] ss:$8 sps:$4 sm:$0xff]  }
 0xaff   :  { %8989 = vmatprep.subr.bf16.mxu0 %v13921_v43  ;;  %v13927_v43 = vld [vmem:[#allocation14 + $0x1b4] ss:$8 sps:$4 sm:$0xff]  }
 0xb00   :  { %20294 = vst [vmem:[#allocation74_spill] sm:$0xff] %v18938_v20  ;;  %v18948_v45 = vmax.f32 %v12850_v17, 0.0  ;;  %v18952_v16 = vpack.c.bf16 %v18938_v20, %v18946_v36 }
 0xb02   :  { %8990 = vmatpush1.bf16.msra.mxu0 %v13919_v55  ;;  %20298 = vst [vmem:[#allocation80_spill] sm:$0xff] %v18948_v45  ;;  %v12851_v55 = vadd.f32 %v18761_v39, %v18755_v60  ;;  %v13936_v60 = vld [vmem:[#allocation14 + $0x1e4] ss:$8 sps:$4 sm:$0xff]  }
 0xb03   :  { %8991 = vmatprep.subr.bf16.mxu0 %v13924_v34  ;;  %v18958_v34 = vpack.c.bf16 %v18942_v9, %v18948_v45 }
 0xb04   :  { %v18962_v17 = vmax.f32 %v12851_v55, 0.0 }
 0xb05   :  { %8941 = vmatmul.mubr.bf16.gmra.mrb[228].mxu0 %v8152_v4  ;;  %v13933_v4 = vld [vmem:[#allocation14 + $0x1d4] ss:$8 sps:$4 sm:$0xff]  }
 0xb06   :  { %8950 = vmatprep.mubr.bf16.mxu0 %v8155_v24  ;;  %8992 = vmatpush1.bf16.msra.mxu0 %v13922_v13  ;;  %20299 = vst [vmem:[#allocation78_spill] sm:$0xff] %v18962_v17  ;;  %v8154_v13 = vmul.bf16 %v18952_v16, %v20296_v37  ;;  %v20300_v24 = vld [vmem:[#allocation55_spill] sm:$0xff] }
 0xb07   :  { %8993 = vmatprep.subr.bf16.mxu0 %v13927_v43  ;;  %v8157_v39 = vmul.bf16 %v18958_v34, %v20300_v24  ;;  %v18968_v43 = vmax.f32 %v12849_v50, 0.0  ;;  %v8111_v50 = vpack.c.bf16 %v18778_v12, %v18776_v33  ;;  %v13943_v12 = vld [vmem:[#allocation14 + $0x210] ss:$8 sps:$4 sm:$0xff]  }
 0xb09   :  { %20301 = vst [vmem:[#allocation85_spill] sm:$0xff] %v18968_v43  ;;  %v18972_v18 = vpack.c.bf16 %v18962_v17, %v18968_v43 }
 0xb0a   :  { %8994 = vmatpush1.bf16.msra.mxu0 %v13925_v63  ;;  %v13934_v63 = vld [vmem:[#allocation14 + $0x1e0] ss:$8 sps:$4 sm:$0xff]  }
 0xb0b   :  { %8995 = vmatprep.subr.bf16.mxu0 %v13930_v58  ;;  %v8156_v55 = vmul.bf16 %v18972_v18, %v20300_v24  ;;  %v13939_v58 = vld [vmem:[#allocation14 + $0x1f4] ss:$8 sps:$4 sm:$0xff]  }
 0xb0d   :  { %8951 = vmatmul.mubr.bf16.gmra.mrb[232].mxu0 %v8154_v13  ;;  %v13942_v13 = vld [vmem:[#allocation14 + $0x204] ss:$8 sps:$4 sm:$0xff]  }
 0xb0e   :  { %8960 = vmatprep.mubr.bf16.mxu0 %v8157_v39  ;;  %8996 = vmatpush1.bf16.msra.mxu0 %v13928_v54  ;;  %v13937_v54 = vld [vmem:[#allocation14 + $0x1f0] ss:$8 sps:$4 sm:$0xff]   ;;  %v13940_v39 = vld [vmem:[#allocation14 + $0x200] ss:$8 sps:$4 sm:$0xff]  }
 0xb0f   :  { %8997 = vmatprep.subr.bf16.mxu0 %v13933_v4  ;;  %v13945_v4 = vld [vmem:[#allocation14 + $0x214] ss:$8 sps:$4 sm:$0xff]  }
 0xb12   :  { %8998 = vmatpush1.bf16.msra.mxu0 %v13931_v44  ;;  %v8110_v44 = vpack.c.bf16 %v18808_v23, %v18772_v26 }
 0xb13   :  { %8999 = vmatprep.subr.bf16.mxu0 %v13936_v60  ;;  %v8113_v60 = vpack.c.bf16 %v18810_v40, %v18769_v19 }
 0xb15   :  { %8961 = vmatmul.mubr.bf16.gmra.mrb[236].mxu0 %v8156_v55  ;;  %v13946_v55 = vld [vmem:[#allocation14 + $0x220] ss:$8 sps:$4 sm:$0xff]  }
 0xb16   :  { %9000 = vmatpush1.bf16.msra.mxu0 %v13934_v63  ;;  %9003 = vmatprep.mubr.bf16.mxu0 %v8111_v50  ;;  %v13948_v63 = vld [vmem:[#allocation14 + $0x224] ss:$8 sps:$4 sm:$0xff]   ;;  %v13951_v50 = vld [vmem:[#allocation14 + $0x234] ss:$8 sps:$4 sm:$0xff]  }
 0xb17   :  { %9001 = vmatprep.subr.bf16.mxu0 %v13939_v58  ;;  %v8112_v58 = vpack.c.bf16 %v18834_v31, %v18800_v52 }
 0xb1a   :  { %9002 = vmatpush1.bf16.msra.mxu0 %v13937_v54  ;;  %v8115_v54 = vpack.c.bf16 %v18836_v46, %v18804_v7 }
 0xb1b   :  { %9084 = vmatprep.subr.bf16.mxu0 %v13942_v13  ;;  %v13949_v13 = vld [vmem:[#allocation14 + $0x230] ss:$8 sps:$4 sm:$0xff]  }
 0xb1d   :  { %9004 = vmatmul.mubr.bf16.vlgmr.msra.gmra.mrb[208].mxu0 %v8110_v44  ;;  %v13954_v44 = vld [vmem:[#allocation14 + $0x244] ss:$8 sps:$4 sm:$0xff]  }
 0xb1e   :  { %9013 = vmatprep.mubr.bf16.mxu0 %v8113_v60  ;;  %9085 = vmatpush1.bf16.msra.mxu0 %v13940_v39  ;;  %v13952_v39 = vld [vmem:[#allocation14 + $0x240] ss:$8 sps:$4 sm:$0xff]   ;;  %v8117_v60 = vpack.c.bf16 %v18864_v27, %v18830_v0 }
 0xb1f   :  { %9086 = vmatprep.subr.bf16.mxu0 %v13945_v4  ;;  %v13957_v4 = vld [vmem:[#allocation14 + $0x254] ss:$8 sps:$4 sm:$0xff]  }
 0xb22   :  { %9087 = vmatpush1.bf16.msra.mxu0 %v13943_v12  ;;  %v8114_v12 = vpack.c.bf16 %v18862_v10, %v18826_v30 }
 0xb23   :  { %9088 = vmatprep.subr.bf16.mxu0 %v13948_v63  ;;  %v13955_v63 = vld [vmem:[#allocation14 + $0x250] ss:$8 sps:$4 sm:$0xff]  }
 0xb25   :  { %9014 = vmatmul.mubr.bf16.gmra.mrb[212].mxu0 %v8112_v58  ;;  %v13960_v58 = vld [vmem:[#allocation14 + $0x264] ss:$8 sps:$4 sm:$0xff]  }
 0xb26   :  { %9023 = vmatprep.mubr.bf16.mxu0 %v8115_v54  ;;  %9089 = vmatpush1.bf16.msra.mxu0 %v13946_v55  ;;  %v13958_v55 = vld [vmem:[#allocation14 + $0x260] ss:$8 sps:$4 sm:$0xff]   ;;  %v13963_v54 = vld [vmem:[#allocation14 + $0x274] ss:$8 sps:$4 sm:$0xff]  }
 0xb27   :  { %9090 = vmatprep.subr.bf16.mxu0 %v13951_v50  ;;  %v8116_v50 = vpack.c.bf16 %v18890_v42, %v18854_v62 }
 0xb2a   :  { %9091 = vmatpush1.bf16.msra.mxu0 %v13949_v13  ;;  %v8119_v13 = vpack.c.bf16 %v18892_v29, %v18858_v21 }
 0xb2b   :  { %9092 = vmatprep.subr.bf16.mxu0 %v13954_v44  ;;  %v13961_v44 = vld [vmem:[#allocation14 + $0x270] ss:$8 sps:$4 sm:$0xff]  }
 0xb2d   :  { %9024 = vmatmul.mubr.bf16.gmra.mrb[216].mxu0 %v8114_v12  ;;  %v13966_v12 = vld [vmem:[#allocation14 + $0x284] ss:$8 sps:$4 sm:$0xff]  }
 0xb2e   :  { %9033 = vmatprep.mubr.bf16.mxu0 %v8117_v60  ;;  %9093 = vmatpush1.bf16.msra.mxu0 %v13952_v39  ;;  %v13964_v39 = vld [vmem:[#allocation14 + $0x280] ss:$8 sps:$4 sm:$0xff]   ;;  %v13969_v60 = vld [vmem:[#allocation14 + $0x294] ss:$8 sps:$4 sm:$0xff]  }
 0xb2f   :  { %9094 = vmatprep.subr.bf16.mxu0 %v13957_v4  ;;  %v8118_v4 = vpack.c.bf16 %v18918_v38, %v18882_v47 }
 0xb32   :  { %9095 = vmatpush1.bf16.msra.mxu0 %v13955_v63  ;;  %v8121_v63 = vpack.c.bf16 %v18920_v25, %v18886_v48 }
 0xb33   :  { %9096 = vmatprep.subr.bf16.mxu0 %v13960_v58  ;;  %v13967_v58 = vld [vmem:[#allocation14 + $0x290] ss:$8 sps:$4 sm:$0xff]  }
 0xb35   :  { %9034 = vmatmul.mubr.bf16.gmra.mrb[220].mxu0 %v8116_v50  ;;  %v13972_v50 = vld [vmem:[#allocation14 + $0x2a4] ss:$8 sps:$4 sm:$0xff]  }
 0xb36   :  { %9043 = vmatprep.mubr.bf16.mxu0 %v8119_v13  ;;  %9097 = vmatpush1.bf16.msra.mxu0 %v13958_v55  ;;  %v13970_v55 = vld [vmem:[#allocation14 + $0x2a0] ss:$8 sps:$4 sm:$0xff]   ;;  %v13975_v13 = vld [vmem:[#allocation14 + $0x2b4] ss:$8 sps:$4 sm:$0xff]  }
 0xb37   :  { %9098 = vmatprep.subr.bf16.mxu0 %v13963_v54  ;;  %v8120_v54 = vpack.c.bf16 %v18946_v36, %v18910_v2 }
 0xb3a   :  { %9099 = vmatpush1.bf16.msra.mxu0 %v13961_v44  ;;  %v8123_v44 = vpack.c.bf16 %v18948_v45, %v18914_v57 }
 0xb3b   :  { %9100 = vmatprep.subr.bf16.mxu0 %v13966_v12  ;;  %v13973_v12 = vld [vmem:[#allocation14 + $0x2b0] ss:$8 sps:$4 sm:$0xff]  }
 0xb3d   :  { %9044 = vmatmul.mubr.bf16.gmra.mrb[224].mxu0 %v8118_v4  ;;  %v13978_v4 = vld [vmem:[#allocation14 + $0x2c4] ss:$8 sps:$4 sm:$0xff]  }
 0xb3e   :  { %9053 = vmatprep.mubr.bf16.mxu0 %v8121_v63  ;;  %9101 = vmatpush1.bf16.msra.mxu0 %v13964_v39  ;;  %v13976_v39 = vld [vmem:[#allocation14 + $0x2c0] ss:$8 sps:$4 sm:$0xff]   ;;  %v13981_v63 = vld [vmem:[#allocation14 + $0x2d4] ss:$8 sps:$4 sm:$0xff]  }
 0xb3f   :  { %9102 = vmatprep.subr.bf16.mxu0 %v13969_v60  ;;  %v8122_v60 = vpack.c.bf16 %v18968_v43, %v18938_v20 }
 0xb42   :  { %9103 = vmatpush1.bf16.msra.mxu0 %v13967_v58  ;;  %v8125_v58 = vpack.c.bf16 %v18780_v53, %v18942_v9 }
 0xb43   :  { %9104 = vmatprep.subr.bf16.mxu0 %v13972_v50  ;;  %v13979_v50 = vld [vmem:[#allocation14 + $0x2d0] ss:$8 sps:$4 sm:$0xff]  }
 0xb45   :  { %9054 = vmatmul.mubr.bf16.gmra.mrb[228].mxu0 %v8120_v54  ;;  %v13984_v54 = vld [vmem:[#allocation14 + $0x2e4] ss:$8 sps:$4 sm:$0xff]  }
 0xb46   :  { %9063 = vmatprep.mubr.bf16.mxu0 %v8123_v44  ;;  %9105 = vmatpush1.bf16.msra.mxu0 %v13970_v55  ;;  %v13982_v55 = vld [vmem:[#allocation14 + $0x2e0] ss:$8 sps:$4 sm:$0xff]   ;;  %v13987_v44 = vld [vmem:[#allocation14 + $0x2f4] ss:$8 sps:$4 sm:$0xff]  }
 0xb47   :  { %9106 = vmatprep.subr.bf16.mxu0 %v13975_v13  ;;  %v8124_v13 = vpack.c.bf16 %v18774_v14, %v18962_v17 }
 0xb4a   :  { %9107 = vmatpush1.bf16.msra.mxu0 %v13973_v12  ;;  %v8191_v12 = vmul.bf16 %v18789_v56, %v20240_v28  ;;  %v8195_v56 = vmul.bf16 %v18846_v6, %v20242_v3  ;;  %v8201_v6 = vmul.bf16 %v18930_v51, %v20245_v35 }
 0xb4b   :  { %9108 = vmatprep.subr.bf16.mxu0 %v13978_v4  ;;  %v13985_v4 = vld [vmem:[#allocation14 + $0x2f0] ss:$8 sps:$4 sm:$0xff]  }
 0xb4d   :  { %9064 = vmatmul.mubr.bf16.gmra.mrb[232].mxu0 %v8122_v60  ;;  %v8193_v60 = vmul.bf16 %v18819_v22, %v20241_v5  ;;  %v8199_v22 = vmul.bf16 %v18902_v32, %v20244_v11  ;;  %v20303_v32 = vld [vmem:[#allocation64_spill] sm:$0xff] }
 0xb4e   :  { %9073 = vmatprep.mubr.bf16.mxu0 %v8125_v58  ;;  %9109 = vmatpush1.bf16.msra.mxu0 %v13976_v39  ;;  %v8190_v39 = vmul.bf16 %v18814_v15, %v20240_v28  ;;  %v8194_v58 = vmul.bf16 %v18868_v49, %v20242_v3  ;;  %v8196_v15 = vmul.bf16 %v18896_v59, %v20243_v1 }
 0xb4f   :  { %9110 = vmatprep.subr.bf16.mxu0 %v13981_v63  ;;  %v8192_v63 = vmul.bf16 %v18840_v61, %v20241_v5  ;;  %v8198_v61 = vmul.bf16 %v18924_v41, %v20244_v11  ;;  %v8200_v49 = vmul.bf16 %v18952_v16, %v20245_v35  ;;  %v20305_v41 = vld [vmem:[#allocation86_spill] sm:$0xff] }
 0xb50   :  { %v8204_v51 = vmul.bf16 %v20305_v41, %v20303_v32  ;;  %v13991_v16 = vld [vmem:[#allocation15 + $0x10] ss:$8 sps:$4 sm:$0xff]   ;;  %v14018_v41 = vld [vmem:[#allocation15 + $0xa0] ss:$8 sps:$4 sm:$0xff]  }
 0xb52   :  { %9111 = vmatpush1.bf16.msra.mxu0 %v13979_v50  ;;  %v8197_v50 = vmul.bf16 %v18874_v8, %v20243_v1  ;;  %v20302_v8 = vld [vmem:[#allocation63_spill] sm:$0xff] }
 0xb53   :  { %9112 = vmatprep.subr.bf16.mxu0 %v13984_v54  ;;  %v8203_v54 = vmul.bf16 %v18958_v34, %v20302_v8  ;;  %v8202_v59 = vmul.bf16 %v18972_v18, %v20302_v8  ;;  %v13993_v34 = vld [vmem:[#allocation15 + $0x14] ss:$8 sps:$4 sm:$0xff]   ;;  %v13997_v18 = vld [vmem:[#allocation15 + $0x30] ss:$8 sps:$4 sm:$0xff]  }
 0xb55   :  { %9074 = vmatmul.mubr.bf16.gmra.mrb[236].mxu0 %v8124_v13 }
 0xb56   :  { %9113 = vmatpush1.bf16.msra.mxu0 %v13982_v55  ;;  %9116 = vmatprep.mubr.bf16.mxu0 %v8191_v12  ;;  %v20304_v55 = vld [vmem:[#allocation59_spill] sm:$0xff] }
 0xb57   :  { %9114 = vmatprep.subr.bf16.mxu0 %v13987_v44  ;;  %v8205_v13 = vmul.bf16 %v20304_v55, %v20303_v32  ;;  %v13988_v44 = vld [vmem:[#allocation15] ss:$8 sps:$4 sm:$0xff]   ;;  %v13990_v12 = vld [vmem:[#allocation15 + $0x4] ss:$8 sps:$4 sm:$0xff]   ;;  %v14017_v55 = vld [vmem:[#allocation15 + $0x94] ss:$8 sps:$4 sm:$0xff]  }
 0xb5a   :  { %9115 = vmatpush1.bf16.msra.mxu0 %v13985_v4  ;;  %v13996_v4 = vld [vmem:[#allocation15 + $0x24] ss:$8 sps:$4 sm:$0xff]  }
 0xb5b   :  { %9977 = vmatprep.subr.bf16.mxu0 %v13990_v12  ;;  %v14026_v12 = vld [vmem:[#allocation15 + $0xc4] ss:$8 sps:$4 sm:$0xff]  }
 0xb5d   :  { %9117 = vmatmul.mubr.bf16.vlgmr.msra.gmra.mrb[208].mxu0 %v8190_v39  ;;  %v13994_v39 = vld [vmem:[#allocation15 + $0x20] ss:$8 sps:$4 sm:$0xff]  }
 0xb5e   :  { %9126 = vmatprep.mubr.bf16.mxu0 %v8193_v60  ;;  %9978 = vmatpush1.bf16.msra.mxu0 %v13988_v44  ;;  %v13999_v60 = vld [vmem:[#allocation15 + $0x34] ss:$8 sps:$4 sm:$0xff]  }
 0xb5f   :  { %9979 = vmatprep.subr.bf16.mxu0 %v13993_v34  ;;  %v14023_v44 = vld [vmem:[#allocation15 + $0xb4] ss:$8 sps:$4 sm:$0xff]   ;;  %v14027_v34 = vld [vmem:[#allocation15 + $0xd0] ss:$8 sps:$4 sm:$0xff]  }
 0xb62   :  { %9980 = vmatpush1.bf16.msra.mxu0 %v13991_v16  ;;  %v14024_v16 = vld [vmem:[#allocation15 + $0xc0] ss:$8 sps:$4 sm:$0xff]  }
 0xb63   :  { %9981 = vmatprep.subr.bf16.mxu0 %v13996_v4  ;;  %v14029_v4 = vld [vmem:[#allocation15 + $0xd4] ss:$8 sps:$4 sm:$0xff]  }
 0xb65   :  { %9127 = vmatmul.mubr.bf16.gmra.mrb[212].mxu0 %v8192_v63  ;;  %v14002_v63 = vld [vmem:[#allocation15 + $0x44] ss:$8 sps:$4 sm:$0xff]  }
 0xb66   :  { %9136 = vmatprep.mubr.bf16.mxu0 %v8195_v56  ;;  %9982 = vmatpush1.bf16.msra.mxu0 %v13994_v39  ;;  %v14000_v56 = vld [vmem:[#allocation15 + $0x40] ss:$8 sps:$4 sm:$0xff]   ;;  %v14032_v39 = vld [vmem:[#allocation15 + $0xe4] ss:$8 sps:$4 sm:$0xff]  }
 0xb67   :  { %9983 = vmatprep.subr.bf16.mxu0 %v13999_v60  ;;  %v14035_v60 = vld [vmem:[#allocation15 + $0xf4] ss:$8 sps:$4 sm:$0xff]  }
 0xb6a   :  { %9984 = vmatpush1.bf16.msra.mxu0 %v13997_v18  ;;  %v14030_v18 = vld [vmem:[#allocation15 + $0xe0] ss:$8 sps:$4 sm:$0xff]  }
 0xb6b   :  { %9985 = vmatprep.subr.bf16.mxu0 %v14002_v63  ;;  %v14033_v63 = vld [vmem:[#allocation15 + $0xf0] ss:$8 sps:$4 sm:$0xff]  }
 0xb6d   :  { %9137 = vmatmul.mubr.bf16.gmra.mrb[216].mxu0 %v8194_v58  ;;  %v14003_v58 = vld [vmem:[#allocation15 + $0x50] ss:$8 sps:$4 sm:$0xff]  }
 0xb6e   :  { %9146 = vmatprep.mubr.bf16.mxu0 %v8197_v50  ;;  %9986 = vmatpush1.bf16.msra.mxu0 %v14000_v56  ;;  %v14005_v50 = vld [vmem:[#allocation15 + $0x54] ss:$8 sps:$4 sm:$0xff]   ;;  %v14038_v56 = vld [vmem:[#allocation15 + $0x104] ss:$8 sps:$4 sm:$0xff]  }
 0xb6f   :  { %9987 = vmatprep.subr.bf16.mxu0 %v14005_v50  ;;  %v20306_v50 = vld [vmem:[#allocation65_spill] sm:$0xff] }
 0xb72   :  { %9988 = vmatpush1.bf16.msra.mxu0 %v14003_v58  ;;  %v8366_v58 = vld [vmem:[%s19492_s18] sm:$0x3] }
 0xb75   :  { %9147 = vmatmul.mubr.bf16.gmra.mrb[220].mxu0 %v8196_v15  ;;  %v14008_v15 = vld [vmem:[#allocation15 + $0x64] ss:$8 sps:$4 sm:$0xff]  }
 0xb76   :  { %9156 = vmatprep.mubr.bf16.mxu0 %v8199_v22  ;;  %v14006_v22 = vld [vmem:[#allocation15 + $0x60] ss:$8 sps:$4 sm:$0xff]   ;;  %9989 = vmatprep.subr.bf16.mxu0 %v14008_v15  ;;  %v19044_v15 = vrot.slane %v8366_v58, %v20306_v50 }
 0xb77   :  { %9990 = vmatpush1.bf16.msra.mxu0 %v14006_v22  ;;  %v20307_v22 = vld [vmem:[#allocation66_spill] sm:$0xff] }
 0xb7d   :  { %9157 = vmatmul.mubr.bf16.gmra.mrb[224].mxu0 %v8198_v61  ;;  %v14009_v61 = vld [vmem:[#allocation15 + $0x70] ss:$8 sps:$4 sm:$0xff]  }
 0xb7e   :  { %9166 = vmatprep.mubr.bf16.mxu0 %v8201_v6  ;;  %v14011_v6 = vld [vmem:[#allocation15 + $0x74] ss:$8 sps:$4 sm:$0xff]  }
 0xb7f   :  { %9991 = vmatprep.subr.bf16.mxu0 %v14011_v6 }
 0xb80   :  { %9992 = vmatpush1.bf16.msra.mxu0 %v14009_v61  ;;  %v19047_v61 = vrot.slane %v8366_v58, %v20307_v22 }
 0xb85   :  { %9167 = vmatmul.mubr.bf16.gmra.mrb[228].mxu0 %v8200_v49  ;;  %v14014_v49 = vld [vmem:[#allocation15 + $0x84] ss:$8 sps:$4 sm:$0xff]  }
 0xb86   :  { %9176 = vmatprep.mubr.bf16.mxu0 %v8203_v54  ;;  %v14012_v54 = vld [vmem:[#allocation15 + $0x80] ss:$8 sps:$4 sm:$0xff]   ;;  %9993 = vmatprep.subr.bf16.mxu0 %v14014_v49 }
 0xb87   :  { %9994 = vmatpush1.bf16.msra.mxu0 %v14012_v54 }
 0xb88   :  { %9995 = vmatprep.subr.bf16.mxu0 %v14017_v55 }
 0xb8d   :  { %9177 = vmatmul.mubr.bf16.gmra.mrb[232].mxu0 %v8202_v59  ;;  %v14015_v59 = vld [vmem:[#allocation15 + $0x90] ss:$8 sps:$4 sm:$0xff]  }
 0xb8e   :  { %9186 = vmatprep.mubr.bf16.mxu0 %v8205_v13  ;;  %v14020_v13 = vld [vmem:[#allocation15 + $0xa4] ss:$8 sps:$4 sm:$0xff]   ;;  %9996 = vmatpush1.bf16.msra.mxu0 %v14015_v59 }
 0xb8f   :  { %9997 = vmatprep.subr.bf16.mxu0 %v14020_v13 }
 0xb92   :  { %9998 = vmatpush1.bf16.msra.mxu0 %v14018_v41 }
 0xb93   :  { %9999 = vmatprep.subr.bf16.mxu0 %v14023_v44 }
 0xb95   :  { %9187 = vmatmul.mubr.bf16.gmra.mrb[236].mxu0 %v8204_v51  ;;  %v14021_v51 = vld [vmem:[#allocation15 + $0xb0] ss:$8 sps:$4 sm:$0xff]  }
 0xb96   :  { %10000 = vmatpush1.bf16.msra.mxu0 %v14021_v51 }
 0xb97   :  { %10001 = vmatprep.subr.bf16.mxu0 %v14026_v12 }
 0xb9a   :  { %10002 = vmatpush1.bf16.msra.mxu0 %v14024_v16 }
 0xb9b   :  { %10003 = vmatprep.subr.bf16.mxu0 %v14029_v4 }
 0xb9e   :  { %10004 = vmatpush1.bf16.msra.mxu0 %v14027_v34 }
 0xb9f   :  { %10005 = vmatprep.subr.bf16.mxu0 %v14032_v39 }
 0xba2   :  { %10006 = vmatpush1.bf16.msra.mxu0 %v14030_v18 }
 0xba3   :  { %10007 = vmatprep.subr.bf16.mxu0 %v14035_v60 }
 0xba6   :  { %10008 = vmatpush1.bf16.msra.mxu0 %v14033_v63 }
 0xba7   :  { %10090 = vmatprep.subr.bf16.mxu0 %v14038_v56 }
 0xc30   :  { %v9118_v6 = vpop.f32.mrb[208].mxu0 }
 0xc31   :  { %v19050_v49 = vadd.f32 %v9118_v6, %v19044_v15  ;;  %v9120_v54 = vpop.f32.mrb[209].mxu0 }
 0xc32   :  { %v19053_v59 = vadd.f32 %v9120_v54, %v19047_v61  ;;  %v9122_v55 = vpop.f32.mrb[210].mxu0 }
 0xc33   :  { %v12857_v13 = vadd.f32 %v9122_v55, %v19044_v15  ;;  %v9124_v41 = vpop.f32.mrb[211].mxu0  ;;  %v19750_v44 = vmax.f32 %v19050_v49, 0.0 }
 0xc34   :  { %v12858_v51 = vadd.f32 %v9124_v41, %v19047_v61  ;;  %v19752_v16 = vmax.f32 %v19053_v59, 0.0 }
 0xc35   :  { %v9199_v12 = vmax.f32 %v12857_v13, 0.0 }
 0xc36   :  { %v9200_v34 = vmax.f32 %v12858_v51, 0.0 }
 0xc37   :  { %v19061_v4 = vpack.c.bf16 %v9199_v12, %v19750_v44 }
 0xc38   :  { %v19065_v39 = vpack.c.bf16 %v9200_v34, %v19752_v16  ;;  %v9128_v18 = vpop.f32.mrb[212].mxu0 }
 0xc39   :  { %v12859_v60 = vadd.f32 %v9128_v18, %v19044_v15  ;;  %v9130_v63 = vpop.f32.mrb[213].mxu0 }
 0xc3a   :  { %v12860_v56 = vadd.f32 %v9130_v63, %v19047_v61  ;;  %v9132_v58 = vpop.f32.mrb[214].mxu0 }
 0xc3b   :  { %v9201_v6 = vmax.f32 %v12859_v60, 0.0  ;;  %v12861_v54 = vadd.f32 %v9132_v58, %v19044_v15  ;;  %v9134_v55 = vpop.f32.mrb[215].mxu0 }
 0xc3c   :  { %v9202_v13 = vmax.f32 %v12860_v56, 0.0  ;;  %v12862_v41 = vadd.f32 %v9134_v55, %v19047_v61 }
 0xc3d   :  { %v19071_v51 = vpack.c.bf16 %v9201_v6, %v9199_v12  ;;  %v9203_v44 = vmax.f32 %v12861_v54, 0.0 }
 0xc3e   :  { %v19073_v53 = vpack.c.bf16 %v9202_v13, %v9200_v34  ;;  %v9204_v16 = vmax.f32 %v12862_v41, 0.0 }
 0xc3f   :  { %v19075_v14 = vpack.c.bf16 %v9203_v44, %v9201_v6 }
 0xc40   :  { %v19077_v18 = vpack.c.bf16 %v9204_v16, %v9202_v13  ;;  %v9138_v9 = vpop.f32.mrb[216].mxu0 }
 0xc41   :  { %v12863_v63 = vadd.f32 %v9138_v9, %v19044_v15  ;;  %v9140_v60 = vpop.f32.mrb[217].mxu0 }
 0xc42   :  { %v12864_v58 = vadd.f32 %v9140_v60, %v19047_v61  ;;  %v9142_v17 = vpop.f32.mrb[218].mxu0 }
 0xc43   :  { %v9205_v56 = vmax.f32 %v12863_v63, 0.0  ;;  %v12865_v55 = vadd.f32 %v9142_v17, %v19044_v15  ;;  %v9144_v12 = vpop.f32.mrb[219].mxu0 }
 0xc44   :  { %v9206_v45 = vmax.f32 %v12864_v58, 0.0  ;;  %v12866_v34 = vadd.f32 %v9144_v12, %v19047_v61 }
 0xc45   :  { %v19083_v54 = vpack.c.bf16 %v9205_v56, %v9203_v44  ;;  %v9207_v6 = vmax.f32 %v12865_v55, 0.0 }
 0xc46   :  { %v19085_v41 = vpack.c.bf16 %v9206_v45, %v9204_v16  ;;  %v9208_v13 = vmax.f32 %v12866_v34, 0.0 }
 0xc47   :  { %v19087_v43 = vpack.c.bf16 %v9207_v6, %v9205_v56 }
 0xc48   :  { %v19089_v9 = vpack.c.bf16 %v9208_v13, %v9206_v45  ;;  %v9148_v57 = vpop.f32.mrb[220].mxu0 }
 0xc49   :  { %v12867_v60 = vadd.f32 %v9148_v57, %v19044_v15  ;;  %v9150_v63 = vpop.f32.mrb[221].mxu0 }
 0xc4a   :  { %v12868_v17 = vadd.f32 %v9150_v63, %v19047_v61  ;;  %v9152_v20 = vpop.f32.mrb[222].mxu0 }
 0xc4b   :  { %v9209_v58 = vmax.f32 %v12867_v60, 0.0  ;;  %v12869_v12 = vadd.f32 %v9152_v20, %v19044_v15  ;;  %v9154_v44 = vpop.f32.mrb[223].mxu0 }
 0xc4c   :  { %v9210_v25 = vmax.f32 %v12868_v17, 0.0  ;;  %v12870_v16 = vadd.f32 %v9154_v44, %v19047_v61 }
 0xc4d   :  { %v19095_v55 = vpack.c.bf16 %v9209_v58, %v9207_v6  ;;  %v9211_v56 = vmax.f32 %v12869_v12, 0.0 }
 0xc4e   :  { %v19097_v34 = vpack.c.bf16 %v9210_v25, %v9208_v13  ;;  %v9212_v45 = vmax.f32 %v12870_v16, 0.0 }
 0xc4f   :  { %v19099_v36 = vpack.c.bf16 %v9211_v56, %v9209_v58 }
 0xc50   :  { %v19101_v57 = vpack.c.bf16 %v9212_v45, %v9210_v25  ;;  %v9158_v48 = vpop.f32.mrb[224].mxu0 }
 0xc51   :  { %v12871_v63 = vadd.f32 %v9158_v48, %v19044_v15  ;;  %v9160_v60 = vpop.f32.mrb[225].mxu0 }
 0xc52   :  { %v12872_v20 = vadd.f32 %v9160_v60, %v19047_v61  ;;  %v9162_v2 = vpop.f32.mrb[226].mxu0 }
 0xc53   :  { %v9213_v17 = vmax.f32 %v12871_v63, 0.0  ;;  %v12873_v44 = vadd.f32 %v9162_v2, %v19044_v15  ;;  %v9164_v6 = vpop.f32.mrb[227].mxu0 }
 0xc54   :  { %v9214_v29 = vmax.f32 %v12872_v20, 0.0  ;;  %v12874_v13 = vadd.f32 %v9164_v6, %v19047_v61 }
 0xc55   :  { %v19107_v12 = vpack.c.bf16 %v9213_v17, %v9211_v56  ;;  %v9215_v58 = vmax.f32 %v12873_v44, 0.0 }
 0xc56   :  { %v19109_v16 = vpack.c.bf16 %v9214_v29, %v9212_v45  ;;  %v9216_v25 = vmax.f32 %v12874_v13, 0.0 }
 0xc57   :  { %v19111_v38 = vpack.c.bf16 %v9215_v58, %v9213_v17 }
 0xc58   :  { %v19113_v48 = vpack.c.bf16 %v9216_v25, %v9214_v29  ;;  %v9168_v21 = vpop.f32.mrb[228].mxu0 }
 0xc59   :  { %v12875_v60 = vadd.f32 %v9168_v21, %v19044_v15  ;;  %v9170_v63 = vpop.f32.mrb[229].mxu0 }
 0xc5a   :  { %v12876_v2 = vadd.f32 %v9170_v63, %v19047_v61  ;;  %v9172_v47 = vpop.f32.mrb[230].mxu0 }
 0xc5b   :  { %v9217_v20 = vmax.f32 %v12875_v60, 0.0  ;;  %v12877_v6 = vadd.f32 %v9172_v47, %v19044_v15  ;;  %v9174_v56 = vpop.f32.mrb[231].mxu0 }
 0xc5c   :  { %v9218_v27 = vmax.f32 %v12876_v2, 0.0  ;;  %v12878_v45 = vadd.f32 %v9174_v56, %v19047_v61 }
 0xc5d   :  { %v19119_v44 = vpack.c.bf16 %v9217_v20, %v9215_v58  ;;  %v9219_v17 = vmax.f32 %v12877_v6, 0.0 }
 0xc5e   :  { %v19121_v13 = vpack.c.bf16 %v9218_v27, %v9216_v25  ;;  %v9220_v29 = vmax.f32 %v12878_v45, 0.0 }
 0xc5f   :  { %v19123_v42 = vpack.c.bf16 %v9219_v17, %v9217_v20 }
 0xc60   :  { %v19125_v21 = vpack.c.bf16 %v9220_v29, %v9218_v27  ;;  %v9178_v0 = vpop.f32.mrb[232].mxu0 }
 0xc61   :  { %v12879_v63 = vadd.f32 %v9178_v0, %v19044_v15  ;;  %v9180_v60 = vpop.f32.mrb[233].mxu0 }
 0xc62   :  { %v12880_v47 = vadd.f32 %v9180_v60, %v19047_v61  ;;  %v9182_v62 = vpop.f32.mrb[234].mxu0 }
 0xc63   :  { %v9221_v2 = vmax.f32 %v12879_v63, 0.0  ;;  %v12881_v56 = vadd.f32 %v9182_v62, %v19044_v15  ;;  %v9184_v58 = vpop.f32.mrb[235].mxu0 }
 0xc64   :  { %v9222_v46 = vmax.f32 %v12880_v47, 0.0  ;;  %v12882_v25 = vadd.f32 %v9184_v58, %v19047_v61 }
 0xc65   :  { %v19131_v6 = vpack.c.bf16 %v9221_v2, %v9219_v17  ;;  %v9223_v20 = vmax.f32 %v12881_v56, 0.0 }
 0xc66   :  { %v19133_v45 = vpack.c.bf16 %v9222_v46, %v9220_v29  ;;  %v9224_v27 = vmax.f32 %v12882_v25, 0.0 }
 0xc67   :  { %v19135_v10 = vpack.c.bf16 %v9223_v20, %v9221_v2 }
 0xc68   :  { %v19137_v0 = vpack.c.bf16 %v9224_v27, %v9222_v46  ;;  %v9188_v7 = vpop.f32.mrb[236].mxu0 }
 0xc69   :  { %v12883_v60 = vadd.f32 %v9188_v7, %v19044_v15  ;;  %v9190_v63 = vpop.f32.mrb[237].mxu0  ;;  %v20308_v7 = vmax.f32 %v19050_v49, 0.0 }
 0xc6a   :  { %v12884_v62 = vadd.f32 %v9190_v63, %v19047_v61  ;;  %v9192_v30 = vpop.f32.mrb[238].mxu0 }
 0xc6b   :  { %v9225_v47 = vmax.f32 %v12883_v60, 0.0  ;;  %v12885_v58 = vadd.f32 %v9192_v30, %v19044_v15  ;;  %v9194_v17 = vpop.f32.mrb[239].mxu0  ;;  %v20309_v30 = vmax.f32 %v19053_v59, 0.0  ;;  %v20310_v60 = vld [vmem:[#allocation42_spill] sm:$0xff]  ;;  %v14044_v59 = vld [vmem:[#allocation15 + $0x124] ss:$8 sps:$4 sm:$0xff]  }
 0xc6c   :  { %v9226_v40 = vmax.f32 %v12884_v62, 0.0  ;;  %v12886_v29 = vadd.f32 %v9194_v17, %v19047_v61  ;;  %v14041_v62 = vld [vmem:[#allocation15 + $0x114] ss:$8 sps:$4 sm:$0xff]  }
 0xc6d   :  { %v19143_v56 = vpack.c.bf16 %v9225_v47, %v9223_v20  ;;  %v9227_v2 = vmax.f32 %v12885_v58, 0.0  ;;  %v14036_v20 = vld [vmem:[#allocation15 + $0x100] ss:$8 sps:$4 sm:$0xff]  }
 0xc6e   :  { %v19145_v25 = vpack.c.bf16 %v9226_v40, %v9224_v27  ;;  %v9228_v46 = vmax.f32 %v12886_v29, 0.0  ;;  %v14042_v58 = vld [vmem:[#allocation15 + $0x120] ss:$8 sps:$4 sm:$0xff]   ;;  %v14047_v29 = vld [vmem:[#allocation15 + $0x134] ss:$8 sps:$4 sm:$0xff]  }
 0xc6f   :  { %v19147_v31 = vpack.c.bf16 %v9227_v2, %v9225_v47  ;;  %v19151_v19 = vpack.c.bf16 %v20308_v7, %v9227_v2  ;;  %v20311_v47 = vld [vmem:[#allocation53_spill] sm:$0xff]  ;;  %v20312_v2 = vld [vmem:[#allocation28_spill] sm:$0xff] }
 0xc70   :  { %v19153_v63 = vpack.c.bf16 %v9228_v46, %v9226_v40  ;;  %v19157_v15 = vpack.c.bf16 %v20309_v30, %v9228_v46  ;;  %v9264_v49 = vmul.bf16 %v19073_v53, %v20311_v47  ;;  %v14039_v40 = vld [vmem:[#allocation15 + $0x110] ss:$8 sps:$4 sm:$0xff]   ;;  %v9263_v17 = vmul.bf16 %v19071_v51, %v20311_v47  ;;  %v14050_v30 = vld [vmem:[#allocation15 + $0x144] ss:$8 sps:$4 sm:$0xff]  }
 0xc71   :  { %v9261_v27 = vmul.bf16 %v19151_v19, %v20310_v60  ;;  %v9266_v46 = vmul.bf16 %v19085_v41, %v20312_v2  ;;  %v14045_v7 = vld [vmem:[#allocation15 + $0x130] ss:$8 sps:$4 sm:$0xff]  }
 0xc72   :  { %v9262_v61 = vmul.bf16 %v19157_v15, %v20310_v60  ;;  %v14048_v60 = vld [vmem:[#allocation15 + $0x140] ss:$8 sps:$4 sm:$0xff]   ;;  %v14051_v47 = vld [vmem:[#allocation15 + $0x150] ss:$8 sps:$4 sm:$0xff]  }
 0xc74   :  { %10009 = vmatprep.mubr.bf16.mxu0 %v9262_v61  ;;  %v9265_v61 = vmul.bf16 %v19083_v54, %v20312_v2  ;;  %v14057_v2 = vld [vmem:[#allocation15 + $0x170] ss:$8 sps:$4 sm:$0xff]  }
 0xc75   :  { %10010 = vmatmul.mubr.bf16.vlgmr.msra.gmra.mrb[240].mxu0 %v9261_v27  ;;  %v20313_v27 = vld [vmem:[#allocation40_spill] sm:$0xff] }
 0xc76   :  { %10019 = vmatprep.mubr.bf16.mxu0 %v9264_v49  ;;  %10091 = vmatpush1.bf16.msra.mxu0 %v14036_v20  ;;  %v14053_v20 = vld [vmem:[#allocation15 + $0x154] ss:$8 sps:$4 sm:$0xff]   ;;  %v14056_v49 = vld [vmem:[#allocation15 + $0x164] ss:$8 sps:$4 sm:$0xff]  }
 0xc77   :  { %10092 = vmatprep.subr.bf16.mxu0 %v14041_v62  ;;  %v9268_v62 = vmul.bf16 %v19097_v34, %v20313_v27 }
 0xc7a   :  { %10093 = vmatpush1.bf16.msra.mxu0 %v14039_v40  ;;  %v14054_v40 = vld [vmem:[#allocation15 + $0x160] ss:$8 sps:$4 sm:$0xff]  }
 0xc7b   :  { %10094 = vmatprep.subr.bf16.mxu0 %v14044_v59  ;;  %v9267_v59 = vmul.bf16 %v19095_v55, %v20313_v27  ;;  %v14063_v27 = vld [vmem:[#allocation15 + $0x190] ss:$8 sps:$4 sm:$0xff]  }
 0xc7d   :  { %10020 = vmatmul.mubr.bf16.gmra.mrb[244].mxu0 %v9263_v17  ;;  %v20314_v17 = vld [vmem:[#allocation38_spill] sm:$0xff] }
 0xc7e   :  { %10029 = vmatprep.mubr.bf16.mxu0 %v9266_v46  ;;  %10095 = vmatpush1.bf16.msra.mxu0 %v14042_v58  ;;  %v14059_v58 = vld [vmem:[#allocation15 + $0x174] ss:$8 sps:$4 sm:$0xff]   ;;  %v14062_v46 = vld [vmem:[#allocation15 + $0x184] ss:$8 sps:$4 sm:$0xff]  }
 0xc7f   :  { %10096 = vmatprep.subr.bf16.mxu0 %v14047_v29  ;;  %v9270_v29 = vmul.bf16 %v19109_v16, %v20314_v17 }
 0xc82   :  { %10097 = vmatpush1.bf16.msra.mxu0 %v14045_v7  ;;  %v14060_v7 = vld [vmem:[#allocation15 + $0x180] ss:$8 sps:$4 sm:$0xff]  }
 0xc83   :  { %10098 = vmatprep.subr.bf16.mxu0 %v14050_v30  ;;  %v9269_v30 = vmul.bf16 %v19107_v12, %v20314_v17  ;;  %v14074_v17 = vld [vmem:[#allocation15 + $0x1c4] ss:$8 sps:$4 sm:$0xff]  }
 0xc85   :  { %10030 = vmatmul.mubr.bf16.gmra.mrb[248].mxu0 %v9265_v61  ;;  %v20315_v61 = vld [vmem:[#allocation43_spill] sm:$0xff] }
 0xc86   :  { %10039 = vmatprep.mubr.bf16.mxu0 %v9268_v62  ;;  %10099 = vmatpush1.bf16.msra.mxu0 %v14048_v60  ;;  %v14065_v60 = vld [vmem:[#allocation15 + $0x194] ss:$8 sps:$4 sm:$0xff]   ;;  %v14068_v62 = vld [vmem:[#allocation15 + $0x1a4] ss:$8 sps:$4 sm:$0xff]  }
 0xc87   :  { %10100 = vmatprep.subr.bf16.mxu0 %v14053_v20  ;;  %v9272_v20 = vmul.bf16 %v19121_v13, %v20315_v61 }
 0xc8a   :  { %10101 = vmatpush1.bf16.msra.mxu0 %v14051_v47  ;;  %v14066_v47 = vld [vmem:[#allocation15 + $0x1a0] ss:$8 sps:$4 sm:$0xff]  }
 0xc8b   :  { %10102 = vmatprep.subr.bf16.mxu0 %v14056_v49  ;;  %v9271_v49 = vmul.bf16 %v19119_v44, %v20315_v61  ;;  %v14078_v61 = vld [vmem:[#allocation15 + $0x1e0] ss:$8 sps:$4 sm:$0xff]  }
 0xc8d   :  { %10040 = vmatmul.mubr.bf16.gmra.mrb[252].mxu0 %v9267_v59  ;;  %v9274_v59 = vmul.bf16 %v19133_v45, %v20296_v37 }
 0xc8e   :  { %10049 = vmatprep.mubr.bf16.mxu0 %v9270_v29  ;;  %10103 = vmatpush1.bf16.msra.mxu0 %v14054_v40  ;;  %v14071_v40 = vld [vmem:[#allocation15 + $0x1b4] ss:$8 sps:$4 sm:$0xff]   ;;  %v14072_v29 = vld [vmem:[#allocation15 + $0x1c0] ss:$8 sps:$4 sm:$0xff]  }
 0xc8f   :  { %10104 = vmatprep.subr.bf16.mxu0 %v14059_v58  ;;  %v14069_v58 = vld [vmem:[#allocation15 + $0x1b0] ss:$8 sps:$4 sm:$0xff]  }
 0xc92   :  { %10105 = vmatpush1.bf16.msra.mxu0 %v14057_v2  ;;  %v9273_v2 = vmul.bf16 %v19131_v6, %v20296_v37  ;;  %v14132_v37 = vld [vmem:[%s19495_s21] ss:$8 sps:$4 sm:$0xff]  }
 0xc93   :  { %10106 = vmatprep.subr.bf16.mxu0 %v14062_v46  ;;  %v14077_v46 = vld [vmem:[#allocation15 + $0x1d4] ss:$8 sps:$4 sm:$0xff]  }
 0xc95   :  { %10050 = vmatmul.mubr.bf16.gmra.mrb[0].mxu0 %v9269_v30  ;;  %v14075_v30 = vld [vmem:[#allocation15 + $0x1d0] ss:$8 sps:$4 sm:$0xff]  }
 0xc96   :  { %10059 = vmatprep.mubr.bf16.mxu0 %v9272_v20  ;;  %10107 = vmatpush1.bf16.msra.mxu0 %v14060_v7  ;;  %v9276_v7 = vmul.bf16 %v19145_v25, %v20300_v24  ;;  %v9275_v20 = vmul.bf16 %v19143_v56, %v20300_v24  ;;  %v14086_v24 = vld [vmem:[#allocation15 + $0x204] ss:$8 sps:$4 sm:$0xff]  }
 0xc97   :  { %10108 = vmatprep.subr.bf16.mxu0 %v14065_v60  ;;  %v14080_v60 = vld [vmem:[#allocation15 + $0x1e4] ss:$8 sps:$4 sm:$0xff]  }
 0xc9a   :  { %10109 = vmatpush1.bf16.msra.mxu0 %v14063_v27  ;;  %v14083_v27 = vld [vmem:[#allocation15 + $0x1f4] ss:$8 sps:$4 sm:$0xff]  }
 0xc9b   :  { %10110 = vmatprep.subr.bf16.mxu0 %v14068_v62  ;;  %v14134_v62 = vld [vmem:[%s19495_s21 + $0x4] ss:$8 sps:$4 sm:$0xff]  }
 0xc9c   :  { %10600 = vmatprep.subr.bf16.mxu1 %v14134_v62  ;;  %v14096_v62 = vld [vmem:[#allocation15 + $0x240] ss:$8 sps:$4 sm:$0xff]  }
 0xc9d   :  { %10060 = vmatmul.mubr.bf16.gmra.mrb[4].mxu0 %v9271_v49  ;;  %v14137_v49 = vld [vmem:[%s19495_s21 + $0x14] ss:$8 sps:$4 sm:$0xff]   ;;  %10601 = vmatpush1.bf16.msra.mxu1 %v14132_v37  ;;  %v14147_v37 = vld [vmem:[%s19495_s21 + $0x50] ss:$8 sps:$4 sm:$0xff]  }
 0xc9e   :  { %10069 = vmatprep.mubr.bf16.mxu0 %v9274_v59  ;;  %10111 = vmatpush1.bf16.msra.mxu0 %v14066_v47  ;;  %v14081_v47 = vld [vmem:[#allocation15 + $0x1f0] ss:$8 sps:$4 sm:$0xff]   ;;  %v14140_v59 = vld [vmem:[%s19495_s21 + $0x24] ss:$8 sps:$4 sm:$0xff]  }
 0xc9f   :  { %10112 = vmatprep.subr.bf16.mxu0 %v14071_v40  ;;  %v14135_v40 = vld [vmem:[%s19495_s21 + $0x10] ss:$8 sps:$4 sm:$0xff]   ;;  %10602 = vmatprep.subr.bf16.mxu1 %v14137_v49  ;;  %v14155_v49 = vld [vmem:[%s19495_s21 + $0x74] ss:$8 sps:$4 sm:$0xff]  }
 0xca1   :  { %10603 = vmatpush1.bf16.msra.mxu1 %v14135_v40  ;;  %v14104_v40 = vld [vmem:[#allocation15 + $0x264] ss:$8 sps:$4 sm:$0xff]  }
 0xca2   :  { %10113 = vmatpush1.bf16.msra.mxu0 %v14069_v58  ;;  %v14089_v58 = vld [vmem:[#allocation15 + $0x214] ss:$8 sps:$4 sm:$0xff]   ;;  %10604 = vmatprep.subr.bf16.mxu1 %v14140_v59  ;;  %v14153_v59 = vld [vmem:[%s19495_s21 + $0x70] ss:$8 sps:$4 sm:$0xff]  }
 0xca3   :  { %10114 = vmatprep.subr.bf16.mxu0 %v14074_v17  ;;  %v14138_v17 = vld [vmem:[%s19495_s21 + $0x20] ss:$8 sps:$4 sm:$0xff]  }
 0xca5   :  { %10070 = vmatmul.mubr.bf16.gmra.mrb[8].mxu0 %v9273_v2  ;;  %v14087_v2 = vld [vmem:[#allocation15 + $0x210] ss:$8 sps:$4 sm:$0xff]   ;;  %10605 = vmatpush1.bf16.msra.mxu1 %v14138_v17  ;;  %v14161_v17 = vld [vmem:[%s19495_s21 + $0x94] ss:$8 sps:$4 sm:$0xff]  }
 0xca6   :  { %10079 = vmatprep.mubr.bf16.mxu0 %v9276_v7  ;;  %10115 = vmatpush1.bf16.msra.mxu0 %v14072_v29  ;;  %v14143_v29 = vld [vmem:[%s19495_s21 + $0x34] ss:$8 sps:$4 sm:$0xff]   ;;  %v14141_v7 = vld [vmem:[%s19495_s21 + $0x30] ss:$8 sps:$4 sm:$0xff]  }
 0xca7   :  { %10116 = vmatprep.subr.bf16.mxu0 %v14077_v46  ;;  %v14092_v46 = vld [vmem:[#allocation15 + $0x224] ss:$8 sps:$4 sm:$0xff]   ;;  %10606 = vmatprep.subr.bf16.mxu1 %v14143_v29  ;;  %v14105_v29 = vld [vmem:[#allocation15 + $0x270] ss:$8 sps:$4 sm:$0xff]  }
 0xca9   :  { %10607 = vmatpush1.bf16.msra.mxu1 %v14141_v7  ;;  %v14108_v7 = vld [vmem:[#allocation15 + $0x280] ss:$8 sps:$4 sm:$0xff]  }
 0xcaa   :  { %10117 = vmatpush1.bf16.msra.mxu0 %v14075_v30  ;;  %v14090_v30 = vld [vmem:[#allocation15 + $0x220] ss:$8 sps:$4 sm:$0xff]  }
 0xcab   :  { %10118 = vmatprep.subr.bf16.mxu0 %v14080_v60  ;;  %v14095_v60 = vld [vmem:[#allocation15 + $0x234] ss:$8 sps:$4 sm:$0xff]  }
 0xcad   :  { %10080 = vmatmul.mubr.bf16.gmra.mrb[12].mxu0 %v9275_v20  ;;  %v14093_v20 = vld [vmem:[#allocation15 + $0x230] ss:$8 sps:$4 sm:$0xff]  }
 0xcae   :  { %10119 = vmatpush1.bf16.msra.mxu0 %v14078_v61  ;;  %10122 = vmatprep.mubr.bf16.mxu0 %v19065_v39  ;;  %v14084_v39 = vld [vmem:[#allocation15 + $0x200] ss:$8 sps:$4 sm:$0xff]   ;;  %v14149_v61 = vld [vmem:[%s19495_s21 + $0x54] ss:$8 sps:$4 sm:$0xff]  }
 0xcaf   :  { %10120 = vmatprep.subr.bf16.mxu0 %v14083_v27  ;;  %v14098_v27 = vld [vmem:[#allocation15 + $0x244] ss:$8 sps:$4 sm:$0xff]  }
 0xcb2   :  { %10121 = vmatpush1.bf16.msra.mxu0 %v14081_v47  ;;  %v14101_v47 = vld [vmem:[#allocation15 + $0x254] ss:$8 sps:$4 sm:$0xff]  }
 0xcb3   :  { %10203 = vmatprep.subr.bf16.mxu0 %v14086_v24  ;;  %v14099_v24 = vld [vmem:[#allocation15 + $0x250] ss:$8 sps:$4 sm:$0xff]  }
 0xcb5   :  { %10123 = vmatmul.mubr.bf16.vlgmr.msra.gmra.mrb[240].mxu0 %v19061_v4  ;;  %v14146_v4 = vld [vmem:[%s19495_s21 + $0x44] ss:$8 sps:$4 sm:$0xff]  }
 0xcb6   :  { %10132 = vmatprep.mubr.bf16.mxu0 %v19077_v18  ;;  %10204 = vmatpush1.bf16.msra.mxu0 %v14084_v39  ;;  %v14144_v18 = vld [vmem:[%s19495_s21 + $0x40] ss:$8 sps:$4 sm:$0xff]  }
 0xcb7   :  { %10205 = vmatprep.subr.bf16.mxu0 %v14089_v58  ;;  %10608 = vmatprep.subr.bf16.mxu1 %v14146_v4  ;;  %v14102_v39 = vld [vmem:[#allocation15 + $0x260] ss:$8 sps:$4 sm:$0xff]   ;;  %v14107_v58 = vld [vmem:[#allocation15 + $0x274] ss:$8 sps:$4 sm:$0xff]  }
 0xcb8   :  { %10609 = vmatpush1.bf16.msra.mxu1 %v14144_v18  ;;  %v14113_v4 = vld [vmem:[#allocation15 + $0x294] ss:$8 sps:$4 sm:$0xff]   ;;  %v14116_v18 = vld [vmem:[#allocation15 + $0x2a4] ss:$8 sps:$4 sm:$0xff]  }
 0xcb9   :  { %10610 = vmatprep.subr.bf16.mxu1 %v14149_v61  ;;  %v14165_v61 = vld [vmem:[%s19495_s21 + $0xb0] ss:$8 sps:$4 sm:$0xff]  }
 0xcba   :  { %10206 = vmatpush1.bf16.msra.mxu0 %v14087_v2  ;;  %v14110_v2 = vld [vmem:[#allocation15 + $0x284] ss:$8 sps:$4 sm:$0xff]  }
 0xcbb   :  { %10207 = vmatprep.subr.bf16.mxu0 %v14092_v46  ;;  %v14159_v46 = vld [vmem:[%s19495_s21 + $0x90] ss:$8 sps:$4 sm:$0xff]  }
 0xcbc   :  { %10611 = vmatpush1.bf16.msra.mxu1 %v14147_v37  ;;  %v14117_v37 = vld [vmem:[#allocation15 + $0x2b0] ss:$8 sps:$4 sm:$0xff]  }
 0xcbd   :  { %10133 = vmatmul.mubr.bf16.gmra.mrb[244].mxu0 %v19075_v14  ;;  %v14152_v14 = vld [vmem:[%s19495_s21 + $0x64] ss:$8 sps:$4 sm:$0xff]  }
 0xcbe   :  { %10142 = vmatprep.mubr.bf16.mxu0 %v19089_v9  ;;  %10208 = vmatpush1.bf16.msra.mxu0 %v14090_v30  ;;  %v14150_v9 = vld [vmem:[%s19495_s21 + $0x60] ss:$8 sps:$4 sm:$0xff]   ;;  %v14167_v30 = vld [vmem:[%s19495_s21 + $0xb4] ss:$8 sps:$4 sm:$0xff]  }
 0xcbf   :  { %10209 = vmatprep.subr.bf16.mxu0 %v14095_v60  ;;  %10612 = vmatprep.subr.bf16.mxu1 %v14152_v14  ;;  %v14111_v60 = vld [vmem:[#allocation15 + $0x290] ss:$8 sps:$4 sm:$0xff]   ;;  %v14122_v14 = vld [vmem:[#allocation15 + $0x2c4] ss:$8 sps:$4 sm:$0xff]  }
 0xcc0   :  { %10613 = vmatpush1.bf16.msra.mxu1 %v14150_v9  ;;  %v14123_v9 = vld [vmem:[#allocation15 + $0x2d0] ss:$8 sps:$4 sm:$0xff]  }
 0xcc1   :  { %10614 = vmatprep.subr.bf16.mxu1 %v14155_v49  ;;  %v14126_v49 = vld [vmem:[#allocation15 + $0x2e0] ss:$8 sps:$4 sm:$0xff]  }
 0xcc2   :  { %10210 = vmatpush1.bf16.msra.mxu0 %v14093_v20  ;;  %v14114_v20 = vld [vmem:[#allocation15 + $0x2a0] ss:$8 sps:$4 sm:$0xff]  }
 0xcc3   :  { %10211 = vmatprep.subr.bf16.mxu0 %v14098_v27  ;;  %v14119_v27 = vld [vmem:[#allocation15 + $0x2b4] ss:$8 sps:$4 sm:$0xff]  }
 0xcc4   :  { %10615 = vmatpush1.bf16.msra.mxu1 %v14153_v59  ;;  %v9311_v59 = vmul.bf16 %v19083_v54, %v20241_v5  ;;  %v9320_v54 = vmul.bf16 %v19133_v45, %v20245_v35 }
 0xcc5   :  { %10143 = vmatmul.mubr.bf16.gmra.mrb[248].mxu0 %v19087_v43  ;;  %v14158_v43 = vld [vmem:[%s19495_s21 + $0x84] ss:$8 sps:$4 sm:$0xff]  }
 0xcc6   :  { %10152 = vmatprep.mubr.bf16.mxu0 %v19101_v57  ;;  %10212 = vmatpush1.bf16.msra.mxu0 %v14096_v62  ;;  %v14156_v57 = vld [vmem:[%s19495_s21 + $0x80] ss:$8 sps:$4 sm:$0xff]  }
 0xcc7   :  { %10213 = vmatprep.subr.bf16.mxu0 %v14101_v47  ;;  %10616 = vmatprep.subr.bf16.mxu1 %v14158_v43  ;;  %v14120_v62 = vld [vmem:[#allocation15 + $0x2c0] ss:$8 sps:$4 sm:$0xff]   ;;  %v14125_v47 = vld [vmem:[#allocation15 + $0x2d4] ss:$8 sps:$4 sm:$0xff]   ;;  %v9316_v43 = vmul.bf16 %v19109_v16, %v20243_v1 }
 0xcc8   :  { %10617 = vmatpush1.bf16.msra.mxu1 %v14156_v57  ;;  %v9485_v16 = vld [vmem:[%s19494_s20] sm:$0x3] }
 0xcc9   :  { %10618 = vmatprep.subr.bf16.mxu1 %v14161_v17 }
 0xcca   :  { %10214 = vmatpush1.bf16.msra.mxu0 %v14099_v24  ;;  %v9310_v24 = vmul.bf16 %v19073_v53, %v20240_v28  ;;  %v9314_v53 = vmul.bf16 %v19097_v34, %v20242_v3  ;;  %v14173_v34 = vld [vmem:[%s19495_s21 + $0xd4] ss:$8 sps:$4 sm:$0xff]  }
 0xccb   :  { %10215 = vmatprep.subr.bf16.mxu0 %v14104_v40  ;;  %v14129_v40 = vld [vmem:[#allocation15 + $0x2f0] ss:$8 sps:$4 sm:$0xff]  }
 0xccc   :  { %10619 = vmatpush1.bf16.msra.mxu1 %v14159_v46  ;;  %v20316_v46 = vld [vmem:[#allocation87_spill] sm:$0xff] }
 0xccd   :  { %10153 = vmatmul.mubr.bf16.gmra.mrb[252].mxu0 %v19099_v36  ;;  %v14164_v36 = vld [vmem:[%s19495_s21 + $0xa4] ss:$8 sps:$4 sm:$0xff]  }
 0xcce   :  { %10162 = vmatprep.mubr.bf16.mxu0 %v19113_v48  ;;  %10216 = vmatpush1.bf16.msra.mxu0 %v14102_v39  ;;  %v14162_v48 = vld [vmem:[%s19495_s21 + $0xa0] ss:$8 sps:$4 sm:$0xff]  }
 0xccf   :  { %10217 = vmatprep.subr.bf16.mxu0 %v14107_v58  ;;  %10620 = vmatprep.subr.bf16.mxu1 %v14164_v36 }
 0xcd0   :  { %10621 = vmatpush1.bf16.msra.mxu1 %v14162_v48 }
 0xcd1   :  { %10622 = vmatprep.subr.bf16.mxu1 %v14167_v30 }
 0xcd2   :  { %10218 = vmatpush1.bf16.msra.mxu0 %v14105_v29 }
 0xcd3   :  { %10219 = vmatprep.subr.bf16.mxu0 %v14110_v2 }
 0xcd4   :  { %10623 = vmatpush1.bf16.msra.mxu1 %v14165_v61 }
 0xcd5   :  { %10163 = vmatmul.mubr.bf16.gmra.mrb[0].mxu0 %v19111_v38  ;;  %v14170_v38 = vld [vmem:[%s19495_s21 + $0xc4] ss:$8 sps:$4 sm:$0xff]  }
 0xcd6   :  { %10172 = vmatprep.mubr.bf16.mxu0 %v19125_v21  ;;  %10220 = vmatpush1.bf16.msra.mxu0 %v14108_v7  ;;  %v14168_v21 = vld [vmem:[%s19495_s21 + $0xc0] ss:$8 sps:$4 sm:$0xff]  }
 0xcd7   :  { %10221 = vmatprep.subr.bf16.mxu0 %v14113_v4  ;;  %10624 = vmatprep.subr.bf16.mxu1 %v14170_v38 }
 0xcd8   :  { %10625 = vmatpush1.bf16.msra.mxu1 %v14168_v21 }
 0xcd9   :  { %10626 = vmatprep.subr.bf16.mxu1 %v14173_v34  ;;  %v20323_v34 = vld [vmem:[#allocation103_spill] sm:$0xff] }
 0xcda   :  { %10222 = vmatpush1.bf16.msra.mxu0 %v14111_v60 }
 0xcdb   :  { %10223 = vmatprep.subr.bf16.mxu0 %v14116_v18 }
 0xcdd   :  { %10173 = vmatmul.mubr.bf16.gmra.mrb[4].mxu0 %v19123_v42  ;;  %v14128_v42 = vld [vmem:[#allocation15 + $0x2e4] ss:$8 sps:$4 sm:$0xff]  }
 0xcde   :  { %10182 = vmatprep.mubr.bf16.mxu0 %v19137_v0  ;;  %10224 = vmatpush1.bf16.msra.mxu0 %v14114_v20  ;;  %v14131_v0 = vld [vmem:[#allocation15 + $0x2f4] ss:$8 sps:$4 sm:$0xff]  }
 0xcdf   :  { %10225 = vmatprep.subr.bf16.mxu0 %v14119_v27 }
 0xce2   :  { %10226 = vmatpush1.bf16.msra.mxu0 %v14117_v37  ;;  %v20317_v37 = vld [vmem:[#allocation58_spill] sm:$0xff] }
 0xce3   :  { %10227 = vmatprep.subr.bf16.mxu0 %v14122_v14 }
 0xce5   :  { %10183 = vmatmul.mubr.bf16.gmra.mrb[8].mxu0 %v19135_v10  ;;  %v9309_v10 = vmul.bf16 %v19071_v51, %v20240_v28  ;;  %v9315_v28 = vmul.bf16 %v19107_v12, %v20243_v1  ;;  %v9318_v51 = vmul.bf16 %v19121_v13, %v20244_v11  ;;  %v9321_v1 = vmul.bf16 %v19143_v56, %v20302_v8  ;;  %v14176_v12 = vld [vmem:[%s19495_s21 + $0xe4] ss:$8 sps:$4 sm:$0xff]  }
 0xce6   :  { %10192 = vmatprep.mubr.bf16.mxu0 %v19153_v63  ;;  %10228 = vmatpush1.bf16.msra.mxu0 %v14120_v62  ;;  %v9312_v63 = vmul.bf16 %v19085_v41, %v20241_v5  ;;  %v9317_v5 = vmul.bf16 %v19119_v44, %v20244_v11  ;;  %v9322_v41 = vmul.bf16 %v19145_v25, %v20302_v8  ;;  %v14174_v8 = vld [vmem:[%s19495_s21 + $0xe0] ss:$8 sps:$4 sm:$0xff]  }
 0xce7   :  { %10229 = vmatprep.subr.bf16.mxu0 %v14125_v47  ;;  %v9323_v11 = vmul.bf16 %v19151_v19, %v20303_v32  ;;  %v14177_v19 = vld [vmem:[%s19495_s21 + $0xf0] ss:$8 sps:$4 sm:$0xff]   ;;  %v19339_v44 = vrot.slane %v9485_v16, %v20306_v50  ;;  %v19342_v13 = vrot.slane %v9485_v16, %v20307_v22  ;;  %v20318_v47 = vld [vmem:[#allocation44_spill] sm:$0xff] }
 0xcea   :  { %10230 = vmatpush1.bf16.msra.mxu0 %v14123_v9 }
 0xceb   :  { %10231 = vmatprep.subr.bf16.mxu0 %v14128_v42  ;;  %v20319_v42 = vld [vmem:[#allocation94_spill] sm:$0xff] }
 0xced   :  { %10193 = vmatmul.mubr.bf16.gmra.mrb[12].mxu0 %v19147_v31  ;;  %v9313_v31 = vmul.bf16 %v19095_v55, %v20242_v3  ;;  %v9319_v3 = vmul.bf16 %v19131_v6, %v20245_v35  ;;  %v9324_v55 = vmul.bf16 %v19157_v15, %v20303_v32  ;;  %v14171_v35 = vld [vmem:[%s19495_s21 + $0xd0] ss:$8 sps:$4 sm:$0xff]   ;;  %v14179_v32 = vld [vmem:[%s19495_s21 + $0xf4] ss:$8 sps:$4 sm:$0xff]  }
 0xcee   :  { %10232 = vmatpush1.bf16.msra.mxu0 %v14126_v49  ;;  %10235 = vmatprep.mubr.bf16.mxu0 %v9310_v24 }
 0xcef   :  { %10233 = vmatprep.subr.bf16.mxu0 %v14131_v0  ;;  %10627 = vmatpush1.bf16.msra.mxu1 %v14171_v35 }
 0xcf0   :  { %10628 = vmatprep.subr.bf16.mxu1 %v14176_v12 }
 0xcf2   :  { %10234 = vmatpush1.bf16.msra.mxu0 %v14129_v40 }
 0xcf3   :  { %10629 = vmatpush1.bf16.msra.mxu1 %v14174_v8 }
 0xcf4   :  { %10630 = vmatprep.subr.bf16.mxu1 %v14179_v32 }
 0xcf5   :  { %10236 = vmatmul.mubr.bf16.vlgmr.msra.gmra.mrb[240].mxu0 %v9309_v10 }
 0xcf6   :  { %10245 = vmatprep.mubr.bf16.mxu0 %v9312_v63 }
 0xcf7   :  { %10631 = vmatpush1.bf16.msra.mxu1 %v14177_v19 }
 0xcfd   :  { %10246 = vmatmul.mubr.bf16.gmra.mrb[244].mxu0 %v9311_v59 }
 0xcfe   :  { %10255 = vmatprep.mubr.bf16.mxu0 %v9314_v53 }
 0xd05   :  { %10256 = vmatmul.mubr.bf16.gmra.mrb[248].mxu0 %v9313_v31 }
 0xd06   :  { %10265 = vmatprep.mubr.bf16.mxu0 %v9316_v43 }
 0xd0d   :  { %10266 = vmatmul.mubr.bf16.gmra.mrb[252].mxu0 %v9315_v28 }
 0xd0e   :  { %10275 = vmatprep.mubr.bf16.mxu0 %v9318_v51  ;;  %v20320_v51 = vld [vmem:[#allocation95_spill] sm:$0xff] }
 0xd15   :  { %10276 = vmatmul.mubr.bf16.gmra.mrb[0].mxu0 %v9317_v5 }
 0xd16   :  { %10285 = vmatprep.mubr.bf16.mxu0 %v9320_v54 }
 0xd1d   :  { %10286 = vmatmul.mubr.bf16.gmra.mrb[4].mxu0 %v9319_v3 }
 0xd1e   :  { %10295 = vmatprep.mubr.bf16.mxu0 %v9322_v41  ;;  %v20321_v41 = vld [vmem:[#allocation96_spill] sm:$0xff] }
 0xd25   :  { %10296 = vmatmul.mubr.bf16.gmra.mrb[8].mxu0 %v9321_v1 }
 0xd26   :  { %10305 = vmatprep.mubr.bf16.mxu0 %v9324_v55 }
 0xd2d   :  { %10306 = vmatmul.mubr.bf16.gmra.mrb[12].mxu0 %v9323_v11  ;;  %v20322_v11 = vld [vmem:[#allocation69_spill] sm:$0xff] }
 0xdc8   :  { %v10237_v6 = vpop.f32.mrb[240].mxu0 }
 0xdc9   :  { %v12887_v45 = vadd.f32 %v10237_v6, %v19339_v44  ;;  %v10239_v56 = vpop.f32.mrb[241].mxu0 }
 0xdca   :  { %v12888_v25 = vadd.f32 %v10239_v56, %v19342_v13  ;;  %v10241_v15 = vpop.f32.mrb[242].mxu0 }
 0xdcb   :  { %v10316_v39 = vadd.f32 %v12887_v45, %v18772_v26  ;;  %v12889_v58 = vadd.f32 %v10241_v15, %v19339_v44  ;;  %v10243_v57 = vpop.f32.mrb[243].mxu0 }
 0xdcc   :  { %v10317_v17 = vadd.f32 %v12888_v25, %v18776_v33  ;;  %v12890_v29 = vadd.f32 %v10243_v57, %v19342_v13  ;;  %v20324_v57 = vld [vmem:[#allocation102_spill] sm:$0xff] }
 0xdcd   :  { %v10318_v2 = vadd.f32 %v12889_v58, %v18808_v23  ;;  %v10348_v7 = vmax.f32 %v10316_v39, 0.0 }
 0xdce   :  { %v10319_v36 = vadd.f32 %v12890_v29, %v20316_v46  ;;  %v10349_v48 = vmax.f32 %v10317_v17, 0.0  ;;  %v20325_v46 = vld [vmem:[#allocation93_spill] sm:$0xff] }
 0xdcf   :  { %v10350_v4 = vmax.f32 %v10318_v2, 0.0 }
 0xdd0   :  { %v10351_v30 = vmax.f32 %v10319_v36, 0.0  ;;  %v10247_v60 = vpop.f32.mrb[244].mxu0 }
 0xdd1   :  { %v10380_v18 = vpack.c.bf16 %v10350_v4, %v10348_v7  ;;  %v12891_v61 = vadd.f32 %v10247_v60, %v19339_v44  ;;  %v10249_v26 = vpop.f32.mrb[245].mxu0  ;;  %v20326_v4 = vld [vmem:[#allocation71_spill] sm:$0xff] }
 0xdd2   :  { %v12892_v38 = vadd.f32 %v10249_v26, %v19342_v13  ;;  %v10251_v20 = vpop.f32.mrb[246].mxu0  ;;  %v10381_v27 = vpack.c.bf16 %v10351_v30, %v10349_v48  ;;  %v20327_v30 = vld [vmem:[#allocation68_spill] sm:$0xff] }
 0xdd3   :  { %v10320_v33 = vadd.f32 %v12891_v61, %v18800_v52  ;;  %v12893_v21 = vadd.f32 %v10251_v20, %v19339_v44  ;;  %v10253_v23 = vpop.f32.mrb[247].mxu0 }
 0xdd4   :  { %v10321_v14 = vadd.f32 %v12892_v38, %v20317_v37  ;;  %v12894_v62 = vadd.f32 %v10253_v23, %v19342_v13  ;;  %10632 = vmatprep.mubr.bf16.mxu1 %v10381_v27 }
 0xdd5   :  { %v10322_v9 = vadd.f32 %v12893_v21, %v20318_v47  ;;  %10633 = vmatmul.mubr.bf16.vlgmr.msra.gmra.mrb[208].mxu1 %v10380_v18  ;;  %v10352_v0 = vmax.f32 %v10320_v33, 0.0 }
 0xdd6   :  { %v10323_v49 = vadd.f32 %v12894_v62, %v20319_v42  ;;  %v10353_v40 = vmax.f32 %v10321_v14, 0.0  ;;  %v20328_v62 = vld [vmem:[#allocation67_spill] sm:$0xff] }
 0xdd7   :  { %v10354_v24 = vmax.f32 %v10322_v9, 0.0 }
 0xdd8   :  { %v10355_v10 = vmax.f32 %v10323_v49, 0.0  ;;  %v10257_v63 = vpop.f32.mrb[248].mxu0  ;;  %v20329_v49 = vld [vmem:[#allocation60_spill] sm:$0xff] }
 0xdd9   :  { %v12895_v52 = vadd.f32 %v10257_v63, %v19339_v44  ;;  %v10259_v59 = vpop.f32.mrb[249].mxu0  ;;  %v10382_v53 = vpack.c.bf16 %v10354_v24, %v10352_v0  ;;  %v20331_v63 = vld [vmem:[#allocation72_spill] sm:$0xff] }
 0xdda   :  { %v12896_v31 = vadd.f32 %v10259_v59, %v19342_v13  ;;  %v10261_v43 = vpop.f32.mrb[250].mxu0  ;;  %v10383_v28 = vpack.c.bf16 %v10355_v10, %v10353_v40  ;;  %v20330_v40 = vld [vmem:[#allocation75_spill] sm:$0xff] }
 0xddb   :  { %v10324_v5 = vadd.f32 %v12895_v52, %v20320_v51  ;;  %v12897_v54 = vadd.f32 %v10261_v43, %v19339_v44  ;;  %v10263_v3 = vpop.f32.mrb[251].mxu0 }
 0xddc   :  { %v10325_v1 = vadd.f32 %v12896_v31, %v20321_v41  ;;  %v12898_v55 = vadd.f32 %v10263_v3, %v19342_v13  ;;  %10642 = vmatprep.mubr.bf16.mxu1 %v10383_v28 }
 0xddd   :  { %v10326_v35 = vadd.f32 %v12897_v54, %v20322_v11  ;;  %10643 = vmatmul.mubr.bf16.gmra.mrb[212].mxu1 %v10382_v53  ;;  %v10356_v12 = vmax.f32 %v10324_v5, 0.0 }
 0xdde   :  { %v10327_v8 = vadd.f32 %v12898_v55, %v20323_v34  ;;  %v10357_v32 = vmax.f32 %v10325_v1, 0.0  ;;  %v20332_v55 = vld [vmem:[#allocation70_spill] sm:$0xff] }
 0xddf   :  { %v10358_v19 = vmax.f32 %v10326_v35, 0.0 }
 0xde0   :  { %v10359_v16 = vmax.f32 %v10327_v8, 0.0  ;;  %v10267_v6 = vpop.f32.mrb[252].mxu0  ;;  %v20333_v8 = vld [vmem:[#allocation73_spill] sm:$0xff] }
 0xde1   :  { %v12899_v45 = vadd.f32 %v10267_v6, %v19339_v44  ;;  %v10269_v56 = vpop.f32.mrb[253].mxu0  ;;  %v10384_v25 = vpack.c.bf16 %v10358_v19, %v10356_v12  ;;  %v20335_v6 = vld [vmem:[#allocation76_spill] sm:$0xff] }
 0xde2   :  { %v12900_v15 = vadd.f32 %v10269_v56, %v19342_v13  ;;  %v10271_v39 = vpop.f32.mrb[254].mxu0  ;;  %v10385_v58 = vpack.c.bf16 %v10359_v16, %v10357_v32  ;;  %v20334_v32 = vld [vmem:[#allocation79_spill] sm:$0xff] }
 0xde3   :  { %v10328_v17 = vadd.f32 %v12899_v45, %v20324_v57  ;;  %v12901_v29 = vadd.f32 %v10271_v39, %v19339_v44  ;;  %v10273_v2 = vpop.f32.mrb[255].mxu0 }
 0xde4   :  { %v10329_v36 = vadd.f32 %v12900_v15, %v20325_v46  ;;  %v12902_v7 = vadd.f32 %v10273_v2, %v19342_v13  ;;  %10652 = vmatprep.mubr.bf16.mxu1 %v10385_v58 }
 0xde5   :  { %v10330_v48 = vadd.f32 %v12901_v29, %v20326_v4  ;;  %10653 = vmatmul.mubr.bf16.gmra.mrb[216].mxu1 %v10384_v25  ;;  %v10360_v18 = vmax.f32 %v10328_v17, 0.0 }
 0xde6   :  { %v10331_v60 = vadd.f32 %v12902_v7, %v20327_v30  ;;  %v10361_v26 = vmax.f32 %v10329_v36, 0.0  ;;  %v20336_v7 = vld [vmem:[#allocation74_spill] sm:$0xff] }
 0xde7   :  { %v10362_v61 = vmax.f32 %v10330_v48, 0.0 }
 0xde8   :  { %v10363_v38 = vmax.f32 %v10331_v60, 0.0  ;;  %v10277_v20 = vpop.f32.mrb[0].mxu0  ;;  %v20337_v60 = vld [vmem:[#allocation77_spill] sm:$0xff] }
 0xde9   :  { %v12903_v27 = vadd.f32 %v10277_v20, %v19339_v44  ;;  %v10279_v33 = vpop.f32.mrb[1].mxu0  ;;  %v10386_v21 = vpack.c.bf16 %v10362_v61, %v10360_v18  ;;  %v20339_v20 = vld [vmem:[#allocation80_spill] sm:$0xff] }
 0xdea   :  { %v12904_v23 = vadd.f32 %v10279_v33, %v19342_v13  ;;  %v10281_v37 = vpop.f32.mrb[2].mxu0  ;;  %v10387_v14 = vpack.c.bf16 %v10363_v38, %v10361_v26  ;;  %v20338_v26 = vld [vmem:[#allocation85_spill] sm:$0xff] }
 0xdeb   :  { %v10332_v47 = vadd.f32 %v12903_v27, %v20328_v62  ;;  %v12905_v9 = vadd.f32 %v10281_v37, %v19339_v44  ;;  %v10283_v42 = vpop.f32.mrb[3].mxu0 }
 0xdec   :  { %v10333_v0 = vadd.f32 %v12904_v23, %v20329_v49  ;;  %v12906_v24 = vadd.f32 %v10283_v42, %v19342_v13  ;;  %10662 = vmatprep.mubr.bf16.mxu1 %v10387_v14 }
 0xded   :  { %v10334_v10 = vadd.f32 %v12905_v9, %v20330_v40  ;;  %10663 = vmatmul.mubr.bf16.gmra.mrb[220].mxu1 %v10386_v21  ;;  %v10364_v59 = vmax.f32 %v10332_v47, 0.0 }
 0xdee   :  { %v10335_v52 = vadd.f32 %v12906_v24, %v20331_v63  ;;  %v10365_v31 = vmax.f32 %v10333_v0, 0.0  ;;  %v20340_v24 = vld [vmem:[#allocation78_spill] sm:$0xff] }
 0xdef   :  { %v10366_v53 = vmax.f32 %v10334_v10, 0.0 }
 0xdf0   :  { %v10367_v43 = vmax.f32 %v10335_v52, 0.0  ;;  %v10287_v28 = vpop.f32.mrb[4].mxu0  ;;  %v20341_v52 = vld [vmem:[#allocation81_spill] sm:$0xff] }
 0xdf1   :  { %v12907_v51 = vadd.f32 %v10287_v28, %v19339_v44  ;;  %v10289_v5 = vpop.f32.mrb[5].mxu0  ;;  %v10388_v54 = vpack.c.bf16 %v10366_v53, %v10364_v59  ;;  %v20343_v28 = vld [vmem:[#allocation88_spill] sm:$0xff] }
 0xdf2   :  { %v12908_v3 = vadd.f32 %v10289_v5, %v19342_v13  ;;  %v10291_v41 = vpop.f32.mrb[6].mxu0  ;;  %v10389_v1 = vpack.c.bf16 %v10367_v43, %v10365_v31  ;;  %v20342_v31 = vld [vmem:[#allocation41_spill] sm:$0xff] }
 0xdf3   :  { %v10336_v11 = vadd.f32 %v12907_v51, %v20332_v55  ;;  %v12909_v35 = vadd.f32 %v10291_v41, %v19339_v44  ;;  %v10293_v34 = vpop.f32.mrb[7].mxu0 }
 0xdf4   :  { %v10337_v12 = vadd.f32 %v12908_v3, %v20333_v8  ;;  %v12910_v19 = vadd.f32 %v10293_v34, %v19342_v13  ;;  %10672 = vmatprep.mubr.bf16.mxu1 %v10389_v1 }
 0xdf5   :  { %v10338_v16 = vadd.f32 %v12909_v35, %v20334_v32  ;;  %10673 = vmatmul.mubr.bf16.gmra.mrb[224].mxu1 %v10388_v54  ;;  %v10368_v56 = vmax.f32 %v10336_v11, 0.0 }
 0xdf6   :  { %v10339_v45 = vadd.f32 %v12910_v19, %v20335_v6  ;;  %v10369_v15 = vmax.f32 %v10337_v12, 0.0 }
 0xdf7   :  { %v10370_v25 = vmax.f32 %v10338_v16, 0.0 }
 0xdf8   :  { %v10371_v39 = vmax.f32 %v10339_v45, 0.0  ;;  %v10297_v58 = vpop.f32.mrb[8].mxu0 }
 0xdf9   :  { %v12911_v57 = vadd.f32 %v10297_v58, %v19339_v44  ;;  %v10299_v17 = vpop.f32.mrb[9].mxu0  ;;  %v10390_v29 = vpack.c.bf16 %v10370_v25, %v10368_v56 }
 0xdfa   :  { %v12912_v2 = vadd.f32 %v10299_v17, %v19342_v13  ;;  %v10301_v46 = vpop.f32.mrb[10].mxu0  ;;  %v10391_v36 = vpack.c.bf16 %v10371_v39, %v10369_v15 }
 0xdfb   :  { %v10340_v4 = vadd.f32 %v12911_v57, %v20336_v7  ;;  %v12913_v48 = vadd.f32 %v10301_v46, %v19339_v44  ;;  %v10303_v30 = vpop.f32.mrb[11].mxu0 }
 0xdfc   :  { %v10341_v18 = vadd.f32 %v12912_v2, %v20337_v60  ;;  %v12914_v61 = vadd.f32 %v10303_v30, %v19342_v13  ;;  %10682 = vmatprep.mubr.bf16.mxu1 %v10391_v36 }
 0xdfd   :  { %v10342_v38 = vadd.f32 %v12913_v48, %v20338_v26  ;;  %10683 = vmatmul.mubr.bf16.gmra.mrb[228].mxu1 %v10390_v29  ;;  %v10372_v33 = vmax.f32 %v10340_v4, 0.0 }
 0xdfe   :  { %v10343_v27 = vadd.f32 %v12914_v61, %v20339_v20  ;;  %v10373_v23 = vmax.f32 %v10341_v18, 0.0 }
 0xdff   :  { %v10374_v21 = vmax.f32 %v10342_v38, 0.0 }
 0xe00   :  { %v10375_v37 = vmax.f32 %v10343_v27, 0.0  ;;  %v10307_v14 = vpop.f32.mrb[12].mxu0 }
 0xe01   :  { %v12915_v62 = vadd.f32 %v10307_v14, %v19339_v44  ;;  %v10309_v47 = vpop.f32.mrb[13].mxu0  ;;  %v10392_v9 = vpack.c.bf16 %v10374_v21, %v10372_v33 }
 0xe02   :  { %v12916_v42 = vadd.f32 %v10309_v47, %v19342_v13  ;;  %v10311_v49 = vpop.f32.mrb[14].mxu0  ;;  %v10393_v0 = vpack.c.bf16 %v10375_v37, %v10373_v23 }
 0xe03   :  { %v10344_v40 = vadd.f32 %v12915_v62, %v20340_v24  ;;  %v12917_v10 = vadd.f32 %v10311_v49, %v19339_v44  ;;  %v10313_v63 = vpop.f32.mrb[15].mxu0  ;;  %v20344_v44 = vmov 0  }
 0xe04   :  { %v10345_v59 = vadd.f32 %v12916_v42, %v20341_v52  ;;  %v12918_v53 = vadd.f32 %v10313_v63, %v19342_v13  ;;  %10692 = vmatprep.mubr.bf16.mxu1 %v10393_v0  ;;  %v10428_v13 = vld [vmem:[%s19496_s22] sm:$0x3] }
 0xe05   :  { %v10346_v43 = vadd.f32 %v12917_v10, %v20342_v31  ;;  %10693 = vmatmul.mubr.bf16.gmra.mrb[232].mxu1 %v10392_v9  ;;  %v10376_v5 = vmax.f32 %v10344_v40, 0.0  ;;  %v19413_v11 = vrot.slane %v10428_v13, %v20306_v50  ;;  %v19416_v35 = vrot.slane %v10428_v13, %v20307_v22 }
 0xe06   :  { %v10347_v51 = vadd.f32 %v12918_v53, %v20343_v28  ;;  %v10377_v3 = vmax.f32 %v10345_v59, 0.0 }
 0xe07   :  { %v10378_v54 = vmax.f32 %v10346_v43, 0.0 }
 0xe08   :  { %v10379_v41 = vmax.f32 %v10347_v51, 0.0 }
 0xe09   :  { %v10394_v1 = vpack.c.bf16 %v10378_v54, %v10376_v5 }
 0xe0a   :  { %v10395_v55 = vpack.c.bf16 %v10379_v41, %v10377_v3 }
 0xe0c   :  { %10702 = vmatprep.mubr.bf16.mxu1 %v10395_v55 }
 0xe0d   :  { %10703 = vmatmul.mubr.bf16.gmra.mrb[236].mxu1 %v10394_v1 }
 0xe0e   :  { %10794 = vmatprep.mubr.bf16.mxu1 %v20344_v44 }
 0xea8   :  { %v10634_v34 = vpop.f32.mrb[208].mxu1 }
 0xea9   :  { %v10635_v8 = vadd.f32 %v10634_v34, %v19413_v11  ;;  %v10636_v12 = vpop.f32.mrb[209].mxu1 }
 0xeaa   :  { %v10637_v19 = vadd.f32 %v10636_v12, %v19416_v35  ;;  %v10638_v32 = vpop.f32.mrb[210].mxu1 }
 0xeab   :  { %v10639_v16 = vadd.f32 %v10638_v32, %v19413_v11  ;;  %v10640_v6 = vpop.f32.mrb[211].mxu1  ;;  %v10713_v56 = vmax.f32 %v10635_v8, 0.0 }
 0xeac   :  { %v10641_v45 = vadd.f32 %v10640_v6, %v19416_v35  ;;  %v10714_v15 = vmax.f32 %v10637_v19, 0.0 }
 0xead   :  { %v10715_v25 = vmax.f32 %v10639_v16, 0.0 }
 0xeae   :  { %v10716_v50 = vmax.f32 %v10641_v45, 0.0 }
 0xeaf   :  { %v10746_v39 = vpack.c.bf16 %v10715_v25, %v10713_v56 }
 0xeb0   :  { %v10747_v58 = vpack.c.bf16 %v10716_v50, %v10714_v15  ;;  %v10644_v22 = vpop.f32.mrb[212].mxu1 }
 0xeb1   :  { %v10645_v57 = vadd.f32 %v10644_v22, %v19413_v11  ;;  %v10646_v17 = vpop.f32.mrb[213].mxu1 }
 0xeb2   :  { %v10647_v29 = vadd.f32 %v10646_v17, %v19416_v35  ;;  %v10648_v2 = vpop.f32.mrb[214].mxu1  ;;  %10762 = vmatprep.subr.bf16.mxu1 %v10747_v58 }
 0xeb3   :  { %v10649_v46 = vadd.f32 %v10648_v2, %v19413_v11  ;;  %v10650_v36 = vpop.f32.mrb[215].mxu1  ;;  %10763 = vmatpush1.bf16.msra.mxu1 %v10746_v39  ;;  %v10717_v4 = vmax.f32 %v10645_v57, 0.0 }
 0xeb4   :  { %v10651_v7 = vadd.f32 %v10650_v36, %v19416_v35  ;;  %v10718_v30 = vmax.f32 %v10647_v29, 0.0 }
 0xeb5   :  { %v10719_v48 = vmax.f32 %v10649_v46, 0.0 }
 0xeb6   :  { %v10720_v60 = vmax.f32 %v10651_v7, 0.0 }
 0xeb7   :  { %v10748_v18 = vpack.c.bf16 %v10719_v48, %v10717_v4 }
 0xeb8   :  { %v10749_v61 = vpack.c.bf16 %v10720_v60, %v10718_v30  ;;  %v10654_v26 = vpop.f32.mrb[216].mxu1 }
 0xeb9   :  { %v10655_v38 = vadd.f32 %v10654_v26, %v19413_v11  ;;  %v10656_v20 = vpop.f32.mrb[217].mxu1 }
 0xeba   :  { %v10657_v27 = vadd.f32 %v10656_v20, %v19416_v35  ;;  %v10658_v33 = vpop.f32.mrb[218].mxu1  ;;  %10764 = vmatprep.subr.bf16.mxu1 %v10749_v61 }
 0xebb   :  { %v10659_v21 = vadd.f32 %v10658_v33, %v19413_v11  ;;  %v10660_v23 = vpop.f32.mrb[219].mxu1  ;;  %10765 = vmatpush1.bf16.msra.mxu1 %v10748_v18  ;;  %v10721_v14 = vmax.f32 %v10655_v38, 0.0 }
 0xebc   :  { %v10661_v37 = vadd.f32 %v10660_v23, %v19416_v35  ;;  %v10722_v47 = vmax.f32 %v10657_v27, 0.0 }
 0xebd   :  { %v10723_v62 = vmax.f32 %v10659_v21, 0.0 }
 0xebe   :  { %v10724_v9 = vmax.f32 %v10661_v37, 0.0 }
 0xebf   :  { %v10750_v42 = vpack.c.bf16 %v10723_v62, %v10721_v14 }
 0xec0   :  { %v10751_v49 = vpack.c.bf16 %v10724_v9, %v10722_v47  ;;  %v10664_v0 = vpop.f32.mrb[220].mxu1 }
 0xec1   :  { %v10665_v24 = vadd.f32 %v10664_v0, %v19413_v11  ;;  %v10666_v40 = vpop.f32.mrb[221].mxu1 }
 0xec2   :  { %v10667_v10 = vadd.f32 %v10666_v40, %v19416_v35  ;;  %v10668_v63 = vpop.f32.mrb[222].mxu1  ;;  %10766 = vmatprep.subr.bf16.mxu1 %v10751_v49 }
 0xec3   :  { %v10669_v52 = vadd.f32 %v10668_v63, %v19413_v11  ;;  %v10670_v59 = vpop.f32.mrb[223].mxu1  ;;  %10767 = vmatpush1.bf16.msra.mxu1 %v10750_v42  ;;  %v10725_v31 = vmax.f32 %v10665_v24, 0.0 }
 0xec4   :  { %v10671_v53 = vadd.f32 %v10670_v59, %v19416_v35  ;;  %v10726_v28 = vmax.f32 %v10667_v10, 0.0 }
 0xec5   :  { %v10727_v43 = vmax.f32 %v10669_v52, 0.0 }
 0xec6   :  { %v10728_v51 = vmax.f32 %v10671_v53, 0.0 }
 0xec7   :  { %v10752_v5 = vpack.c.bf16 %v10727_v43, %v10725_v31  ;;  %v14180_v31 = vld [vmem:[#allocation17 + $0x40] sm:$0xff]  }
 0xec8   :  { %v10753_v54 = vpack.c.bf16 %v10728_v51, %v10726_v28  ;;  %v10674_v3 = vpop.f32.mrb[224].mxu1  ;;  %v10745_v43 = vld [vmem:[%s20345_s7] sm:$0xf]  ;;  %v14183_v51 = vld [vmem:[#allocation17 + $0x8] sm:$0xff]  }
 0xec9   :  { %v10675_v41 = vadd.f32 %v10674_v3, %v19413_v11  ;;  %v10676_v1 = vpop.f32.mrb[225].mxu1  ;;  %v14181_v28 = vld [vmem:[#allocation17] sm:$0xff]   ;;  %v14187_v3 = vld [vmem:[#allocation17 + $0x18] sm:$0xff]  }
 0xeca   :  { %v10677_v55 = vadd.f32 %v10676_v1, %v19416_v35  ;;  %v10678_v44 = vpop.f32.mrb[226].mxu1  ;;  %10768 = vmatprep.subr.bf16.mxu1 %v10753_v54  ;;  %v14186_v54 = vld [vmem:[#allocation17 + $0x58] sm:$0xff]   ;;  %v14189_v1 = vld [vmem:[#allocation17 + $0x20] sm:$0xff]  }
 0xecb   :  { %v10679_v13 = vadd.f32 %v10678_v44, %v19413_v11  ;;  %v10680_v34 = vpop.f32.mrb[227].mxu1  ;;  %10769 = vmatpush1.bf16.msra.mxu1 %v10752_v5  ;;  %v10729_v12 = vmax.f32 %v10675_v41, 0.0  ;;  %v14185_v5 = vld [vmem:[#allocation17 + $0x10] sm:$0xff]   ;;  %v14188_v41 = vld [vmem:[#allocation17 + $0x60] sm:$0xff]   ;;  %v14191_v44 = vld [vmem:[#allocation17 + $0x28] sm:$0xff]  }
 0xecc   :  { %v10681_v8 = vadd.f32 %v10680_v34, %v19416_v35  ;;  %v10730_v32 = vmax.f32 %v10677_v55, 0.0  ;;  %v14190_v55 = vld [vmem:[#allocation17 + $0x68] sm:$0xff]   ;;  %v14193_v34 = vld [vmem:[#allocation17 + $0x30] sm:$0xff]  }
 0xecd   :  { %v10731_v19 = vmax.f32 %v10679_v13, 0.0  ;;  %v14192_v13 = vld [vmem:[#allocation17 + $0x70] sm:$0xff]  }
 0xece   :  { %v10732_v16 = vmax.f32 %v10681_v8, 0.0  ;;  %v14194_v8 = vld [vmem:[#allocation17 + $0x78] sm:$0xff]  }
 0xecf   :  { %v10754_v6 = vpack.c.bf16 %v10731_v19, %v10729_v12  ;;  %v14195_v12 = vld [vmem:[#allocation17 + $0x38] sm:$0xff]   ;;  %v14481_v19 = vmov 0.0|0.0  }
 0xed0   :  { %v10755_v45 = vpack.c.bf16 %v10732_v16, %v10730_v32  ;;  %v10684_v56 = vpop.f32.mrb[228].mxu1  ;;  %v10981_v32 = vld [vmem:[#allocation18] sm:$0xff]  ;;  %v10982_v16 = vld [vmem:[#allocation18 + $0x8] sm:$0xff] }
 0xed1   :  { %v10685_v25 = vadd.f32 %v10684_v56, %v19413_v11  ;;  %v10686_v15 = vpop.f32.mrb[229].mxu1 }
 0xed2   :  { %v10687_v50 = vadd.f32 %v10686_v15, %v19416_v35  ;;  %v10688_v39 = vpop.f32.mrb[230].mxu1  ;;  %10770 = vmatprep.subr.bf16.mxu1 %v10755_v45  ;;  %v12768_v15 = vpack.c.bf16 %v10982_v16, %v10981_v32 }
 0xed3   :  { %v10689_v58 = vadd.f32 %v10688_v39, %v19413_v11  ;;  %v10690_v22 = vpop.f32.mrb[231].mxu1  ;;  %10771 = vmatpush1.bf16.msra.mxu1 %v10754_v6  ;;  %v10733_v17 = vmax.f32 %v10685_v25, 0.0 }
 0xed4   :  { %v10691_v57 = vadd.f32 %v10690_v22, %v19416_v35  ;;  %v10734_v2 = vmax.f32 %v10687_v50, 0.0  ;;  %v10984_v22 = vld [vmem:[#allocation18 + $0x18] sm:$0xff] }
 0xed5   :  { %v10735_v29 = vmax.f32 %v10689_v58, 0.0  ;;  %v10983_v58 = vld [vmem:[#allocation18 + $0x10] sm:$0xff] }
 0xed6   :  { %v10736_v46 = vmax.f32 %v10691_v57, 0.0  ;;  %v12771_v57 = vpack.c.bf16 %v10984_v22, %v10983_v58 }
 0xed7   :  { %v10756_v36 = vpack.c.bf16 %v10735_v29, %v10733_v17  ;;  %v10985_v17 = vld [vmem:[#allocation18 + $0x20] sm:$0xff]  ;;  %v10986_v29 = vld [vmem:[#allocation18 + $0x28] sm:$0xff] }
 0xed8   :  { %v10757_v7 = vpack.c.bf16 %v10736_v46, %v10734_v2  ;;  %v10694_v4 = vpop.f32.mrb[232].mxu1  ;;  %v12774_v2 = vpack.c.bf16 %v10986_v29, %v10985_v17  ;;  %v10987_v46 = vld [vmem:[#allocation18 + $0x30] sm:$0xff] }
 0xed9   :  { %v10695_v48 = vadd.f32 %v10694_v4, %v19413_v11  ;;  %v10696_v30 = vpop.f32.mrb[233].mxu1  ;;  %v10989_v4 = vld [vmem:[#allocation18 + $0x40] sm:$0xff] }
 0xeda   :  { %v10697_v60 = vadd.f32 %v10696_v30, %v19416_v35  ;;  %v10698_v18 = vpop.f32.mrb[234].mxu1  ;;  %10772 = vmatprep.subr.bf16.mxu1 %v10757_v7 }
 0xedb   :  { %v10699_v61 = vadd.f32 %v10698_v18, %v19413_v11  ;;  %v10700_v26 = vpop.f32.mrb[235].mxu1  ;;  %10773 = vmatpush1.bf16.msra.mxu1 %v10756_v36  ;;  %v10737_v20 = vmax.f32 %v10695_v48, 0.0  ;;  %v10988_v36 = vld [vmem:[#allocation18 + $0x38] sm:$0xff]  ;;  %v10990_v48 = vld [vmem:[#allocation18 + $0x48] sm:$0xff] }
 0xedc   :  { %v10701_v38 = vadd.f32 %v10700_v26, %v19416_v35  ;;  %v10738_v33 = vmax.f32 %v10697_v60, 0.0  ;;  %v12777_v7 = vpack.c.bf16 %v10988_v36, %v10987_v46  ;;  %v12780_v30 = vpack.c.bf16 %v10990_v48, %v10989_v4  ;;  %v10991_v60 = vld [vmem:[#allocation18 + $0x50] sm:$0xff]  ;;  %v10992_v18 = vld [vmem:[#allocation18 + $0x58] sm:$0xff]  ;;  %v10993_v26 = vld [vmem:[#allocation18 + $0x60] sm:$0xff] }
 0xedd   :  { %v10739_v27 = vmax.f32 %v10699_v61, 0.0  ;;  %v12783_v61 = vpack.c.bf16 %v10992_v18, %v10991_v60 }
 0xede   :  { %v10740_v21 = vmax.f32 %v10701_v38, 0.0  ;;  %v10994_v38 = vld [vmem:[#allocation18 + $0x68] sm:$0xff] }
 0xedf   :  { %v10758_v23 = vpack.c.bf16 %v10739_v27, %v10737_v20  ;;  %v10995_v20 = vld [vmem:[#allocation18 + $0x70] sm:$0xff]  ;;  %v12786_v27 = vpack.c.bf16 %v10994_v38, %v10993_v26 }
 0xee0   :  { %v10759_v37 = vpack.c.bf16 %v10740_v21, %v10738_v33  ;;  %v10704_v14 = vpop.f32.mrb[236].mxu1  ;;  %v10996_v33 = vld [vmem:[#allocation18 + $0x78] sm:$0xff]  ;;  %v20346_v21 = vmov 0.0  }
 0xee1   :  { %v10705_v62 = vadd.f32 %v10704_v14, %v19413_v11  ;;  %v10706_v47 = vpop.f32.mrb[237].mxu1  ;;  %v11910_v14 = vld [vmem:[%s19498_s24] ss:$0 sm:$0xff]  ;;  %s14483_s24 = smov [#allocation20]  }
 0xee2   :  { %v10707_v9 = vadd.f32 %v10706_v47, %v19416_v35  ;;  %v10708_v42 = vpop.f32.mrb[238].mxu1  ;;  %10774 = vmatprep.subr.bf16.mxu1 %v10759_v37  ;;  %s11098_s13 = sshll.u32 %s14483_s24, 4  ;;  %s11099_s13 = int_to_ptr.vmem [resolvable:$true] %s11098_s13 }
 0xee3   :  { %v10709_v49 = vadd.f32 %v10708_v42, %v19413_v11  ;;  %v10710_v0 = vpop.f32.mrb[239].mxu1  ;;  %10775 = vmatpush1.bf16.msra.mxu1 %v10758_v23  ;;  %v10741_v40 = vmax.f32 %v10705_v62, 0.0  ;;  %v14182_v11 = vld [vmem:[#allocation17 + $0x48] sm:$0xff]   ;;  %v12789_v23 = vpack.c.bf16 %v10996_v33, %v10995_v20  ;;  %s14429_s15 = scalar_lea.vmem %s11099_s13, 128  ;;  %p14434_p11 = scmp.lt.s32.totalorder %s11099_s13, %s11099_s13 }
 0xee4   :  { %v10711_v24 = vadd.f32 %v10710_v0, %v19416_v35  ;;  %v10742_v63 = vmax.f32 %v10707_v9, 0.0  ;;  %v14184_v35 = vld [vmem:[#allocation17 + $0x50] sm:$0xff]   ;;  %p14430_p10 = scmp.ne.s32.totalorder %s11099_s13, %s14429_s15  ;;  %p14435_p12 = scmp.lt.s32.totalorder %s14429_s15, %s14429_s15 }
 0xee5   :  { %v10743_v10 = vmax.f32 %v10709_v49, 0.0 }
 0xee6   :  { %v10744_v52 = vmax.f32 %v10711_v24, 0.0  ;;  %v20347_v24 = vlaneseq  ;;  %p14436_p13 = por %p14435_p12, %p14434_p11 }
 0xee7   :  { %v10760_v59 = vpack.c.bf16 %v10743_v10, %v10741_v40  ;;  %v11927_v10 = vld [vmem:[%s20348_s1] ss:$0 sm:$0xff] }
 0xee8   :  { %v10761_v53 = vpack.c.bf16 %v10744_v52, %v10742_v63  ;;  %v11075_v40 = vand.u32 127, %v20347_v24  ;;  %p14437_p0 = pnand %p14436_p13, %p14430_p10 }
 0xeea   :  { %10776 = vmatprep.subr.bf16.mxu1 %v10761_v53  ;;  %vm11076_vm10 = vcmp.ge.s32.totalorder %v11075_v40, 3  ;;  %vm11077_vm11 = vcmp.lt.s32.totalorder %v11075_v40, 7 }
 0xeeb   :  { %10777 = vmatpush1.bf16.msra.mxu1 %v10760_v59  ;;  %vm11078_vm12 = vmand %vm11076_vm10, %vm11077_vm11 }
 0xeec   :  { %12571 = vmatprep.subr.bf16.mxu1 %v14180_v31  ;;  %v11928_v53 = vsel %vm11078_vm12, 1.0, %v20346_v21 }
 0xeee   :  { %10795 = vmatmul.mubr.bf16.vlgmr.msra.gmra.mrb[240].mxu1 %v10745_v43 }
 0xeef   :  { %12572 = vmatpush3.bf16.msra.mxu1 %v14181_v28 }
 0xef0   :  { %12573 = vmatprep.subr.bf16.mxu1 %v14182_v11 }
 0xef3   :  { %12574 = vmatpush3.bf16.msra.mxu1 %v14183_v51 }
 0xef4   :  { %12575 = vmatprep.subr.bf16.mxu1 %v14184_v35 }
 0xef7   :  { %12576 = vmatpush3.bf16.msra.mxu1 %v14185_v5 }
 0xef8   :  { %12577 = vmatprep.subr.bf16.mxu1 %v14186_v54 }
 0xefb   :  { %12578 = vmatpush3.bf16.msra.mxu1 %v14187_v3 }
 0xefc   :  { %12579 = vmatprep.subr.bf16.mxu1 %v14188_v41 }
 0xeff   :  { %12580 = vmatpush3.bf16.msra.mxu1 %v14189_v1 }
 0xf00   :  { %12581 = vmatprep.subr.bf16.mxu1 %v14190_v55 }
 0xf03   :  { %12582 = vmatpush3.bf16.msra.mxu1 %v14191_v44 }
 0xf04   :  { %12583 = vmatprep.subr.bf16.mxu1 %v14192_v13 }
 0xf07   :  { %12584 = vmatpush3.bf16.msra.mxu1 %v14193_v34 }
 0xf08   :  { %12585 = vmatprep.subr.bf16.mxu1 %v14194_v8 }
 0xf0b   :  { %12586 = vmatpush3.bf16.msra.mxu1 %v14195_v12 }
 0xf0c   :  { %12767 = vmatprep.subr.bf16.mxu1 %v14481_v19 }
 0xfc1   :  { %v10796_v6 = vpop.f32.mrb[240].mxu1 }
 0xfc2   :  { %v10798_v45 = vpop.f32.mrb[241].mxu1  ;;  %v10803_v50 = vpack.c.bf16 %v10796_v6, %v10796_v6 }
 0xfc3   :  { %v10804_v56 = vpack.c.bf16 %v10798_v45, %v10798_v45  ;;  %v10800_v25 = vpop.f32.mrb[242].mxu1 }
 0xfc4   :  { %v10801_v39 = vpop.f32.mrb[243].mxu1 }
 0xfc5   :  { %10972 = vmatprep.mubr.bf16.mxu1 %v10804_v56 }
 0xfc6   :  { %10973 = vmatmul.mubr.bf16.vlgmr.msra.gmra.mrb[244].mxu1 %v10803_v50 }
 0xfc7   :  { %12769 = vmatpush3.bf16.msra.mxu1 %v12768_v15  ;;  %12764 = vmatprep.mubr.msk.f32.mxu1 %vm14482_vm9, %v20346_v21 }
 0xfc8   :  { %12770 = vmatprep.subr.bf16.mxu1 %v14481_v19 }
 0xfcb   :  { %12772 = vmatpush3.bf16.msra.mxu1 %v12771_v57 }
 0xfcc   :  { %12773 = vmatprep.subr.bf16.mxu1 %v14481_v19 }
 0xfcf   :  { %12775 = vmatpush3.bf16.msra.mxu1 %v12774_v2 }
 0xfd0   :  { %12776 = vmatprep.subr.bf16.mxu1 %v14481_v19 }
 0xfd3   :  { %12778 = vmatpush3.bf16.msra.mxu1 %v12777_v7 }
 0xfd4   :  { %12779 = vmatprep.subr.bf16.mxu1 %v14481_v19 }
 0xfd7   :  { %12781 = vmatpush3.bf16.msra.mxu1 %v12780_v30 }
 0xfd8   :  { %12782 = vmatprep.subr.bf16.mxu1 %v14481_v19 }
 0xfdb   :  { %12784 = vmatpush3.bf16.msra.mxu1 %v12783_v61 }
 0xfdc   :  { %12785 = vmatprep.subr.bf16.mxu1 %v14481_v19 }
 0xfdf   :  { %12787 = vmatpush3.bf16.msra.mxu1 %v12786_v27 }
 0xfe0   :  { %12788 = vmatprep.subr.bf16.mxu1 %v14481_v19 }
 0xfe3   :  { %12790 = vmatpush3.bf16.msra.mxu1 %v12789_v23 }
0x1099   :  { %v12587_v37 = vpop.f32.mrb[244].mxu1 }
0x109a   :  { %v12588_v62 = vpop.f32.mrb[245].mxu1 }
0x109b   :  { %v12589_v47 = vadd.f32 %v12588_v62, %v12587_v37  ;;  %v12590_v9 = vpop.f32.mrb[246].mxu1 }
0x109c   :  { %v12591_v42 = vpop.f32.mrb[247].mxu1 }
0x109d   :  { %v10975_v49 = vadd.f32 %v12589_v47, %v11910_v14 }
0x109f   :  { %v10980_v0 = vmax.f32 %v10975_v49, 0.0 }
0x10a1   :  { %12765 = vmatmul.mubr.f32.vlgmr.msra.gmra.mrb[248].mxu1 %v10980_v0 }
0x1174   :  { %v11070_v63 = vpop.f32.mrb[248].mxu1 }
0x1175   :  { %v11071_v52 = vadd.f32 %v11927_v10, %v11070_v63  ;;  %v12766_v59 = vpop.f32.mrb[249].mxu1 }
0x1177   :  { %v11081_v31 = vmul.f32 %v11071_v52, %v11071_v52 }
0x1179   :  { %v11082_v43 = vmul.f32 %v11928_v53, %v11081_v31 }
0x117b   :  { %11083 = vadd.xlane.f32.xlu0 %v11082_v43 }
0x1208   :  { %v11084_v28 = vpop.xlane.xlu0 %11083 }
0x1209   :  { %v11085_v11 = vmax.f32 %v11084_v28, 1e-12 }
0x120b   :  { %14196 = vrsqrt.f32 %v11085_v11 }
0x1215   :  { %v14197_v51 = vpop.eup %14196 }
0x1216   :  { %v11929_v35 = vadd.f32 -1.0, %v14197_v51 }
0x1218   :  { %v11088_v5 = vmul.f32 %v11929_v35, %v11928_v53 }
0x121a   :  { %v11089_v54 = vadd.f32 1.0, %v11088_v5 }
0x121c   :  { %v11090_v3 = vmul.f32 %v11089_v54, %v11071_v52 }
0x121e   :  { %11091 = vst [vmem:[#allocation20] sm:$0xff] %v11090_v3 }
0x121f   :  { %14440 = shalt.err (!%p14437_p0)
}
0x1220   :  { %s20349_s14 = sld [smem:[#allocation121_spill]] }
0x1226   :  { %s14441_s26 = scalar_lea.hbm %s20349_s14, 128 }
0x1227   :  { %p14442_p1 = scmp.ne.s32.totalorder %s20349_s14, %s14441_s26  ;;  %p14445_p2 = scmp.lt.u32.totalorder %s14441_s26, %s20349_s14 }
0x1229   :  { %p14447_p3 = pnand %p14445_p2, %p14442_p1 }
0x122b   :  { %14450 = shalt.err (!%p14447_p3)
}
0x122c   :  { %11101 = dma.vmem_to_hbm [thread:$0]  %s11099_s13, 128, %s20349_s14, [#allocation5]  }
0x122d   :  { %14463 = dma.done.wait [#allocation5], 128  }
0x122e   :  { %14464 = vsyncadd [#allocation5], 4294967168 }
0x122f   :  { %11105 = vsyncpa [#allocation4], 1 }
0x1230   :  { %11106 = vsyncpa [#allocation7], 1 }
0x1231   :  { %11107 = vsyncpa [#allocation10], 1 }
0x1232   :  { %11108 = vsyncpa [#allocation13], 1 }
0x1233   :  { %11109 = vsyncpa [#allocation16], 1 }
0x1234   :  { %11110 = vsyncpa [#allocation19], 1 }
0x1235   :  { %11111 = vsyncpa [#allocation5], 1 }

</bundles_post_ra>
